<compile_context>
chip_gen: v5e
topology: v5e:2x2
jax: 0.10.0
libtpu: 0.0.40
codegen_flags: <defaults>
</compile_context>

<pallas_src>
import jax
import jax.numpy as jnp
from jax.experimental import pallas as pl
from jax.experimental.pallas import tpu as pltpu

H = 1024          # hidden size (hard-coded in the module: Linear(2048, 1024), Linear(1024, 1))
BATCH = 2
NUM_CHOICES = 4
N = BATCH * NUM_CHOICES
COL_CHUNK = 512   # streamed output-column chunk: 2048x512 bf16 = 2 MiB per buffer


def fusion_kernel(rob_ref, v1_ref, v2_ref,
                  wq_ref, bq_ref, wb_ref, bb_ref, wc_ref, bc_ref,
                  logits_ref, qp_ref):
    p = pl.program_id(0)                  # 0: att_ques phase, 1: att_bd phase
    j = pl.program_id(1)                  # weight output-column chunk index
    C = wq_ref.shape[1]                   # column chunk width (static)
    h = rob_ref.shape[1]                  # hidden size (static)
    cols = pl.ds(pl.multiple_of(j * C, C), C)

    # ---------------- phase 0: att_ques -> ques_part_out ----------------
    @pl.when(p == 0)
    def _att_ques_phase():
        wq = wq_ref[...]                                       # (2H, C) bf16
        # concat([rob, v1], 1) @ wq_chunk == rob @ wq[:H] + v1 @ wq[H:]
        aq = jnp.dot(rob_ref[...].astype(jnp.bfloat16), wq[:h, :],
                     preferred_element_type=jnp.float32)
        aq = aq + jnp.dot(v1_ref[...].astype(jnp.bfloat16), wq[h:, :],
                          preferred_element_type=jnp.float32)
        att_q = jnp.tanh(aq + bq_ref[:, cols]) * v1_ref[:, cols]   # (N, C)
        ques_sum = jnp.sum(att_q, axis=0, keepdims=True)           # (1, C)
        # ques_part_out = out_roberta * sum(att_q, dim=0)  (this column chunk)
        qp_ref[:, cols] = rob_ref[:, cols] * ques_sum

    # ---------------- phase 1: att_bd -> classifier logits --------------
    @pl.when(p == 1)
    def _att_bd_phase():
        wb = wb_ref[...]                                       # (2H, C) bf16
        # concat([v2, ques_part], 1) @ wb_chunk
        ab = jnp.dot(v2_ref[...].astype(jnp.bfloat16), wb[:h, :],
                     preferred_element_type=jnp.float32)
        ab = ab + jnp.dot(qp_ref[...].astype(jnp.bfloat16), wb[h:, :],
                          preferred_element_type=jnp.float32)
        att_b = jnp.tanh(ab + bb_ref[:, cols]) * v2_ref[:, cols]   # (N, C)
        bd_sum = jnp.sum(att_b, axis=0, keepdims=True)             # (1, C)
        final = bd_sum * qp_ref[:, cols]                           # (N, C)
        # dropout: identity (eval mode); classifier Linear(H, 1) partial dot
        partial = jnp.sum(final * wc_ref[:, cols], axis=-1, keepdims=True)

        @pl.when(j == 0)
        def _init():
            logits_ref[...] = jnp.full(logits_ref.shape, bc_ref[0, 0],
                                       logits_ref.dtype)
        logits_ref[...] += partial


def vit_bd_v2_forward(out_roberta, out_vit1, out_vit2, params, num_choices,
                      labels=None, col_chunk=COL_CHUNK):
    """Glue: calls the Pallas kernel, reshapes logits, optional CE loss."""
    wq, bq, wb, bb, wc, bc = params
    n, h = out_roberta.shape
    assert h % col_chunk == 0
    kc = h // col_chunk

    full = lambda p, j: (0, 0)   # whole-array blocks, DMA'd once
    grid_spec = pltpu.PrefetchScalarGridSpec(
        num_scalar_prefetch=0,
        grid=(2, kc),
        in_specs=[
            pl.BlockSpec((n, h), full),                        # out_roberta
            pl.BlockSpec((n, h), full),                        # out_vit1
            pl.BlockSpec((n, h), full),                        # out_vit2
            # wq streamed during phase 0; pinned to its last chunk in phase 1
            # (same block index -> no re-DMA).
            pl.BlockSpec((2 * h, col_chunk),
                         lambda p, j: (0, j * (1 - p) + (kc - 1) * p)),
            pl.BlockSpec((1, h), full),                        # bq
            # wb pinned to chunk 0 during phase 0, streamed during phase 1.
            pl.BlockSpec((2 * h, col_chunk), lambda p, j: (0, j * p)),
            pl.BlockSpec((1, h), full),                        # bb
            pl.BlockSpec((1, h), full),                        # wc
            pl.BlockSpec(memory_space=pltpu.MemorySpace.SMEM), # bc scalar
        ],
        out_specs=pl.BlockSpec((n, 1), full),                  # resident logits
        scratch_shapes=[pltpu.VMEM((n, h), jnp.float32)],      # ques_part_out
    )

    logits = pl.pallas_call(
        fusion_kernel,
        out_shape=jax.ShapeDtypeStruct((n, 1), jnp.float32),
        grid_spec=grid_spec,
        compiler_params=pltpu.CompilerParams(
            dimension_semantics=("arbitrary", "arbitrary"),
            vmem_limit_bytes=32 * 1024 * 1024),
    )(out_roberta, out_vit1, out_vit2, wq, bq, wb, bb, wc, bc)

    reshaped_logits = logits.reshape(-1, num_choices)
    outputs = (reshaped_logits,)
    if labels is not None:
        log_p = jax.nn.log_softmax(reshaped_logits, axis=-1)
        loss = -jnp.mean(jnp.take_along_axis(log_p, labels[:, None], axis=-1))
        outputs = (loss,) + outputs
    return outputs


def init_params(key):
    k1, k2, k3, k4, k5, k6 = jax.random.split(key, 6)
    scale = 0.02
    # att_ques / att_bd Linear(2048, 1024) weights stored (in, out), bf16 in HBM.
    wq = (scale * jax.random.normal(k1, (2 * H, H), jnp.float32)).astype(jnp.bfloat16)
    bq = scale * jax.random.normal(k2, (1, H), jnp.float32)
    wb = (scale * jax.random.normal(k3, (2 * H, H), jnp.float32)).astype(jnp.bfloat16)
    bb = scale * jax.random.normal(k4, (1, H), jnp.float32)
    wc = scale * jax.random.normal(k5, (1, H), jnp.float32)       # classifier Linear(1024,1) row
    bc = scale * jax.random.normal(k6, (1, 1), jnp.float32)
    return (wq, bq, wb, bb, wc, bc)


def reference_forward(out_roberta, out_vit1, out_vit2, params, num_choices):
    """Pure-JAX reference mirroring the PyTorch forward (eval-mode dropout),
    with the same bf16 weight quantization / bf16 matmul inputs + f32
    accumulation as the kernel (everything else stays f32)."""
    wq, bq, wb, bb, wc, bc = params
    cat1 = jnp.concatenate([out_roberta, out_vit1], axis=1).astype(jnp.bfloat16)
    att_q = jnp.tanh(jnp.dot(cat1, wq, preferred_element_type=jnp.float32) + bq)
    att_q = att_q * out_vit1
    ques_part = out_roberta * jnp.sum(att_q, axis=0)
    cat2 = jnp.concatenate([out_vit2, ques_part], axis=1).astype(jnp.bfloat16)
    att_b = jnp.tanh(jnp.dot(cat2, wb, preferred_element_type=jnp.float32) + bb)
    att_b = att_b * out_vit2
    final = jnp.sum(att_b, axis=0) * ques_part
    logits = jnp.sum(final * wc, axis=-1, keepdims=True) + bc[0, 0]
    return logits.reshape(-1, num_choices)


if __name__ == "__main__":
    key = jax.random.PRNGKey(0)
    kp, kr, k1, k2, kl = jax.random.split(key, 5)

    params = init_params(kp)

    # Synthetic backbone outputs (would come from RoBERTa pooled output and
    # ViT CLS tokens in the real model).
    out_roberta = jax.random.normal(kr, (N, H), jnp.float32)
    out_vit1 = jax.random.normal(k1, (N, H), jnp.float32)
    out_vit2 = jax.random.normal(k2, (N, H), jnp.float32)
    labels = jax.random.randint(kl, (BATCH,), 0, NUM_CHOICES)

    loss, reshaped_logits = vit_bd_v2_forward(
        out_roberta, out_vit1, out_vit2, params, NUM_CHOICES, labels=labels)
    jax.block_until_ready((loss, reshaped_logits))

    ref = reference_forward(out_roberta, out_vit1, out_vit2, params, NUM_CHOICES)
    assert reshaped_logits.shape == (BATCH, NUM_CHOICES)
    # Tolerance accounts for f32-accumulation-order differences between the
    # kernel's K-split / column-chunked dots and the single XLA dot.
    assert jnp.allclose(reshaped_logits, ref, rtol=1e-2, atol=1e-2), (
        float(jnp.max(jnp.abs(reshaped_logits - ref))))

    print("KERNEL_OK")
</pallas_src>

<mosaic_0001>
module attributes {stable_mosaic.version = 11 : i64} {
  func.func @fusion_kernel(%arg0: i32, %arg1: i32, %arg2: memref<8x1024xf32, #tpu.memory_space<vmem>>, %arg3: memref<8x1024xf32, #tpu.memory_space<vmem>>, %arg4: memref<8x1024xf32, #tpu.memory_space<vmem>>, %arg5: memref<2048x512xbf16, #tpu.memory_space<vmem>>, %arg6: memref<1x1024xf32, #tpu.memory_space<vmem>>, %arg7: memref<2048x512xbf16, #tpu.memory_space<vmem>>, %arg8: memref<1x1024xf32, #tpu.memory_space<vmem>>, %arg9: memref<1x1024xf32, #tpu.memory_space<vmem>>, %arg10: memref<1x1xf32, #tpu.memory_space<smem>>, %arg11: memref<8x1xf32, #tpu.memory_space<vmem>>, %arg12: memref<8x1024xf32, #tpu.memory_space<vmem>>) attributes {dimension_semantics = [#tpu.dimension_semantics<arbitrary>, #tpu.dimension_semantics<arbitrary>], iteration_bounds = array<i64: 2, 2>, scalar_prefetch = 0 : i64, scratch_operands = 1 : i64, tpu.core_type = #tpu.core_type<tc>, window_params = [{pipeline_mode = #tpu.pipeline_mode<synchronous>, transform_indices = @transform_0, window_bounds = array<i64: 8, 1024>}, {pipeline_mode = #tpu.pipeline_mode<synchronous>, transform_indices = @transform_1, window_bounds = array<i64: 8, 1024>}, {pipeline_mode = #tpu.pipeline_mode<synchronous>, transform_indices = @transform_2, window_bounds = array<i64: 8, 1024>}, {transform_indices = @transform_3, window_bounds = array<i64: 2048, 512>}, {pipeline_mode = #tpu.pipeline_mode<synchronous>, transform_indices = @transform_4, window_bounds = array<i64: 1, 1024>}, {transform_indices = @transform_5, window_bounds = array<i64: 2048, 512>}, {pipeline_mode = #tpu.pipeline_mode<synchronous>, transform_indices = @transform_6, window_bounds = array<i64: 1, 1024>}, {pipeline_mode = #tpu.pipeline_mode<synchronous>, transform_indices = @transform_7, window_bounds = array<i64: 1, 1024>}, {transform_indices = @transform_8, window_bounds = array<i64: 1, 1>}, {pipeline_mode = #tpu.pipeline_mode<synchronous>, transform_indices = @transform_9, window_bounds = array<i64: 8, 1>}]} {
    %c512_i32 = arith.constant 512 : i32
    %0 = arith.muli %arg1, %c512_i32 : i32
    %1 = tpu.assume_multiple %0, 512 : i32
    %c0_i32 = arith.constant 0 : i32
    %2 = arith.cmpi eq, %arg0, %c0_i32 : i32
    %3 = arith.extui %2 : i1 to i32
    %c0_i32_0 = arith.constant 0 : i32
    %4 = arith.cmpi ne, %3, %c0_i32_0 : i32
    scf.if %4 {
      %c0 = arith.constant 0 : index
      %c0_2 = arith.constant 0 : index
      %8 = vector.load %arg5[%c0, %c0_2] : memref<2048x512xbf16, #tpu.memory_space<vmem>>, vector<2048x512xbf16>
      %c0_3 = arith.constant 0 : index
      %c0_4 = arith.constant 0 : index
      %9 = vector.load %arg2[%c0_3, %c0_4] : memref<8x1024xf32, #tpu.memory_space<vmem>>, vector<8x1024xf32>
      %10 = arith.truncf %9 : vector<8x1024xf32> to vector<8x1024xbf16>
      %11 = vector.extract_strided_slice %8 {offsets = [0, 0], sizes = [1024, 512], strides = [1, 1]} : vector<2048x512xbf16> to vector<1024x512xbf16>
      %cst = arith.constant dense<0.000000e+00> : vector<8x512xf32>
      %12 = tpu.matmul %10, %11, %cst {dimension_numbers = #tpu.dot_dimension_numbers<[1], [0], [0], [1], [0, 0, 1, 1], [], []>} : vector<8x1024xbf16>, vector<1024x512xbf16>, vector<8x512xf32> -> vector<8x512xf32>
      %c0_5 = arith.constant 0 : index
      %c0_6 = arith.constant 0 : index
      %13 = vector.load %arg3[%c0_5, %c0_6] : memref<8x1024xf32, #tpu.memory_space<vmem>>, vector<8x1024xf32>
      %14 = arith.truncf %13 : vector<8x1024xf32> to vector<8x1024xbf16>
      %15 = vector.extract_strided_slice %8 {offsets = [1024, 0], sizes = [1024, 512], strides = [1, 1]} : vector<2048x512xbf16> to vector<1024x512xbf16>
      %cst_7 = arith.constant dense<0.000000e+00> : vector<8x512xf32>
      %16 = tpu.matmul %14, %15, %cst_7 {dimension_numbers = #tpu.dot_dimension_numbers<[1], [0], [0], [1], [0, 0, 1, 1], [], []>} : vector<8x1024xbf16>, vector<1024x512xbf16>, vector<8x512xf32> -> vector<8x512xf32>
      %17 = arith.addf %12, %16 : vector<8x512xf32>
      %c0_8 = arith.constant 0 : index
      %18 = arith.index_cast %1 : i32 to index
      %19 = vector.load %arg6[%c0_8, %18] : memref<1x1024xf32, #tpu.memory_space<vmem>>, vector<1x512xf32>
      %20 = vector.broadcast %19 : vector<1x512xf32> to vector<8x512xf32>
      %21 = arith.addf %17, %20 : vector<8x512xf32>
      %22 = math.tanh %21 : vector<8x512xf32>
      %c0_9 = arith.constant 0 : index
      %23 = arith.index_cast %1 : i32 to index
      %24 = vector.load %arg3[%c0_9, %23] : memref<8x1024xf32, #tpu.memory_space<vmem>>, vector<8x512xf32>
      %25 = arith.mulf %22, %24 : vector<8x512xf32>
      %cst_10 = arith.constant dense<0.000000e+00> : vector<512xf32>
      %26 = vector.multi_reduction <add>, %25, %cst_10 [0] : vector<8x512xf32> to vector<512xf32>
      %27 = vector.shape_cast %26 : vector<512xf32> to vector<1x512xf32>
      %c0_11 = arith.constant 0 : index
      %28 = arith.index_cast %1 : i32 to index
      %29 = vector.load %arg2[%c0_11, %28] : memref<8x1024xf32, #tpu.memory_space<vmem>>, vector<8x512xf32>
      %30 = vector.broadcast %27 : vector<1x512xf32> to vector<8x512xf32>
      %31 = arith.mulf %29, %30 : vector<8x512xf32>
      %c0_12 = arith.constant 0 : index
      %32 = arith.index_cast %1 : i32 to index
      %33 = vector.load %arg12[%c0_12, %32] : memref<8x1024xf32, #tpu.memory_space<vmem>>, vector<8x512xf32>
      tpu.vector_store %arg12[%c0_12, %32], %31 {strides = array<i32>} : memref<8x1024xf32, #tpu.memory_space<vmem>>, vector<8x512xf32>,
    } else {
    }
    %c1_i32 = arith.constant 1 : i32
    %5 = arith.cmpi eq, %arg0, %c1_i32 : i32
    %6 = arith.extui %5 : i1 to i32
    %c0_i32_1 = arith.constant 0 : i32
    %7 = arith.cmpi ne, %6, %c0_i32_1 : i32
    scf.if %7 {
      %c0 = arith.constant 0 : index
      %c0_2 = arith.constant 0 : index
      %8 = vector.load %arg7[%c0, %c0_2] : memref<2048x512xbf16, #tpu.memory_space<vmem>>, vector<2048x512xbf16>
      %c0_3 = arith.constant 0 : index
      %c0_4 = arith.constant 0 : index
      %9 = vector.load %arg4[%c0_3, %c0_4] : memref<8x1024xf32, #tpu.memory_space<vmem>>, vector<8x1024xf32>
      %10 = arith.truncf %9 : vector<8x1024xf32> to vector<8x1024xbf16>
      %11 = vector.extract_strided_slice %8 {offsets = [0, 0], sizes = [1024, 512], strides = [1, 1]} : vector<2048x512xbf16> to vector<1024x512xbf16>
      %cst = arith.constant dense<0.000000e+00> : vector<8x512xf32>
      %12 = tpu.matmul %10, %11, %cst {dimension_numbers = #tpu.dot_dimension_numbers<[1], [0], [0], [1], [0, 0, 1, 1], [], []>} : vector<8x1024xbf16>, vector<1024x512xbf16>, vector<8x512xf32> -> vector<8x512xf32>
      %c0_5 = arith.constant 0 : index
      %c0_6 = arith.constant 0 : index
      %13 = vector.load %arg12[%c0_5, %c0_6] : memref<8x1024xf32, #tpu.memory_space<vmem>>, vector<8x1024xf32>
      %14 = arith.truncf %13 : vector<8x1024xf32> to vector<8x1024xbf16>
      %15 = vector.extract_strided_slice %8 {offsets = [1024, 0], sizes = [1024, 512], strides = [1, 1]} : vector<2048x512xbf16> to vector<1024x512xbf16>
      %cst_7 = arith.constant dense<0.000000e+00> : vector<8x512xf32>
      %16 = tpu.matmul %14, %15, %cst_7 {dimension_numbers = #tpu.dot_dimension_numbers<[1], [0], [0], [1], [0, 0, 1, 1], [], []>} : vector<8x1024xbf16>, vector<1024x512xbf16>, vector<8x512xf32> -> vector<8x512xf32>
      %17 = arith.addf %12, %16 : vector<8x512xf32>
      %c0_8 = arith.constant 0 : index
      %18 = arith.index_cast %1 : i32 to index
      %19 = vector.load %arg8[%c0_8, %18] : memref<1x1024xf32, #tpu.memory_space<vmem>>, vector<1x512xf32>
      %20 = vector.broadcast %19 : vector<1x512xf32> to vector<8x512xf32>
      %21 = arith.addf %17, %20 : vector<8x512xf32>
      %22 = math.tanh %21 : vector<8x512xf32>
      %c0_9 = arith.constant 0 : index
      %23 = arith.index_cast %1 : i32 to index
      %24 = vector.load %arg4[%c0_9, %23] : memref<8x1024xf32, #tpu.memory_space<vmem>>, vector<8x512xf32>
      %25 = arith.mulf %22, %24 : vector<8x512xf32>
      %cst_10 = arith.constant dense<0.000000e+00> : vector<512xf32>
      %26 = vector.multi_reduction <add>, %25, %cst_10 [0] : vector<8x512xf32> to vector<512xf32>
      %27 = vector.shape_cast %26 : vector<512xf32> to vector<1x512xf32>
      %c0_11 = arith.constant 0 : index
      %28 = arith.index_cast %1 : i32 to index
      %29 = vector.load %arg12[%c0_11, %28] : memref<8x1024xf32, #tpu.memory_space<vmem>>, vector<8x512xf32>
      %30 = vector.broadcast %27 : vector<1x512xf32> to vector<8x512xf32>
      %31 = arith.mulf %30, %29 : vector<8x512xf32>
      %c0_12 = arith.constant 0 : index
      %32 = arith.index_cast %1 : i32 to index
      %33 = vector.load %arg9[%c0_12, %32] : memref<1x1024xf32, #tpu.memory_space<vmem>>, vector<1x512xf32>
      %34 = vector.broadcast %33 : vector<1x512xf32> to vector<8x512xf32>
      %35 = arith.mulf %31, %34 : vector<8x512xf32>
      %cst_13 = arith.constant dense<0.000000e+00> : vector<8xf32>
      %36 = vector.multi_reduction <add>, %35, %cst_13 [1] : vector<8x512xf32> to vector<8xf32>
      %37 = vector.shape_cast %36 : vector<8xf32> to vector<8x1xf32>
      %c0_i32_14 = arith.constant 0 : i32
      %38 = arith.cmpi eq, %arg1, %c0_i32_14 : i32
      %39 = arith.extui %38 : i1 to i32
      %c0_i32_15 = arith.constant 0 : i32
      %40 = arith.cmpi ne, %39, %c0_i32_15 : i32
      scf.if %40 {
        %c0_20 = arith.constant 0 : index
        %c0_21 = arith.constant 0 : index
        %44 = memref.load %arg10[%c0_20, %c0_21] : memref<1x1xf32, #tpu.memory_space<smem>>
        %45 = vector.broadcast %44 : f32 to vector<8x1xf32>
        %c0_22 = arith.constant 0 : index
        %c0_23 = arith.constant 0 : index
        %46 = vector.load %arg11[%c0_22, %c0_23] : memref<8x1xf32, #tpu.memory_space<vmem>>, vector<8x1xf32>
        tpu.vector_store %arg11[%c0_22, %c0_23], %45 {strides = array<i32>} : memref<8x1xf32, #tpu.memory_space<vmem>>, vector<8x1xf32>,
      } else {
      }
      %c0_16 = arith.constant 0 : index
      %c0_17 = arith.constant 0 : index
      %41 = vector.load %arg11[%c0_16, %c0_17] : memref<8x1xf32, #tpu.memory_space<vmem>>, vector<8x1xf32>
      %42 = arith.addf %41, %37 : vector<8x1xf32>
      %c0_18 = arith.constant 0 : index
      %c0_19 = arith.constant 0 : index
      %43 = vector.load %arg11[%c0_18, %c0_19] : memref<8x1xf32, #tpu.memory_space<vmem>>, vector<8x1xf32>
      tpu.vector_store %arg11[%c0_18, %c0_19], %42 {strides = array<i32>} : memref<8x1xf32, #tpu.memory_space<vmem>>, vector<8x1xf32>,
    } else {
    }
    return
  }
  func.func @transform_0(%arg0: i32, %arg1: i32) -> (i32, i32) {
    %c0_i32 = arith.constant 0 : i32
    %c0_i32_0 = arith.constant 0 : i32
    %c0_i32_1 = arith.constant 0 : i32
    return %c0_i32, %c0_i32_0 : i32, i32
  }
  func.func @transform_1(%arg0: i32, %arg1: i32) -> (i32, i32) {
    %c0_i32 = arith.constant 0 : i32
    %c0_i32_0 = arith.constant 0 : i32
    %c0_i32_1 = arith.constant 0 : i32
    return %c0_i32, %c0_i32_0 : i32, i32
  }
  func.func @transform_2(%arg0: i32, %arg1: i32) -> (i32, i32) {
    %c0_i32 = arith.constant 0 : i32
    %c0_i32_0 = arith.constant 0 : i32
    %c0_i32_1 = arith.constant 0 : i32
    return %c0_i32, %c0_i32_0 : i32, i32
  }
  func.func @transform_3(%arg0: i32, %arg1: i32) -> (i32, i32) {
    %c1_i32 = arith.constant 1 : i32
    %0 = arith.subi %c1_i32, %arg0 : i32
    %1 = arith.muli %arg1, %0 : i32
    %c1_i32_0 = arith.constant 1 : i32
    %2 = arith.muli %c1_i32_0, %arg0 : i32
    %3 = arith.addi %1, %2 : i32
    %c0_i32 = arith.constant 0 : i32
    %c0_i32_1 = arith.constant 0 : i32
    return %c0_i32, %3 : i32, i32
  }
  func.func @transform_4(%arg0: i32, %arg1: i32) -> (i32, i32) {
    %c0_i32 = arith.constant 0 : i32
    %c0_i32_0 = arith.constant 0 : i32
    %c0_i32_1 = arith.constant 0 : i32
    return %c0_i32, %c0_i32_0 : i32, i32
  }
  func.func @transform_5(%arg0: i32, %arg1: i32) -> (i32, i32) {
    %0 = arith.muli %arg1, %arg0 : i32
    %c0_i32 = arith.constant 0 : i32
    %c0_i32_0 = arith.constant 0 : i32
    return %c0_i32, %0 : i32, i32
  }
  func.func @transform_6(%arg0: i32, %arg1: i32) -> (i32, i32) {
    %c0_i32 = arith.constant 0 : i32
    %c0_i32_0 = arith.constant 0 : i32
    %c0_i32_1 = arith.constant 0 : i32
    return %c0_i32, %c0_i32_0 : i32, i32
  }
  func.func @transform_7(%arg0: i32, %arg1: i32) -> (i32, i32) {
    %c0_i32 = arith.constant 0 : i32
    %c0_i32_0 = arith.constant 0 : i32
    %c0_i32_1 = arith.constant 0 : i32
    return %c0_i32, %c0_i32_0 : i32, i32
  }
  func.func @transform_8(%arg0: i32, %arg1: i32) -> (i32, i32) {
    %c0_i32 = arith.constant 0 : i32
    %c0_i32_0 = arith.constant 0 : i32
    %c0_i32_1 = arith.constant 0 : i32
    return %c0_i32, %c0_i32_0 : i32, i32
  }
  func.func @transform_9(%arg0: i32, %arg1: i32) -> (i32, i32) {
    %c0_i32 = arith.constant 0 : i32
    %c0_i32_0 = arith.constant 0 : i32
    %c0_i32_1 = arith.constant 0 : i32
    return %c0_i32, %c0_i32_0 : i32, i32
  }
}

</mosaic_0001>

<bundles_post_ra>
// kernel: tpu_custom_call.1
= control target key start
LH: loop header
LB: loop body
LE: loop exit
PB: predicated region body
PF: predicated region fallthrough
CT: control target
= control target key end

     0   :  { %s17099_s0 = inlined_call_operand.hbm [shape: f32[8,1024], index: 0, kind: input, shape index: {}]   ;;  %s17100_s1 = inlined_call_operand.hbm [shape: f32[8,1024], index: 1, kind: input, shape index: {}]   ;;  %s17101_s2 = inlined_call_operand.hbm [shape: f32[8,1024], index: 2, kind: input, shape index: {}]   ;;  %s17102_s3 = inlined_call_operand.hbm [shape: bf16[2048,1024], index: 3, kind: input, shape index: {}]   ;;  %s17103_s4 = inlined_call_operand.hbm [shape: f32[1,1024], index: 4, kind: input, shape index: {}]   ;;  %s17104_s5 = inlined_call_operand.hbm [shape: bf16[2048,1024], index: 5, kind: input, shape index: {}]   ;;  %s17105_s6 = inlined_call_operand.hbm [shape: f32[1,1024], index: 6, kind: input, shape index: {}]   ;;  %s17106_s7 = inlined_call_operand.hbm [shape: f32[1,1024], index: 7, kind: input, shape index: {}]   ;;  %s17107_s8 = inlined_call_operand.<no memory space> [shape: f32[1,1], index: 8, kind: input, shape index: {}]   ;;  %s17108_s9 = inlined_call_operand.vmem [shape: f32[8,1], index: 9, kind: output, shape index: {}]  }
   0x1   :  { %17114 = sst [smem:[#allocation27_spill]] %s17099_s0 }
   0x2   :  { %17115 = sst [smem:[#allocation28_spill]] %s17100_s1 }
   0x3   :  { %17116 = sst [smem:[#allocation29_spill]] %s17101_s2 }
   0x4   :  { %17117 = sst [smem:[#allocation30_spill]] %s17102_s3 }
   0x5   :  { %17118 = sst [smem:[#allocation31_spill]] %s17103_s4 }
   0x6   :  { %17119 = sst [smem:[#allocation32_spill]] %s17105_s6 }
   0x7   :  { %17120 = sst [smem:[#allocation33_spill]] %s17106_s7 }
   0x8   :  { %17121 = sst [smem:[#allocation34_spill]] %s17108_s9 }
   0x9   :  { %14 = sst [smem:[#allocation3]] %s17107_s8 }
   0xa   :  { %15 = vsyncpa [#allocation5], 0 }
   0xb   :  { %16 = vsyncpa [#allocation7], 0 }
   0xc   :  { %17 = vsyncpa [#allocation10], 0 }
   0xd   :  { %19 = vsyncpa [#allocation10 + $0x1], 0 }
   0xe   :  { %20 = vsyncpa [#allocation13], 0 }
   0xf   :  { %22 = vsyncpa [#allocation13 + $0x1], 0 }
  0x10   :  { %23 = vsyncpa [#allocation16], 0  ;;  %s14451_s11 = smov 0   ;;  %s14453_s12 = smov 0  }
  0x11   :  { %s14455_s13 = smov 0   ;;  %s14457_s14 = smov 0  }
  0x12   :  { %s14459_s15 = smov 0   ;;  %s14461_s16 = smov 0  }
  0x13   :  { %s14463_s8 = smov 0   ;;  %s14465_s17 = smov 0  }
  0x14   :  { %s14467_s18 = smov 0   ;;  %s14469_s19 = smov 0  }
  0x15   :  { %s14471_s20 = smov 0  }
  0x16 LB: > { %17122 = sst [smem:[#allocation24_spill]] %s14371_s8  ;;  %s17109_s24 = sadd.s32 4294967295, %s14387_s20   ;;  %s14387_s20 = sphi %s14471_s20, %s29_s20   ;;  %s14383_s19 = sphi %s14469_s19, %s17159_s19   ;;  %s14379_s18 = sphi %s14467_s18, %s17158_s18   ;;  %s14375_s17 = sphi %s14465_s17, %s17157_s17   ;;  %s14371_s8 = sphi %s14463_s8, %s17156_s8   ;;  %s14367_s16 = sphi %s14461_s16, %s17155_s16   ;;  %s14363_s15 = sphi %s14459_s15, %s17154_s15   ;;  %s14359_s14 = sphi %s14457_s14, %s17153_s14   ;;  %s14355_s13 = sphi %s14455_s13, %s17152_s13   ;;  %s14351_s12 = sphi %s14453_s12, %s17151_s12   ;;  %s14347_s11 = sphi %s14451_s11, %s17150_s11  }
  0x17   : > { %17123 = sst [smem:[#allocation25_spill]] %s14375_s17  ;;  %p8697_p0 = scmp.ge.s32.totalorder %s14387_s20, 1 }
  0x18   : > { %s17124_s1 = sld [smem:[#allocation28_spill]]  ;;  %p14513_p1 = scmp.eq.s32.totalorder %s17109_s24, 0 }
  0x19   : > { %p274_p2 = scmp.lt.s32.totalorder %s14387_s20, 5  ;;  %s14389_s27 = smov [#allocation6]  }
  0x1a   : > { %s300_s28 = sshll.u32 %s14389_s27, 4  ;;  %s17127_s4 = sld [smem:[#allocation31_spill]]  ;;  %s301_s28 = int_to_ptr.vmem [resolvable:$true] %s300_s28 }
  0x1b   : > { %p14518_p3 = pnand %p8697_p0, %p274_p2  ;;  %s14390_s22 = smov [#allocation11]  }
  0x1c   : > { %s324_s24 = sshll.u32 %s14390_s22, 4  ;;  %s17129_s6 = sld [smem:[#allocation32_spill]]  ;;  %s325_s24 = int_to_ptr.vmem [resolvable:$true] %s324_s24 }
  0x1d   : > { %p13881_p4 = pneg %p14518_p3  ;;  %s14391_s29 = smov [#allocation14]  }
  0x1e   : > { %s298_s23 = sshll.u32 %s17124_s1, 4  ;;  %s336_s30 = sshll.u32 %s14391_s29, 4  ;;  %s299_s23 = int_to_ptr.hbm [resolvable:$true] %s298_s23  ;;  %s337_s30 = int_to_ptr.vmem [resolvable:$true] %s336_s30 }
  0x1f   : > { %p14529_p5 = pnand %p13881_p4, %p14513_p1  ;;  %s17130_s0 = sld [smem:[#allocation27_spill]] }
  0x20   : > { %s322_s10 = sshll.u32 %s17127_s4, 4  ;;  %s14392_s1 = smov [#allocation4]   ;;  %s323_s10 = int_to_ptr.hbm [resolvable:$true] %s322_s10 }
  0x21   : > { %13887 = dma.hbm_to_vmem [thread:$0]  (!%p14529_p5), %s299_s23, 1024, %s301_s28, [#allocation7]  }
  0x22   : > { %s334_s9 = sshll.u32 %s17129_s6, 4  ;;  %s288_s27 = sshll.u32 %s14392_s1, 4  ;;  %s335_s9 = int_to_ptr.hbm [resolvable:$true] %s334_s9  ;;  %s289_s27 = int_to_ptr.vmem [resolvable:$true] %s288_s27 }
  0x23   : > { %13893 = dma.hbm_to_vmem [thread:$0]  (!%p14529_p5), %s323_s10, 128, %s325_s24, [#allocation10]  }
  0x24   : > { %13896 = dma.hbm_to_vmem [thread:$0]  (!%p14529_p5), %s335_s9, 128, %s337_s30, [#allocation13]  }
  0x25   : > { %s286_s22 = sshll.u32 %s17130_s0, 4  ;;  %s17131_s2 = sld [smem:[#allocation29_spill]]  ;;  %s287_s22 = int_to_ptr.hbm [resolvable:$true] %s286_s22 }
  0x26   : > { %13884 = dma.hbm_to_vmem [thread:$0]  (!%p14529_p5), %s287_s22, 1024, %s289_s27, [#allocation5]  }
  0x27   : > { %s17132_s7 = sld [smem:[#allocation33_spill]]  ;;  %s14393_s17 = smov [#allocation8]  }
  0x28   : > { %s312_s28 = sshll.u32 %s14393_s17, 4  ;;  %s14394_s6 = smov [#allocation15]   ;;  %s313_s28 = int_to_ptr.vmem [resolvable:$true] %s312_s28 }
  0x29   : > { %s348_s8 = sshll.u32 %s14394_s6, 4  ;;  %s38_s10 = sadd.s32 1, %s14379_s18  ;;  %s349_s8 = int_to_ptr.vmem [resolvable:$true] %s348_s8 }
  0x2a   : > { %s41_s29 = sadd.s32 1, %s14383_s19  ;;  %p39_p6 = scmp.ge.s32.totalorder %s38_s10, 2 }
  0x2b   : > { %s310_s23 = sshll.u32 %s17131_s2, 4  ;;  %s108_s30 = ssub.s32 1, %s14383_s19  ;;  %s311_s23 = int_to_ptr.hbm [resolvable:$true] %s310_s23 }
  0x2c   : > { %13890 = dma.hbm_to_vmem [thread:$0]  (!%p14529_p5), %s311_s23, 1024, %s313_s28, [#allocation7]  }
  0x2d   : > { %s346_s4 = sshll.u32 %s17132_s7, 4  ;;  %s109_s22 = smul.u32 %s14379_s18, %s108_s30  ;;  %s347_s4 = int_to_ptr.hbm [resolvable:$true] %s346_s4 }
  0x2e   : > { %13899 = dma.hbm_to_vmem [thread:$0]  (!%p14529_p5), %s347_s4, 128, %s349_s8, [#allocation16]  }
  0x2f   : > { %s117_s1 = sadd.s32 1, %s14367_s16  ;;  %s17161_s10 = smov (%p39_p6, %s38_s10), 0 }
  0x30   : > { %s17163_s29 = smov (!%p39_p6, %s41_s29), %s14383_s19  ;;  %s110_s27 = sadd.s32 %s14383_s19, %s109_s22 }
  0x31   : > { %p124_p7 = scmp.ne.s32.totalorder %s14367_s16, %s14363_s15  ;;  %p43_p8 = scmp.ge.s32.totalorder %s17163_s29, 2 }
  0x32   : > { %p125_p9 = scmp.eq.s32.totalorder %s14387_s20, 0  ;;  %p130_p10 = scmp.ne.s32.totalorder %s14363_s15, %s14359_s14 }
  0x33   : > { %p13913_p11 = scmp.lt.s32.totalorder %s14387_s20, 4  ;;  %s17165_s29 = smov (%p43_p8, %s17163_s29), 0 }
  0x34   : > { %17133 = sst [smem:[#allocation26_spill]] %s17165_s29  ;;  %p14576_p12 = por %p125_p9, %p124_p7 }
  0x35   : > { %p14582_p13 = por %p14513_p1, %p130_p10  ;;  %s111_s9 = ssub.s32 1, %s17165_s29 }
  0x36   : > { %s112_s24 = smul.u32 %s111_s9, %s17161_s10  ;;  %s364_s4 = sand.u32 1, %s14367_s16  }
  0x37   : > { %s12827_s17 = sshll.u32 %s110_s27, 4  ;;  %s8705_s6 = sshll.u32 %s364_s4, 12 }
  0x38   : > { %s113_s28 = sadd.s32 %s112_s24, %s17165_s29  ;;  %s17136_s3 = sld [smem:[#allocation30_spill]] }
  0x39   : > { %s114_s8 = ssub.s32 %s110_s27, %s113_s28  ;;  %s366_s9 = scalar_lea.vmem [#allocation9], %s8705_s6 }
  0x3a   : > { %p115_p0 = scmp.eq.s32.totalorder %s114_s8, 0  ;;  %s377_s2 = sshll.u32 %s366_s9, 4  ;;  %s378_s2 = int_to_ptr.vmem [resolvable:$true] %s377_s2 }
  0x3b   : > { %p13901_p2 = pnand %p13913_p11, %p14576_p12  ;;  %s17137_s27 = sand.u32 1, %s14387_s20  }
  0x3c   : > { %s14595_s24 = scalar_select %p115_p0, %s14367_s16, %s117_s1  }
  0x3d   : > { %s363_s4 = scalar_lea.sflag [#allocation10], %s17137_s27  ;;  %s14396_s28 = smov 256  }
  0x3e   : > { %s374_s0 = scalar_lea.hbm %s17136_s3, %s12827_s17  ;;  %s17112_s17 = smov 512  }
  0x3f   : > { %s375_s14 = sshll.u32 %s374_s0, 4  ;;  %s14397_s8 = smov 16   ;;  %s376_s14 = int_to_ptr.hbm [resolvable:$true] %s375_s14 }
  0x40   : > { %13903 = dma.hbm_to_vmem [thread:$0]  (!%p13901_p2), %s376_s14, 65536, %s378_s2, %s363_s4, %s17112_s17, %s14396_s28, %s14397_s8  }
  0x41   : > { %s161_s0 = smul.u32 %s14379_s18, %s14383_s19  ;;  %p173_p4 = scmp.ne.s32.totalorder %s14355_s13, %s14351_s12 }
  0x42   : > { %s162_s6 = smul.u32 %s17165_s29, %s17161_s10  ;;  %p179_p5 = scmp.ne.s32.totalorder %s14351_s12, %s14347_s11 }
  0x43   : > { %s166_s30 = sadd.s32 1, %s14355_s13  ;;  %p175_p7 = por %p173_p4, %p125_p9 }
  0x44   : > { %s163_s1 = ssub.s32 %s161_s0, %s162_s6  ;;  %p14617_p8 = por %p179_p5, %p14513_p1 }
  0x45   : > { %p164_p6 = scmp.eq.s32.totalorder %s163_s1, 0  ;;  %s389_s22 = sand.u32 1, %s14355_s13  }
  0x46   : > { %s8708_s2 = sshll.u32 %s389_s22, 12  ;;  %s12828_s14 = sshll.u32 %s161_s0, 4 }
  0x47   : > { %s14623_s9 = scalar_select %p164_p6, %s14355_s13, %s166_s30  }
  0x48   : > { %s397_s11 = scalar_lea.hbm %s17104_s5, %s12828_s14  ;;  %s391_s17 = scalar_lea.vmem [#allocation12], %s8708_s2 }
  0x49   : > { %s398_s6 = sshll.u32 %s397_s11, 4  ;;  %s400_s3 = sshll.u32 %s391_s17, 4  ;;  %s399_s6 = int_to_ptr.hbm [resolvable:$true] %s398_s6  ;;  %s401_s3 = int_to_ptr.vmem [resolvable:$true] %s400_s3 }
  0x4a   : > { %p13904_p9 = pnand %p13913_p11, %p175_p7  ;;  %s17139_s1 = sand.u32 1, %s14387_s20  }
  0x4b   : > { %s388_s7 = scalar_lea.sflag [#allocation13], %s17139_s1  ;;  %s17140_s29 = smov 512  }
  0x4c   : > { %13906 = dma.hbm_to_vmem [thread:$0]  (!%p13904_p9), %s399_s6, 65536, %s401_s3, %s388_s7, %s17140_s29, %s14396_s28, %s14397_s8  }
  0x4d   : > { %412 = sbr.rel (%p14518_p3) target bundleno = 1615 (0x64f), region = 56 }
  0x52   : > { %14318 = dma.done.wait (%p14513_p1), [#allocation5], 1024  }
  0x53   : > { %14320 = vsyncadd (%p14513_p1), [#allocation5], 4294966272 }
  0x54   : > { %14322 = dma.done.wait (%p14513_p1), [#allocation7], 2048  }
  0x55   : > { %14324 = vsyncadd (%p14513_p1), [#allocation7], 4294965248  ;;  %s17141_s17 = sadd.s32 4294967295, %s14387_s20   ;;  %s431_s7 = sand.u32 1, %s14363_s15  }
  0x56   : > { %s429_s3 = sand.u32 1, %s17141_s17   ;;  %s8715_s26 = sshll.u32 %s431_s7, 12 }
  0x57   : > { %s430_s29 = scalar_lea.sflag [#allocation10], %s429_s3  ;;  %s14646_s28 = scalar_lea.vmem [#allocation9], %s8715_s26 }
  0x58   : > { %14326 = dma.done.wait (%p14582_p13), %s430_s29, 65536  }
  0x59   : > { %14328 = vsyncadd (%p14582_p13), %s430_s29, 4294901760 }
  0x5a   : > { %14330 = dma.done.wait (%p14513_p1), [#allocation10], 128  }
  0x5b   : > { %14332 = vsyncadd (%p14513_p1), [#allocation10], 4294967168  ;;  %s446_s8 = sand.u32 1, %s14351_s12   ;;  %s445_s30 = scalar_lea.sflag [#allocation13], %s429_s3 }
  0x5c   : > { %s8717_s0 = sshll.u32 %s446_s8, 12 }
  0x5d   : > { %s14657_s22 = scalar_lea.vmem [#allocation12], %s8717_s0 }
  0x5e   : > { %14334 = dma.done.wait (%p14617_p8), %s445_s30, 65536  }
  0x5f   : > { %14336 = vsyncadd (%p14617_p8), %s445_s30, 4294901760 }
  0x60   : > { %14338 = dma.done.wait (%p14513_p1), [#allocation13], 128  }
  0x61   : > { %14340 = vsyncadd (%p14513_p1), [#allocation13], 4294967168 }
  0x62   : > { %14342 = dma.done.wait (%p14513_p1), [#allocation16], 128  }
  0x63   : > { %14344 = vsyncadd (%p14513_p1), [#allocation16], 4294967168  ;;  %s17142_s23 = sld [smem:[#allocation24_spill]] }
  0x64   : > { %s17143_s14 = sld [smem:[#allocation25_spill]] }
  0x69   : > { %s8720_s2 = sshll.u32 %s17142_s23, 9 }
  0x6a   : > { %p8721_p3 = scmp.ne.s32.totalorder %s17143_s14, 0 }
  0x6b   : > { %s15715_s21 = sshra.s32 (!%p8721_p3), %s8720_s2, 7 }
  0x6c   : > { %504 = sbr.rel (%p8721_p3) target bundleno = 792 (0x318), region = 92  ;;  %s4443_s27 = scalar_lea.vmem (!%p8721_p3), [#allocation11], %s15715_s21 }
  0x6d   : > { %s15747_s4 = sshll.u32 (!%p8721_p3), %s15715_s21, 3 }
  0x6e   : > { %s15772_s11 = scalar_lea.vmem (!%p8721_p3), [#allocation6], %s15747_s4  ;;  %s15808_s6 = scalar_lea.vmem (!%p8721_p3), [#allocation4], %s15747_s4 }
  0x6f   : > { %s15825_s1 = scalar_lea.vmem (!%p8721_p3), [#allocation2], %s15747_s4 }
  0x71   : > { %v8836_v0 = vld [vmem:[%s14646_s28 + $0x8e0] sm:$0xf]  ;;  %v13115_v1 = vld [vmem:[%s14646_s28 + $0x8ec] sm:$0xf0] }
  0x72   : > { %v8964_v2 = vld [vmem:[%s14646_s28 + $0x9e0] sm:$0xf]  ;;  %v8837_v3 = vor.u32 %v13115_v1, %v8836_v0  ;;  %v13147_v4 = vld [vmem:[%s14646_s28 + $0x9ec] sm:$0xf0] }
  0x73   : > { %v9092_v5 = vld [vmem:[%s14646_s28 + $0xae0] sm:$0xf]  ;;  %v13179_v6 = vld [vmem:[%s14646_s28 + $0xaec] sm:$0xf0]  ;;  %v8965_v7 = vor.u32 %v13147_v4, %v8964_v2 }
  0x74   : > { %v9093_v8 = vor.u32 %v13179_v6, %v9092_v5  ;;  %v9220_v9 = vld [vmem:[%s14646_s28 + $0xbe0] sm:$0xf]  ;;  %v13211_v10 = vld [vmem:[%s14646_s28 + $0xbec] sm:$0xf0]  ;;  %2329 = vmatpush.bf16.msra.mxu0 %v8837_v3 }
  0x75   : > { %v8820_v11 = vld [vmem:[%s14646_s28 + $0x8c0] sm:$0xf]  ;;  %v9221_v12 = vor.u32 %v13211_v10, %v9220_v9  ;;  %v13111_v13 = vld [vmem:[%s14646_s28 + $0x8cc] sm:$0xf0]  ;;  %2342 = vmatpush.bf16.msra.mxu1 %v8965_v7 }
  0x76   : > { %v8948_v14 = vld [vmem:[%s14646_s28 + $0x9c0] sm:$0xf]  ;;  %v13143_v15 = vld [vmem:[%s14646_s28 + $0x9cc] sm:$0xf0]  ;;  %2355 = vmatpush.bf16.msra.mxu2 %v9093_v8  ;;  %v8821_v16 = vor.u32 %v13111_v13, %v8820_v11 }
  0x77   : > { %v8949_v17 = vor.u32 %v13143_v15, %v8948_v14  ;;  %v9076_v18 = vld [vmem:[%s14646_s28 + $0xac0] sm:$0xf]  ;;  %v13175_v19 = vld [vmem:[%s14646_s28 + $0xacc] sm:$0xf0]  ;;  %2368 = vmatpush.bf16.msra.mxu3 %v9221_v12 }
  0x78   : > { %v9204_v20 = vld [vmem:[%s14646_s28 + $0xbc0] sm:$0xf]  ;;  %v9077_v21 = vor.u32 %v13175_v19, %v9076_v18  ;;  %v13207_v22 = vld [vmem:[%s14646_s28 + $0xbcc] sm:$0xf0]  ;;  %2330 = vmatpush.bf16.msra.mxu0 %v8821_v16 }
  0x79   : > { %v8804_v23 = vld [vmem:[%s14646_s28 + $0x8a0] sm:$0xf]  ;;  %v13107_v24 = vld [vmem:[%s14646_s28 + $0x8ac] sm:$0xf0]  ;;  %v9205_v25 = vor.u32 %v13207_v22, %v9204_v20  ;;  %2343 = vmatpush.bf16.msra.mxu1 %v8949_v17 }
  0x7a   : > { %v8932_v26 = vld [vmem:[%s14646_s28 + $0x9a0] sm:$0xf]  ;;  %v13139_v27 = vld [vmem:[%s14646_s28 + $0x9ac] sm:$0xf0]  ;;  %v8805_v29 = vor.u32 %v13107_v24, %v8804_v23  ;;  %2356 = vmatpush.bf16.msra.mxu2 %v9077_v21 }
  0x7b   : > { %v9060_v28 = vld [vmem:[%s14646_s28 + $0xaa0] sm:$0xf]  ;;  %v13171_v30 = vld [vmem:[%s14646_s28 + $0xaac] sm:$0xf0]  ;;  %v8933_v33 = vor.u32 %v13139_v27, %v8932_v26  ;;  %2369 = vmatpush.bf16.msra.mxu3 %v9205_v25 }
  0x7c   : > { %v9188_v31 = vld [vmem:[%s14646_s28 + $0xba0] sm:$0xf]  ;;  %v13203_v32 = vld [vmem:[%s14646_s28 + $0xbac] sm:$0xf0]  ;;  %v9061_v34 = vor.u32 %v13171_v30, %v9060_v28  ;;  %2331 = vmatpush.bf16.msra.mxu0 %v8805_v29 }
  0x7d   : > { %v8788_v35 = vld [vmem:[%s14646_s28 + $0x880] sm:$0xf]  ;;  %v13103_v36 = vld [vmem:[%s14646_s28 + $0x88c] sm:$0xf0]  ;;  %v9189_v38 = vor.u32 %v13203_v32, %v9188_v31  ;;  %2344 = vmatpush.bf16.msra.mxu1 %v8933_v33 }
  0x7e   : > { %v8916_v37 = vld [vmem:[%s14646_s28 + $0x980] sm:$0xf]  ;;  %v13135_v39 = vld [vmem:[%s14646_s28 + $0x98c] sm:$0xf0]  ;;  %v8789_v44 = vor.u32 %v13103_v36, %v8788_v35  ;;  %2357 = vmatpush.bf16.msra.mxu2 %v9061_v34 }
  0x7f   : > { %v9044_v40 = vld [vmem:[%s14646_s28 + $0xa80] sm:$0xf]  ;;  %v13167_v41 = vld [vmem:[%s14646_s28 + $0xa8c] sm:$0xf0]  ;;  %v8917_v45 = vor.u32 %v13135_v39, %v8916_v37  ;;  %2370 = vmatpush.bf16.msra.mxu3 %v9189_v38 }
  0x80   : > { %v9172_v42 = vld [vmem:[%s14646_s28 + $0xb80] sm:$0xf]  ;;  %v13199_v43 = vld [vmem:[%s14646_s28 + $0xb8c] sm:$0xf0]  ;;  %v9045_v46 = vor.u32 %v13167_v41, %v9044_v40  ;;  %2332 = vmatpush.bf16.msra.mxu0 %v8789_v44 }
  0x81   : > { %v8772_v47 = vld [vmem:[%s14646_s28 + $0x860] sm:$0xf]  ;;  %v13099_v48 = vld [vmem:[%s14646_s28 + $0x86c] sm:$0xf0]  ;;  %v9173_v50 = vor.u32 %v13199_v43, %v9172_v42  ;;  %2345 = vmatpush.bf16.msra.mxu1 %v8917_v45 }
  0x82   : > { %v8900_v49 = vld [vmem:[%s14646_s28 + $0x960] sm:$0xf]  ;;  %v13131_v51 = vld [vmem:[%s14646_s28 + $0x96c] sm:$0xf0]  ;;  %v8773_v56 = vor.u32 %v13099_v48, %v8772_v47  ;;  %2358 = vmatpush.bf16.msra.mxu2 %v9045_v46 }
  0x83   : > { %v9028_v52 = vld [vmem:[%s14646_s28 + $0xa60] sm:$0xf]  ;;  %v13163_v53 = vld [vmem:[%s14646_s28 + $0xa6c] sm:$0xf0]  ;;  %v8901_v57 = vor.u32 %v13131_v51, %v8900_v49  ;;  %2371 = vmatpush.bf16.msra.mxu3 %v9173_v50 }
  0x84   : > { %v9156_v54 = vld [vmem:[%s14646_s28 + $0xb60] sm:$0xf]  ;;  %v13195_v55 = vld [vmem:[%s14646_s28 + $0xb6c] sm:$0xf0]  ;;  %v9029_v58 = vor.u32 %v13163_v53, %v9028_v52  ;;  %2333 = vmatpush.bf16.msra.mxu0 %v8773_v56 }
  0x85   : > { %v8756_v59 = vld [vmem:[%s14646_s28 + $0x840] sm:$0xf]  ;;  %v13095_v60 = vld [vmem:[%s14646_s28 + $0x84c] sm:$0xf0]  ;;  %v9157_v62 = vor.u32 %v13195_v55, %v9156_v54  ;;  %2346 = vmatpush.bf16.msra.mxu1 %v8901_v57 }
  0x86   : > { %v8884_v61 = vld [vmem:[%s14646_s28 + $0x940] sm:$0xf]  ;;  %v13127_v63 = vld [vmem:[%s14646_s28 + $0x94c] sm:$0xf0]  ;;  %v8757_v4 = vor.u32 %v13095_v60, %v8756_v59  ;;  %2359 = vmatpush.bf16.msra.mxu2 %v9029_v58 }
  0x87   : > { %v9012_v0 = vld [vmem:[%s14646_s28 + $0xa40] sm:$0xf]  ;;  %v13159_v1 = vld [vmem:[%s14646_s28 + $0xa4c] sm:$0xf0]  ;;  %v8885_v5 = vor.u32 %v13127_v63, %v8884_v61  ;;  %2372 = vmatpush.bf16.msra.mxu3 %v9157_v62 }
  0x88   : > { %v9140_v2 = vld [vmem:[%s14646_s28 + $0xb40] sm:$0xf]  ;;  %v13191_v3 = vld [vmem:[%s14646_s28 + $0xb4c] sm:$0xf0]  ;;  %v9013_v6 = vor.u32 %v13159_v1, %v9012_v0  ;;  %2334 = vmatpush.bf16.msra.mxu0 %v8757_v4 }
  0x89   : > { %v8740_v7 = vld [vmem:[%s14646_s28 + $0x820] sm:$0xf]  ;;  %v13091_v8 = vld [vmem:[%s14646_s28 + $0x82c] sm:$0xf0]  ;;  %v9141_v10 = vor.u32 %v13191_v3, %v9140_v2  ;;  %2347 = vmatpush.bf16.msra.mxu1 %v8885_v5 }
  0x8a   : > { %v8868_v9 = vld [vmem:[%s14646_s28 + $0x920] sm:$0xf]  ;;  %v13123_v11 = vld [vmem:[%s14646_s28 + $0x92c] sm:$0xf0]  ;;  %v8741_v16 = vor.u32 %v13091_v8, %v8740_v7  ;;  %2360 = vmatpush.bf16.msra.mxu2 %v9013_v6 }
  0x8b   : > { %v8996_v12 = vld [vmem:[%s14646_s28 + $0xa20] sm:$0xf]  ;;  %v13155_v13 = vld [vmem:[%s14646_s28 + $0xa2c] sm:$0xf0]  ;;  %v8869_v19 = vor.u32 %v13123_v11, %v8868_v9  ;;  %2373 = vmatpush.bf16.msra.mxu3 %v9141_v10  ;;  %v1036_v10 = vld [vmem:[#allocation6 + $0x18] sm:$0xff] }
  0x8c   : > { %v9124_v14 = vld [vmem:[%s14646_s28 + $0xb20] sm:$0xf]  ;;  %v13187_v15 = vld [vmem:[%s14646_s28 + $0xb2c] sm:$0xf0]  ;;  %v8997_v20 = vor.u32 %v13155_v13, %v8996_v12  ;;  %2335 = vmatpush.bf16.msra.mxu0 %v8741_v16  ;;  %v1034_v11 = vld [vmem:[#allocation6 + $0x8] sm:$0xff]  ;;  %v14772_v16 = vpack.c.bf16 %v1036_v10, %v1036_v10 }
  0x8d   : > { %v8724_v17 = vld [vmem:[%s14646_s28 + $0x800] sm:$0xf]  ;;  %v13087_v18 = vld [vmem:[%s14646_s28 + $0x80c] sm:$0xf0]  ;;  %v9125_v24 = vor.u32 %v13187_v15, %v9124_v14  ;;  %2348 = vmatpush.bf16.msra.mxu1 %v8869_v19  ;;  %v8966_v10 = vld [vmem:[%s14646_s28 + $0x9f0] sm:$0xf0] }
  0x8e   : > { %v8852_v21 = vld [vmem:[%s14646_s28 + $0x900] sm:$0xf]  ;;  %v13119_v22 = vld [vmem:[%s14646_s28 + $0x90c] sm:$0xf0]  ;;  %v8725_v31 = vor.u32 %v13087_v18, %v8724_v17  ;;  %2361 = vmatpush.bf16.msra.mxu2 %v8997_v20  ;;  %v14774_v17 = vpack.c.bf16 %v1034_v11, %v1034_v11  ;;  %v13177_v11 = vld [vmem:[%s14646_s28 + $0xae4] sm:$0xf] }
  0x8f   : > { %v8980_v23 = vld [vmem:[%s14646_s28 + $0xa00] sm:$0xf]  ;;  %v13151_v25 = vld [vmem:[%s14646_s28 + $0xa0c] sm:$0xf0]  ;;  %v8853_v35 = vor.u32 %v13119_v22, %v8852_v21  ;;  %2374 = vmatpush.bf16.msra.mxu3 %v9125_v24 }
  0x90   : > { %v9108_v26 = vld [vmem:[%s14646_s28 + $0xb00] sm:$0xf]  ;;  %v13183_v27 = vld [vmem:[%s14646_s28 + $0xb0c] sm:$0xf0]  ;;  %v8981_v36 = vor.u32 %v13151_v25, %v8980_v23  ;;  %2336 = vmatpush.bf16.msra.mxu0 %v8725_v31 }
  0x91   : > { %v9348_v28 = vld [vmem:[%s14646_s28 + $0xce0] sm:$0xf]  ;;  %v13243_v29 = vld [vmem:[%s14646_s28 + $0xcec] sm:$0xf0]  ;;  %v9109_v39 = vor.u32 %v13183_v27, %v9108_v26  ;;  %2349 = vmatpush.bf16.msra.mxu1 %v8853_v35 }
  0x92   : > { %v9476_v30 = vld [vmem:[%s14646_s28 + $0xde0] sm:$0xf]  ;;  %v13275_v32 = vld [vmem:[%s14646_s28 + $0xdec] sm:$0xf0]  ;;  %v9349_v40 = vor.u32 %v13243_v29, %v9348_v28  ;;  %2362 = vmatpush.bf16.msra.mxu2 %v8981_v36 }
  0x93   : > { %v9604_v33 = vld [vmem:[%s14646_s28 + $0xee0] sm:$0xf]  ;;  %v13307_v34 = vld [vmem:[%s14646_s28 + $0xeec] sm:$0xf0]  ;;  %v9477_v41 = vor.u32 %v13275_v32, %v9476_v30  ;;  %2375 = vmatpush.bf16.msra.mxu3 %v9109_v39 }
  0x94   : > { %v9732_v37 = vld [vmem:[%s14646_s28 + $0xfe0] sm:$0xf]  ;;  %v13339_v38 = vld [vmem:[%s14646_s28 + $0xfec] sm:$0xf0]  ;;  %v9605_v42 = vor.u32 %v13307_v34, %v9604_v33  ;;  %2381 = vmatpush.bf16.msrb.mxu0 %v9349_v40  ;;  %2350 = vmatmul.bf16.vlgmr.msra.gmra.mxu1 %v14774_v17 }
  0x95   : > { %v9332_v43 = vld [vmem:[%s14646_s28 + $0xcc0] sm:$0xf]  ;;  %v13239_v44 = vld [vmem:[%s14646_s28 + $0xccc] sm:$0xf0]  ;;  %v9733_v46 = vor.u32 %v13339_v38, %v9732_v37  ;;  %2394 = vmatpush.bf16.msrb.mxu1 %v9477_v41 }
  0x96   : > { %v9460_v45 = vld [vmem:[%s14646_s28 + $0xdc0] sm:$0xf]  ;;  %v13271_v47 = vld [vmem:[%s14646_s28 + $0xdcc] sm:$0xf0]  ;;  %v9333_v52 = vor.u32 %v13239_v44, %v9332_v43  ;;  %2407 = vmatpush.bf16.msrb.mxu2 %v9605_v42  ;;  %2376 = vmatmul.bf16.vlgmr.msra.gmra.mxu3 %v14772_v16 }
  0x97   : > { %v9588_v48 = vld [vmem:[%s14646_s28 + $0xec0] sm:$0xf]  ;;  %v13303_v49 = vld [vmem:[%s14646_s28 + $0xecc] sm:$0xf0]  ;;  %v9461_v54 = vor.u32 %v13271_v47, %v9460_v45  ;;  %2420 = vmatpush.bf16.msrb.mxu3 %v9733_v46 }
  0x98   : > { %v9716_v50 = vld [vmem:[%s14646_s28 + $0xfc0] sm:$0xf]  ;;  %v13335_v51 = vld [vmem:[%s14646_s28 + $0xfcc] sm:$0xf0]  ;;  %v9589_v55 = vor.u32 %v13303_v49, %v9588_v48  ;;  %2382 = vmatpush.bf16.msrb.mxu0 %v9333_v52 }
  0x99   : > { %v9316_v53 = vld [vmem:[%s14646_s28 + $0xca0] sm:$0xf]  ;;  %v13235_v56 = vld [vmem:[%s14646_s28 + $0xcac] sm:$0xf0]  ;;  %v9717_v59 = vor.u32 %v13335_v51, %v9716_v50  ;;  %2395 = vmatpush.bf16.msrb.mxu1 %v9461_v54 }
  0x9a   : > { %v9444_v57 = vld [vmem:[%s14646_s28 + $0xda0] sm:$0xf]  ;;  %v1035_v58 = vld [vmem:[#allocation6 + $0x10] sm:$0xff]  ;;  %v9317_v2 = vor.u32 %v13235_v56, %v9316_v53  ;;  %2408 = vmatpush.bf16.msrb.mxu2 %v9589_v55 }
  0x9b   : > { %v13267_v60 = vld [vmem:[%s14646_s28 + $0xdac] sm:$0xf0]  ;;  %v9572_v61 = vld [vmem:[%s14646_s28 + $0xea0] sm:$0xf]  ;;  %v14759_v63 = vpack.c.bf16 %v1035_v58, %v1035_v58  ;;  %2421 = vmatpush.bf16.msrb.mxu3 %v9717_v59 }
  0x9c   : > { %v13299_v62 = vld [vmem:[%s14646_s28 + $0xeac] sm:$0xf0]  ;;  %v9700_v0 = vld [vmem:[%s14646_s28 + $0xfa0] sm:$0xf]  ;;  %v9445_v6 = vor.u32 %v13267_v60, %v9444_v57  ;;  %2383 = vmatpush.bf16.msrb.mxu0 %v9317_v2 }
  0x9d   : > { %v13331_v1 = vld [vmem:[%s14646_s28 + $0xfac] sm:$0xf0]  ;;  %v9300_v3 = vld [vmem:[%s14646_s28 + $0xc80] sm:$0xf]  ;;  %2363 = vmatmul.bf16.vlgmr.msra.gmra.mxu2 %v14759_v63  ;;  %v9573_v7 = vor.u32 %v13299_v62, %v9572_v61 }
  0x9e   : > { %v13231_v4 = vld [vmem:[%s14646_s28 + $0xc8c] sm:$0xf0]  ;;  %v1033_v5 = vld [vmem:[#allocation6] sm:$0xff]  ;;  %v9701_v12 = vor.u32 %v13331_v1, %v9700_v0  ;;  %2396 = vmatpush.bf16.msrb.mxu1 %v9445_v6  ;;  %v8838_v6 = vld [vmem:[%s14646_s28 + $0x8f0] sm:$0xf0] }
  0x9f   : > { %v9428_v8 = vld [vmem:[%s14646_s28 + $0xd80] sm:$0xf]  ;;  %v14767_v9 = vpack.c.bf16 %v1033_v5, %v1033_v5  ;;  %v13263_v13 = vld [vmem:[%s14646_s28 + $0xd8c] sm:$0xf0]  ;;  %v9301_v20 = vor.u32 %v13231_v4, %v9300_v3  ;;  %2409 = vmatpush.bf16.msrb.mxu2 %v9573_v7  ;;  %v13113_v5 = vld [vmem:[%s14646_s28 + $0x8e4] sm:$0xf] }
  0xa0   : > { %v9556_v14 = vld [vmem:[%s14646_s28 + $0xe80] sm:$0xf]  ;;  %v13295_v15 = vld [vmem:[%s14646_s28 + $0xe8c] sm:$0xf0]  ;;  %v9429_v21 = vor.u32 %v13263_v13, %v9428_v8  ;;  %2422 = vmatpush.bf16.msrb.mxu3 %v9701_v12  ;;  %v13145_v7 = vld [vmem:[%s14646_s28 + $0x9e4] sm:$0xf] }
  0xa1   : > { %v9684_v18 = vld [vmem:[%s14646_s28 + $0xf80] sm:$0xf]  ;;  %v13327_v19 = vld [vmem:[%s14646_s28 + $0xf8c] sm:$0xf0]  ;;  %2337 = vmatmul.bf16.vlgmr.msra.gmra.mxu0 %v14767_v9  ;;  %v9557_v22 = vor.u32 %v13295_v15, %v9556_v14  ;;  %v9094_v12 = vld [vmem:[%s14646_s28 + $0xaf0] sm:$0xf0] }
  0xa2   : > { %v9284_v23 = vld [vmem:[%s14646_s28 + $0xc60] sm:$0xf]  ;;  %v13227_v24 = vld [vmem:[%s14646_s28 + $0xc6c] sm:$0xf0]  ;;  %v9685_v26 = vor.u32 %v13327_v19, %v9684_v18  ;;  %2384 = vmatpush.bf16.msrb.mxu0 %v9301_v20  ;;  %2397 = vmatpush.bf16.msrb.mxu1 %v9429_v21  ;;  %v13209_v15 = vld [vmem:[%s14646_s28 + $0xbe4] sm:$0xf]  ;;  %v8841_v21 = vor.u32 %v13113_v5, %v8838_v6 }
  0xa3   : > { %v9412_v25 = vld [vmem:[%s14646_s28 + $0xd60] sm:$0xf]  ;;  %v13259_v27 = vld [vmem:[%s14646_s28 + $0xd6c] sm:$0xf0]  ;;  %v9285_v32 = vor.u32 %v13227_v24, %v9284_v23  ;;  %2410 = vmatpush.bf16.msrb.mxu2 %v9557_v22  ;;  %v9222_v18 = vld [vmem:[%s14646_s28 + $0xbf0] sm:$0xf0] }
  0xa4   : > { %v9540_v28 = vld [vmem:[%s14646_s28 + $0xe60] sm:$0xf]  ;;  %v13291_v29 = vld [vmem:[%s14646_s28 + $0xe6c] sm:$0xf0]  ;;  %v9413_v33 = vor.u32 %v13259_v27, %v9412_v25  ;;  %2423 = vmatpush.bf16.msrb.mxu3 %v9685_v26  ;;  %v13109_v22 = vld [vmem:[%s14646_s28 + $0x8c4] sm:$0xf]  ;;  %v8969_v25 = vor.u32 %v13145_v7, %v8966_v10  ;;  %v9097_v26 = vor.u32 %v13177_v11, %v9094_v12 }
  0xa5   : > { %v9668_v30 = vld [vmem:[%s14646_s28 + $0xf60] sm:$0xf]  ;;  %v13323_v31 = vld [vmem:[%s14646_s28 + $0xf6c] sm:$0xf0]  ;;  %v9541_v34 = vor.u32 %v13291_v29, %v9540_v28  ;;  %v1040_v24 = vld [vmem:[#allocation6 + $0x38] sm:$0xff] }
  0xa6   : > { %v9268_v35 = vld [vmem:[%s14646_s28 + $0xc40] sm:$0xf]  ;;  %v13223_v36 = vld [vmem:[%s14646_s28 + $0xc4c] sm:$0xf0]  ;;  %v9669_v38 = vor.u32 %v13323_v31, %v9668_v30  ;;  %2385 = vmatpush.bf16.msrb.mxu0 %v9285_v32  ;;  %2398 = vmatpush.bf16.msrb.mxu1 %v9413_v33  ;;  %v8822_v27 = vld [vmem:[%s14646_s28 + $0x8d0] sm:$0xf0]  ;;  %v9225_v30 = vor.u32 %v13209_v15, %v9222_v18 }
  0xa7   : > { %v9396_v37 = vld [vmem:[%s14646_s28 + $0xd40] sm:$0xf]  ;;  %v13255_v39 = vld [vmem:[%s14646_s28 + $0xd4c] sm:$0xf0]  ;;  %v9269_v44 = vor.u32 %v13223_v36, %v9268_v35  ;;  %2411 = vmatpush.bf16.msrb.mxu2 %v9541_v34  ;;  %v13141_v28 = vld [vmem:[%s14646_s28 + $0x9c4] sm:$0xf] }
  0xa8   : > { %v9524_v40 = vld [vmem:[%s14646_s28 + $0xe40] sm:$0xf]  ;;  %v13287_v41 = vld [vmem:[%s14646_s28 + $0xe4c] sm:$0xf0]  ;;  %v9397_v45 = vor.u32 %v13255_v39, %v9396_v37  ;;  %2424 = vmatpush.bf16.msrb.mxu3 %v9669_v38  ;;  %v1038_v29 = vld [vmem:[#allocation6 + $0x28] sm:$0xff]  ;;  %v14833_v38 = vpack.c.bf16 %v1040_v24, %v1040_v24  ;;  %v8825_v39 = vor.u32 %v13109_v22, %v8822_v27 }
  0xa9   : > { %v9652_v42 = vld [vmem:[%s14646_s28 + $0xf40] sm:$0xf]  ;;  %v13319_v43 = vld [vmem:[%s14646_s28 + $0xf4c] sm:$0xf0]  ;;  %v9525_v46 = vor.u32 %v13287_v41, %v9524_v40  ;;  %v8950_v31 = vld [vmem:[%s14646_s28 + $0x9d0] sm:$0xf0]  ;;  %v14835_v40 = vpack.c.bf16 %v1038_v29, %v1038_v29 }
  0xaa   : > { %v9252_v47 = vld [vmem:[%s14646_s28 + $0xc20] sm:$0xf]  ;;  %v13219_v48 = vld [vmem:[%s14646_s28 + $0xc2c] sm:$0xf0]  ;;  %v9653_v50 = vor.u32 %v13319_v43, %v9652_v42  ;;  %2386 = vmatpush.bf16.msrb.mxu0 %v9269_v44  ;;  %2399 = vmatpush.bf16.msrb.mxu1 %v9397_v45  ;;  %v13173_v32 = vld [vmem:[%s14646_s28 + $0xac4] sm:$0xf]  ;;  %v8953_v41 = vor.u32 %v13141_v28, %v8950_v31 }
  0xab   : > { %v9380_v49 = vld [vmem:[%s14646_s28 + $0xd20] sm:$0xf]  ;;  %v13251_v51 = vld [vmem:[%s14646_s28 + $0xd2c] sm:$0xf0]  ;;  %v9253_v56 = vor.u32 %v13219_v48, %v9252_v47  ;;  %2412 = vmatpush.bf16.msrb.mxu2 %v9525_v46  ;;  %v9078_v33 = vld [vmem:[%s14646_s28 + $0xad0] sm:$0xf0] }
  0xac   : > { %v9508_v52 = vld [vmem:[%s14646_s28 + $0xe20] sm:$0xf]  ;;  %v13283_v53 = vld [vmem:[%s14646_s28 + $0xe2c] sm:$0xf0]  ;;  %v9381_v59 = vor.u32 %v13251_v51, %v9380_v49  ;;  %2425 = vmatpush.bf16.msrb.mxu3 %v9653_v50  ;;  %v13205_v35 = vld [vmem:[%s14646_s28 + $0xbc4] sm:$0xf]  ;;  %v9081_v42 = vor.u32 %v13173_v32, %v9078_v33 }
  0xad   : > { %v9636_v54 = vld [vmem:[%s14646_s28 + $0xf20] sm:$0xf]  ;;  %v13315_v55 = vld [vmem:[%s14646_s28 + $0xf2c] sm:$0xf0]  ;;  %v9509_v60 = vor.u32 %v13283_v53, %v9508_v52  ;;  %v9206_v36 = vld [vmem:[%s14646_s28 + $0xbd0] sm:$0xf0] }
  0xae   : > { %v9236_v57 = vld [vmem:[%s14646_s28 + $0xc00] sm:$0xf]  ;;  %v13215_v58 = vld [vmem:[%s14646_s28 + $0xc0c] sm:$0xf0]  ;;  %v9637_v1 = vor.u32 %v13315_v55, %v9636_v54  ;;  %2387 = vmatpush.bf16.msrb.mxu0 %v9253_v56  ;;  %2400 = vmatpush.bf16.msrb.mxu1 %v9381_v59  ;;  %v13105_v43 = vld [vmem:[%s14646_s28 + $0x8a4] sm:$0xf]  ;;  %v9209_v46 = vor.u32 %v13205_v35, %v9206_v36 }
  0xaf   : > { %v9364_v61 = vld [vmem:[%s14646_s28 + $0xd00] sm:$0xf]  ;;  %v13247_v62 = vld [vmem:[%s14646_s28 + $0xd0c] sm:$0xf0]  ;;  %v9237_v8 = vor.u32 %v13215_v58, %v9236_v57  ;;  %2413 = vmatpush.bf16.msrb.mxu2 %v9509_v60  ;;  %v8806_v44 = vld [vmem:[%s14646_s28 + $0x8b0] sm:$0xf0] }
  0xb0   : > { %v9492_v0 = vld [vmem:[%s14646_s28 + $0xe00] sm:$0xf]  ;;  %v13279_v2 = vld [vmem:[%s14646_s28 + $0xe0c] sm:$0xf0]  ;;  %v9365_v13 = vor.u32 %v13247_v62, %v9364_v61  ;;  %2426 = vmatpush.bf16.msrb.mxu3 %v9637_v1  ;;  %v13137_v45 = vld [vmem:[%s14646_s28 + $0x9a4] sm:$0xf]  ;;  %v8809_v52 = vor.u32 %v13105_v43, %v8806_v44 }
  0xb1   : > { %v9620_v3 = vld [vmem:[%s14646_s28 + $0xf00] sm:$0xf]  ;;  %v13311_v4 = vld [vmem:[%s14646_s28 + $0xf0c] sm:$0xf0]  ;;  %v9493_v14 = vor.u32 %v13279_v2, %v9492_v0  ;;  %v8934_v47 = vld [vmem:[%s14646_s28 + $0x9b0] sm:$0xf0] }
  0xb2   : > { %v1039_v19 = vld [vmem:[#allocation6 + $0x30] sm:$0xff]  ;;  %v9621_v20 = vor.u32 %v13311_v4, %v9620_v3  ;;  %v1037_v23 = vld [vmem:[#allocation6 + $0x20] sm:$0xff]  ;;  %2388 = vmatpush.bf16.msrb.mxu0 %v9237_v8  ;;  %2401 = vmatpush.bf16.msrb.mxu1 %v9365_v13  ;;  %v8937_v53 = vor.u32 %v13137_v45, %v8934_v47 }
  0xb3   : > { %v14827_v34 = vpack.c.bf16 %v1039_v19, %v1039_v19  ;;  %2414 = vmatpush.bf16.msrb.mxu2 %v9493_v14  ;;  %v14831_v37 = vpack.c.bf16 %v1037_v23, %v1037_v23  ;;  %v13169_v48 = vld [vmem:[%s14646_s28 + $0xaa4] sm:$0xf]  ;;  %v9062_v49 = vld [vmem:[%s14646_s28 + $0xab0] sm:$0xf0] }
  0xb4   : > { %2427 = vmatpush.bf16.msrb.mxu3 %v9621_v20  ;;  %v13201_v50 = vld [vmem:[%s14646_s28 + $0xba4] sm:$0xf]  ;;  %v9190_v51 = vld [vmem:[%s14646_s28 + $0xbb0] sm:$0xf0]  ;;  %v9065_v54 = vor.u32 %v13169_v48, %v9062_v49 }
  0xb5   : > { %2389 = vmatmul.bf16.vlgmr.msrb.gmra.mxu0 %v14831_v37  ;;  %2402 = vmatmul.bf16.vlgmr.msrb.gmra.mxu1 %v14835_v40  ;;  %v13101_v55 = vld [vmem:[%s14646_s28 + $0x884] sm:$0xf]  ;;  %v8790_v56 = vld [vmem:[%s14646_s28 + $0x890] sm:$0xf0]  ;;  %v9193_v58 = vor.u32 %v13201_v50, %v9190_v51 }
  0xb6   : > { %2433 = vmatpush.bf16.msra.mxu0 %v8841_v21  ;;  %2446 = vmatpush.bf16.msra.mxu1 %v8969_v25  ;;  %v13133_v57 = vld [vmem:[%s14646_s28 + $0x984] sm:$0xf]  ;;  %v8918_v59 = vld [vmem:[%s14646_s28 + $0x990] sm:$0xf0]  ;;  %v8793_v1 = vor.u32 %v13101_v55, %v8790_v56 }
  0xb7   : > { %2459 = vmatpush.bf16.msra.mxu2 %v9097_v26  ;;  %2428 = vmatmul.bf16.vlgmr.msrb.gmra.mxu3 %v14833_v38  ;;  %v13165_v60 = vld [vmem:[%s14646_s28 + $0xa84] sm:$0xf]  ;;  %v9046_v61 = vld [vmem:[%s14646_s28 + $0xa90] sm:$0xf0]  ;;  %v8921_v2 = vor.u32 %v13133_v57, %v8918_v59 }
  0xb8   : > { %2472 = vmatpush.bf16.msra.mxu3 %v9225_v30  ;;  %2415 = vmatmul.bf16.vlgmr.msrb.gmra.mxu2 %v14827_v34  ;;  %v13197_v62 = vld [vmem:[%s14646_s28 + $0xb84] sm:$0xf]  ;;  %v9174_v0 = vld [vmem:[%s14646_s28 + $0xb90] sm:$0xf0]  ;;  %v9049_v3 = vor.u32 %v13165_v60, %v9046_v61 }
  0xb9   : > { %v13097_v4 = vld [vmem:[%s14646_s28 + $0x864] sm:$0xf]  ;;  %v8774_v5 = vld [vmem:[%s14646_s28 + $0x870] sm:$0xf0]  ;;  %v9177_v7 = vor.u32 %v13197_v62, %v9174_v0 }
  0xba   : > { %2434 = vmatpush.bf16.msra.mxu0 %v8825_v39  ;;  %2447 = vmatpush.bf16.msra.mxu1 %v8953_v41  ;;  %v13129_v6 = vld [vmem:[%s14646_s28 + $0x964] sm:$0xf]  ;;  %v8902_v8 = vld [vmem:[%s14646_s28 + $0x970] sm:$0xf0]  ;;  %v8777_v14 = vor.u32 %v13097_v4, %v8774_v5 }
  0xbb   : > { %2460 = vmatpush.bf16.msra.mxu2 %v9081_v42  ;;  %v13161_v10 = vld [vmem:[%s14646_s28 + $0xa64] sm:$0xf]  ;;  %v9030_v11 = vld [vmem:[%s14646_s28 + $0xa70] sm:$0xf0]  ;;  %v8905_v15 = vor.u32 %v13129_v6, %v8902_v8 }
  0xbc   : > { %2473 = vmatpush.bf16.msra.mxu3 %v9209_v46  ;;  %v13193_v12 = vld [vmem:[%s14646_s28 + $0xb64] sm:$0xf]  ;;  %v9158_v13 = vld [vmem:[%s14646_s28 + $0xb70] sm:$0xf0]  ;;  %v9033_v18 = vor.u32 %v13161_v10, %v9030_v11 }
  0xbd   : > { %v13093_v19 = vld [vmem:[%s14646_s28 + $0x844] sm:$0xf]  ;;  %v8758_v20 = vld [vmem:[%s14646_s28 + $0x850] sm:$0xf0]  ;;  %v9161_v22 = vor.u32 %v13193_v12, %v9158_v13 }
  0xbe   : > { %2435 = vmatpush.bf16.msra.mxu0 %v8809_v52  ;;  %2448 = vmatpush.bf16.msra.mxu1 %v8937_v53  ;;  %v13125_v21 = vld [vmem:[%s14646_s28 + $0x944] sm:$0xf]  ;;  %v8886_v23 = vld [vmem:[%s14646_s28 + $0x950] sm:$0xf0]  ;;  %v8761_v28 = vor.u32 %v13093_v19, %v8758_v20 }
  0xbf   : > { %2461 = vmatpush.bf16.msra.mxu2 %v9065_v54  ;;  %v13157_v24 = vld [vmem:[%s14646_s28 + $0xa44] sm:$0xf]  ;;  %v9014_v25 = vld [vmem:[%s14646_s28 + $0xa50] sm:$0xf0]  ;;  %v8889_v29 = vor.u32 %v13125_v21, %v8886_v23 }
  0xc0   : > { %2474 = vmatpush.bf16.msra.mxu3 %v9193_v58  ;;  %v13189_v26 = vld [vmem:[%s14646_s28 + $0xb44] sm:$0xf]  ;;  %v9142_v27 = vld [vmem:[%s14646_s28 + $0xb50] sm:$0xf0]  ;;  %v9017_v30 = vor.u32 %v13157_v24, %v9014_v25 }
  0xc1   : > { %v13089_v31 = vld [vmem:[%s14646_s28 + $0x824] sm:$0xf]  ;;  %v8742_v32 = vld [vmem:[%s14646_s28 + $0x830] sm:$0xf0]  ;;  %v9145_v35 = vor.u32 %v13189_v26, %v9142_v27 }
  0xc2   : > { %2436 = vmatpush.bf16.msra.mxu0 %v8793_v1  ;;  %2449 = vmatpush.bf16.msra.mxu1 %v8921_v2  ;;  %v13121_v33 = vld [vmem:[%s14646_s28 + $0x924] sm:$0xf]  ;;  %v8870_v36 = vld [vmem:[%s14646_s28 + $0x930] sm:$0xf0]  ;;  %v8745_v44 = vor.u32 %v13089_v31, %v8742_v32 }
  0xc3   : > { %2462 = vmatpush.bf16.msra.mxu2 %v9049_v3  ;;  %v13153_v39 = vld [vmem:[%s14646_s28 + $0xa24] sm:$0xf]  ;;  %v8998_v41 = vld [vmem:[%s14646_s28 + $0xa30] sm:$0xf0]  ;;  %v8873_v47 = vor.u32 %v13121_v33, %v8870_v36 }
  0xc4   : > { %2475 = vmatpush.bf16.msra.mxu3 %v9177_v7  ;;  %v13185_v42 = vld [vmem:[%s14646_s28 + $0xb24] sm:$0xf]  ;;  %v9126_v43 = vld [vmem:[%s14646_s28 + $0xb30] sm:$0xf0]  ;;  %v9001_v48 = vor.u32 %v13153_v39, %v8998_v41 }
  0xc5   : > { %v13085_v45 = vld [vmem:[%s14646_s28 + $0x804] sm:$0xf]  ;;  %v8726_v46 = vld [vmem:[%s14646_s28 + $0x810] sm:$0xf0]  ;;  %v9129_v52 = vor.u32 %v13185_v42, %v9126_v43 }
  0xc6   : > { %2437 = vmatpush.bf16.msra.mxu0 %v8777_v14  ;;  %2450 = vmatpush.bf16.msra.mxu1 %v8905_v15  ;;  %v13117_v49 = vld [vmem:[%s14646_s28 + $0x904] sm:$0xf]  ;;  %v8854_v50 = vld [vmem:[%s14646_s28 + $0x910] sm:$0xf0]  ;;  %v8729_v59 = vor.u32 %v13085_v45, %v8726_v46 }
  0xc7   : > { %2463 = vmatpush.bf16.msra.mxu2 %v9033_v18  ;;  %v13149_v51 = vld [vmem:[%s14646_s28 + $0xa04] sm:$0xf]  ;;  %v8982_v53 = vld [vmem:[%s14646_s28 + $0xa10] sm:$0xf0]  ;;  %v8857_v0 = vor.u32 %v13117_v49, %v8854_v50 }
  0xc8   : > { %2476 = vmatpush.bf16.msra.mxu3 %v9161_v22  ;;  %v13181_v54 = vld [vmem:[%s14646_s28 + $0xb04] sm:$0xf]  ;;  %v9110_v55 = vld [vmem:[%s14646_s28 + $0xb10] sm:$0xf0]  ;;  %v8985_v1 = vor.u32 %v13149_v51, %v8982_v53 }
  0xc9   : > { %v13241_v56 = vld [vmem:[%s14646_s28 + $0xce4] sm:$0xf]  ;;  %v9350_v57 = vld [vmem:[%s14646_s28 + $0xcf0] sm:$0xf0]  ;;  %v9113_v4 = vor.u32 %v13181_v54, %v9110_v55 }
  0xca   : > { %2438 = vmatpush.bf16.msra.mxu0 %v8761_v28  ;;  %2451 = vmatpush.bf16.msra.mxu1 %v8889_v29  ;;  %v13273_v58 = vld [vmem:[%s14646_s28 + $0xde4] sm:$0xf]  ;;  %v9478_v60 = vld [vmem:[%s14646_s28 + $0xdf0] sm:$0xf0]  ;;  %v9353_v5 = vor.u32 %v13241_v56, %v9350_v57 }
  0xcb   : > { %2464 = vmatpush.bf16.msra.mxu2 %v9017_v30  ;;  %v13305_v61 = vld [vmem:[%s14646_s28 + $0xee4] sm:$0xf]  ;;  %v9606_v62 = vld [vmem:[%s14646_s28 + $0xef0] sm:$0xf0]  ;;  %v9481_v6 = vor.u32 %v13273_v58, %v9478_v60 }
  0xcc   : > { %2477 = vmatpush.bf16.msra.mxu3 %v9145_v35  ;;  %v13337_v2 = vld [vmem:[%s14646_s28 + $0xfe4] sm:$0xf]  ;;  %v9734_v3 = vld [vmem:[%s14646_s28 + $0xff0] sm:$0xf0]  ;;  %v9609_v7 = vor.u32 %v13305_v61, %v9606_v62 }
  0xcd   : > { %v13237_v8 = vld [vmem:[%s14646_s28 + $0xcc4] sm:$0xf]  ;;  %v9334_v10 = vld [vmem:[%s14646_s28 + $0xcd0] sm:$0xf0]  ;;  %v9737_v12 = vor.u32 %v13337_v2, %v9734_v3 }
  0xce   : > { %2439 = vmatpush.bf16.msra.mxu0 %v8745_v44  ;;  %2452 = vmatpush.bf16.msra.mxu1 %v8873_v47  ;;  %v13269_v11 = vld [vmem:[%s14646_s28 + $0xdc4] sm:$0xf]  ;;  %v9462_v13 = vld [vmem:[%s14646_s28 + $0xdd0] sm:$0xf0]  ;;  %v9337_v20 = vor.u32 %v13237_v8, %v9334_v10 }
  0xcf   : > { %2465 = vmatpush.bf16.msra.mxu2 %v9001_v48  ;;  %v13301_v14 = vld [vmem:[%s14646_s28 + $0xec4] sm:$0xf]  ;;  %v9590_v15 = vld [vmem:[%s14646_s28 + $0xed0] sm:$0xf0]  ;;  %v9465_v21 = vor.u32 %v13269_v11, %v9462_v13 }
  0xd0   : > { %2478 = vmatpush.bf16.msra.mxu3 %v9129_v52  ;;  %v13333_v18 = vld [vmem:[%s14646_s28 + $0xfc4] sm:$0xf]  ;;  %v9718_v19 = vld [vmem:[%s14646_s28 + $0xfd0] sm:$0xf0]  ;;  %v9593_v22 = vor.u32 %v13301_v14, %v9590_v15 }
  0xd1   : > { %v13233_v23 = vld [vmem:[%s14646_s28 + $0xca4] sm:$0xf]  ;;  %v9318_v24 = vld [vmem:[%s14646_s28 + $0xcb0] sm:$0xf0]  ;;  %v9721_v26 = vor.u32 %v13333_v18, %v9718_v19 }
  0xd2   : > { %2440 = vmatpush.bf16.msra.mxu0 %v8729_v59  ;;  %2453 = vmatpush.bf16.msra.mxu1 %v8857_v0  ;;  %v13265_v25 = vld [vmem:[%s14646_s28 + $0xda4] sm:$0xf]  ;;  %v9446_v27 = vld [vmem:[%s14646_s28 + $0xdb0] sm:$0xf0]  ;;  %v9321_v32 = vor.u32 %v13233_v23, %v9318_v24 }
  0xd3   : > { %2466 = vmatpush.bf16.msra.mxu2 %v8985_v1  ;;  %v13297_v28 = vld [vmem:[%s14646_s28 + $0xea4] sm:$0xf]  ;;  %v9574_v29 = vld [vmem:[%s14646_s28 + $0xeb0] sm:$0xf0]  ;;  %v9449_v33 = vor.u32 %v13265_v25, %v9446_v27 }
  0xd4   : > { %2479 = vmatpush.bf16.msra.mxu3 %v9113_v4  ;;  %v13329_v30 = vld [vmem:[%s14646_s28 + $0xfa4] sm:$0xf]  ;;  %v9702_v31 = vld [vmem:[%s14646_s28 + $0xfb0] sm:$0xf0]  ;;  %v9577_v35 = vor.u32 %v13297_v28, %v9574_v29 }
  0xd5   : > { %2441 = vmatmul.bf16.vlgmr.msra.gmra.mxu0 %v14767_v9  ;;  %2454 = vmatmul.bf16.vlgmr.msra.gmra.mxu1 %v14774_v17  ;;  %v13229_v36 = vld [vmem:[%s14646_s28 + $0xc84] sm:$0xf]  ;;  %v9302_v39 = vld [vmem:[%s14646_s28 + $0xc90] sm:$0xf0]  ;;  %v9705_v42 = vor.u32 %v13329_v30, %v9702_v31 }
  0xd6   : > { %2485 = vmatpush.bf16.msrb.mxu0 %v9353_v5  ;;  %2498 = vmatpush.bf16.msrb.mxu1 %v9481_v6  ;;  %v13261_v41 = vld [vmem:[%s14646_s28 + $0xd84] sm:$0xf]  ;;  %v9430_v43 = vld [vmem:[%s14646_s28 + $0xd90] sm:$0xf0]  ;;  %v9305_v48 = vor.u32 %v13229_v36, %v9302_v39  ;;  %v8844_v39 = vld [vmem:[%s14646_s28 + $0x8e8] sm:$0xf] }
  0xd7   : > { %2511 = vmatpush.bf16.msrb.mxu2 %v9609_v7  ;;  %2480 = vmatmul.bf16.vlgmr.msra.gmra.mxu3 %v14772_v16  ;;  %v13293_v44 = vld [vmem:[%s14646_s28 + $0xe84] sm:$0xf]  ;;  %v9558_v45 = vld [vmem:[%s14646_s28 + $0xe90] sm:$0xf0]  ;;  %v9433_v49 = vor.u32 %v13261_v41, %v9430_v43  ;;  %v13116_v41 = vld [vmem:[%s14646_s28 + $0x8f4] sm:$0xf0] }
  0xd8   : > { %2524 = vmatpush.bf16.msrb.mxu3 %v9737_v12  ;;  %2467 = vmatmul.bf16.vlgmr.msra.gmra.mxu2 %v14759_v63  ;;  %v13325_v46 = vld [vmem:[%s14646_s28 + $0xf84] sm:$0xf]  ;;  %v9686_v47 = vld [vmem:[%s14646_s28 + $0xf90] sm:$0xf0]  ;;  %v9561_v50 = vor.u32 %v13293_v44, %v9558_v45  ;;  %v13148_v44 = vld [vmem:[%s14646_s28 + $0x9f4] sm:$0xf0] }
  0xd9   : > { %v13225_v51 = vld [vmem:[%s14646_s28 + $0xc64] sm:$0xf]  ;;  %v9286_v52 = vld [vmem:[%s14646_s28 + $0xc70] sm:$0xf0]  ;;  %v9689_v54 = vor.u32 %v13325_v46, %v9686_v47  ;;  %v9100_v45 = vld [vmem:[%s14646_s28 + $0xae8] sm:$0xf] }
  0xda   : > { %2486 = vmatpush.bf16.msrb.mxu0 %v9337_v20  ;;  %2499 = vmatpush.bf16.msrb.mxu1 %v9465_v21  ;;  %v13257_v53 = vld [vmem:[%s14646_s28 + $0xd64] sm:$0xf]  ;;  %v9414_v55 = vld [vmem:[%s14646_s28 + $0xd70] sm:$0xf0]  ;;  %v9289_v60 = vor.u32 %v13225_v51, %v9286_v52  ;;  %v13180_v46 = vld [vmem:[%s14646_s28 + $0xaf4] sm:$0xf0]  ;;  %v8845_v52 = vor.u32 %v13116_v41, %v8844_v39 }
  0xdb   : > { %2512 = vmatpush.bf16.msrb.mxu2 %v9593_v22  ;;  %v13289_v56 = vld [vmem:[%s14646_s28 + $0xe64] sm:$0xf]  ;;  %v9542_v57 = vld [vmem:[%s14646_s28 + $0xe70] sm:$0xf0]  ;;  %v9417_v61 = vor.u32 %v13257_v53, %v9414_v55  ;;  %v8828_v55 = vld [vmem:[%s14646_s28 + $0x8c8] sm:$0xf] }
  0xdc   : > { %2525 = vmatpush.bf16.msrb.mxu3 %v9721_v26  ;;  %v13321_v58 = vld [vmem:[%s14646_s28 + $0xf64] sm:$0xf]  ;;  %v9670_v59 = vld [vmem:[%s14646_s28 + $0xf70] sm:$0xf0]  ;;  %v9545_v62 = vor.u32 %v13289_v56, %v9542_v57  ;;  %v13112_v56 = vld [vmem:[%s14646_s28 + $0x8d4] sm:$0xf0] }
  0xdd   : > { %v13221_v0 = vld [vmem:[%s14646_s28 + $0xc44] sm:$0xf]  ;;  %v9270_v1 = vld [vmem:[%s14646_s28 + $0xc50] sm:$0xf0]  ;;  %v9673_v3 = vor.u32 %v13321_v58, %v9670_v59  ;;  %v8956_v57 = vld [vmem:[%s14646_s28 + $0x9c8] sm:$0xf] }
  0xde   : > { %2487 = vmatpush.bf16.msrb.mxu0 %v9321_v32  ;;  %2500 = vmatpush.bf16.msrb.mxu1 %v9449_v33  ;;  %v13253_v2 = vld [vmem:[%s14646_s28 + $0xd44] sm:$0xf]  ;;  %v9398_v4 = vld [vmem:[%s14646_s28 + $0xd50] sm:$0xf0]  ;;  %v9273_v10 = vor.u32 %v13221_v0, %v9270_v1  ;;  %v13144_v59 = vld [vmem:[%s14646_s28 + $0x9d4] sm:$0xf0]  ;;  %v8829_v1 = vor.u32 %v13112_v56, %v8828_v55 }
  0xdf   : > { %2513 = vmatpush.bf16.msrb.mxu2 %v9577_v35  ;;  %v13285_v5 = vld [vmem:[%s14646_s28 + $0xe44] sm:$0xf]  ;;  %v9526_v6 = vld [vmem:[%s14646_s28 + $0xe50] sm:$0xf0]  ;;  %v9401_v11 = vor.u32 %v13253_v2, %v9398_v4  ;;  %v13208_v0 = vld [vmem:[%s14646_s28 + $0xbd4] sm:$0xf0]  ;;  %v8957_v2 = vor.u32 %v13144_v59, %v8956_v57 }
  0xe0   : > { %2526 = vmatpush.bf16.msrb.mxu3 %v9705_v42  ;;  %v13317_v7 = vld [vmem:[%s14646_s28 + $0xf44] sm:$0xf]  ;;  %v9654_v8 = vld [vmem:[%s14646_s28 + $0xf50] sm:$0xf0]  ;;  %v9529_v12 = vor.u32 %v13285_v5, %v9526_v6  ;;  %v8972_v42 = vld [vmem:[%s14646_s28 + $0x9e8] sm:$0xf] }
  0xe1   : > { %v13217_v13 = vld [vmem:[%s14646_s28 + $0xc24] sm:$0xf]  ;;  %v9254_v14 = vld [vmem:[%s14646_s28 + $0xc30] sm:$0xf0]  ;;  %v9657_v18 = vor.u32 %v13317_v7, %v9654_v8  ;;  %v8973_v53 = vor.u32 %v13148_v44, %v8972_v42  ;;  %v8812_v4 = vld [vmem:[%s14646_s28 + $0x8a8] sm:$0xf] }
  0xe2   : > { %2488 = vmatpush.bf16.msrb.mxu0 %v9305_v48  ;;  %2501 = vmatpush.bf16.msrb.mxu1 %v9433_v49  ;;  %v13249_v15 = vld [vmem:[%s14646_s28 + $0xd24] sm:$0xf]  ;;  %v9382_v19 = vld [vmem:[%s14646_s28 + $0xd30] sm:$0xf0]  ;;  %v9257_v24 = vor.u32 %v13217_v13, %v9254_v14  ;;  %v9228_v49 = vld [vmem:[%s14646_s28 + $0xbe8] sm:$0xf] }
  0xe3   : > { %2514 = vmatpush.bf16.msrb.mxu2 %v9561_v50  ;;  %v13281_v20 = vld [vmem:[%s14646_s28 + $0xe24] sm:$0xf]  ;;  %v9510_v21 = vld [vmem:[%s14646_s28 + $0xe30] sm:$0xf0]  ;;  %v9385_v27 = vor.u32 %v13249_v15, %v9382_v19  ;;  %v13212_v50 = vld [vmem:[%s14646_s28 + $0xbf4] sm:$0xf0] }
  0xe4   : > { %2527 = vmatpush.bf16.msrb.mxu3 %v9689_v54  ;;  %v13313_v22 = vld [vmem:[%s14646_s28 + $0xf24] sm:$0xf]  ;;  %v9638_v23 = vld [vmem:[%s14646_s28 + $0xf30] sm:$0xf0]  ;;  %v9513_v28 = vor.u32 %v13281_v20, %v9510_v21  ;;  %v9101_v54 = vor.u32 %v13180_v46, %v9100_v45  ;;  %v9229_v58 = vor.u32 %v13212_v50, %v9228_v49  ;;  %v13108_v5 = vld [vmem:[%s14646_s28 + $0x8b4] sm:$0xf0] }
  0xe5   : > { %v13213_v25 = vld [vmem:[%s14646_s28 + $0xc04] sm:$0xf]  ;;  %v9238_v26 = vld [vmem:[%s14646_s28 + $0xc10] sm:$0xf0]  ;;  %v9641_v32 = vor.u32 %v13313_v22, %v9638_v23  ;;  %v8940_v6 = vld [vmem:[%s14646_s28 + $0x9a8] sm:$0xf]  ;;  %v8813_v14 = vor.u32 %v13108_v5, %v8812_v4 }
  0xe6   : > { %2489 = vmatpush.bf16.msrb.mxu0 %v9289_v60  ;;  %2502 = vmatpush.bf16.msrb.mxu1 %v9417_v61  ;;  %v13245_v29 = vld [vmem:[%s14646_s28 + $0xd04] sm:$0xf]  ;;  %v9366_v30 = vld [vmem:[%s14646_s28 + $0xd10] sm:$0xf0]  ;;  %v9241_v43 = vor.u32 %v13213_v25, %v9238_v26  ;;  %v9084_v60 = vld [vmem:[%s14646_s28 + $0xac8] sm:$0xf] }
  0xe7   : > { %2515 = vmatpush.bf16.msrb.mxu2 %v9545_v62  ;;  %v13277_v31 = vld [vmem:[%s14646_s28 + $0xe04] sm:$0xf]  ;;  %v9494_v33 = vld [vmem:[%s14646_s28 + $0xe10] sm:$0xf0]  ;;  %v9369_v47 = vor.u32 %v13245_v29, %v9366_v30  ;;  %v13176_v61 = vld [vmem:[%s14646_s28 + $0xad4] sm:$0xf0] }
  0xe8   : > { %2528 = vmatpush.bf16.msrb.mxu3 %v9673_v3  ;;  %v13309_v35 = vld [vmem:[%s14646_s28 + $0xf04] sm:$0xf]  ;;  %v9622_v36 = vld [vmem:[%s14646_s28 + $0xf10] sm:$0xf0]  ;;  %v9497_v48 = vor.u32 %v13277_v31, %v9494_v33  ;;  %v9212_v62 = vld [vmem:[%s14646_s28 + $0xbc8] sm:$0xf]  ;;  %v9085_v3 = vor.u32 %v13176_v61, %v9084_v60 }
  0xe9   : > { %v9625_v51 = vor.u32 %v13309_v35, %v9622_v36  ;;  %v9213_v7 = vor.u32 %v13208_v0, %v9212_v62  ;;  %v13140_v8 = vld [vmem:[%s14646_s28 + $0x9b4] sm:$0xf0]  ;;  %v8796_v19 = vld [vmem:[%s14646_s28 + $0x888] sm:$0xf] }
  0xea   : > { %2490 = vmatpush.bf16.msrb.mxu0 %v9273_v10  ;;  %2503 = vmatpush.bf16.msrb.mxu1 %v9401_v11  ;;  %v9068_v10 = vld [vmem:[%s14646_s28 + $0xaa8] sm:$0xf]  ;;  %v13172_v11 = vld [vmem:[%s14646_s28 + $0xab4] sm:$0xf0]  ;;  %v8941_v15 = vor.u32 %v13140_v8, %v8940_v6 }
  0xeb   : > { %2516 = vmatpush.bf16.msrb.mxu2 %v9529_v12  ;;  %v9196_v12 = vld [vmem:[%s14646_s28 + $0xba8] sm:$0xf]  ;;  %v13204_v13 = vld [vmem:[%s14646_s28 + $0xbb4] sm:$0xf0] }
  0xec   : > { %2529 = vmatpush.bf16.msrb.mxu3 %v9657_v18  ;;  %v9069_v18 = vor.u32 %v13172_v11, %v9068_v10  ;;  %v13104_v20 = vld [vmem:[%s14646_s28 + $0x894] sm:$0xf0]  ;;  %v8924_v21 = vld [vmem:[%s14646_s28 + $0x988] sm:$0xf]  ;;  %v9197_v22 = vor.u32 %v13204_v13, %v9196_v12 }
  0xed   : > { %v13136_v23 = vld [vmem:[%s14646_s28 + $0x994] sm:$0xf0]  ;;  %v9180_v26 = vld [vmem:[%s14646_s28 + $0xb88] sm:$0xf] }
  0xee   : > { %2491 = vmatpush.bf16.msrb.mxu0 %v9257_v24  ;;  %2504 = vmatpush.bf16.msrb.mxu1 %v9385_v27  ;;  %v9052_v24 = vld [vmem:[%s14646_s28 + $0xa88] sm:$0xf]  ;;  %v13168_v25 = vld [vmem:[%s14646_s28 + $0xa94] sm:$0xf0]  ;;  %v8925_v29 = vor.u32 %v13136_v23, %v8924_v21 }
  0xef   : > { %2517 = vmatpush.bf16.msrb.mxu2 %v9513_v28  ;;  %v13200_v27 = vld [vmem:[%s14646_s28 + $0xb94] sm:$0xf0]  ;;  %v8797_v28 = vor.u32 %v13104_v20, %v8796_v19  ;;  %v9053_v30 = vor.u32 %v13168_v25, %v9052_v24  ;;  %v8780_v31 = vld [vmem:[%s14646_s28 + $0x868] sm:$0xf] }
  0xf0   : > { %2530 = vmatpush.bf16.msrb.mxu3 %v9641_v32  ;;  %v13100_v32 = vld [vmem:[%s14646_s28 + $0x874] sm:$0xf0]  ;;  %v8908_v33 = vld [vmem:[%s14646_s28 + $0x968] sm:$0xf]  ;;  %v9181_v35 = vor.u32 %v13200_v27, %v9180_v26 }
  0xf1   : > { %v13132_v36 = vld [vmem:[%s14646_s28 + $0x974] sm:$0xf0]  ;;  %v9036_v39 = vld [vmem:[%s14646_s28 + $0xa68] sm:$0xf]  ;;  %v8781_v44 = vor.u32 %v13100_v32, %v8780_v31 }
  0xf2   : > { %2492 = vmatpush.bf16.msrb.mxu0 %v9241_v43  ;;  %2505 = vmatpush.bf16.msrb.mxu1 %v9369_v47  ;;  %v13164_v41 = vld [vmem:[%s14646_s28 + $0xa74] sm:$0xf0]  ;;  %v9164_v42 = vld [vmem:[%s14646_s28 + $0xb68] sm:$0xf]  ;;  %v8909_v45 = vor.u32 %v13132_v36, %v8908_v33 }
  0xf3   : > { %2518 = vmatpush.bf16.msrb.mxu2 %v9497_v48  ;;  %v13196_v43 = vld [vmem:[%s14646_s28 + $0xb74] sm:$0xf0]  ;;  %v9037_v46 = vor.u32 %v13164_v41, %v9036_v39  ;;  %v8764_v47 = vld [vmem:[%s14646_s28 + $0x848] sm:$0xf] }
  0xf4   : > { %2531 = vmatpush.bf16.msrb.mxu3 %v9625_v51  ;;  %v13096_v48 = vld [vmem:[%s14646_s28 + $0x854] sm:$0xf0]  ;;  %v8892_v49 = vld [vmem:[%s14646_s28 + $0x948] sm:$0xf]  ;;  %v9165_v50 = vor.u32 %v13196_v43, %v9164_v42 }
  0xf5   : > { %2493 = vmatmul.bf16.vlgmr.msrb.gmra.mxu0 %v14831_v37  ;;  %2506 = vmatmul.bf16.vlgmr.msrb.gmra.mxu1 %v14835_v40  ;;  %v13128_v51 = vld [vmem:[%s14646_s28 + $0x954] sm:$0xf0]  ;;  %v8765_v56 = vor.u32 %v13096_v48, %v8764_v47  ;;  %v8748_v59 = vld [vmem:[%s14646_s28 + $0x828] sm:$0xf] }
  0xf6   : > { %2537 = vmatpush.bf16.msra.mxu0 %v8845_v52  ;;  %2550 = vmatpush.bf16.msra.mxu1 %v8973_v53  ;;  %v9020_v52 = vld [vmem:[%s14646_s28 + $0xa48] sm:$0xf]  ;;  %v13160_v53 = vld [vmem:[%s14646_s28 + $0xa54] sm:$0xf0]  ;;  %v8893_v57 = vor.u32 %v13128_v51, %v8892_v49 }
  0xf7   : > { %2563 = vmatpush.bf16.msra.mxu2 %v9101_v54  ;;  %2532 = vmatmul.bf16.vlgmr.msrb.gmra.mxu3 %v14833_v38  ;;  %v9148_v54 = vld [vmem:[%s14646_s28 + $0xb48] sm:$0xf]  ;;  %v13192_v55 = vld [vmem:[%s14646_s28 + $0xb54] sm:$0xf0] }
  0xf8   : > { %2576 = vmatpush.bf16.msra.mxu3 %v9229_v58  ;;  %2519 = vmatmul.bf16.vlgmr.msrb.gmra.mxu2 %v14827_v34  ;;  %v9021_v58 = vor.u32 %v13160_v53, %v9020_v52  ;;  %v13092_v60 = vld [vmem:[%s14646_s28 + $0x834] sm:$0xf0]  ;;  %v8876_v61 = vld [vmem:[%s14646_s28 + $0x928] sm:$0xf]  ;;  %v9149_v62 = vor.u32 %v13192_v55, %v9148_v54 }
  0xf9   : > { %v13124_v0 = vld [vmem:[%s14646_s28 + $0x934] sm:$0xf0]  ;;  %v8749_v5 = vor.u32 %v13092_v60, %v8748_v59  ;;  %v8732_v6 = vld [vmem:[%s14646_s28 + $0x808] sm:$0xf] }
  0xfa   : > { %2538 = vmatpush.bf16.msra.mxu0 %v8829_v1  ;;  %2551 = vmatpush.bf16.msra.mxu1 %v8957_v2  ;;  %v9004_v1 = vld [vmem:[%s14646_s28 + $0xa28] sm:$0xf]  ;;  %v13156_v2 = vld [vmem:[%s14646_s28 + $0xa34] sm:$0xf0]  ;;  %v8877_v8 = vor.u32 %v13124_v0, %v8876_v61 }
  0xfb   : > { %2564 = vmatpush.bf16.msra.mxu2 %v9085_v3  ;;  %v9132_v3 = vld [vmem:[%s14646_s28 + $0xb28] sm:$0xf]  ;;  %v13188_v4 = vld [vmem:[%s14646_s28 + $0xb34] sm:$0xf0]  ;;  %v9005_v10 = vor.u32 %v13156_v2, %v9004_v1 }
  0xfc   : > { %2577 = vmatpush.bf16.msra.mxu3 %v9213_v7  ;;  %v13088_v7 = vld [vmem:[%s14646_s28 + $0x814] sm:$0xf0]  ;;  %v8860_v11 = vld [vmem:[%s14646_s28 + $0x908] sm:$0xf] }
  0xfd   : > { %v13120_v12 = vld [vmem:[%s14646_s28 + $0x914] sm:$0xf0]  ;;  %v8988_v13 = vld [vmem:[%s14646_s28 + $0xa08] sm:$0xf]  ;;  %v8733_v23 = vor.u32 %v13088_v7, %v8732_v6 }
  0xfe   : > { %2539 = vmatpush.bf16.msra.mxu0 %v8813_v14  ;;  %2552 = vmatpush.bf16.msra.mxu1 %v8941_v15  ;;  %v9133_v14 = vor.u32 %v13188_v4, %v9132_v3  ;;  %v13152_v15 = vld [vmem:[%s14646_s28 + $0xa14] sm:$0xf0]  ;;  %v9356_v20 = vld [vmem:[%s14646_s28 + $0xce8] sm:$0xf]  ;;  %v8861_v27 = vor.u32 %v13120_v12, %v8860_v11 }
  0xff   : > { %2565 = vmatpush.bf16.msra.mxu2 %v9069_v18  ;;  %v9116_v18 = vld [vmem:[%s14646_s28 + $0xb08] sm:$0xf]  ;;  %v13184_v19 = vld [vmem:[%s14646_s28 + $0xb14] sm:$0xf0] }
 0x100   : > { %2578 = vmatpush.bf16.msra.mxu3 %v9197_v22  ;;  %v13244_v21 = vld [vmem:[%s14646_s28 + $0xcf4] sm:$0xf0]  ;;  %v9484_v22 = vld [vmem:[%s14646_s28 + $0xde8] sm:$0xf]  ;;  %v9117_v31 = vor.u32 %v13184_v19, %v9116_v18 }
 0x101   : > { %v13276_v24 = vld [vmem:[%s14646_s28 + $0xdf4] sm:$0xf0]  ;;  %v9612_v25 = vld [vmem:[%s14646_s28 + $0xee8] sm:$0xf]  ;;  %v9357_v32 = vor.u32 %v13244_v21, %v9356_v20 }
 0x102   : > { %2540 = vmatpush.bf16.msra.mxu0 %v8797_v28  ;;  %2553 = vmatpush.bf16.msra.mxu1 %v8925_v29  ;;  %v13308_v26 = vld [vmem:[%s14646_s28 + $0xef4] sm:$0xf0]  ;;  %v8989_v28 = vor.u32 %v13152_v15, %v8988_v13  ;;  %v9740_v29 = vld [vmem:[%s14646_s28 + $0xfe8] sm:$0xf]  ;;  %v9485_v33 = vor.u32 %v13276_v24, %v9484_v22 }
 0x103   : > { %2566 = vmatpush.bf16.msra.mxu2 %v9053_v30  ;;  %v13340_v30 = vld [vmem:[%s14646_s28 + $0xff4] sm:$0xf0]  ;;  %v9340_v36 = vld [vmem:[%s14646_s28 + $0xcc8] sm:$0xf] }
 0x104   : > { %2579 = vmatpush.bf16.msra.mxu3 %v9181_v35  ;;  %v9613_v35 = vor.u32 %v13308_v26, %v9612_v25  ;;  %v13240_v39 = vld [vmem:[%s14646_s28 + $0xcd4] sm:$0xf0]  ;;  %v9468_v41 = vld [vmem:[%s14646_s28 + $0xdc8] sm:$0xf]  ;;  %v9741_v42 = vor.u32 %v13340_v30, %v9740_v29 }
 0x105   : > { %v13272_v43 = vld [vmem:[%s14646_s28 + $0xdd4] sm:$0xf0]  ;;  %v9341_v48 = vor.u32 %v13240_v39, %v9340_v36  ;;  %v9324_v51 = vld [vmem:[%s14646_s28 + $0xca8] sm:$0xf] }
 0x106   : > { %2541 = vmatpush.bf16.msra.mxu0 %v8781_v44  ;;  %2554 = vmatpush.bf16.msra.mxu1 %v8909_v45  ;;  %v9596_v44 = vld [vmem:[%s14646_s28 + $0xec8] sm:$0xf]  ;;  %v13304_v45 = vld [vmem:[%s14646_s28 + $0xed4] sm:$0xf0]  ;;  %v9469_v49 = vor.u32 %v13272_v43, %v9468_v41 }
 0x107   : > { %2567 = vmatpush.bf16.msra.mxu2 %v9037_v46  ;;  %v9724_v46 = vld [vmem:[%s14646_s28 + $0xfc8] sm:$0xf]  ;;  %v13336_v47 = vld [vmem:[%s14646_s28 + $0xfd4] sm:$0xf0] }
 0x108   : > { %2580 = vmatpush.bf16.msra.mxu3 %v9165_v50  ;;  %v9597_v50 = vor.u32 %v13304_v45, %v9596_v44  ;;  %v13236_v52 = vld [vmem:[%s14646_s28 + $0xcb4] sm:$0xf0]  ;;  %v9452_v53 = vld [vmem:[%s14646_s28 + $0xda8] sm:$0xf]  ;;  %v9725_v54 = vor.u32 %v13336_v47, %v9724_v46 }
 0x109   : > { %v13268_v55 = vld [vmem:[%s14646_s28 + $0xdb4] sm:$0xf0]  ;;  %v9325_v60 = vor.u32 %v13236_v52, %v9324_v51  ;;  %v9308_v0 = vld [vmem:[%s14646_s28 + $0xc88] sm:$0xf] }
 0x10a   : > { %2542 = vmatpush.bf16.msra.mxu0 %v8765_v56  ;;  %2555 = vmatpush.bf16.msra.mxu1 %v8893_v57  ;;  %v9580_v56 = vld [vmem:[%s14646_s28 + $0xea8] sm:$0xf]  ;;  %v13300_v57 = vld [vmem:[%s14646_s28 + $0xeb4] sm:$0xf0]  ;;  %v9453_v61 = vor.u32 %v13268_v55, %v9452_v53 }
 0x10b   : > { %2568 = vmatpush.bf16.msra.mxu2 %v9021_v58  ;;  %v9708_v58 = vld [vmem:[%s14646_s28 + $0xfa8] sm:$0xf]  ;;  %v13332_v59 = vld [vmem:[%s14646_s28 + $0xfb4] sm:$0xf0] }
 0x10c   : > { %2581 = vmatpush.bf16.msra.mxu3 %v9149_v62  ;;  %v9581_v62 = vor.u32 %v13300_v57, %v9580_v56  ;;  %v13232_v1 = vld [vmem:[%s14646_s28 + $0xc94] sm:$0xf0]  ;;  %v9436_v2 = vld [vmem:[%s14646_s28 + $0xd88] sm:$0xf]  ;;  %v9709_v3 = vor.u32 %v13332_v59, %v9708_v58 }
 0x10d   : > { %v13264_v4 = vld [vmem:[%s14646_s28 + $0xd94] sm:$0xf0]  ;;  %v9692_v7 = vld [vmem:[%s14646_s28 + $0xf88] sm:$0xf] }
 0x10e   : > { %2543 = vmatpush.bf16.msra.mxu0 %v8749_v5  ;;  %2556 = vmatpush.bf16.msra.mxu1 %v8877_v8  ;;  %v9564_v5 = vld [vmem:[%s14646_s28 + $0xe88] sm:$0xf]  ;;  %v13296_v6 = vld [vmem:[%s14646_s28 + $0xe94] sm:$0xf0]  ;;  %v9437_v11 = vor.u32 %v13264_v4, %v9436_v2 }
 0x10f   : > { %2569 = vmatpush.bf16.msra.mxu2 %v9005_v10  ;;  %v13328_v8 = vld [vmem:[%s14646_s28 + $0xf94] sm:$0xf0]  ;;  %v9309_v10 = vor.u32 %v13232_v1, %v9308_v0  ;;  %v9565_v12 = vor.u32 %v13296_v6, %v9564_v5  ;;  %v9292_v13 = vld [vmem:[%s14646_s28 + $0xc68] sm:$0xf] }
 0x110   : > { %2582 = vmatpush.bf16.msra.mxu3 %v9133_v14  ;;  %v13228_v14 = vld [vmem:[%s14646_s28 + $0xc74] sm:$0xf0]  ;;  %v9420_v15 = vld [vmem:[%s14646_s28 + $0xd68] sm:$0xf]  ;;  %v9693_v18 = vor.u32 %v13328_v8, %v9692_v7 }
 0x111   : > { %v13260_v19 = vld [vmem:[%s14646_s28 + $0xd74] sm:$0xf0]  ;;  %v9548_v20 = vld [vmem:[%s14646_s28 + $0xe68] sm:$0xf]  ;;  %v9293_v24 = vor.u32 %v13228_v14, %v9292_v13  ;;  %v2351_v41 = vpop.f32.mrf.mxu1 }
 0x112   : > { %2544 = vmatpush.bf16.msra.mxu0 %v8733_v23  ;;  %2557 = vmatpush.bf16.msra.mxu1 %v8861_v27  ;;  %v13292_v21 = vld [vmem:[%s14646_s28 + $0xe74] sm:$0xf0]  ;;  %v9676_v22 = vld [vmem:[%s14646_s28 + $0xf68] sm:$0xf]  ;;  %v9421_v26 = vor.u32 %v13260_v19, %v9420_v15  ;;  %v13178_v19 = vld [vmem:[%s14646_s28 + $0xaec] sm:$0xf] }
 0x113   : > { %2570 = vmatpush.bf16.msra.mxu2 %v8989_v28  ;;  %v13324_v23 = vld [vmem:[%s14646_s28 + $0xf74] sm:$0xf0]  ;;  %v9549_v27 = vor.u32 %v13292_v21, %v9548_v20  ;;  %v9276_v28 = vld [vmem:[%s14646_s28 + $0xc48] sm:$0xf]  ;;  %v9102_v20 = vld [vmem:[%s14646_s28 + $0xaf8] sm:$0xf0] }
 0x114   : > { %2583 = vmatpush.bf16.msra.mxu3 %v9117_v31  ;;  %v13224_v29 = vld [vmem:[%s14646_s28 + $0xc54] sm:$0xf0]  ;;  %v9404_v30 = vld [vmem:[%s14646_s28 + $0xd48] sm:$0xf]  ;;  %v9677_v31 = vor.u32 %v13324_v23, %v9676_v22  ;;  %v13210_v23 = vld [vmem:[%s14646_s28 + $0xbec] sm:$0xf] }
 0x115   : > { %2545 = vmatmul.bf16.vlgmr.msra.gmra.mxu0 %v14767_v9  ;;  %2558 = vmatmul.bf16.vlgmr.msra.gmra.mxu1 %v14774_v17  ;;  %v9660_v36 = vld [vmem:[%s14646_s28 + $0xf48] sm:$0xf]  ;;  %v13320_v39 = vld [vmem:[%s14646_s28 + $0xf54] sm:$0xf0]  ;;  %v9277_v43 = vor.u32 %v13224_v29, %v9276_v28  ;;  %v9105_v28 = vor.u32 %v13178_v19, %v9102_v20  ;;  %v13110_v29 = vld [vmem:[%s14646_s28 + $0x8cc] sm:$0xf] }
 0x116   : > { %2589 = vmatpush.bf16.msrb.mxu0 %v9357_v32  ;;  %2602 = vmatpush.bf16.msrb.mxu1 %v9485_v33  ;;  %v13256_v32 = vld [vmem:[%s14646_s28 + $0xd54] sm:$0xf0]  ;;  %v9532_v33 = vld [vmem:[%s14646_s28 + $0xe48] sm:$0xf]  ;;  %v13162_v19 = vld [vmem:[%s14646_s28 + $0xa6c] sm:$0xf] }
 0x117   : > { %2615 = vmatpush.bf16.msrb.mxu2 %v9613_v35  ;;  %2584 = vmatmul.bf16.vlgmr.msra.gmra.mxu3 %v14772_v16  ;;  %v13288_v35 = vld [vmem:[%s14646_s28 + $0xe54] sm:$0xf0]  ;;  %v9405_v45 = vor.u32 %v13256_v32, %v9404_v30  ;;  %v9260_v47 = vld [vmem:[%s14646_s28 + $0xc28] sm:$0xf]  ;;  %v8830_v30 = vld [vmem:[%s14646_s28 + $0x8d8] sm:$0xf0] }
 0x118   : > { %2628 = vmatpush.bf16.msrb.mxu3 %v9741_v42  ;;  %2571 = vmatmul.bf16.vlgmr.msra.gmra.mxu2 %v14759_v63  ;;  %v9533_v46 = vor.u32 %v13288_v35, %v9532_v33  ;;  %v13252_v51 = vld [vmem:[%s14646_s28 + $0xd34] sm:$0xf0]  ;;  %v9516_v52 = vld [vmem:[%s14646_s28 + $0xe28] sm:$0xf]  ;;  %v8958_v35 = vld [vmem:[%s14646_s28 + $0x9d8] sm:$0xf0] }
 0x119   : > { %v13284_v53 = vld [vmem:[%s14646_s28 + $0xe34] sm:$0xf0]  ;;  %v9644_v55 = vld [vmem:[%s14646_s28 + $0xf28] sm:$0xf]  ;;  %v2377_v57 = vpop.f32.mrf.mxu3  ;;  %v2353_v13 = vpop.f32.mrf.mxu1  ;;  %v9038_v20 = vld [vmem:[%s14646_s28 + $0xa78] sm:$0xf0] }
 0x11a   : > { %2590 = vmatpush.bf16.msrb.mxu0 %v9341_v48  ;;  %2603 = vmatpush.bf16.msrb.mxu1 %v9469_v49  ;;  %v13220_v48 = vld [vmem:[%s14646_s28 + $0xc34] sm:$0xf0]  ;;  %v9388_v49 = vld [vmem:[%s14646_s28 + $0xd28] sm:$0xf]  ;;  %v9517_v1 = vor.u32 %v13284_v53, %v9516_v52  ;;  %v9070_v52 = vld [vmem:[%s14646_s28 + $0xab8] sm:$0xf0] }
 0x11b   : > { %2616 = vmatpush.bf16.msrb.mxu2 %v9597_v50  ;;  %v9661_v50 = vor.u32 %v13320_v39, %v9660_v36  ;;  %v13316_v56 = vld [vmem:[%s14646_s28 + $0xf34] sm:$0xf0]  ;;  %v9261_v58 = vor.u32 %v13220_v48, %v9260_v47  ;;  %v9244_v59 = vld [vmem:[%s14646_s28 + $0xc08] sm:$0xf]  ;;  %v9389_v0 = vor.u32 %v13252_v51, %v9388_v49  ;;  %v13174_v36 = vld [vmem:[%s14646_s28 + $0xacc] sm:$0xf] }
 0x11c   : > { %2629 = vmatpush.bf16.msrb.mxu3 %v9725_v54  ;;  %v9372_v2 = vld [vmem:[%s14646_s28 + $0xd08] sm:$0xf]  ;;  %v9645_v5 = vor.u32 %v13316_v56, %v9644_v55  ;;  %v13280_v6 = vld [vmem:[%s14646_s28 + $0xe14] sm:$0xf0]  ;;  %v9086_v39 = vld [vmem:[%s14646_s28 + $0xad8] sm:$0xf0] }
 0x11d   : > { %v9500_v4 = vld [vmem:[%s14646_s28 + $0xe08] sm:$0xf]  ;;  %v13312_v8 = vld [vmem:[%s14646_s28 + $0xf14] sm:$0xf0]  ;;  %v8814_v47 = vld [vmem:[%s14646_s28 + $0x8b8] sm:$0xf0] }
 0x11e   : > { %2591 = vmatpush.bf16.msrb.mxu0 %v9325_v60  ;;  %2604 = vmatpush.bf16.msrb.mxu1 %v9453_v61  ;;  %v2338_v25 = vpop.f32.mrf.mxu0  ;;  %v13216_v60 = vld [vmem:[%s14646_s28 + $0xc14] sm:$0xf0]  ;;  %v9628_v7 = vld [vmem:[%s14646_s28 + $0xf08] sm:$0xf]  ;;  %v9501_v22 = vor.u32 %v13280_v6, %v9500_v4  ;;  %v13138_v48 = vld [vmem:[%s14646_s28 + $0x9ac] sm:$0xf] }
 0x11f   : > { %2617 = vmatpush.bf16.msrb.mxu2 %v9581_v62  ;;  %v2352_v44 = vadd.f32 %v2351_v41, %v2338_v25  ;;  %v9245_v15 = vor.u32 %v13216_v60, %v9244_v59  ;;  %v9629_v25 = vor.u32 %v13312_v8, %v9628_v7  ;;  %v13206_v41 = vld [vmem:[%s14646_s28 + $0xbcc] sm:$0xf]  ;;  %v8798_v59 = vld [vmem:[%s14646_s28 + $0x898] sm:$0xf0] }
 0x120   : > { %2630 = vmatpush.bf16.msrb.mxu3 %v9709_v3  ;;  %v2364_v42 = vpop.f32.mrf.mxu2  ;;  %v13248_v3 = vld [vmem:[%s14646_s28 + $0xd14] sm:$0xf0]  ;;  %v13170_v51 = vld [vmem:[%s14646_s28 + $0xaac] sm:$0xf]  ;;  %v9182_v4 = vld [vmem:[%s14646_s28 + $0xb98] sm:$0xf0] }
 0x121   : > { %v2365_v54 = vadd.f32 %v2364_v42, %v2352_v44  ;;  %v9373_v21 = vor.u32 %v13248_v3, %v9372_v2  ;;  %v2379_v32 = vpop.f32.mrf.mxu3  ;;  %v9214_v42 = vld [vmem:[%s14646_s28 + $0xbd8] sm:$0xf0]  ;;  %v13202_v53 = vld [vmem:[%s14646_s28 + $0xbac] sm:$0xf] }
 0x122   : > { %2592 = vmatpush.bf16.msrb.mxu0 %v9309_v10  ;;  %2605 = vmatpush.bf16.msrb.mxu1 %v9437_v11  ;;  %v13114_v10 = vld [vmem:[%s14646_s28 + $0x8ec] sm:$0xf]  ;;  %v8846_v11 = vld [vmem:[%s14646_s28 + $0x8f8] sm:$0xf0]  ;;  %v9217_v49 = vor.u32 %v13206_v41, %v9214_v42 }
 0x123   : > { %2618 = vmatpush.bf16.msrb.mxu2 %v9565_v12  ;;  %v15087_v61 = vadd.f32 %v2377_v57, %v2365_v54  ;;  %v13146_v12 = vld [vmem:[%s14646_s28 + $0x9ec] sm:$0xf]  ;;  %v9198_v54 = vld [vmem:[%s14646_s28 + $0xbb8] sm:$0xf0]  ;;  %v9073_v57 = vor.u32 %v13170_v51, %v9070_v52 }
 0x124   : > { %2631 = vmatpush.bf16.msrb.mxu3 %v9693_v18  ;;  %v8974_v18 = vld [vmem:[%s14646_s28 + $0x9f8] sm:$0xf0]  ;;  %v13134_v60 = vld [vmem:[%s14646_s28 + $0x98c] sm:$0xf] }
 0x125   : > { %v9054_v2 = vld [vmem:[%s14646_s28 + $0xa98] sm:$0xf0]  ;;  %v13198_v3 = vld [vmem:[%s14646_s28 + $0xb8c] sm:$0xf] }
 0x126   : > { %2593 = vmatpush.bf16.msrb.mxu0 %v9293_v24  ;;  %2606 = vmatpush.bf16.msrb.mxu1 %v9421_v26  ;;  %v2340_v62 = vpop.f32.mrf.mxu0  ;;  %v9230_v24 = vld [vmem:[%s14646_s28 + $0xbf8] sm:$0xf0]  ;;  %v8849_v26 = vor.u32 %v13114_v10, %v8846_v11  ;;  %v13098_v10 = vld [vmem:[%s14646_s28 + $0x86c] sm:$0xf] }
 0x127   : > { %2619 = vmatpush.bf16.msrb.mxu2 %v9549_v27  ;;  %v8977_v27 = vor.u32 %v13146_v12, %v8974_v18  ;;  %v9233_v33 = vor.u32 %v13210_v23, %v9230_v24  ;;  %v9201_v62 = vor.u32 %v13202_v53, %v9198_v54  ;;  %v8782_v11 = vld [vmem:[%s14646_s28 + $0x878] sm:$0xf0]  ;;  %v13130_v12 = vld [vmem:[%s14646_s28 + $0x96c] sm:$0xf] }
 0x128   : > { %2632 = vmatpush.bf16.msrb.mxu3 %v9677_v31  ;;  %v2366_v14 = vpop.f32.mrf.mxu2  ;;  %v13142_v31 = vld [vmem:[%s14646_s28 + $0x9cc] sm:$0xf]  ;;  %v8910_v18 = vld [vmem:[%s14646_s28 + $0x978] sm:$0xf0]  ;;  %v8785_v24 = vor.u32 %v13098_v10, %v8782_v11 }
 0x129   : > { %v8961_v44 = vor.u32 %v13142_v31, %v8958_v35  ;;  %v8894_v31 = vld [vmem:[%s14646_s28 + $0x958] sm:$0xf0]  ;;  %v13158_v32 = vld [vmem:[%s14646_s28 + $0xa4c] sm:$0xf] }
 0x12a   : > { %2594 = vmatpush.bf16.msrb.mxu0 %v9277_v43  ;;  %2607 = vmatpush.bf16.msrb.mxu1 %v9405_v45  ;;  %v8833_v43 = vor.u32 %v13110_v29, %v8830_v30  ;;  %v9089_v45 = vor.u32 %v13174_v36, %v9086_v39  ;;  %v13190_v39 = vld [vmem:[%s14646_s28 + $0xb4c] sm:$0xf]  ;;  %v9150_v41 = vld [vmem:[%s14646_s28 + $0xb58] sm:$0xf0] }
 0x12b   : > { %2620 = vmatpush.bf16.msrb.mxu2 %v9533_v46  ;;  %v13106_v46 = vld [vmem:[%s14646_s28 + $0x8ac] sm:$0xf]  ;;  %v9153_v51 = vor.u32 %v13190_v39, %v9150_v41  ;;  %v8878_v52 = vld [vmem:[%s14646_s28 + $0x938] sm:$0xf0] }
 0x12c   : > { %2633 = vmatpush.bf16.msrb.mxu3 %v9661_v50  ;;  %v8942_v50 = vld [vmem:[%s14646_s28 + $0x9b8] sm:$0xf0]  ;;  %v8817_v55 = vor.u32 %v13106_v46, %v8814_v47  ;;  %v13090_v47 = vld [vmem:[%s14646_s28 + $0x82c] sm:$0xf] }
 0x12d   : > { %v8945_v56 = vor.u32 %v13138_v48, %v8942_v50  ;;  %v8750_v48 = vld [vmem:[%s14646_s28 + $0x838] sm:$0xf0]  ;;  %v13154_v53 = vld [vmem:[%s14646_s28 + $0xa2c] sm:$0xf] }
 0x12e   : > { %2595 = vmatpush.bf16.msrb.mxu0 %v9261_v58  ;;  %2608 = vmatpush.bf16.msrb.mxu1 %v9389_v0  ;;  %v13102_v58 = vld [vmem:[%s14646_s28 + $0x88c] sm:$0xf]  ;;  %v8926_v0 = vld [vmem:[%s14646_s28 + $0x998] sm:$0xf0] }
 0x12f   : > { %2621 = vmatpush.bf16.msrb.mxu2 %v9517_v1  ;;  %v13166_v1 = vld [vmem:[%s14646_s28 + $0xa8c] sm:$0xf]  ;;  %v8929_v7 = vor.u32 %v13134_v60, %v8926_v0  ;;  %v9006_v54 = vld [vmem:[%s14646_s28 + $0xa38] sm:$0xf0] }
 0x130   : > { %2634 = vmatpush.bf16.msrb.mxu3 %v9645_v5  ;;  %v8801_v5 = vor.u32 %v13102_v58, %v8798_v59  ;;  %v9057_v8 = vor.u32 %v13166_v1, %v9054_v2  ;;  %v13086_v58 = vld [vmem:[%s14646_s28 + $0x80c] sm:$0xf]  ;;  %v8734_v59 = vld [vmem:[%s14646_s28 + $0x818] sm:$0xf0] }
 0x131   : > { %v13118_v0 = vld [vmem:[%s14646_s28 + $0x90c] sm:$0xf]  ;;  %v8862_v1 = vld [vmem:[%s14646_s28 + $0x918] sm:$0xf0] }
 0x132   : > { %2596 = vmatpush.bf16.msrb.mxu0 %v9245_v15  ;;  %2609 = vmatpush.bf16.msrb.mxu1 %v9373_v21  ;;  %v2390_v6 = vpop.f32.mrf.mxu0  ;;  %v2403_v14 = vpop.f32.mrf.mxu1  ;;  %v9185_v15 = vor.u32 %v13198_v3, %v9182_v4  ;;  %v13194_v21 = vld [vmem:[%s14646_s28 + $0xb6c] sm:$0xf]  ;;  %v9358_v11 = vld [vmem:[%s14646_s28 + $0xcf8] sm:$0xf0] }
 0x133   : > { %2622 = vmatpush.bf16.msrb.mxu2 %v9501_v22  ;;  %v2391_v13 = vadd.f32 %v2390_v6, %v15087_v61  ;;  %v9166_v22 = vld [vmem:[%s14646_s28 + $0xb78] sm:$0xf0]  ;;  %v8913_v61 = vor.u32 %v13130_v12, %v8910_v18  ;;  %v13150_v2 = vld [vmem:[%s14646_s28 + $0xa0c] sm:$0xf] }
 0x134   : > { %2635 = vmatpush.bf16.msrb.mxu3 %v9629_v25  ;;  %v9041_v25 = vor.u32 %v13162_v19, %v9038_v20  ;;  %v9169_v30 = vor.u32 %v13194_v21, %v9166_v22  ;;  %v13182_v6 = vld [vmem:[%s14646_s28 + $0xb0c] sm:$0xf]  ;;  %v9614_v18 = vld [vmem:[%s14646_s28 + $0xef8] sm:$0xf0]  ;;  %v8865_v19 = vor.u32 %v13118_v0, %v8862_v1 }
 0x135   : > { %2597 = vmatmul.bf16.vlgmr.msrb.gmra.mxu0 %v14831_v37  ;;  %2610 = vmatmul.bf16.vlgmr.msrb.gmra.mxu1 %v14835_v40  ;;  %v2404_v23 = vadd.f32 %v2403_v14, %v2391_v13  ;;  %v13242_v10 = vld [vmem:[%s14646_s28 + $0xcec] sm:$0xf]  ;;  %v8737_v13 = vor.u32 %v13086_v58, %v8734_v59  ;;  %v9486_v14 = vld [vmem:[%s14646_s28 + $0xdf8] sm:$0xf0] }
 0x136   : > { %2641 = vmatpush.bf16.msra.mxu0 %v8849_v26  ;;  %2654 = vmatpush.bf16.msra.mxu1 %v8977_v27  ;;  %v13094_v26 = vld [vmem:[%s14646_s28 + $0x84c] sm:$0xf]  ;;  %v8766_v27 = vld [vmem:[%s14646_s28 + $0x858] sm:$0xf0] }
 0x137   : > { %2667 = vmatpush.bf16.msra.mxu2 %v9105_v28  ;;  %2636 = vmatmul.bf16.vlgmr.msrb.gmra.mxu3 %v14833_v38  ;;  %v13126_v28 = vld [vmem:[%s14646_s28 + $0x94c] sm:$0xf]  ;;  %v8769_v42 = vor.u32 %v13094_v26, %v8766_v27  ;;  %v9742_v22 = vld [vmem:[%s14646_s28 + $0xff8] sm:$0xf0] }
 0x138   : > { %2680 = vmatpush.bf16.msra.mxu3 %v9233_v33  ;;  %2623 = vmatmul.bf16.vlgmr.msrb.gmra.mxu2 %v14827_v34  ;;  %v9022_v33 = vld [vmem:[%s14646_s28 + $0xa58] sm:$0xf0]  ;;  %v13274_v12 = vld [vmem:[%s14646_s28 + $0xdec] sm:$0xf] }
 0x139   : > { %v9025_v46 = vor.u32 %v13158_v32, %v9022_v33  ;;  %v13338_v21 = vld [vmem:[%s14646_s28 + $0xfec] sm:$0xf]  ;;  %v9342_v27 = vld [vmem:[%s14646_s28 + $0xcd8] sm:$0xf0] }
 0x13a   : > { %2642 = vmatpush.bf16.msra.mxu0 %v8833_v43  ;;  %2655 = vmatpush.bf16.msra.mxu1 %v8961_v44  ;;  %v2429_v36 = vpop.f32.mrf.mxu3  ;;  %v2392_v44 = vpop.f32.mrf.mxu0  ;;  %v13238_v26 = vld [vmem:[%s14646_s28 + $0xccc] sm:$0xf]  ;;  %v9598_v32 = vld [vmem:[%s14646_s28 + $0xed8] sm:$0xf0] }
 0x13b   : > { %2668 = vmatpush.bf16.msra.mxu2 %v9089_v45  ;;  %v2416_v29 = vpop.f32.mrf.mxu2  ;;  %v8897_v45 = vor.u32 %v13126_v28, %v8894_v31  ;;  %v2405_v50 = vpop.f32.mrf.mxu1  ;;  %v13270_v28 = vld [vmem:[%s14646_s28 + $0xdcc] sm:$0xf]  ;;  %v9326_v44 = vld [vmem:[%s14646_s28 + $0xcb8] sm:$0xf0] }
 0x13c   : > { %2681 = vmatpush.bf16.msra.mxu3 %v9217_v49  ;;  %v2417_v35 = vadd.f32 %v2416_v29, %v2404_v23  ;;  %v13122_v49 = vld [vmem:[%s14646_s28 + $0x92c] sm:$0xf]  ;;  %v9745_v29 = vor.u32 %v13338_v21, %v9742_v22  ;;  %v9566_v58 = vld [vmem:[%s14646_s28 + $0xe98] sm:$0xf0] }
 0x13d   : > { %v8881_v60 = vor.u32 %v13122_v49, %v8878_v52  ;;  %v13302_v31 = vld [vmem:[%s14646_s28 + $0xecc] sm:$0xf]  ;;  %v9582_v49 = vld [vmem:[%s14646_s28 + $0xeb8] sm:$0xf0] }
 0x13e   : > { %2643 = vmatpush.bf16.msra.mxu0 %v8817_v55  ;;  %2656 = vmatpush.bf16.msra.mxu1 %v8945_v56  ;;  %v15148_v43 = vadd.f32 %v2429_v36, %v2417_v35  ;;  %v13186_v55 = vld [vmem:[%s14646_s28 + $0xb2c] sm:$0xf]  ;;  %v9134_v56 = vld [vmem:[%s14646_s28 + $0xb38] sm:$0xf0]  ;;  %v9345_v36 = vor.u32 %v13238_v26, %v9342_v27  ;;  %v9601_v41 = vor.u32 %v13302_v31, %v9598_v32 }
 0x13f   : > { %2669 = vmatpush.bf16.msra.mxu2 %v9073_v57  ;;  %v8753_v57 = vor.u32 %v13090_v47, %v8750_v48  ;;  %v9137_v4 = vor.u32 %v13186_v55, %v9134_v56  ;;  %v13334_v33 = vld [vmem:[%s14646_s28 + $0xfcc] sm:$0xf]  ;;  %v9726_v35 = vld [vmem:[%s14646_s28 + $0xfd8] sm:$0xf0] }
 0x140   : > { %2682 = vmatpush.bf16.msra.mxu3 %v9201_v62  ;;  %v9009_v62 = vor.u32 %v13154_v53, %v9006_v54  ;;  %v9454_v47 = vld [vmem:[%s14646_s28 + $0xdb8] sm:$0xf0]  ;;  %v13298_v48 = vld [vmem:[%s14646_s28 + $0xeac] sm:$0xf] }
 0x141   : > { %v13330_v50 = vld [vmem:[%s14646_s28 + $0xfac] sm:$0xf]  ;;  %v9585_v54 = vor.u32 %v13298_v48, %v9582_v49  ;;  %v9310_v55 = vld [vmem:[%s14646_s28 + $0xc98] sm:$0xf0] }
 0x142   : > { %2644 = vmatpush.bf16.msra.mxu0 %v8801_v5  ;;  %2657 = vmatpush.bf16.msra.mxu1 %v8929_v7  ;;  %v8990_v5 = vld [vmem:[%s14646_s28 + $0xa18] sm:$0xf0]  ;;  %v13262_v56 = vld [vmem:[%s14646_s28 + $0xd8c] sm:$0xf] }
 0x143   : > { %2670 = vmatpush.bf16.msra.mxu2 %v9057_v8  ;;  %v2418_v3 = vpop.f32.mrf.mxu2  ;;  %v9118_v7 = vld [vmem:[%s14646_s28 + $0xb18] sm:$0xf0]  ;;  %v2431_v8 = vpop.f32.mrf.mxu3  ;;  %v8993_v20 = vor.u32 %v13150_v2, %v8990_v5  ;;  %v13326_v59 = vld [vmem:[%s14646_s28 + $0xf8c] sm:$0xf] }
 0x144   : > { %2683 = vmatpush.bf16.msra.mxu3 %v9185_v15  ;;  %v13306_v15 = vld [vmem:[%s14646_s28 + $0xeec] sm:$0xf]  ;;  %v9121_v23 = vor.u32 %v13182_v6, %v9118_v7  ;;  %v9294_v3 = vld [vmem:[%s14646_s28 + $0xc78] sm:$0xf0] }
 0x145   : > { %v13226_v2 = vld [vmem:[%s14646_s28 + $0xc6c] sm:$0xf]  ;;  %v9422_v7 = vld [vmem:[%s14646_s28 + $0xd78] sm:$0xf0] }
 0x146   : > { %2645 = vmatpush.bf16.msra.mxu0 %v8785_v24  ;;  %2658 = vmatpush.bf16.msra.mxu1 %v8913_v61  ;;  %v9361_v24 = vor.u32 %v13242_v10, %v9358_v11  ;;  %v9489_v61 = vor.u32 %v13274_v12, %v9486_v14  ;;  %v13290_v8 = vld [vmem:[%s14646_s28 + $0xe6c] sm:$0xf]  ;;  %v9550_v10 = vld [vmem:[%s14646_s28 + $0xe78] sm:$0xf0]  ;;  %v9297_v14 = vor.u32 %v13226_v2, %v9294_v3  ;;  %v12891_v2 = vld [vmem:[%s14646_s28 + $0x1ec] sm:$0xf0] }
 0x147   : > { %2671 = vmatpush.bf16.msra.mxu2 %v9041_v25  ;;  %v9617_v25 = vor.u32 %v13306_v15, %v9614_v18  ;;  %v13322_v12 = vld [vmem:[%s14646_s28 + $0xf6c] sm:$0xf]  ;;  %v9553_v18 = vor.u32 %v13290_v8, %v9550_v10  ;;  %v9646_v49 = vld [vmem:[%s14646_s28 + $0xf38] sm:$0xf0]  ;;  %v10116_v3 = vld [vmem:[%s14646_s28 + $0x2e0] sm:$0xf] }
 0x148   : > { %2684 = vmatpush.bf16.msra.mxu3 %v9169_v30  ;;  %v9470_v30 = vld [vmem:[%s14646_s28 + $0xdd8] sm:$0xf0]  ;;  %v13254_v21 = vld [vmem:[%s14646_s28 + $0xd4c] sm:$0xf]  ;;  %v12955_v8 = vld [vmem:[%s14646_s28 + $0x3ec] sm:$0xf0] }
 0x149   : > { %v9473_v39 = vor.u32 %v13270_v28, %v9470_v30  ;;  %v13318_v28 = vld [vmem:[%s14646_s28 + $0xf4c] sm:$0xf] }
 0x14a   : > { %2646 = vmatpush.bf16.msra.mxu0 %v8769_v42  ;;  %2659 = vmatpush.bf16.msra.mxu1 %v8897_v45  ;;  %v13234_v42 = vld [vmem:[%s14646_s28 + $0xcac] sm:$0xf] }
 0x14b   : > { %2672 = vmatpush.bf16.msra.mxu2 %v9025_v46  ;;  %v13266_v45 = vld [vmem:[%s14646_s28 + $0xdac] sm:$0xf]  ;;  %v9729_v46 = vor.u32 %v13334_v33, %v9726_v35  ;;  %v9329_v52 = vor.u32 %v13234_v42, %v9326_v44 }
 0x14c   : > { %2685 = vmatpush.bf16.msra.mxu3 %v9153_v51  ;;  %v9710_v51 = vld [vmem:[%s14646_s28 + $0xfb8] sm:$0xf0]  ;;  %v9457_v53 = vor.u32 %v13266_v45, %v9454_v47  ;;  %v13314_v48 = vld [vmem:[%s14646_s28 + $0xf2c] sm:$0xf] }
 0x14d   : > { %v9390_v45 = vld [vmem:[%s14646_s28 + $0xd38] sm:$0xf0] }
 0x14e   : > { %2647 = vmatpush.bf16.msra.mxu0 %v8753_v57  ;;  %2660 = vmatpush.bf16.msra.mxu1 %v8881_v60  ;;  %v9438_v57 = vld [vmem:[%s14646_s28 + $0xd98] sm:$0xf0] }
 0x14f   : > { %2673 = vmatpush.bf16.msra.mxu2 %v9009_v62  ;;  %v9694_v60 = vld [vmem:[%s14646_s28 + $0xf98] sm:$0xf0]  ;;  %v9441_v0 = vor.u32 %v13262_v56, %v9438_v57  ;;  %v13278_v56 = vld [vmem:[%s14646_s28 + $0xe0c] sm:$0xf]  ;;  %v9649_v57 = vor.u32 %v13314_v48, %v9646_v49  ;;  %v12911_v48 = vld [vmem:[%s14646_s28 + $0x28c] sm:$0xf0] }
 0x150   : > { %2686 = vmatpush.bf16.msra.mxu3 %v9137_v4  ;;  %v13258_v4 = vld [vmem:[%s14646_s28 + $0xd6c] sm:$0xf]  ;;  %v9697_v6 = vor.u32 %v13326_v59, %v9694_v60  ;;  %v9518_v47 = vld [vmem:[%s14646_s28 + $0xe38] sm:$0xf0]  ;;  %v10196_v49 = vld [vmem:[%s14646_s28 + $0x380] sm:$0xf] }
 0x151   : > { %v9425_v15 = vor.u32 %v13258_v4, %v9422_v7  ;;  %v9630_v59 = vld [vmem:[%s14646_s28 + $0xf18] sm:$0xf0]  ;;  %v12923_v4 = vld [vmem:[%s14646_s28 + $0x2ec] sm:$0xf0]  ;;  %v10244_v7 = vld [vmem:[%s14646_s28 + $0x3e0] sm:$0xf] }
 0x152   : > { %2648 = vmatpush.bf16.msra.mxu0 %v8737_v13  ;;  %2661 = vmatpush.bf16.msra.mxu1 %v8865_v19  ;;  %v2442_v62 = vpop.f32.mrf.mxu0  ;;  %v2455_v5 = vpop.f32.mrf.mxu1  ;;  %v9678_v13 = vld [vmem:[%s14646_s28 + $0xf78] sm:$0xf0]  ;;  %v13222_v19 = vld [vmem:[%s14646_s28 + $0xc4c] sm:$0xf] }
 0x153   : > { %2674 = vmatpush.bf16.msra.mxu2 %v8993_v20  ;;  %v2456_v11 = vadd.f32 %v2455_v5, %v2442_v62  ;;  %v9278_v20 = vld [vmem:[%s14646_s28 + $0xc58] sm:$0xf0]  ;;  %v12859_v62 = vld [vmem:[%s14646_s28 + $0xec] sm:$0xf0] }
 0x154   : > { %2687 = vmatpush.bf16.msra.mxu3 %v9121_v23  ;;  %v9681_v23 = vor.u32 %v13322_v12, %v9678_v13  ;;  %v9281_v30 = vor.u32 %v13222_v19, %v9278_v20  ;;  %v10117_v13 = vor.u32 %v12923_v4, %v10116_v3  ;;  %v10245_v19 = vor.u32 %v12955_v8, %v10244_v7  ;;  %v12887_v20 = vld [vmem:[%s14646_s28 + $0x1cc] sm:$0xf0]  ;;  %v9908_v4 = vld [vmem:[%s14646_s28 + $0x140] sm:$0xf] }
 0x155   : > { %2649 = vmatmul.bf16.vlgmr.msra.gmra.mxu0 %v14767_v9  ;;  %2662 = vmatmul.bf16.vlgmr.msra.gmra.mxu1 %v14774_v17  ;;  %v9713_v9 = vor.u32 %v13330_v50, %v9710_v51  ;;  %v13214_v51 = vld [vmem:[%s14646_s28 + $0xc0c] sm:$0xf]  ;;  %v12839_v3 = vld [vmem:[%s14646_s28 + $0x4c] sm:$0xf0]  ;;  %v10036_v8 = vld [vmem:[%s14646_s28 + $0x240] sm:$0xf] }
 0x156   : > { %2693 = vmatpush.bf16.msrb.mxu0 %v9361_v24  ;;  %2706 = vmatpush.bf16.msrb.mxu1 %v9489_v61  ;;  %v9406_v24 = vld [vmem:[%s14646_s28 + $0xd58] sm:$0xf0]  ;;  %v13286_v61 = vld [vmem:[%s14646_s28 + $0xe4c] sm:$0xf]  ;;  %v12871_v7 = vld [vmem:[%s14646_s28 + $0x14c] sm:$0xf0] }
 0x157   : > { %2719 = vmatpush.bf16.msrb.mxu2 %v9617_v25  ;;  %2688 = vmatmul.bf16.vlgmr.msra.gmra.mxu3 %v14772_v16  ;;  %v13294_v16 = vld [vmem:[%s14646_s28 + $0xe8c] sm:$0xf]  ;;  %v9534_v25 = vld [vmem:[%s14646_s28 + $0xe58] sm:$0xf0]  ;;  %v9409_v33 = vor.u32 %v13254_v21, %v9406_v24  ;;  %v10100_v21 = vld [vmem:[%s14646_s28 + $0x2c0] sm:$0xf] }
 0x158   : > { %2732 = vmatpush.bf16.msrb.mxu3 %v9745_v29  ;;  %2675 = vmatmul.bf16.vlgmr.msra.gmra.mxu2 %v14759_v63  ;;  %v13230_v63 = vld [vmem:[%s14646_s28 + $0xc8c] sm:$0xf]  ;;  %v9569_v1 = vor.u32 %v13294_v16, %v9566_v58  ;;  %v9662_v29 = vld [vmem:[%s14646_s28 + $0xf58] sm:$0xf0]  ;;  %v9537_v35 = vor.u32 %v13286_v61, %v9534_v25  ;;  %v12951_v24 = vld [vmem:[%s14646_s28 + $0x3cc] sm:$0xf0] }
 0x159   : > { %v9313_v17 = vor.u32 %v13230_v63, %v9310_v55  ;;  %v9665_v44 = vor.u32 %v13318_v28, %v9662_v29  ;;  %v13246_v63 = vld [vmem:[%s14646_s28 + $0xd0c] sm:$0xf]  ;;  %v9374_v55 = vld [vmem:[%s14646_s28 + $0xd18] sm:$0xf0]  ;;  %v12851_v28 = vld [vmem:[%s14646_s28 + $0xac] sm:$0xf0] }
 0x15a   : > { %2694 = vmatpush.bf16.msrb.mxu0 %v9345_v36  ;;  %2707 = vmatpush.bf16.msrb.mxu1 %v9473_v39  ;;  %v2481_v27 = vpop.f32.mrf.mxu3  ;;  %v2444_v32 = vpop.f32.mrf.mxu0  ;;  %v13218_v36 = vld [vmem:[%s14646_s28 + $0xc2c] sm:$0xf]  ;;  %v9262_v39 = vld [vmem:[%s14646_s28 + $0xc38] sm:$0xf0]  ;;  %v9377_v5 = vor.u32 %v13246_v63, %v9374_v55  ;;  %v9956_v29 = vld [vmem:[%s14646_s28 + $0x1a0] sm:$0xf] }
 0x15b   : > { %2720 = vmatpush.bf16.msrb.mxu2 %v9601_v41  ;;  %v2468_v22 = vpop.f32.mrf.mxu2  ;;  %v13250_v41 = vld [vmem:[%s14646_s28 + $0xd2c] sm:$0xf]  ;;  %v2457_v42 = vpop.f32.mrf.mxu1  ;;  %v9265_v50 = vor.u32 %v13218_v36, %v9262_v39  ;;  %v9502_v16 = vld [vmem:[%s14646_s28 + $0xe18] sm:$0xf0]  ;;  %v12883_v32 = vld [vmem:[%s14646_s28 + $0x1ac] sm:$0xf0] }
 0x15c   : > { %2733 = vmatpush.bf16.msrb.mxu3 %v9729_v46  ;;  %v2469_v26 = vadd.f32 %v2468_v22, %v2456_v11  ;;  %v13282_v46 = vld [vmem:[%s14646_s28 + $0xe2c] sm:$0xf]  ;;  %v12919_v22 = vld [vmem:[%s14646_s28 + $0x2cc] sm:$0xf0]  ;;  %v10212_v36 = vld [vmem:[%s14646_s28 + $0x3a0] sm:$0xf] }
 0x15d   : > { %v13310_v58 = vld [vmem:[%s14646_s28 + $0xf0c] sm:$0xf]  ;;  %v12947_v39 = vld [vmem:[%s14646_s28 + $0x3ac] sm:$0xf0]  ;;  %v9924_v55 = vld [vmem:[%s14646_s28 + $0x160] sm:$0xf] }
 0x15e   : > { %2695 = vmatpush.bf16.msrb.mxu0 %v9329_v52  ;;  %2708 = vmatpush.bf16.msrb.mxu1 %v9457_v53  ;;  %v15218_v31 = vadd.f32 %v2481_v27, %v2469_v26  ;;  %v9246_v52 = vld [vmem:[%s14646_s28 + $0xc18] sm:$0xf0]  ;;  %v9393_v53 = vor.u32 %v13250_v41, %v9390_v45  ;;  %v9633_v10 = vor.u32 %v13310_v58, %v9630_v59  ;;  %v9828_v27 = vld [vmem:[%s14646_s28 + $0xa0] sm:$0xf]  ;;  %v12847_v45 = vld [vmem:[%s14646_s28 + $0x8c] sm:$0xf0] }
 0x15f   : > { %2721 = vmatpush.bf16.msrb.mxu2 %v9585_v54  ;;  %v9521_v54 = vor.u32 %v13282_v46, %v9518_v47  ;;  %v10101_v26 = vor.u32 %v12919_v22, %v10100_v21  ;;  %v9829_v41 = vor.u32 %v12851_v28, %v9828_v27  ;;  %v12879_v46 = vld [vmem:[%s14646_s28 + $0x18c] sm:$0xf0]  ;;  %v10068_v47 = vld [vmem:[%s14646_s28 + $0x280] sm:$0xf] }
 0x160   : > { %2734 = vmatpush.bf16.msrb.mxu3 %v9713_v9  ;;  %v12843_v63 = vld [vmem:[%s14646_s28 + $0x6c] sm:$0xf0]  ;;  %v10052_v58 = vld [vmem:[%s14646_s28 + $0x260] sm:$0xf] }
 0x161   : > { %v12907_v59 = vld [vmem:[%s14646_s28 + $0x26c] sm:$0xf0]  ;;  %v9764_v22 = vld [vmem:[%s14646_s28 + $0x20] sm:$0xf] }
 0x162   : > { %2696 = vmatpush.bf16.msrb.mxu0 %v9313_v17  ;;  %2709 = vmatpush.bf16.msrb.mxu1 %v9441_v0  ;;  %v2483_v60 = vpop.f32.mrf.mxu3  ;;  %v9860_v17 = vld [vmem:[%s14646_s28 + $0xe0] sm:$0xf]  ;;  %v12899_v28 = vld [vmem:[%s14646_s28 + $0x22c] sm:$0xf0] }
 0x163   : > { %2722 = vmatpush.bf16.msrb.mxu2 %v9569_v1  ;;  %v2470_v9 = vpop.f32.mrf.mxu2  ;;  %v9988_v0 = vld [vmem:[%s14646_s28 + $0x1e0] sm:$0xf]  ;;  %v9249_v1 = vor.u32 %v13214_v51, %v9246_v52  ;;  %v9861_v11 = vor.u32 %v12859_v62, %v9860_v17  ;;  %v12939_v17 = vld [vmem:[%s14646_s28 + $0x36c] sm:$0xf0] }
 0x164   : > { %2735 = vmatpush.bf16.msrb.mxu3 %v9697_v6  ;;  %v9505_v6 = vor.u32 %v13278_v56, %v9502_v16  ;;  %v9989_v12 = vor.u32 %v12891_v2, %v9988_v0  ;;  %v12875_v16 = vld [vmem:[%s14646_s28 + $0x16c] sm:$0xf0]  ;;  %v10180_v60 = vld [vmem:[%s14646_s28 + $0x360] sm:$0xf] }
 0x165   : > { %v9780_v2 = vld [vmem:[%s14646_s28 + $0x40] sm:$0xf] }
 0x166   : > { %2697 = vmatpush.bf16.msrb.mxu0 %v9297_v14  ;;  %2710 = vmatpush.bf16.msrb.mxu1 %v9425_v15  ;;  %v9844_v14 = vld [vmem:[%s14646_s28 + $0xc0] sm:$0xf]  ;;  %v12855_v15 = vld [vmem:[%s14646_s28 + $0xcc] sm:$0xf0] }
 0x167   : > { %2723 = vmatpush.bf16.msrb.mxu2 %v9553_v18  ;;  %v9972_v18 = vld [vmem:[%s14646_s28 + $0x1c0] sm:$0xf]  ;;  %v9845_v61 = vor.u32 %v12855_v15, %v9844_v14  ;;  %v12935_v14 = vld [vmem:[%s14646_s28 + $0x34c] sm:$0xf0]  ;;  %v9781_v15 = vor.u32 %v12839_v3, %v9780_v2 }
 0x168   : > { %2736 = vmatpush.bf16.msrb.mxu3 %v9681_v23  ;;  %v10228_v23 = vld [vmem:[%s14646_s28 + $0x3c0] sm:$0xf]  ;;  %v9973_v25 = vor.u32 %v12887_v20, %v9972_v18  ;;  %v9909_v20 = vor.u32 %v12871_v7, %v9908_v4  ;;  %v13015_v4 = vld [vmem:[%s14646_s28 + $0x5cc] sm:$0xf0] }
 0x169   : > { %v10020_v27 = vld [vmem:[%s14646_s28 + $0x220] sm:$0xf] }
 0x16a   : > { %2698 = vmatpush.bf16.msrb.mxu0 %v9281_v30  ;;  %2711 = vmatpush.bf16.msrb.mxu1 %v9409_v33  ;;  %v10229_v30 = vor.u32 %v12951_v24, %v10228_v23  ;;  %v10084_v33 = vld [vmem:[%s14646_s28 + $0x2a0] sm:$0xf]  ;;  %v12835_v23 = vld [vmem:[%s14646_s28 + $0x2c] sm:$0xf0] }
 0x16b   : > { %2724 = vmatpush.bf16.msrb.mxu2 %v9537_v35  ;;  %v12915_v35 = vld [vmem:[%s14646_s28 + $0x2ac] sm:$0xf0]  ;;  %v9892_v24 = vld [vmem:[%s14646_s28 + $0x120] sm:$0xf] }
 0x16c   : > { %2737 = vmatpush.bf16.msrb.mxu3 %v9665_v44  ;;  %v10085_v42 = vor.u32 %v12915_v35, %v10084_v33  ;;  %v9812_v44 = vld [vmem:[%s14646_s28 + $0x80] sm:$0xf]  ;;  %v12831_v35 = vld [vmem:[%s14646_s28 + $0xc] sm:$0xf0] }
 0x16d   : > { %v9748_v33 = vld [vmem:[%s14646_s28] sm:$0xf] }
 0x16e   : > { %2699 = vmatpush.bf16.msrb.mxu0 %v9265_v50  ;;  %2712 = vmatpush.bf16.msrb.mxu1 %v9393_v53  ;;  %v12943_v50 = vld [vmem:[%s14646_s28 + $0x38c] sm:$0xf0]  ;;  %v10069_v53 = vor.u32 %v12911_v48, %v10068_v47  ;;  %v10372_v48 = vld [vmem:[%s14646_s28 + $0x4e0] sm:$0xf] }
 0x16f   : > { %2725 = vmatpush.bf16.msrb.mxu2 %v9521_v54  ;;  %v9796_v54 = vld [vmem:[%s14646_s28 + $0x60] sm:$0xf] }
 0x170   : > { %2738 = vmatpush.bf16.msrb.mxu3 %v9649_v57  ;;  %v10197_v57 = vor.u32 %v12943_v50, %v10196_v49  ;;  %v9797_v0 = vor.u32 %v12843_v63, %v9796_v54  ;;  %v12987_v49 = vld [vmem:[%s14646_s28 + $0x4ec] sm:$0xf0]  ;;  %v10500_v50 = vld [vmem:[%s14646_s28 + $0x5e0] sm:$0xf] }
 0x172   : > { %2700 = vmatpush.bf16.msrb.mxu0 %v9249_v1  ;;  %2713 = vmatpush.bf16.msrb.mxu1 %v9377_v5  ;;  %v2494_v51 = vpop.f32.mrf.mxu0  ;;  %v2507_v9 = vpop.f32.mrf.mxu1  ;;  %v10053_v1 = vor.u32 %v12907_v59, %v10052_v58  ;;  %v1019_v58 = vld [vmem:[#allocation4 + $0x10] sm:$0xff]  ;;  %v1018_v59 = vld [vmem:[#allocation4 + $0x8] sm:$0xff] }
 0x173   : > { %2726 = vmatpush.bf16.msrb.mxu2 %v9505_v6  ;;  %v2495_v56 = vadd.f32 %v2494_v51, %v15218_v31  ;;  %v9925_v31 = vor.u32 %v12875_v16, %v9924_v55  ;;  %v10181_v6 = vor.u32 %v12939_v17, %v10180_v60  ;;  %v13019_v51 = vld [vmem:[%s14646_s28 + $0x5ec] sm:$0xf0]  ;;  %v10756_v55 = vld [vmem:[%s14646_s28 + $0x7e0] sm:$0xf]  ;;  %v10373_v16 = vor.u32 %v12987_v49, %v10372_v48  ;;  %v1020_v60 = vld [vmem:[#allocation4 + $0x18] sm:$0xff] }
 0x174   : > { %2739 = vmatpush.bf16.msrb.mxu3 %v9633_v10  ;;  %v12903_v10 = vld [vmem:[%s14646_s28 + $0x24c] sm:$0xf0]  ;;  %v10501_v17 = vor.u32 %v13019_v51, %v10500_v50  ;;  %v15323_v7 = vpack.c.bf16 %v1019_v58, %v1019_v58  ;;  %v10436_v48 = vld [vmem:[%s14646_s28 + $0x560] sm:$0xf] }
 0x175   : > { %2701 = vmatmul.bf16.vlgmr.msrb.gmra.mxu0 %v14831_v37  ;;  %2714 = vmatmul.bf16.vlgmr.msrb.gmra.mxu1 %v14835_v40  ;;  %v9940_v37 = vld [vmem:[%s14646_s28 + $0x180] sm:$0xf]  ;;  %v9813_v40 = vor.u32 %v12847_v45, %v9812_v44  ;;  %v2508_v62 = vadd.f32 %v2507_v9, %v2495_v56  ;;  %v10037_v21 = vor.u32 %v12903_v10, %v10036_v8  ;;  %v13083_v56 = vld [vmem:[%s14646_s28 + $0x7ec] sm:$0xf0] }
 0x176   : > { %4025 = vmatpush.bf16.msra.mxu0 %v9861_v11  ;;  %4038 = vmatpush.bf16.msra.mxu1 %v9989_v12  ;;  %v9941_v52 = vor.u32 %v12879_v46, %v9940_v37  ;;  %v12895_v37 = vld [vmem:[%s14646_s28 + $0x20c] sm:$0xf0]  ;;  %v1017_v9 = vld [vmem:[#allocation4] sm:$0xff]  ;;  %v10757_v2 = vor.u32 %v13083_v56, %v10756_v55  ;;  %v15325_v8 = vpack.c.bf16 %v1018_v59, %v1018_v59 }
 0x177   : > { %4051 = vmatpush.bf16.msra.mxu2 %v10117_v13  ;;  %2740 = vmatmul.bf16.vlgmr.msrb.gmra.mxu3 %v14833_v38  ;;  %v10213_v38 = vor.u32 %v12947_v39, %v10212_v36  ;;  %v10164_v13 = vld [vmem:[%s14646_s28 + $0x340] sm:$0xf]  ;;  %v10021_v39 = vor.u32 %v12899_v28, %v10020_v27  ;;  %v12927_v46 = vld [vmem:[%s14646_s28 + $0x30c] sm:$0xf0]  ;;  %v15318_v3 = vpack.c.bf16 %v1017_v9, %v1017_v9 }
 0x178   : > { %4064 = vmatpush.bf16.msra.mxu3 %v10245_v19  ;;  %2727 = vmatmul.bf16.vlgmr.msrb.gmra.mxu2 %v14827_v34  ;;  %v9957_v34 = vor.u32 %v12883_v32, %v9956_v29  ;;  %v10148_v29 = vld [vmem:[%s14646_s28 + $0x320] sm:$0xf]  ;;  %v9765_v32 = vor.u32 %v12835_v23, %v9764_v22  ;;  %v13011_v23 = vld [vmem:[%s14646_s28 + $0x5ac] sm:$0xf0] }
 0x179   : > { %v10740_v10 = vld [vmem:[%s14646_s28 + $0x7c0] sm:$0xf] }
 0x17a   : > { %4026 = vmatpush.bf16.msra.mxu0 %v9845_v61  ;;  %4039 = vmatpush.bf16.msra.mxu1 %v9973_v25  ;;  %v2533_v12 = vpop.f32.mrf.mxu3  ;;  %v2496_v19 = vpop.f32.mrf.mxu0  ;;  %v10165_v25 = vor.u32 %v12935_v14, %v10164_v13  ;;  %v10564_v51 = vld [vmem:[%s14646_s28 + $0x660] sm:$0xf] }
 0x17b   : > { %4052 = vmatpush.bf16.msra.mxu2 %v10101_v26  ;;  %v2520_v5 = vpop.f32.mrf.mxu2  ;;  %v2509_v61 = vpop.f32.mrf.mxu1  ;;  %v12867_v26 = vld [vmem:[%s14646_s28 + $0x12c] sm:$0xf0]  ;;  %v10340_v19 = vld [vmem:[%s14646_s28 + $0x4a0] sm:$0xf] }
 0x17c   : > { %4065 = vmatpush.bf16.msra.mxu3 %v10229_v30  ;;  %v2521_v11 = vadd.f32 %v2520_v5, %v2508_v62  ;;  %v12931_v30 = vld [vmem:[%s14646_s28 + $0x32c] sm:$0xf0]  ;;  %v9893_v36 = vor.u32 %v12867_v26, %v9892_v24  ;;  %v10612_v5 = vld [vmem:[%s14646_s28 + $0x6c0] sm:$0xf] }
 0x17d   : > { %v10149_v45 = vor.u32 %v12931_v30, %v10148_v29  ;;  %v10596_v24 = vld [vmem:[%s14646_s28 + $0x6a0] sm:$0xf]  ;;  %v13043_v61 = vld [vmem:[%s14646_s28 + $0x6ac] sm:$0xf0] }
 0x17e   : > { %4027 = vmatpush.bf16.msra.mxu0 %v9829_v41  ;;  %4040 = vmatpush.bf16.msra.mxu1 %v9957_v34  ;;  %v15289_v18 = vadd.f32 %v2533_v12, %v2521_v11  ;;  %v9876_v41 = vld [vmem:[%s14646_s28 + $0x100] sm:$0xf]  ;;  %v12863_v34 = vld [vmem:[%s14646_s28 + $0x10c] sm:$0xf0]  ;;  %v15329_v12 = vpack.c.bf16 %v1020_v60, %v1020_v60  ;;  %v10597_v29 = vor.u32 %v13043_v61, %v10596_v24 }
 0x17f   : > { %4053 = vmatpush.bf16.msra.mxu2 %v10085_v42  ;;  %v10004_v42 = vld [vmem:[%s14646_s28 + $0x200] sm:$0xf]  ;;  %v9877_v54 = vor.u32 %v12863_v34, %v9876_v41  ;;  %v13079_v11 = vld [vmem:[%s14646_s28 + $0x7cc] sm:$0xf0] }
 0x180   : > { %4066 = vmatpush.bf16.msra.mxu3 %v10213_v38  ;;  %v10132_v38 = vld [vmem:[%s14646_s28 + $0x300] sm:$0xf]  ;;  %v10005_v63 = vor.u32 %v12895_v37, %v10004_v42  ;;  %v10741_v22 = vor.u32 %v13079_v11, %v10740_v10  ;;  %v13075_v26 = vld [vmem:[%s14646_s28 + $0x7ac] sm:$0xf0] }
 0x181   : > { %v10324_v30 = vld [vmem:[%s14646_s28 + $0x480] sm:$0xf]  ;;  %v13039_v41 = vld [vmem:[%s14646_s28 + $0x68c] sm:$0xf0] }
 0x182   : > { %4028 = vmatpush.bf16.msra.mxu0 %v9813_v40  ;;  %4041 = vmatpush.bf16.msra.mxu1 %v9941_v52  ;;  %v2535_v47 = vpop.f32.mrf.mxu3  ;;  %v9749_v40 = vor.u32 %v12831_v35, %v9748_v33  ;;  %v10628_v52 = vld [vmem:[%s14646_s28 + $0x6e0] sm:$0xf]  ;;  %v13071_v42 = vld [vmem:[%s14646_s28 + $0x78c] sm:$0xf0] }
 0x183   : > { %4054 = vmatpush.bf16.msra.mxu2 %v10069_v53  ;;  %v2522_v44 = vpop.f32.mrf.mxu2  ;;  %v13051_v53 = vld [vmem:[%s14646_s28 + $0x6ec] sm:$0xf0]  ;;  %v10452_v33 = vld [vmem:[%s14646_s28 + $0x580] sm:$0xf] }
 0x184   : > { %4067 = vmatpush.bf16.msra.mxu3 %v10197_v57  ;;  %v10133_v57 = vor.u32 %v12927_v46, %v10132_v38  ;;  %v10629_v62 = vor.u32 %v13051_v53, %v10628_v52  ;;  %v10708_v34 = vld [vmem:[%s14646_s28 + $0x780] sm:$0xf]  ;;  %v12971_v47 = vld [vmem:[%s14646_s28 + $0x46c] sm:$0xf0] }
 0x185   : > { %v10308_v46 = vld [vmem:[%s14646_s28 + $0x460] sm:$0xf]  ;;  %v10709_v50 = vor.u32 %v13071_v42, %v10708_v34  ;;  %v13035_v52 = vld [vmem:[%s14646_s28 + $0x66c] sm:$0xf0] }
 0x186   : > { %4029 = vmatpush.bf16.msra.mxu0 %v9797_v0  ;;  %4042 = vmatpush.bf16.msra.mxu1 %v9925_v31  ;;  %v10356_v0 = vld [vmem:[%s14646_s28 + $0x4c0] sm:$0xf]  ;;  %v12983_v31 = vld [vmem:[%s14646_s28 + $0x4cc] sm:$0xf0]  ;;  %v10309_v55 = vor.u32 %v12971_v47, %v10308_v46  ;;  %v10565_v9 = vor.u32 %v13035_v52, %v10564_v51  ;;  %v9990_v47 = vld [vmem:[%s14646_s28 + $0x1f0] sm:$0xf0] }
 0x187   : > { %4055 = vmatpush.bf16.msra.mxu2 %v10053_v1  ;;  %v10484_v1 = vld [vmem:[%s14646_s28 + $0x5c0] sm:$0xf]  ;;  %v10357_v13 = vor.u32 %v12983_v31, %v10356_v0  ;;  %v13031_v0 = vld [vmem:[%s14646_s28 + $0x64c] sm:$0xf0]  ;;  %v12953_v51 = vld [vmem:[%s14646_s28 + $0x3e4] sm:$0xf] }
 0x188   : > { %4068 = vmatpush.bf16.msra.mxu3 %v10181_v6  ;;  %v13047_v6 = vld [vmem:[%s14646_s28 + $0x6cc] sm:$0xf0]  ;;  %v10485_v14 = vor.u32 %v13015_v4, %v10484_v1  ;;  %v10420_v58 = vld [vmem:[%s14646_s28 + $0x540] sm:$0xf]  ;;  %v10246_v52 = vld [vmem:[%s14646_s28 + $0x3f0] sm:$0xf0] }
 0x189   : > { %v13063_v4 = vld [vmem:[%s14646_s28 + $0x74c] sm:$0xf0]  ;;  %v10660_v61 = vld [vmem:[%s14646_s28 + $0x720] sm:$0xf] }
 0x18a   : > { %4030 = vmatpush.bf16.msra.mxu0 %v9781_v15  ;;  %4043 = vmatpush.bf16.msra.mxu1 %v9909_v20  ;;  %v10613_v15 = vor.u32 %v13047_v6, %v10612_v5  ;;  %v12979_v20 = vld [vmem:[%s14646_s28 + $0x4ac] sm:$0xf0]  ;;  %v10644_v34 = vld [vmem:[%s14646_s28 + $0x700] sm:$0xf] }
 0x18b   : > { %4056 = vmatpush.bf16.msra.mxu2 %v10037_v21  ;;  %v10468_v21 = vld [vmem:[%s14646_s28 + $0x5a0] sm:$0xf]  ;;  %v10341_v27 = vor.u32 %v12979_v20, %v10340_v19  ;;  %v13027_v24 = vld [vmem:[%s14646_s28 + $0x62c] sm:$0xf0] }
 0x18c   : > { %4069 = vmatpush.bf16.msra.mxu3 %v10165_v25  ;;  %v10724_v25 = vld [vmem:[%s14646_s28 + $0x7a0] sm:$0xf]  ;;  %v10469_v28 = vor.u32 %v13011_v23, %v10468_v21  ;;  %v13055_v42 = vld [vmem:[%s14646_s28 + $0x70c] sm:$0xf0] }
 0x18d   : > { %v10725_v35 = vor.u32 %v13075_v26, %v10724_v25  ;;  %v10404_v19 = vld [vmem:[%s14646_s28 + $0x520] sm:$0xf]  ;;  %v13059_v25 = vld [vmem:[%s14646_s28 + $0x72c] sm:$0xf0] }
 0x18e   : > { %4031 = vmatpush.bf16.msra.mxu0 %v9765_v32  ;;  %4044 = vmatpush.bf16.msra.mxu1 %v9893_v36  ;;  %v12975_v32 = vld [vmem:[%s14646_s28 + $0x48c] sm:$0xf0]  ;;  %v10532_v23 = vld [vmem:[%s14646_s28 + $0x620] sm:$0xf] }
 0x18f   : > { %4057 = vmatpush.bf16.msra.mxu2 %v10021_v39  ;;  %v13007_v36 = vld [vmem:[%s14646_s28 + $0x58c] sm:$0xf0]  ;;  %v10580_v39 = vld [vmem:[%s14646_s28 + $0x680] sm:$0xf]  ;;  %v10325_v44 = vor.u32 %v12975_v32, %v10324_v30  ;;  %v10533_v30 = vor.u32 %v13027_v24, %v10532_v23  ;;  %v9958_v23 = vld [vmem:[%s14646_s28 + $0x1b0] sm:$0xf0] }
 0x190   : > { %4070 = vmatpush.bf16.msra.mxu3 %v10149_v45  ;;  %v10453_v37 = vor.u32 %v13007_v36, %v10452_v33  ;;  %v10581_v38 = vor.u32 %v13039_v41, %v10580_v39  ;;  %v10388_v32 = vld [vmem:[%s14646_s28 + $0x500] sm:$0xf]  ;;  %v12991_v33 = vld [vmem:[%s14646_s28 + $0x50c] sm:$0xf0]  ;;  %v10661_v39 = vor.u32 %v13059_v25, %v10660_v61  ;;  %v12913_v24 = vld [vmem:[%s14646_s28 + $0x2a4] sm:$0xf] }
 0x191   : > { %v13023_v41 = vld [vmem:[%s14646_s28 + $0x60c] sm:$0xf0]  ;;  %v10086_v61 = vld [vmem:[%s14646_s28 + $0x2b0] sm:$0xf0]  ;;  %v12945_v25 = vld [vmem:[%s14646_s28 + $0x3a4] sm:$0xf] }
 0x192   : > { %4032 = vmatpush.bf16.msra.mxu0 %v9749_v40  ;;  %4045 = vmatpush.bf16.msra.mxu1 %v9877_v54  ;;  %v2546_v45 = vpop.f32.mrf.mxu0  ;;  %v2559_v49 = vpop.f32.mrf.mxu1  ;;  %v13003_v40 = vld [vmem:[%s14646_s28 + $0x56c] sm:$0xf0]  ;;  %v10692_v54 = vld [vmem:[%s14646_s28 + $0x760] sm:$0xf] }
 0x193   : > { %4058 = vmatpush.bf16.msra.mxu2 %v10005_v63  ;;  %v2560_v53 = vadd.f32 %v2559_v49, %v2546_v45  ;;  %v13067_v63 = vld [vmem:[%s14646_s28 + $0x76c] sm:$0xf0]  ;;  %v10437_v56 = vor.u32 %v13003_v40, %v10436_v48  ;;  %v12857_v45 = vld [vmem:[%s14646_s28 + $0xe4] sm:$0xf]  ;;  %v10118_v49 = vld [vmem:[%s14646_s28 + $0x2f0] sm:$0xf0] }
 0x194   : > { %4071 = vmatpush.bf16.msra.mxu3 %v10133_v57  ;;  %v10292_v57 = vld [vmem:[%s14646_s28 + $0x440] sm:$0xf]  ;;  %v10693_v60 = vor.u32 %v13067_v63, %v10692_v54  ;;  %v12921_v48 = vld [vmem:[%s14646_s28 + $0x2e4] sm:$0xf]  ;;  %v10645_v54 = vor.u32 %v13055_v42, %v10644_v34  ;;  %v10198_v42 = vld [vmem:[%s14646_s28 + $0x390] sm:$0xf0] }
 0x195   : > { %4033 = vmatmul.bf16.vlgmr.msra.gmra.mxu0 %v15318_v3  ;;  %4046 = vmatmul.bf16.vlgmr.msra.gmra.mxu1 %v15325_v8  ;;  %v12941_v34 = vld [vmem:[%s14646_s28 + $0x384] sm:$0xf] }
 0x196   : > { %4077 = vmatpush.bf16.msrb.mxu0 %v10373_v16  ;;  %4090 = vmatpush.bf16.msrb.mxu1 %v10501_v17  ;;  %v12967_v16 = vld [vmem:[%s14646_s28 + $0x44c] sm:$0xf0] }
 0x197   : > { %4103 = vmatpush.bf16.msrb.mxu2 %v10629_v62  ;;  %4072 = vmatmul.bf16.vlgmr.msra.gmra.mxu3 %v15329_v12  ;;  %v12999_v17 = vld [vmem:[%s14646_s28 + $0x54c] sm:$0xf0]  ;;  %v10548_v62 = vld [vmem:[%s14646_s28 + $0x640] sm:$0xf]  ;;  %v10293_v5 = vor.u32 %v12967_v16, %v10292_v57  ;;  %v10121_v16 = vor.u32 %v12921_v48, %v10118_v49  ;;  %v12873_v48 = vld [vmem:[%s14646_s28 + $0x164] sm:$0xf] }
 0x198   : > { %4116 = vmatpush.bf16.msrb.mxu3 %v10757_v2  ;;  %4059 = vmatmul.bf16.vlgmr.msra.gmra.mxu2 %v15323_v7  ;;  %v10676_v2 = vld [vmem:[%s14646_s28 + $0x740] sm:$0xf]  ;;  %v10421_v11 = vor.u32 %v12999_v17, %v10420_v58  ;;  %v12853_v58 = vld [vmem:[%s14646_s28 + $0xc4] sm:$0xf]  ;;  %v10249_v17 = vor.u32 %v12953_v51, %v10246_v52  ;;  %v9926_v51 = vld [vmem:[%s14646_s28 + $0x170] sm:$0xf0] }
 0x199   : > { %v10677_v21 = vor.u32 %v13063_v4, %v10676_v2  ;;  %v12905_v52 = vld [vmem:[%s14646_s28 + $0x264] sm:$0xf] }
 0x19a   : > { %4078 = vmatpush.bf16.msrb.mxu0 %v10357_v13  ;;  %4091 = vmatpush.bf16.msrb.mxu1 %v10485_v14  ;;  %v2585_v1 = vpop.f32.mrf.mxu3  ;;  %v2548_v10 = vpop.f32.mrf.mxu0  ;;  %v10549_v13 = vor.u32 %v13031_v0, %v10548_v62  ;;  %v10276_v14 = vld [vmem:[%s14646_s28 + $0x420] sm:$0xf]  ;;  %v9974_v0 = vld [vmem:[%s14646_s28 + $0x1d0] sm:$0xf0] }
 0x19b   : > { %4104 = vmatpush.bf16.msrb.mxu2 %v10613_v15  ;;  %v2572_v59 = vpop.f32.mrf.mxu2  ;;  %v12963_v15 = vld [vmem:[%s14646_s28 + $0x42c] sm:$0xf0]  ;;  %v2561_v20 = vpop.f32.mrf.mxu1  ;;  %v10230_v10 = vld [vmem:[%s14646_s28 + $0x3d0] sm:$0xf0] }
 0x19c   : > { %4117 = vmatpush.bf16.msrb.mxu3 %v10741_v22  ;;  %v2573_v31 = vadd.f32 %v2572_v59, %v2560_v53  ;;  %v12995_v22 = vld [vmem:[%s14646_s28 + $0x52c] sm:$0xf0]  ;;  %v10277_v26 = vor.u32 %v12963_v15, %v10276_v14  ;;  %v1021_v53 = vld [vmem:[#allocation4 + $0x20] sm:$0xff]  ;;  %v9846_v59 = vld [vmem:[%s14646_s28 + $0xd0] sm:$0xf0] }
 0x19d   : > { %v15396_v62 = vpack.c.bf16 %v1021_v53, %v1021_v53  ;;  %v9830_v20 = vld [vmem:[%s14646_s28 + $0xb0] sm:$0xf0] }
 0x19e   : > { %4079 = vmatpush.bf16.msrb.mxu0 %v10341_v27  ;;  %4092 = vmatpush.bf16.msrb.mxu1 %v10469_v28  ;;  %v15367_v6 = vadd.f32 %v2585_v1, %v2573_v31  ;;  %v10260_v27 = vld [vmem:[%s14646_s28 + $0x400] sm:$0xf]  ;;  %v12959_v28 = vld [vmem:[%s14646_s28 + $0x40c] sm:$0xf0]  ;;  %v12917_v31 = vld [vmem:[%s14646_s28 + $0x2c4] sm:$0xf] }
 0x19f   : > { %4105 = vmatpush.bf16.msrb.mxu2 %v10597_v29  ;;  %v10405_v29 = vor.u32 %v12995_v22, %v10404_v19  ;;  %v10261_v46 = vor.u32 %v12959_v28, %v10260_v27  ;;  %v10102_v1 = vld [vmem:[%s14646_s28 + $0x2d0] sm:$0xf0]  ;;  %v12849_v19 = vld [vmem:[%s14646_s28 + $0xa4] sm:$0xf] }
 0x1a0   : > { %4118 = vmatpush.bf16.msrb.mxu3 %v10725_v35  ;;  %v10516_v35 = vld [vmem:[%s14646_s28 + $0x600] sm:$0xf]  ;;  %v10105_v15 = vor.u32 %v12917_v31, %v10102_v1  ;;  %v9833_v27 = vor.u32 %v12849_v19, %v9830_v20  ;;  %v10054_v53 = vld [vmem:[%s14646_s28 + $0x270] sm:$0xf0] }
 0x1a1   : > { %v10517_v40 = vor.u32 %v13023_v41, %v10516_v35  ;;  %v10070_v41 = vld [vmem:[%s14646_s28 + $0x290] sm:$0xf0] }
 0x1a2   : > { %4080 = vmatpush.bf16.msrb.mxu0 %v10325_v44  ;;  %4093 = vmatpush.bf16.msrb.mxu1 %v10453_v37  ;;  %v2587_v44 = vpop.f32.mrf.mxu3  ;;  %v9862_v37 = vld [vmem:[%s14646_s28 + $0xf0] sm:$0xf0] }
 0x1a3   : > { %4106 = vmatpush.bf16.msrb.mxu2 %v10581_v38  ;;  %v2574_v36 = vpop.f32.mrf.mxu2  ;;  %v12889_v38 = vld [vmem:[%s14646_s28 + $0x1e4] sm:$0xf]  ;;  %v9865_v63 = vor.u32 %v12857_v45, %v9862_v37  ;;  %v10038_v31 = vld [vmem:[%s14646_s28 + $0x250] sm:$0xf0] }
 0x1a4   : > { %4119 = vmatpush.bf16.msrb.mxu3 %v10709_v50  ;;  %v10389_v50 = vor.u32 %v12991_v33, %v10388_v32  ;;  %v9993_v57 = vor.u32 %v12889_v38, %v9990_v47  ;;  %v9814_v32 = vld [vmem:[%s14646_s28 + $0x90] sm:$0xf0]  ;;  %v12877_v33 = vld [vmem:[%s14646_s28 + $0x184] sm:$0xf] }
 0x1a5   : > { %v9942_v36 = vld [vmem:[%s14646_s28 + $0x190] sm:$0xf0] }
 0x1a6   : > { %4081 = vmatpush.bf16.msrb.mxu0 %v10309_v55  ;;  %4094 = vmatpush.bf16.msrb.mxu1 %v10437_v56  ;;  %v1023_v55 = vld [vmem:[#allocation4 + $0x30] sm:$0xff]  ;;  %v1022_v56 = vld [vmem:[#allocation4 + $0x28] sm:$0xff]  ;;  %v9945_v37 = vor.u32 %v12877_v33, %v9942_v36  ;;  %v12829_v33 = vld [vmem:[%s14646_s28 + $0x4] sm:$0xf] }
 0x1a7   : > { %4107 = vmatpush.bf16.msrb.mxu2 %v10565_v9  ;;  %v1024_v9 = vld [vmem:[#allocation4 + $0x38] sm:$0xff]  ;;  %v15401_v2 = vpack.c.bf16 %v1023_v55, %v1023_v55  ;;  %v15403_v4 = vpack.c.bf16 %v1022_v56, %v1022_v56  ;;  %v9798_v47 = vld [vmem:[%s14646_s28 + $0x70] sm:$0xf0] }
 0x1a8   : > { %4120 = vmatpush.bf16.msrb.mxu3 %v10693_v60  ;;  %v12885_v60 = vld [vmem:[%s14646_s28 + $0x1c4] sm:$0xf] }
 0x1a9   : > { %v9977_v14 = vor.u32 %v12885_v60, %v9974_v0  ;;  %v12901_v0 = vld [vmem:[%s14646_s28 + $0x244] sm:$0xf] }
 0x1aa   : > { %4082 = vmatpush.bf16.msrb.mxu0 %v10293_v5  ;;  %4095 = vmatpush.bf16.msrb.mxu1 %v10421_v11  ;;  %v12949_v5 = vld [vmem:[%s14646_s28 + $0x3c4] sm:$0xf]  ;;  %v15407_v11 = vpack.c.bf16 %v1024_v9, %v1024_v9  ;;  %v10057_v9 = vor.u32 %v12905_v52, %v10054_v53  ;;  %v10630_v53 = vld [vmem:[%s14646_s28 + $0x6f0] sm:$0xf0] }
 0x1ab   : > { %4108 = vmatpush.bf16.msrb.mxu2 %v10549_v13  ;;  %v9849_v13 = vor.u32 %v12853_v58, %v9846_v59  ;;  %v10233_v22 = vor.u32 %v12949_v5, %v10230_v10  ;;  %v12869_v58 = vld [vmem:[%s14646_s28 + $0x144] sm:$0xf] }
 0x1ac   : > { %4121 = vmatpush.bf16.msrb.mxu3 %v10677_v21  ;;  %v12881_v21 = vld [vmem:[%s14646_s28 + $0x1a4] sm:$0xf] }
 0x1ad   : > { %v9961_v28 = vor.u32 %v12881_v21, %v9958_v23  ;;  %v12933_v10 = vld [vmem:[%s14646_s28 + $0x344] sm:$0xf]  ;;  %v10041_v21 = vor.u32 %v12901_v0, %v10038_v31  ;;  %v9766_v23 = vld [vmem:[%s14646_s28 + $0x30] sm:$0xf0] }
 0x1ae   : > { %4083 = vmatpush.bf16.msrb.mxu0 %v10277_v26  ;;  %4096 = vmatpush.bf16.msrb.mxu1 %v10405_v29  ;;  %v10214_v26 = vld [vmem:[%s14646_s28 + $0x3b0] sm:$0xf0]  ;;  %v10089_v29 = vor.u32 %v12913_v24, %v10086_v61  ;;  %v12865_v24 = vld [vmem:[%s14646_s28 + $0x124] sm:$0xf] }
 0x1af   : > { %4109 = vmatpush.bf16.msrb.mxu2 %v10533_v30  ;;  %v12845_v30 = vld [vmem:[%s14646_s28 + $0x84] sm:$0xf]  ;;  %v10217_v35 = vor.u32 %v12945_v25, %v10214_v26  ;;  %v9894_v26 = vld [vmem:[%s14646_s28 + $0x130] sm:$0xf0] }
 0x1b0   : > { %4122 = vmatpush.bf16.msrb.mxu3 %v10661_v39  ;;  %v12909_v39 = vld [vmem:[%s14646_s28 + $0x284] sm:$0xf]  ;;  %v9817_v44 = vor.u32 %v12845_v30, %v9814_v32  ;;  %v10150_v30 = vld [vmem:[%s14646_s28 + $0x330] sm:$0xf0]  ;;  %v9897_v36 = vor.u32 %v12865_v24, %v9894_v26 }
 0x1b1   : > { %v10073_v38 = vor.u32 %v12909_v39, %v10070_v41  ;;  %v12861_v41 = vld [vmem:[%s14646_s28 + $0x104] sm:$0xf]  ;;  %v10486_v0 = vld [vmem:[%s14646_s28 + $0x5d0] sm:$0xf0] }
 0x1b2   : > { %4084 = vmatpush.bf16.msrb.mxu0 %v10261_v46  ;;  %4097 = vmatpush.bf16.msrb.mxu1 %v10389_v50  ;;  %v2598_v45 = vpop.f32.mrf.mxu0  ;;  %v12841_v46 = vld [vmem:[%s14646_s28 + $0x64] sm:$0xf]  ;;  %v2611_v50 = vpop.f32.mrf.mxu1  ;;  %v10470_v24 = vld [vmem:[%s14646_s28 + $0x5b0] sm:$0xf0] }
 0x1b3   : > { %4110 = vmatpush.bf16.msrb.mxu2 %v10517_v40  ;;  %v2599_v49 = vadd.f32 %v2598_v45, %v15367_v6  ;;  %v10201_v40 = vor.u32 %v12941_v34, %v10198_v42  ;;  %v9801_v56 = vor.u32 %v12841_v46, %v9798_v47  ;;  %v9929_v6 = vor.u32 %v12873_v48, %v9926_v51  ;;  %v9878_v34 = vld [vmem:[%s14646_s28 + $0x110] sm:$0xf0]  ;;  %v12893_v42 = vld [vmem:[%s14646_s28 + $0x204] sm:$0xf] }
 0x1b4   : > { %4123 = vmatpush.bf16.msrb.mxu3 %v10645_v54  ;;  %v12937_v54 = vld [vmem:[%s14646_s28 + $0x364] sm:$0xf]  ;;  %v10134_v46 = vld [vmem:[%s14646_s28 + $0x310] sm:$0xf0] }
 0x1b5   : > { %4085 = vmatmul.bf16.vlgmr.msrb.gmra.mxu0 %v15396_v62  ;;  %4098 = vmatmul.bf16.vlgmr.msrb.gmra.mxu1 %v15403_v4  ;;  %v2612_v55 = vadd.f32 %v2611_v50, %v2599_v49  ;;  %v12985_v48 = vld [vmem:[%s14646_s28 + $0x4e4] sm:$0xf]  ;;  %v10374_v49 = vld [vmem:[%s14646_s28 + $0x4f0] sm:$0xf0] }
 0x1b6   : > { %4129 = vmatpush.bf16.msra.mxu0 %v9865_v63  ;;  %4142 = vmatpush.bf16.msra.mxu1 %v9993_v57  ;;  %v10182_v63 = vld [vmem:[%s14646_s28 + $0x370] sm:$0xf0]  ;;  %v12837_v57 = vld [vmem:[%s14646_s28 + $0x44] sm:$0xf] }
 0x1b7   : > { %4155 = vmatpush.bf16.msra.mxu2 %v10121_v16  ;;  %4124 = vmatmul.bf16.vlgmr.msrb.gmra.mxu3 %v15407_v11  ;;  %v9782_v16 = vld [vmem:[%s14646_s28 + $0x50] sm:$0xf0]  ;;  %v10185_v60 = vor.u32 %v12937_v54, %v10182_v63  ;;  %v13017_v50 = vld [vmem:[%s14646_s28 + $0x5e4] sm:$0xf]  ;;  %v9881_v54 = vor.u32 %v12861_v41, %v9878_v34 }
 0x1b8   : > { %4168 = vmatpush.bf16.msra.mxu3 %v10249_v17  ;;  %4111 = vmatmul.bf16.vlgmr.msrb.gmra.mxu2 %v15401_v2  ;;  %v9910_v17 = vld [vmem:[%s14646_s28 + $0x150] sm:$0xf0]  ;;  %v13049_v52 = vld [vmem:[%s14646_s28 + $0x6e4] sm:$0xf] }
 0x1b9   : > { %v9913_v20 = vor.u32 %v12869_v58, %v9910_v17  ;;  %v10502_v51 = vld [vmem:[%s14646_s28 + $0x5f0] sm:$0xf0]  ;;  %v12981_v58 = vld [vmem:[%s14646_s28 + $0x4c4] sm:$0xf] }
 0x1ba   : > { %4130 = vmatpush.bf16.msra.mxu0 %v9849_v13  ;;  %4143 = vmatpush.bf16.msra.mxu1 %v9977_v14  ;;  %v2637_v5 = vpop.f32.mrf.mxu3  ;;  %v10166_v13 = vld [vmem:[%s14646_s28 + $0x350] sm:$0xf0]  ;;  %v9785_v14 = vor.u32 %v12837_v57, %v9782_v16  ;;  %v2600_v19 = vpop.f32.mrf.mxu0  ;;  %v10505_v57 = vor.u32 %v13017_v50, %v10502_v51  ;;  %v10633_v16 = vor.u32 %v13049_v52, %v10630_v53  ;;  %v13045_v31 = vld [vmem:[%s14646_s28 + $0x6c4] sm:$0xf] }
 0x1bb   : > { %4156 = vmatpush.bf16.msra.mxu2 %v10105_v15  ;;  %v2624_v59 = vpop.f32.mrf.mxu2  ;;  %v2613_v61 = vpop.f32.mrf.mxu1  ;;  %v10169_v25 = vor.u32 %v12933_v10, %v10166_v13  ;;  %v10742_v10 = vld [vmem:[%s14646_s28 + $0x7d0] sm:$0xf0]  ;;  %v13073_v26 = vld [vmem:[%s14646_s28 + $0x7a4] sm:$0xf] }
 0x1bc   : > { %4169 = vmatpush.bf16.msra.mxu3 %v10233_v22  ;;  %v2625_v1 = vadd.f32 %v2624_v59, %v2612_v55  ;;  %v12833_v22 = vld [vmem:[%s14646_s28 + $0x24] sm:$0xf]  ;;  %v10358_v59 = vld [vmem:[%s14646_s28 + $0x4d0] sm:$0xf0] }
 0x1bd   : > { %v9769_v32 = vor.u32 %v12833_v22, %v9766_v23  ;;  %v13081_v55 = vld [vmem:[%s14646_s28 + $0x7e4] sm:$0xf]  ;;  %v10361_v13 = vor.u32 %v12981_v58, %v10358_v59  ;;  %v10582_v34 = vld [vmem:[%s14646_s28 + $0x690] sm:$0xf0] }
 0x1be   : > { %4131 = vmatpush.bf16.msra.mxu0 %v9833_v27  ;;  %4144 = vmatpush.bf16.msra.mxu1 %v9961_v28  ;;  %v15446_v15 = vadd.f32 %v2637_v5, %v2625_v1  ;;  %v12897_v27 = vld [vmem:[%s14646_s28 + $0x224] sm:$0xf]  ;;  %v10022_v28 = vld [vmem:[%s14646_s28 + $0x230] sm:$0xf0] }
 0x1bf   : > { %4157 = vmatpush.bf16.msra.mxu2 %v10089_v29  ;;  %v12929_v29 = vld [vmem:[%s14646_s28 + $0x324] sm:$0xf]  ;;  %v10025_v39 = vor.u32 %v12897_v27, %v10022_v28  ;;  %v10614_v1 = vld [vmem:[%s14646_s28 + $0x6d0] sm:$0xf0] }
 0x1c0   : > { %4170 = vmatpush.bf16.msra.mxu3 %v10217_v35  ;;  %v9750_v35 = vld [vmem:[%s14646_s28 + $0x10] sm:$0xf0]  ;;  %v10153_v45 = vor.u32 %v12929_v29, %v10150_v30  ;;  %v13077_v5 = vld [vmem:[%s14646_s28 + $0x7c4] sm:$0xf]  ;;  %v10617_v19 = vor.u32 %v13045_v31, %v10614_v1 }
 0x1c1   : > { %v13009_v22 = vld [vmem:[%s14646_s28 + $0x5a4] sm:$0xf]  ;;  %v10745_v23 = vor.u32 %v13077_v5, %v10742_v10  ;;  %v10726_v27 = vld [vmem:[%s14646_s28 + $0x7b0] sm:$0xf0] }
 0x1c2   : > { %4132 = vmatpush.bf16.msra.mxu0 %v9817_v44  ;;  %4145 = vmatpush.bf16.msra.mxu1 %v9945_v37  ;;  %v10006_v37 = vld [vmem:[%s14646_s28 + $0x210] sm:$0xf0]  ;;  %v2639_v47 = vpop.f32.mrf.mxu3  ;;  %v13041_v61 = vld [vmem:[%s14646_s28 + $0x6a4] sm:$0xf]  ;;  %v10473_v29 = vor.u32 %v13009_v22, %v10470_v24 }
 0x1c3   : > { %4158 = vmatpush.bf16.msra.mxu2 %v10073_v38  ;;  %v2626_v44 = vpop.f32.mrf.mxu2  ;;  %v12925_v38 = vld [vmem:[%s14646_s28 + $0x304] sm:$0xf]  ;;  %v10009_v63 = vor.u32 %v12893_v42, %v10006_v37  ;;  %v10438_v51 = vld [vmem:[%s14646_s28 + $0x570] sm:$0xf0] }
 0x1c4   : > { %4171 = vmatpush.bf16.msra.mxu3 %v10201_v40  ;;  %v9753_v40 = vor.u32 %v12829_v33, %v9750_v35  ;;  %v10326_v33 = vld [vmem:[%s14646_s28 + $0x490] sm:$0xf0]  ;;  %v13005_v35 = vld [vmem:[%s14646_s28 + $0x584] sm:$0xf] }
 0x1c5   : > { %v13037_v41 = vld [vmem:[%s14646_s28 + $0x684] sm:$0xf]  ;;  %v10710_v44 = vld [vmem:[%s14646_s28 + $0x790] sm:$0xf0] }
 0x1c6   : > { %4133 = vmatpush.bf16.msra.mxu0 %v9801_v56  ;;  %4146 = vmatpush.bf16.msra.mxu1 %v9929_v6  ;;  %v10758_v56 = vld [vmem:[%s14646_s28 + $0x7f0] sm:$0xf0]  ;;  %v10137_v6 = vor.u32 %v12925_v38, %v10134_v46  ;;  %v13069_v42 = vld [vmem:[%s14646_s28 + $0x784] sm:$0xf]  ;;  %v10585_v46 = vor.u32 %v13037_v41, %v10582_v34 }
 0x1c7   : > { %4159 = vmatpush.bf16.msra.mxu2 %v10057_v9  ;;  %v10377_v9 = vor.u32 %v12985_v48, %v10374_v49  ;;  %v10761_v17 = vor.u32 %v13081_v55, %v10758_v56  ;;  %v12969_v47 = vld [vmem:[%s14646_s28 + $0x464] sm:$0xf]  ;;  %v10310_v48 = vld [vmem:[%s14646_s28 + $0x470] sm:$0xf0] }
 0x1c8   : > { %4172 = vmatpush.bf16.msra.mxu3 %v10185_v60  ;;  %v13013_v60 = vld [vmem:[%s14646_s28 + $0x5c4] sm:$0xf]  ;;  %v10566_v53 = vld [vmem:[%s14646_s28 + $0x670] sm:$0xf0]  ;;  %v10313_v56 = vor.u32 %v12969_v47, %v10310_v48 }
 0x1c9   : > { %v13001_v49 = vld [vmem:[%s14646_s28 + $0x564] sm:$0xf]  ;;  %v10694_v55 = vld [vmem:[%s14646_s28 + $0x770] sm:$0xf0] }
 0x1ca   : > { %4134 = vmatpush.bf16.msra.mxu0 %v9785_v14  ;;  %4147 = vmatpush.bf16.msra.mxu1 %v9913_v20  ;;  %v10489_v14 = vor.u32 %v13013_v60, %v10486_v0  ;;  %v12977_v20 = vld [vmem:[%s14646_s28 + $0x4a4] sm:$0xf]  ;;  %v10550_v31 = vld [vmem:[%s14646_s28 + $0x650] sm:$0xf0] }
 0x1cb   : > { %4160 = vmatpush.bf16.msra.mxu2 %v10041_v21  ;;  %v10342_v21 = vld [vmem:[%s14646_s28 + $0x4b0] sm:$0xf0]  ;;  %v13033_v52 = vld [vmem:[%s14646_s28 + $0x664] sm:$0xf] }
 0x1cc   : > { %4173 = vmatpush.bf16.msra.mxu3 %v10169_v25  ;;  %v10598_v25 = vld [vmem:[%s14646_s28 + $0x6b0] sm:$0xf0]  ;;  %v10345_v28 = vor.u32 %v12977_v20, %v10342_v21  ;;  %v12997_v58 = vld [vmem:[%s14646_s28 + $0x544] sm:$0xf] }
 0x1cd   : > { %v10601_v30 = vor.u32 %v13041_v61, %v10598_v25  ;;  %v13029_v0 = vld [vmem:[%s14646_s28 + $0x644] sm:$0xf]  ;;  %v10278_v24 = vld [vmem:[%s14646_s28 + $0x430] sm:$0xf0] }
 0x1ce   : > { %4135 = vmatpush.bf16.msra.mxu0 %v9769_v32  ;;  %4148 = vmatpush.bf16.msra.mxu1 %v9897_v36  ;;  %v12973_v32 = vld [vmem:[%s14646_s28 + $0x484] sm:$0xf]  ;;  %v10729_v36 = vor.u32 %v13073_v26, %v10726_v27  ;;  %v10553_v22 = vor.u32 %v13029_v0, %v10550_v31  ;;  %v10406_v27 = vld [vmem:[%s14646_s28 + $0x530] sm:$0xf0]  ;;  %v12888_v31 = vld [vmem:[%s14646_s28 + $0x1d4] sm:$0xf0] }
 0x1cf   : > { %4161 = vmatpush.bf16.msra.mxu2 %v10025_v39  ;;  %v10454_v39 = vld [vmem:[%s14646_s28 + $0x590] sm:$0xf0]  ;;  %v13061_v10 = vld [vmem:[%s14646_s28 + $0x744] sm:$0xf] }
 0x1d0   : > { %4174 = vmatpush.bf16.msra.mxu3 %v10153_v45  ;;  %v10329_v45 = vor.u32 %v12973_v32, %v10326_v33  ;;  %v10457_v38 = vor.u32 %v13005_v35, %v10454_v39  ;;  %v12993_v61 = vld [vmem:[%s14646_s28 + $0x524] sm:$0xf]  ;;  %v10662_v32 = vld [vmem:[%s14646_s28 + $0x730] sm:$0xf0] }
 0x1d1   : > { %v12957_v35 = vld [vmem:[%s14646_s28 + $0x404] sm:$0xf]  ;;  %v10409_v39 = vor.u32 %v12993_v61, %v10406_v27  ;;  %v10646_v47 = vld [vmem:[%s14646_s28 + $0x710] sm:$0xf0]  ;;  %v12916_v27 = vld [vmem:[%s14646_s28 + $0x2b4] sm:$0xf0] }
 0x1d2   : > { %4136 = vmatpush.bf16.msra.mxu0 %v9753_v40  ;;  %4149 = vmatpush.bf16.msra.mxu1 %v9881_v54  ;;  %v2650_v37 = vpop.f32.mrf.mxu0  ;;  %v2663_v50 = vpop.f32.mrf.mxu1  ;;  %v10713_v40 = vor.u32 %v13069_v42, %v10710_v44  ;;  %v12989_v34 = vld [vmem:[%s14646_s28 + $0x504] sm:$0xf]  ;;  %v10390_v42 = vld [vmem:[%s14646_s28 + $0x510] sm:$0xf0] }
 0x1d3   : > { %4162 = vmatpush.bf16.msra.mxu2 %v10009_v63  ;;  %v2664_v54 = vadd.f32 %v2663_v50, %v2650_v37  ;;  %v13065_v63 = vld [vmem:[%s14646_s28 + $0x764] sm:$0xf]  ;;  %v12860_v50 = vld [vmem:[%s14646_s28 + $0xf4] sm:$0xf0] }
 0x1d4   : > { %4175 = vmatpush.bf16.msra.mxu3 %v10137_v6  ;;  %v10441_v6 = vor.u32 %v13001_v49, %v10438_v51  ;;  %v10697_v60 = vor.u32 %v13065_v63, %v10694_v55  ;;  %v13021_v44 = vld [vmem:[%s14646_s28 + $0x604] sm:$0xf]  ;;  %v9868_v49 = vld [vmem:[%s14646_s28 + $0xe8] sm:$0xf]  ;;  %v10393_v63 = vor.u32 %v12989_v34, %v10390_v42  ;;  %v12880_v34 = vld [vmem:[%s14646_s28 + $0x194] sm:$0xf0] }
 0x1d5   : > { %4137 = vmatmul.bf16.vlgmr.msra.gmra.mxu0 %v15318_v3  ;;  %4150 = vmatmul.bf16.vlgmr.msra.gmra.mxu1 %v15325_v8  ;;  %v10076_v42 = vld [vmem:[%s14646_s28 + $0x288] sm:$0xf] }
 0x1d6   : > { %4181 = vmatpush.bf16.msrb.mxu0 %v10377_v9  ;;  %4194 = vmatpush.bf16.msrb.mxu1 %v10505_v57  ;;  %v10569_v9 = vor.u32 %v13033_v52, %v10566_v53  ;;  %v12965_v57 = vld [vmem:[%s14646_s28 + $0x444] sm:$0xf]  ;;  %v12892_v52 = vld [vmem:[%s14646_s28 + $0x1f4] sm:$0xf0]  ;;  %v10124_v53 = vld [vmem:[%s14646_s28 + $0x2e8] sm:$0xf] }
 0x1d7   : > { %4207 = vmatpush.bf16.msrb.mxu2 %v10633_v16  ;;  %4176 = vmatmul.bf16.vlgmr.msra.gmra.mxu3 %v15329_v12  ;;  %v10294_v16 = vld [vmem:[%s14646_s28 + $0x450] sm:$0xf0] }
 0x1d8   : > { %4220 = vmatpush.bf16.msrb.mxu3 %v10761_v17  ;;  %4163 = vmatmul.bf16.vlgmr.msra.gmra.mxu2 %v15323_v7  ;;  %v10422_v17 = vld [vmem:[%s14646_s28 + $0x550] sm:$0xf0] }
 0x1d9   : > { %v10425_v21 = vor.u32 %v12997_v58, %v10422_v17  ;;  %v9980_v17 = vld [vmem:[%s14646_s28 + $0x1c8] sm:$0xf] }
 0x1da   : > { %4182 = vmatpush.bf16.msrb.mxu0 %v10361_v13  ;;  %4195 = vmatpush.bf16.msrb.mxu1 %v10489_v14  ;;  %v2689_v5 = vpop.f32.mrf.mxu3  ;;  %v10678_v13 = vld [vmem:[%s14646_s28 + $0x750] sm:$0xf0]  ;;  %v10297_v14 = vor.u32 %v12965_v57, %v10294_v16  ;;  %v2652_v20 = vpop.f32.mrf.mxu0  ;;  %v9869_v57 = vor.u32 %v12860_v50, %v9868_v49  ;;  %v9804_v49 = vld [vmem:[%s14646_s28 + $0x68] sm:$0xf]  ;;  %v12844_v50 = vld [vmem:[%s14646_s28 + $0x74] sm:$0xf0] }
 0x1db   : > { %4208 = vmatpush.bf16.msrb.mxu2 %v10617_v19  ;;  %v2676_v59 = vpop.f32.mrf.mxu2  ;;  %v2665_v25 = vpop.f32.mrf.mxu1  ;;  %v10681_v26 = vor.u32 %v13061_v10, %v10678_v13  ;;  %v10236_v10 = vld [vmem:[%s14646_s28 + $0x3c8] sm:$0xf]  ;;  %v12952_v13 = vld [vmem:[%s14646_s28 + $0x3d4] sm:$0xf0]  ;;  %v9981_v20 = vor.u32 %v12888_v31, %v9980_v17 }
 0x1dc   : > { %4221 = vmatpush.bf16.msrb.mxu3 %v10745_v23  ;;  %v2677_v1 = vadd.f32 %v2676_v59, %v2664_v54  ;;  %v12961_v23 = vld [vmem:[%s14646_s28 + $0x424] sm:$0xf]  ;;  %v12924_v54 = vld [vmem:[%s14646_s28 + $0x2f4] sm:$0xf0]  ;;  %v9852_v59 = vld [vmem:[%s14646_s28 + $0xc8] sm:$0xf]  ;;  %v10237_v61 = vor.u32 %v12952_v13, %v10236_v10 }
 0x1dd   : > { %v10281_v33 = vor.u32 %v12961_v23, %v10278_v24  ;;  %v10125_v58 = vor.u32 %v12924_v54, %v10124_v53  ;;  %v12852_v23 = vld [vmem:[%s14646_s28 + $0xb4] sm:$0xf0]  ;;  %v9964_v24 = vld [vmem:[%s14646_s28 + $0x1a8] sm:$0xf] }
 0x1de   : > { %4183 = vmatpush.bf16.msrb.mxu0 %v10345_v28  ;;  %4196 = vmatpush.bf16.msrb.mxu1 %v10473_v29  ;;  %v15516_v19 = vadd.f32 %v2689_v5, %v2677_v1  ;;  %v13025_v28 = vld [vmem:[%s14646_s28 + $0x624] sm:$0xf]  ;;  %v10534_v29 = vld [vmem:[%s14646_s28 + $0x630] sm:$0xf0]  ;;  %v10108_v1 = vld [vmem:[%s14646_s28 + $0x2c8] sm:$0xf] }
 0x1df   : > { %4209 = vmatpush.bf16.msrb.mxu2 %v10601_v30  ;;  %v13057_v30 = vld [vmem:[%s14646_s28 + $0x724] sm:$0xf]  ;;  %v10537_v41 = vor.u32 %v13025_v28, %v10534_v29  ;;  %v12920_v5 = vld [vmem:[%s14646_s28 + $0x2d4] sm:$0xf0]  ;;  %v10220_v28 = vld [vmem:[%s14646_s28 + $0x3a8] sm:$0xf] }
 0x1e0   : > { %4222 = vmatpush.bf16.msrb.mxu3 %v10729_v36  ;;  %v10262_v36 = vld [vmem:[%s14646_s28 + $0x410] sm:$0xf0]  ;;  %v10665_v37 = vor.u32 %v13057_v30, %v10662_v32  ;;  %v12884_v25 = vld [vmem:[%s14646_s28 + $0x1b4] sm:$0xf0] }
 0x1e1   : > { %v10265_v51 = vor.u32 %v12957_v35, %v10262_v36  ;;  %v12948_v29 = vld [vmem:[%s14646_s28 + $0x3b4] sm:$0xf0]  ;;  %v9965_v32 = vor.u32 %v12884_v25, %v9964_v24  ;;  %v9820_v35 = vld [vmem:[%s14646_s28 + $0x88] sm:$0xf] }
 0x1e2   : > { %4184 = vmatpush.bf16.msrb.mxu0 %v10329_v45  ;;  %4197 = vmatpush.bf16.msrb.mxu1 %v10457_v38  ;;  %v10518_v38 = vld [vmem:[%s14646_s28 + $0x610] sm:$0xf0]  ;;  %v2691_v48 = vpop.f32.mrf.mxu3  ;;  %v12848_v36 = vld [vmem:[%s14646_s28 + $0x94] sm:$0xf0]  ;;  %v9772_v25 = vld [vmem:[%s14646_s28 + $0x28] sm:$0xf] }
 0x1e3   : > { %4210 = vmatpush.bf16.msrb.mxu2 %v10585_v46  ;;  %v2678_v45 = vpop.f32.mrf.mxu2  ;;  %v13053_v46 = vld [vmem:[%s14646_s28 + $0x704] sm:$0xf]  ;;  %v10521_v55 = vor.u32 %v13021_v44, %v10518_v38  ;;  %v12912_v44 = vld [vmem:[%s14646_s28 + $0x294] sm:$0xf0]  ;;  %v9821_v38 = vor.u32 %v12848_v36, %v9820_v35  ;;  %v10156_v35 = vld [vmem:[%s14646_s28 + $0x328] sm:$0xf] }
 0x1e4   : > { %4223 = vmatpush.bf16.msrb.mxu3 %v10713_v40  ;;  %v9996_v40 = vld [vmem:[%s14646_s28 + $0x1e8] sm:$0xf]  ;;  %v10077_v48 = vor.u32 %v12912_v44, %v10076_v42  ;;  %v12876_v54 = vld [vmem:[%s14646_s28 + $0x174] sm:$0xf0] }
 0x1e5   : > { %v9997_v16 = vor.u32 %v12892_v52, %v9996_v40  ;;  %v10204_v45 = vld [vmem:[%s14646_s28 + $0x388] sm:$0xf]  ;;  %v12872_v31 = vld [vmem:[%s14646_s28 + $0x154] sm:$0xf0] }
 0x1e6   : > { %4185 = vmatpush.bf16.msrb.mxu0 %v10313_v56  ;;  %4198 = vmatpush.bf16.msrb.mxu1 %v10441_v6  ;;  %v10252_v56 = vld [vmem:[%s14646_s28 + $0x3e8] sm:$0xf]  ;;  %v12956_v6 = vld [vmem:[%s14646_s28 + $0x3f4] sm:$0xf0] }
 0x1e7   : > { %4211 = vmatpush.bf16.msrb.mxu2 %v10569_v9  ;;  %v10649_v9 = vor.u32 %v13053_v46, %v10646_v47  ;;  %v10253_v0 = vor.u32 %v12956_v6, %v10252_v56  ;;  %v9932_v40 = vld [vmem:[%s14646_s28 + $0x168] sm:$0xf]  ;;  %v12940_v6 = vld [vmem:[%s14646_s28 + $0x374] sm:$0xf0] }
 0x1e8   : > { %4224 = vmatpush.bf16.msrb.mxu3 %v10697_v60  ;;  %v12856_v60 = vld [vmem:[%s14646_s28 + $0xd4] sm:$0xf0]  ;;  %v10188_v56 = vld [vmem:[%s14646_s28 + $0x368] sm:$0xf] }
 0x1e9   : > { %v12932_v36 = vld [vmem:[%s14646_s28 + $0x334] sm:$0xf0] }
 0x1ea   : > { %4186 = vmatpush.bf16.msrb.mxu0 %v10297_v14  ;;  %4199 = vmatpush.bf16.msrb.mxu1 %v10425_v21  ;;  %v9853_v14 = vor.u32 %v12856_v60, %v9852_v59  ;;  %v10109_v21 = vor.u32 %v12920_v5, %v10108_v1  ;;  %v12840_v59 = vld [vmem:[%s14646_s28 + $0x54] sm:$0xf0]  ;;  %v9916_v60 = vld [vmem:[%s14646_s28 + $0x148] sm:$0xf] }
 0x1eb   : > { %4212 = vmatpush.bf16.msrb.mxu2 %v10553_v22  ;;  %v9836_v22 = vld [vmem:[%s14646_s28 + $0xa8] sm:$0xf]  ;;  %v12904_v5 = vld [vmem:[%s14646_s28 + $0x254] sm:$0xf0]  ;;  %v9917_v24 = vor.u32 %v12872_v31, %v9916_v60 }
 0x1ec   : > { %4225 = vmatpush.bf16.msrb.mxu3 %v10681_v26  ;;  %v10092_v26 = vld [vmem:[%s14646_s28 + $0x2a8] sm:$0xf]  ;;  %v9837_v30 = vor.u32 %v12852_v23, %v9836_v22 }
 0x1ed   : > { %v10044_v1 = vld [vmem:[%s14646_s28 + $0x248] sm:$0xf] }
 0x1ee   : > { %4187 = vmatpush.bf16.msrb.mxu0 %v10281_v33  ;;  %4200 = vmatpush.bf16.msrb.mxu1 %v10409_v39  ;;  %v10093_v33 = vor.u32 %v12916_v27, %v10092_v26  ;;  %v9948_v39 = vld [vmem:[%s14646_s28 + $0x188] sm:$0xf]  ;;  %v12836_v26 = vld [vmem:[%s14646_s28 + $0x34] sm:$0xf0] }
 0x1ef   : > { %4213 = vmatpush.bf16.msrb.mxu2 %v10537_v41  ;;  %v10221_v41 = vor.u32 %v12948_v29, %v10220_v28  ;;  %v9949_v47 = vor.u32 %v12880_v34, %v9948_v39  ;;  %v9900_v27 = vld [vmem:[%s14646_s28 + $0x128] sm:$0xf]  ;;  %v9773_v39 = vor.u32 %v12836_v26, %v9772_v25  ;;  %v12832_v34 = vld [vmem:[%s14646_s28 + $0x14] sm:$0xf0] }
 0x1f0   : > { %4226 = vmatpush.bf16.msrb.mxu3 %v10665_v37  ;;  %v12944_v37 = vld [vmem:[%s14646_s28 + $0x394] sm:$0xf0]  ;;  %v10492_v31 = vld [vmem:[%s14646_s28 + $0x5c8] sm:$0xf] }
 0x1f1   : > { %v10205_v53 = vor.u32 %v12944_v37, %v10204_v45  ;;  %v9884_v45 = vld [vmem:[%s14646_s28 + $0x108] sm:$0xf]  ;;  %v12864_v37 = vld [vmem:[%s14646_s28 + $0x114] sm:$0xf0] }
 0x1f2   : > { %4188 = vmatpush.bf16.msrb.mxu0 %v10265_v51  ;;  %4201 = vmatpush.bf16.msrb.mxu1 %v10393_v63  ;;  %v2702_v46 = vpop.f32.mrf.mxu0  ;;  %v2715_v52 = vpop.f32.mrf.mxu1  ;;  %v10060_v63 = vld [vmem:[%s14646_s28 + $0x268] sm:$0xf]  ;;  %v12980_v25 = vld [vmem:[%s14646_s28 + $0x4b4] sm:$0xf0] }
 0x1f3   : > { %4214 = vmatpush.bf16.msrb.mxu2 %v10521_v55  ;;  %v2703_v51 = vadd.f32 %v2702_v46, %v15516_v19  ;;  %v12908_v55 = vld [vmem:[%s14646_s28 + $0x274] sm:$0xf0]  ;;  %v9933_v19 = vor.u32 %v12876_v54, %v9932_v40  ;;  %v10476_v26 = vld [vmem:[%s14646_s28 + $0x5a8] sm:$0xf] }
 0x1f4   : > { %4227 = vmatpush.bf16.msrb.mxu3 %v10649_v9 }
 0x1f5   : > { %4189 = vmatmul.bf16.vlgmr.msrb.gmra.mxu0 %v15396_v62  ;;  %4202 = vmatmul.bf16.vlgmr.msrb.gmra.mxu1 %v15403_v4  ;;  %v2716_v9 = vadd.f32 %v2715_v52, %v2703_v51  ;;  %v10380_v51 = vld [vmem:[%s14646_s28 + $0x4e8] sm:$0xf]  ;;  %v12988_v52 = vld [vmem:[%s14646_s28 + $0x4f4] sm:$0xf0] }
 0x1f6   : > { %4233 = vmatpush.bf16.msra.mxu0 %v9869_v57  ;;  %4246 = vmatpush.bf16.msra.mxu1 %v9997_v16  ;;  %v9805_v57 = vor.u32 %v12844_v50, %v9804_v49  ;;  %v10061_v16 = vor.u32 %v12908_v55, %v10060_v63  ;;  %v10140_v49 = vld [vmem:[%s14646_s28 + $0x308] sm:$0xf]  ;;  %v12928_v50 = vld [vmem:[%s14646_s28 + $0x314] sm:$0xf0] }
 0x1f7   : > { %4259 = vmatpush.bf16.msra.mxu2 %v10125_v58  ;;  %4228 = vmatmul.bf16.vlgmr.msrb.gmra.mxu3 %v15407_v11  ;;  %v9788_v58 = vld [vmem:[%s14646_s28 + $0x48] sm:$0xf]  ;;  %v13020_v63 = vld [vmem:[%s14646_s28 + $0x5f4] sm:$0xf0] }
 0x1f8   : > { %4272 = vmatpush.bf16.msra.mxu3 %v10253_v0  ;;  %4215 = vmatmul.bf16.vlgmr.msrb.gmra.mxu2 %v15401_v2  ;;  %v10189_v0 = vor.u32 %v12940_v6, %v10188_v56  ;;  %v10636_v55 = vld [vmem:[%s14646_s28 + $0x6e8] sm:$0xf]  ;;  %v13052_v56 = vld [vmem:[%s14646_s28 + $0x6f4] sm:$0xf0]  ;;  %v9885_v6 = vor.u32 %v12864_v37, %v9884_v45 }
 0x1f9   : > { %v10637_v60 = vor.u32 %v13052_v56, %v10636_v55  ;;  %v13008_v45 = vld [vmem:[%s14646_s28 + $0x594] sm:$0xf0]  ;;  %v10588_v37 = vld [vmem:[%s14646_s28 + $0x688] sm:$0xf] }
 0x1fa   : > { %4234 = vmatpush.bf16.msra.mxu0 %v9853_v14  ;;  %4247 = vmatpush.bf16.msra.mxu1 %v9981_v20  ;;  %v2741_v13 = vpop.f32.mrf.mxu3  ;;  %v10172_v14 = vld [vmem:[%s14646_s28 + $0x348] sm:$0xf]  ;;  %v12936_v20 = vld [vmem:[%s14646_s28 + $0x354] sm:$0xf0]  ;;  %v2704_v23 = vpop.f32.mrf.mxu0 }
 0x1fb   : > { %4260 = vmatpush.bf16.msra.mxu2 %v10109_v21  ;;  %v2728_v17 = vpop.f32.mrf.mxu2  ;;  %v9789_v21 = vor.u32 %v12840_v59, %v9788_v58  ;;  %v2717_v28 = vpop.f32.mrf.mxu1  ;;  %v10173_v29 = vor.u32 %v12936_v20, %v10172_v14  ;;  %v10381_v58 = vor.u32 %v12988_v52, %v10380_v51  ;;  %v10748_v14 = vld [vmem:[%s14646_s28 + $0x7c8] sm:$0xf]  ;;  %v13080_v20 = vld [vmem:[%s14646_s28 + $0x7d4] sm:$0xf0] }
 0x1fc   : > { %4273 = vmatpush.bf16.msra.mxu3 %v10237_v61  ;;  %v2729_v10 = vadd.f32 %v2728_v17, %v2716_v9  ;;  %v10045_v61 = vor.u32 %v12904_v5, %v10044_v1  ;;  %v10364_v17 = vld [vmem:[%s14646_s28 + $0x4c8] sm:$0xf]  ;;  %v13016_v5 = vld [vmem:[%s14646_s28 + $0x5d4] sm:$0xf0] }
 0x1fd   : > { %v10493_v23 = vor.u32 %v13016_v5, %v10492_v31  ;;  %v13012_v28 = vld [vmem:[%s14646_s28 + $0x5b4] sm:$0xf0]  ;;  %v10316_v52 = vld [vmem:[%s14646_s28 + $0x468] sm:$0xf] }
 0x1fe   : > { %4235 = vmatpush.bf16.msra.mxu0 %v9837_v30  ;;  %4248 = vmatpush.bf16.msra.mxu1 %v9965_v32  ;;  %v15587_v22 = vadd.f32 %v2741_v13, %v2729_v10  ;;  %v12868_v30 = vld [vmem:[%s14646_s28 + $0x134] sm:$0xf0]  ;;  %v10028_v32 = vld [vmem:[%s14646_s28 + $0x228] sm:$0xf] }
 0x1ff   : > { %4261 = vmatpush.bf16.msra.mxu2 %v10093_v33  ;;  %v12900_v33 = vld [vmem:[%s14646_s28 + $0x234] sm:$0xf0]  ;;  %v9901_v42 = vor.u32 %v12868_v30, %v9900_v27  ;;  %v10620_v10 = vld [vmem:[%s14646_s28 + $0x6c8] sm:$0xf]  ;;  %v10749_v27 = vor.u32 %v13080_v20, %v10748_v14 }
 0x200   : > { %4274 = vmatpush.bf16.msra.mxu3 %v10221_v41  ;;  %v9756_v41 = vld [vmem:[%s14646_s28 + $0x8] sm:$0xf]  ;;  %v10029_v44 = vor.u32 %v12900_v33, %v10028_v32  ;;  %v13048_v13 = vld [vmem:[%s14646_s28 + $0x6d4] sm:$0xf0] }
 0x201   : > { %v9757_v54 = vor.u32 %v12832_v34, %v9756_v41  ;;  %v13044_v30 = vld [vmem:[%s14646_s28 + $0x6b4] sm:$0xf0]  ;;  %v10732_v32 = vld [vmem:[%s14646_s28 + $0x7a8] sm:$0xf] }
 0x202   : > { %4236 = vmatpush.bf16.msra.mxu0 %v9821_v38  ;;  %4249 = vmatpush.bf16.msra.mxu1 %v9949_v47  ;;  %v10012_v38 = vld [vmem:[%s14646_s28 + $0x208] sm:$0xf]  ;;  %v10157_v47 = vor.u32 %v12932_v36, %v10156_v35  ;;  %v2743_v40 = vpop.f32.mrf.mxu3  ;;  %v13076_v33 = vld [vmem:[%s14646_s28 + $0x7b4] sm:$0xf0]  ;;  %v10477_v36 = vor.u32 %v13012_v28, %v10476_v26 }
 0x203   : > { %4262 = vmatpush.bf16.msra.mxu2 %v10077_v48  ;;  %v2730_v46 = vpop.f32.mrf.mxu2  ;;  %v12896_v48 = vld [vmem:[%s14646_s28 + $0x214] sm:$0xf0]  ;;  %v10332_v41 = vld [vmem:[%s14646_s28 + $0x488] sm:$0xf] }
 0x204   : > { %4275 = vmatpush.bf16.msra.mxu3 %v10205_v53  ;;  %v10508_v53 = vld [vmem:[%s14646_s28 + $0x5e8] sm:$0xf]  ;;  %v10013_v9 = vor.u32 %v12896_v48, %v10012_v38  ;;  %v12976_v34 = vld [vmem:[%s14646_s28 + $0x494] sm:$0xf0] }
 0x205   : > { %v10509_v59 = vor.u32 %v13020_v63, %v10508_v53  ;;  %v13040_v38 = vld [vmem:[%s14646_s28 + $0x694] sm:$0xf0]  ;;  %v10572_v56 = vld [vmem:[%s14646_s28 + $0x668] sm:$0xf] }
 0x206   : > { %4237 = vmatpush.bf16.msra.mxu0 %v9805_v57  ;;  %4250 = vmatpush.bf16.msra.mxu1 %v9933_v19  ;;  %v10764_v57 = vld [vmem:[%s14646_s28 + $0x7e8] sm:$0xf]  ;;  %v13084_v19 = vld [vmem:[%s14646_s28 + $0x7f4] sm:$0xf0]  ;;  %v10589_v51 = vor.u32 %v13040_v38, %v10588_v37 }
 0x207   : > { %4263 = vmatpush.bf16.msra.mxu2 %v10061_v16  ;;  %v10141_v16 = vor.u32 %v12928_v50, %v10140_v49  ;;  %v10765_v1 = vor.u32 %v13084_v19, %v10764_v57  ;;  %v13072_v48 = vld [vmem:[%s14646_s28 + $0x794] sm:$0xf0]  ;;  %v10333_v49 = vor.u32 %v12976_v34, %v10332_v41  ;;  %v10556_v5 = vld [vmem:[%s14646_s28 + $0x648] sm:$0xf] }
 0x208   : > { %4276 = vmatpush.bf16.msra.mxu3 %v10189_v0  ;;  %v12984_v0 = vld [vmem:[%s14646_s28 + $0x4d4] sm:$0xf0]  ;;  %v10684_v14 = vld [vmem:[%s14646_s28 + $0x748] sm:$0xf] }
 0x209   : > { %v12972_v53 = vld [vmem:[%s14646_s28 + $0x474] sm:$0xf0]  ;;  %v10284_v26 = vld [vmem:[%s14646_s28 + $0x428] sm:$0xf] }
 0x20a   : > { %4238 = vmatpush.bf16.msra.mxu0 %v9789_v21  ;;  %4251 = vmatpush.bf16.msra.mxu1 %v9917_v24  ;;  %v10365_v21 = vor.u32 %v12984_v0, %v10364_v17  ;;  %v10621_v24 = vor.u32 %v13048_v13, %v10620_v10  ;;  %v13004_v55 = vld [vmem:[%s14646_s28 + $0x574] sm:$0xf0]  ;;  %v10317_v19 = vor.u32 %v12972_v53, %v10316_v52  ;;  %v10428_v17 = vld [vmem:[%s14646_s28 + $0x548] sm:$0xf]  ;;  %v12858_v52 = vld [vmem:[%s14646_s28 + $0xec] sm:$0xf] }
 0x20b   : > { %4264 = vmatpush.bf16.msra.mxu2 %v10045_v61  ;;  %v10348_v61 = vld [vmem:[%s14646_s28 + $0x4a8] sm:$0xf]  ;;  %v13068_v57 = vld [vmem:[%s14646_s28 + $0x774] sm:$0xf0]  ;;  %v9870_v53 = vld [vmem:[%s14646_s28 + $0xf8] sm:$0xf0] }
 0x20c   : > { %4277 = vmatpush.bf16.msra.mxu3 %v10173_v29  ;;  %v10604_v29 = vld [vmem:[%s14646_s28 + $0x6a8] sm:$0xf]  ;;  %v10349_v35 = vor.u32 %v12980_v25, %v10348_v61  ;;  %v13032_v10 = vld [vmem:[%s14646_s28 + $0x654] sm:$0xf0] }
 0x20d   : > { %v13064_v20 = vld [vmem:[%s14646_s28 + $0x754] sm:$0xf0]  ;;  %v10557_v25 = vor.u32 %v13032_v10, %v10556_v5  ;;  %v10412_v28 = vld [vmem:[%s14646_s28 + $0x528] sm:$0xf]  ;;  %v12854_v5 = vld [vmem:[%s14646_s28 + $0xcc] sm:$0xf] }
 0x20e   : > { %4239 = vmatpush.bf16.msra.mxu0 %v9773_v39  ;;  %4252 = vmatpush.bf16.msra.mxu1 %v9901_v42  ;;  %v10605_v39 = vor.u32 %v13044_v30, %v10604_v29  ;;  %v10460_v42 = vld [vmem:[%s14646_s28 + $0x588] sm:$0xf]  ;;  %v10685_v29 = vor.u32 %v13064_v20, %v10684_v14  ;;  %v12996_v30 = vld [vmem:[%s14646_s28 + $0x534] sm:$0xf0]  ;;  %v9854_v10 = vld [vmem:[%s14646_s28 + $0xd8] sm:$0xf0] }
 0x20f   : > { %4265 = vmatpush.bf16.msra.mxu2 %v10029_v44  ;;  %v10733_v44 = vor.u32 %v13076_v33, %v10732_v32  ;;  %v10461_v40 = vor.u32 %v13008_v45, %v10460_v42  ;;  %v10540_v32 = vld [vmem:[%s14646_s28 + $0x628] sm:$0xf]  ;;  %v13028_v33 = vld [vmem:[%s14646_s28 + $0x634] sm:$0xf0]  ;;  %v10413_v42 = vor.u32 %v12996_v30, %v10412_v28  ;;  %v12886_v14 = vld [vmem:[%s14646_s28 + $0x1cc] sm:$0xf] }
 0x210   : > { %4278 = vmatpush.bf16.msra.mxu3 %v10157_v47  ;;  %v10716_v47 = vld [vmem:[%s14646_s28 + $0x788] sm:$0xf]  ;;  %v12960_v34 = vld [vmem:[%s14646_s28 + $0x414] sm:$0xf0]  ;;  %v12850_v28 = vld [vmem:[%s14646_s28 + $0xac] sm:$0xf] }
 0x211   : > { %v10717_v63 = vor.u32 %v13072_v48, %v10716_v47  ;;  %v10268_v41 = vld [vmem:[%s14646_s28 + $0x408] sm:$0xf]  ;;  %v12992_v37 = vld [vmem:[%s14646_s28 + $0x514] sm:$0xf0]  ;;  %v12882_v30 = vld [vmem:[%s14646_s28 + $0x1ac] sm:$0xf] }
 0x212   : > { %4240 = vmatpush.bf16.msra.mxu0 %v9757_v54  ;;  %4253 = vmatpush.bf16.msra.mxu1 %v9885_v6  ;;  %v15639_v46 = vpop.f32.mrf.mxu0  ;;  %v15643_v50 = vpop.f32.mrf.mxu1  ;;  %v10444_v54 = vld [vmem:[%s14646_s28 + $0x568] sm:$0xf]  ;;  %v13036_v6 = vld [vmem:[%s14646_s28 + $0x674] sm:$0xf0] }
 0x213   : > { %4266 = vmatpush.bf16.msra.mxu2 %v10013_v9  ;;  %v10700_v9 = vld [vmem:[%s14646_s28 + $0x768] sm:$0xf]  ;;  %v13024_v48 = vld [vmem:[%s14646_s28 + $0x614] sm:$0xf0] }
 0x214   : > { %4279 = vmatpush.bf16.msra.mxu3 %v10141_v16  ;;  %v10445_v16 = vor.u32 %v13004_v55, %v10444_v54  ;;  %v10701_v0 = vor.u32 %v13068_v57, %v10700_v9  ;;  %v10396_v45 = vld [vmem:[%s14646_s28 + $0x508] sm:$0xf]  ;;  %v12890_v54 = vld [vmem:[%s14646_s28 + $0x1ec] sm:$0xf]  ;;  %v10269_v55 = vor.u32 %v12960_v34, %v10268_v41  ;;  %v10126_v9 = vld [vmem:[%s14646_s28 + $0x2f8] sm:$0xf0] }
 0x215   : > { %4241 = vmatmul.bf16.vlgmr.msra.gmra.mxu0 %v15318_v3  ;;  %4254 = vmatmul.bf16.vlgmr.msra.gmra.mxu1 %v15325_v8  ;;  %v10524_v38 = vld [vmem:[%s14646_s28 + $0x608] sm:$0xf]  ;;  %v10397_v57 = vor.u32 %v12992_v37, %v10396_v45  ;;  %v10222_v41 = vld [vmem:[%s14646_s28 + $0x3b8] sm:$0xf0]  ;;  %v12878_v37 = vld [vmem:[%s14646_s28 + $0x18c] sm:$0xf] }
 0x216   : > { %4285 = vmatpush.bf16.msrb.mxu0 %v10381_v58  ;;  %4298 = vmatpush.bf16.msrb.mxu1 %v10509_v59  ;;  %v10573_v58 = vor.u32 %v13036_v6, %v10572_v56  ;;  %v10300_v59 = vld [vmem:[%s14646_s28 + $0x448] sm:$0xf]  ;;  %v9998_v56 = vld [vmem:[%s14646_s28 + $0x1f8] sm:$0xf0]  ;;  %v12922_v6 = vld [vmem:[%s14646_s28 + $0x2ec] sm:$0xf] }
 0x217   : > { %4311 = vmatpush.bf16.msrb.mxu2 %v10637_v60  ;;  %4280 = vmatmul.bf16.vlgmr.msra.gmra.mxu3 %v15329_v12  ;;  %v12968_v60 = vld [vmem:[%s14646_s28 + $0x454] sm:$0xf0]  ;;  %v9822_v45 = vld [vmem:[%s14646_s28 + $0x98] sm:$0xf0] }
 0x218   : > { %4324 = vmatpush.bf16.msrb.mxu3 %v10765_v1  ;;  %4267 = vmatmul.bf16.vlgmr.msra.gmra.mxu2 %v15323_v7  ;;  %v13000_v1 = vld [vmem:[%s14646_s28 + $0x554] sm:$0xf0] }
 0x219   : > { %v10429_v61 = vor.u32 %v13000_v1, %v10428_v17  ;;  %v4035_v17 = vadd.f32 %v15639_v46, %v15148_v43  ;;  %v10129_v1 = vor.u32 %v12922_v6, %v10126_v9  ;;  %v9857_v43 = vor.u32 %v12854_v5, %v9854_v10  ;;  %v12842_v9 = vld [vmem:[%s14646_s28 + $0x6c] sm:$0xf] }
 0x21a   : > { %4286 = vmatpush.bf16.msrb.mxu0 %v10365_v21  ;;  %4299 = vmatpush.bf16.msrb.mxu1 %v10493_v23  ;;  %v15661_v13 = vpop.f32.mrf.mxu3  ;;  %v4036_v21 = vpop.f32.mrf.mxu0  ;;  %v10301_v23 = vor.u32 %v12968_v60, %v10300_v59  ;;  %v9873_v60 = vor.u32 %v12858_v52, %v9870_v53  ;;  %v12942_v52 = vld [vmem:[%s14646_s28 + $0x38c] sm:$0xf]  ;;  %v10206_v53 = vld [vmem:[%s14646_s28 + $0x398] sm:$0xf0] }
 0x21b   : > { %4312 = vmatpush.bf16.msrb.mxu2 %v10621_v24  ;;  %v15656_v31 = vpop.f32.mrf.mxu2  ;;  %v4049_v24 = vpop.f32.mrf.mxu1  ;;  %v9982_v21 = vld [vmem:[%s14646_s28 + $0x1d8] sm:$0xf0]  ;;  %v4048_v46 = vadd.f32 %v15643_v50, %v4035_v17 }
 0x21c   : > { %4325 = vmatpush.bf16.msrb.mxu3 %v10749_v27  ;;  %v12964_v27 = vld [vmem:[%s14646_s28 + $0x434] sm:$0xf0]  ;;  %v10110_v24 = vld [vmem:[%s14646_s28 + $0x2d8] sm:$0xf0] }
 0x21d   : > { %v4061_v50 = vadd.f32 %v15656_v31, %v4048_v46  ;;  %v10190_v17 = vld [vmem:[%s14646_s28 + $0x378] sm:$0xf0] }
 0x21e   : > { %4287 = vmatpush.bf16.msrb.mxu0 %v10349_v35  ;;  %4300 = vmatpush.bf16.msrb.mxu1 %v10477_v36  ;;  %v10668_v35 = vld [vmem:[%s14646_s28 + $0x728] sm:$0xf]  ;;  %v13060_v36 = vld [vmem:[%s14646_s28 + $0x734] sm:$0xf0]  ;;  %v10046_v46 = vld [vmem:[%s14646_s28 + $0x258] sm:$0xf0] }
 0x21f   : > { %4313 = vmatpush.bf16.msrb.mxu2 %v10605_v39  ;;  %v10285_v39 = vor.u32 %v12964_v27, %v10284_v26  ;;  %v10669_v47 = vor.u32 %v13060_v36, %v10668_v35  ;;  %v9985_v26 = vor.u32 %v12886_v14, %v9982_v21  ;;  %v12914_v35 = vld [vmem:[%s14646_s28 + $0x2ac] sm:$0xf]  ;;  %v10094_v36 = vld [vmem:[%s14646_s28 + $0x2b8] sm:$0xf0] }
 0x220   : > { %4326 = vmatpush.bf16.msrb.mxu3 %v10733_v44  ;;  %v10541_v44 = vor.u32 %v13028_v33, %v10540_v32  ;;  %v9966_v33 = vld [vmem:[%s14646_s28 + $0x1b8] sm:$0xf0] }
 0x221   : > { %v9969_v31 = vor.u32 %v12882_v30, %v9966_v33  ;;  %v9790_v21 = vld [vmem:[%s14646_s28 + $0x58] sm:$0xf0] }
 0x222   : > { %4288 = vmatpush.bf16.msrb.mxu0 %v10333_v49  ;;  %4301 = vmatpush.bf16.msrb.mxu1 %v10461_v40  ;;  %v10652_v49 = vld [vmem:[%s14646_s28 + $0x708] sm:$0xf]  ;;  %v13056_v40 = vld [vmem:[%s14646_s28 + $0x714] sm:$0xf0]  ;;  %v10174_v30 = vld [vmem:[%s14646_s28 + $0x358] sm:$0xf0] }
 0x223   : > { %4314 = vmatpush.bf16.msrb.mxu2 %v10589_v51  ;;  %v4062_v51 = vpop.f32.mrf.mxu2  ;;  %v10653_v59 = vor.u32 %v13056_v40, %v10652_v49  ;;  %v10078_v49 = vld [vmem:[%s14646_s28 + $0x298] sm:$0xf0]  ;;  %v4074_v40 = vadd.f32 %v15661_v13, %v4061_v50  ;;  %v12874_v13 = vld [vmem:[%s14646_s28 + $0x16c] sm:$0xf] }
 0x224   : > { %4327 = vmatpush.bf16.msrb.mxu3 %v10717_v63  ;;  %v4075_v63 = vpop.f32.mrf.mxu3 }
 0x226   : > { %4289 = vmatpush.bf16.msrb.mxu0 %v10317_v19  ;;  %4302 = vmatpush.bf16.msrb.mxu1 %v10445_v16  ;;  %v10525_v19 = vor.u32 %v13024_v48, %v10524_v38  ;;  %v12954_v16 = vld [vmem:[%s14646_s28 + $0x3ec] sm:$0xf] }
 0x227   : > { %4315 = vmatpush.bf16.msrb.mxu2 %v10573_v58  ;;  %v10254_v58 = vld [vmem:[%s14646_s28 + $0x3f8] sm:$0xf0]  ;;  %v12910_v48 = vld [vmem:[%s14646_s28 + $0x28c] sm:$0xf] }
 0x228   : > { %4328 = vmatpush.bf16.msrb.mxu3 %v10701_v0  ;;  %v10001_v0 = vor.u32 %v12890_v54, %v9998_v56  ;;  %v10257_v20 = vor.u32 %v12954_v16, %v10254_v58  ;;  %v10081_v6 = vor.u32 %v12910_v48, %v10078_v49  ;;  %v9934_v16 = vld [vmem:[%s14646_s28 + $0x178] sm:$0xf0]  ;;  %v12906_v58 = vld [vmem:[%s14646_s28 + $0x26c] sm:$0xf] }
 0x229   : > { %v9937_v10 = vor.u32 %v12874_v13, %v9934_v16  ;;  %v10158_v48 = vld [vmem:[%s14646_s28 + $0x338] sm:$0xf0] }
 0x22a   : > { %4290 = vmatpush.bf16.msrb.mxu0 %v10301_v23  ;;  %4303 = vmatpush.bf16.msrb.mxu1 %v10429_v61  ;;  %v12918_v23 = vld [vmem:[%s14646_s28 + $0x2cc] sm:$0xf]  ;;  %v10382_v16 = vld [vmem:[%s14646_s28 + $0x4f8] sm:$0xf0] }
 0x22b   : > { %4316 = vmatpush.bf16.msrb.mxu2 %v10557_v25  ;;  %v12950_v61 = vld [vmem:[%s14646_s28 + $0x3cc] sm:$0xf]  ;;  %v10238_v25 = vld [vmem:[%s14646_s28 + $0x3d8] sm:$0xf0]  ;;  %v10113_v27 = vor.u32 %v12918_v23, %v10110_v24 }
 0x22c   : > { %4329 = vmatpush.bf16.msrb.mxu3 %v10685_v29  ;;  %v9838_v29 = vld [vmem:[%s14646_s28 + $0xb8] sm:$0xf0]  ;;  %v10241_v32 = vor.u32 %v12950_v61, %v10238_v25  ;;  %v12870_v23 = vld [vmem:[%s14646_s28 + $0x14c] sm:$0xf] }
 0x22d   : > { %v9841_v34 = vor.u32 %v12850_v28, %v9838_v29  ;;  %v9918_v25 = vld [vmem:[%s14646_s28 + $0x158] sm:$0xf0]  ;;  %v12934_v29 = vld [vmem:[%s14646_s28 + $0x34c] sm:$0xf] }
 0x22e   : > { %4291 = vmatpush.bf16.msrb.mxu0 %v10285_v39  ;;  %4304 = vmatpush.bf16.msrb.mxu1 %v10413_v42  ;;  %v12946_v39 = vld [vmem:[%s14646_s28 + $0x3ac] sm:$0xf]  ;;  %v10097_v42 = vor.u32 %v12914_v35, %v10094_v36  ;;  %v9921_v50 = vor.u32 %v12870_v23, %v9918_v25  ;;  %v10766_v23 = vld [vmem:[%s14646_s28 + $0x7f8] sm:$0xf0] }
 0x22f   : > { %4317 = vmatpush.bf16.msrb.mxu2 %v10541_v44  ;;  %v12846_v44 = vld [vmem:[%s14646_s28 + $0x8c] sm:$0xf]  ;;  %v10225_v38 = vor.u32 %v12946_v39, %v10222_v41 }
 0x230   : > { %4330 = vmatpush.bf16.msrb.mxu3 %v10669_v47  ;;  %v9950_v47 = vld [vmem:[%s14646_s28 + $0x198] sm:$0xf0]  ;;  %v9825_v54 = vor.u32 %v12846_v44, %v9822_v45  ;;  %v12834_v41 = vld [vmem:[%s14646_s28 + $0x2c] sm:$0xf] }
 0x231   : > { %v9953_v56 = vor.u32 %v12878_v37, %v9950_v47  ;;  %v9902_v44 = vld [vmem:[%s14646_s28 + $0x138] sm:$0xf0]  ;;  %v12898_v45 = vld [vmem:[%s14646_s28 + $0x22c] sm:$0xf] }
 0x232   : > { %4292 = vmatpush.bf16.msrb.mxu0 %v10269_v55  ;;  %4305 = vmatpush.bf16.msrb.mxu1 %v10397_v57  ;;  %v4086_v51 = vpop.f32.mrf.mxu0  ;;  %v4099_v63 = vpop.f32.mrf.mxu1  ;;  %v9806_v57 = vld [vmem:[%s14646_s28 + $0x78] sm:$0xf0]  ;;  %v12930_v47 = vld [vmem:[%s14646_s28 + $0x32c] sm:$0xf] }
 0x233   : > { %4318 = vmatpush.bf16.msrb.mxu2 %v10525_v19  ;;  %v4087_v55 = vadd.f32 %v4086_v51, %v4074_v40  ;;  %v10209_v19 = vor.u32 %v12942_v52, %v10206_v53  ;;  %v10030_v37 = vld [vmem:[%s14646_s28 + $0x238] sm:$0xf0]  ;;  %v12830_v40 = vld [vmem:[%s14646_s28 + $0xc] sm:$0xf] }
 0x234   : > { %4331 = vmatpush.bf16.msrb.mxu3 %v10653_v59  ;;  %v10062_v59 = vld [vmem:[%s14646_s28 + $0x278] sm:$0xf0]  ;;  %v10033_v53 = vor.u32 %v12898_v45, %v10030_v37  ;;  %v13010_v45 = vld [vmem:[%s14646_s28 + $0x5ac] sm:$0xf] }
 0x235   : > { %4293 = vmatmul.bf16.vlgmr.msrb.gmra.mxu0 %v15396_v62  ;;  %4306 = vmatmul.bf16.vlgmr.msrb.gmra.mxu1 %v15403_v4  ;;  %v4100_v5 = vadd.f32 %v4099_v63, %v4087_v55  ;;  %v10065_v14 = vor.u32 %v12906_v58, %v10062_v59  ;;  %v9758_v51 = vld [vmem:[%s14646_s28 + $0x18] sm:$0xf0]  ;;  %v12894_v55 = vld [vmem:[%s14646_s28 + $0x20c] sm:$0xf] }
 0x236   : > { %4337 = vmatpush.bf16.msra.mxu0 %v9873_v60  ;;  %4350 = vmatpush.bf16.msra.mxu1 %v10001_v0  ;;  %v12938_v60 = vld [vmem:[%s14646_s28 + $0x36c] sm:$0xf]  ;;  %v9809_v0 = vor.u32 %v12842_v9, %v9806_v57  ;;  %v9886_v63 = vld [vmem:[%s14646_s28 + $0x118] sm:$0xf0] }
 0x237   : > { %4363 = vmatpush.bf16.msra.mxu2 %v10129_v1  ;;  %4332 = vmatmul.bf16.vlgmr.msrb.gmra.mxu3 %v15407_v11  ;;  %v15735_v1 = vld [vmem:[%s4443_s27] sm:$0xf]  ;;  %v10193_v24 = vor.u32 %v12938_v60, %v10190_v17  ;;  %v12926_v9 = vld [vmem:[%s14646_s28 + $0x30c] sm:$0xf]  ;;  %v10142_v57 = vld [vmem:[%s14646_s28 + $0x318] sm:$0xf0]  ;;  %v9761_v60 = vor.u32 %v12830_v40, %v9758_v51 }
 0x238   : > { %4376 = vmatpush.bf16.msra.mxu3 %v10257_v20  ;;  %4319 = vmatmul.bf16.vlgmr.msrb.gmra.mxu2 %v15401_v2  ;;  %v12838_v20 = vld [vmem:[%s14646_s28 + $0x4c] sm:$0xf]  ;;  %v4446_v28 = vperm.slane %v15735_v1, 0  ;;  %v10510_v17 = vld [vmem:[%s14646_s28 + $0x5f8] sm:$0xf0] }
 0x239   : > { %v9793_v33 = vor.u32 %v12838_v20, %v9790_v21  ;;  %v13018_v58 = vld [vmem:[%s14646_s28 + $0x5ec] sm:$0xf]  ;;  %v10734_v51 = vld [vmem:[%s14646_s28 + $0x7b8] sm:$0xf0] }
 0x23a   : > { %4338 = vmatpush.bf16.msra.mxu0 %v9857_v43  ;;  %4351 = vmatpush.bf16.msra.mxu1 %v9985_v26  ;;  %v12902_v43 = vld [vmem:[%s14646_s28 + $0x24c] sm:$0xf]  ;;  %v4101_v35 = vpop.f32.mrf.mxu1 }
 0x23b   : > { %4364 = vmatpush.bf16.msra.mxu2 %v10113_v27  ;;  %v4112_v61 = vpop.f32.mrf.mxu2  ;;  %v4125_v27 = vpop.f32.mrf.mxu3  ;;  %v10049_v39 = vor.u32 %v12902_v43, %v10046_v46  ;;  %v13082_v21 = vld [vmem:[%s14646_s28 + $0x7ec] sm:$0xf]  ;;  %v10513_v43 = vor.u32 %v13018_v58, %v10510_v17  ;;  %v10622_v35 = vld [vmem:[%s14646_s28 + $0x6d8] sm:$0xf0]  ;;  %v4498_v58 = vld [vmem:[%s15808_s6] sm:$0xff] }
 0x23c   : > { %4377 = vmatpush.bf16.msra.mxu3 %v10241_v32  ;;  %v4113_v26 = vadd.f32 %v4112_v61, %v4100_v5  ;;  %v4088_v32 = vpop.f32.mrf.mxu0  ;;  %v10638_v5 = vld [vmem:[%s14646_s28 + $0x6f8] sm:$0xf0]  ;;  %v13074_v40 = vld [vmem:[%s14646_s28 + $0x7ac] sm:$0xf] }
 0x23d   : > { %v10494_v32 = vld [vmem:[%s14646_s28 + $0x5d8] sm:$0xf0] }
 0x23e   : > { %4339 = vmatpush.bf16.msra.mxu0 %v9841_v34  ;;  %4352 = vmatpush.bf16.msra.mxu1 %v9969_v31  ;;  %v4126_v36 = vadd.f32 %v4125_v27, %v4113_v26  ;;  %v9774_v34 = vld [vmem:[%s14646_s28 + $0x38] sm:$0xf0]  ;;  %v12866_v31 = vld [vmem:[%s14646_s28 + $0x12c] sm:$0xf] }
 0x23f   : > { %4365 = vmatpush.bf16.msra.mxu2 %v10097_v42  ;;  %v10177_v42 = vor.u32 %v12934_v29, %v10174_v30  ;;  %v9777_v49 = vor.u32 %v12834_v41, %v9774_v34  ;;  %v9905_v52 = vor.u32 %v12866_v31, %v9902_v44  ;;  %v12982_v26 = vld [vmem:[%s14646_s28 + $0x4cc] sm:$0xf]  ;;  %v10366_v27 = vld [vmem:[%s14646_s28 + $0x4d8] sm:$0xf0]  ;;  %v10769_v30 = vor.u32 %v13082_v21, %v10766_v23 }
 0x240   : > { %4378 = vmatpush.bf16.msra.mxu3 %v10225_v38  ;;  %v4454_v38 = vadd.f32 %v4446_v28, %v4126_v36  ;;  %v13014_v28 = vld [vmem:[%s14646_s28 + $0x5cc] sm:$0xf]  ;;  %v10369_v41 = vor.u32 %v12982_v26, %v10366_v27  ;;  %v10350_v44 = vld [vmem:[%s14646_s28 + $0x4b8] sm:$0xf0] }
 0x241   : > { %v13078_v36 = vld [vmem:[%s14646_s28 + $0x7cc] sm:$0xf]  ;;  %v10497_v34 = vor.u32 %v13014_v28, %v10494_v32  ;;  %v10446_v23 = vld [vmem:[%s14646_s28 + $0x578] sm:$0xf0] }
 0x242   : > { %4340 = vmatpush.bf16.msra.mxu0 %v9825_v54  ;;  %4353 = vmatpush.bf16.msra.mxu1 %v9953_v56  ;;  %14017 = vtanh.f32 %v4454_v38  ;;  %v12862_v54 = vld [vmem:[%s14646_s28 + $0x10c] sm:$0xf]  ;;  %v10161_v56 = vor.u32 %v12930_v47, %v10158_v48  ;;  %v10478_v47 = vld [vmem:[%s14646_s28 + $0x5b8] sm:$0xf0] }
 0x243   : > { %4366 = vmatpush.bf16.msra.mxu2 %v10081_v6  ;;  %v10014_v6 = vld [vmem:[%s14646_s28 + $0x218] sm:$0xf0]  ;;  %v4114_v13 = vpop.f32.mrf.mxu2  ;;  %v4127_v59 = vpop.f32.mrf.mxu3  ;;  %v13042_v48 = vld [vmem:[%s14646_s28 + $0x6ac] sm:$0xf] }
 0x244   : > { %4379 = vmatpush.bf16.msra.mxu3 %v10209_v19  ;;  %v12986_v19 = vld [vmem:[%s14646_s28 + $0x4ec] sm:$0xf]  ;;  %v10017_v20 = vor.u32 %v12894_v55, %v10014_v6  ;;  %v10462_v6 = vld [vmem:[%s14646_s28 + $0x598] sm:$0xf0] }
 0x245   : > { %v10385_v61 = vor.u32 %v12986_v19, %v10382_v16  ;;  %v13070_v13 = vld [vmem:[%s14646_s28 + $0x78c] sm:$0xf]  ;;  %v10718_v19 = vld [vmem:[%s14646_s28 + $0x798] sm:$0xf0] }
 0x246   : > { %4341 = vmatpush.bf16.msra.mxu0 %v9809_v0  ;;  %4354 = vmatpush.bf16.msra.mxu1 %v9937_v10  ;;  %v13050_v0 = vld [vmem:[%s14646_s28 + $0x6ec] sm:$0xf]  ;;  %v4464_v10 = vld [vmem:[%s15772_s11] sm:$0xff]  ;;  %v10721_v21 = vor.u32 %v13070_v13, %v10718_v19  ;;  %v10526_v19 = vld [vmem:[%s14646_s28 + $0x618] sm:$0xf0] }
 0x247   : > { %4367 = vmatpush.bf16.msra.mxu2 %v10065_v14  ;;  %v9889_v14 = vor.u32 %v12862_v54, %v9886_v63  ;;  %v10641_v46 = vor.u32 %v13050_v0, %v10638_v5  ;;  %v10334_v63 = vld [vmem:[%s14646_s28 + $0x498] sm:$0xf0]  ;;  %v12970_v5 = vld [vmem:[%s14646_s28 + $0x46c] sm:$0xf] }
 0x248   : > { %4380 = vmatpush.bf16.msra.mxu3 %v10193_v24  ;;  %v10145_v24 = vor.u32 %v12926_v9, %v10142_v57  ;;  %v14018_v25 = vpop.eup %14017  ;;  %v13038_v9 = vld [vmem:[%s14646_s28 + $0x68c] sm:$0xf] }
 0x249   : > { %v4468_v29 = vmul.f32 %v14018_v25, %v4464_v10  ;;  %v10318_v10 = vld [vmem:[%s14646_s28 + $0x478] sm:$0xf0]  ;;  %v13066_v25 = vld [vmem:[%s14646_s28 + $0x76c] sm:$0xf] }
 0x24a   : > { %4342 = vmatpush.bf16.msra.mxu0 %v9793_v33  ;;  %4355 = vmatpush.bf16.msra.mxu1 %v9921_v50  ;;  %v13046_v33 = vld [vmem:[%s14646_s28 + $0x6cc] sm:$0xf]  ;;  %v10750_v50 = vld [vmem:[%s14646_s28 + $0x7d8] sm:$0xf0]  ;;  %v10321_v26 = vor.u32 %v12970_v5, %v10318_v10 }
 0x24b   : > { %4368 = vmatpush.bf16.msra.mxu2 %v10049_v39  ;;  %v4472_v39 = vrot.slane %v4468_v29, 4  ;;  %v10625_v31 = vor.u32 %v13046_v33, %v10622_v35  ;;  %v10753_v38 = vor.u32 %v13078_v36, %v10750_v50  ;;  %v12998_v32 = vld [vmem:[%s14646_s28 + $0x54c] sm:$0xf]  ;;  %v10430_v36 = vld [vmem:[%s14646_s28 + $0x558] sm:$0xf0] }
 0x24c   : > { %4381 = vmatpush.bf16.msra.mxu3 %v10177_v42  ;;  %v12978_v42 = vld [vmem:[%s14646_s28 + $0x4ac] sm:$0xf] }
 0x24d   : > { %v4473_v37 = vadd.f32 %v4472_v39, %v4468_v29  ;;  %v12966_v29 = vld [vmem:[%s14646_s28 + $0x44c] sm:$0xf]  ;;  %v10558_v39 = vld [vmem:[%s14646_s28 + $0x658] sm:$0xf0] }
 0x24e   : > { %4343 = vmatpush.bf16.msra.mxu0 %v9777_v49  ;;  %4356 = vmatpush.bf16.msra.mxu1 %v9905_v52  ;;  %v10606_v49 = vld [vmem:[%s14646_s28 + $0x6b8] sm:$0xf0]  ;;  %v13030_v50 = vld [vmem:[%s14646_s28 + $0x64c] sm:$0xf] }
 0x24f   : > { %4369 = vmatpush.bf16.msra.mxu2 %v10033_v53  ;;  %v4474_v52 = vrot.slane %v4473_v37, 2  ;;  %v10481_v53 = vor.u32 %v13010_v45, %v10478_v47  ;;  %v10609_v54 = vor.u32 %v13042_v48, %v10606_v49  ;;  %v12962_v47 = vld [vmem:[%s14646_s28 + $0x42c] sm:$0xf]  ;;  %v10286_v48 = vld [vmem:[%s14646_s28 + $0x438] sm:$0xf0] }
 0x250   : > { %4382 = vmatpush.bf16.msra.mxu3 %v10161_v56  ;;  %v10737_v56 = vor.u32 %v13074_v40, %v10734_v51  ;;  %v12994_v49 = vld [vmem:[%s14646_s28 + $0x52c] sm:$0xf]  ;;  %v10414_v51 = vld [vmem:[%s14646_s28 + $0x538] sm:$0xf0] }
 0x251   : > { %v4475_v55 = vadd.f32 %v4474_v52, %v4473_v37  ;;  %v10433_v37 = vor.u32 %v12998_v32, %v10430_v36  ;;  %v13026_v52 = vld [vmem:[%s14646_s28 + $0x62c] sm:$0xf] }
 0x252   : > { %4344 = vmatpush.bf16.msra.mxu0 %v9761_v60  ;;  %4357 = vmatpush.bf16.msra.mxu1 %v9889_v14  ;;  %v15803_v57 = vpop.f32.mrf.mxu0  ;;  %v15811_v60 = vpop.f32.mrf.mxu1  ;;  %v13002_v14 = vld [vmem:[%s14646_s28 + $0x56c] sm:$0xf] }
 0x253   : > { %4370 = vmatpush.bf16.msra.mxu2 %v10017_v20  ;;  %v4476_v16 = vrot.slane %v4475_v55, 1  ;;  %v10449_v27 = vor.u32 %v13002_v14, %v10446_v23  ;;  %v13022_v13 = vld [vmem:[%s14646_s28 + $0x60c] sm:$0xf] }
 0x254   : > { %4383 = vmatpush.bf16.msra.mxu3 %v10145_v24  ;;  %v13034_v24 = vld [vmem:[%s14646_s28 + $0x66c] sm:$0xf]  ;;  %v10529_v10 = vor.u32 %v13022_v13, %v10526_v19 }
 0x255   : > { %4345 = vmatmul.bf16.vlgmr.msra.gmra.mxu0 %v15318_v3  ;;  %4358 = vmatmul.bf16.vlgmr.msra.gmra.mxu1 %v15325_v8  ;;  %v10353_v3 = vor.u32 %v12978_v42, %v10350_v44  ;;  %v13006_v8 = vld [vmem:[%s14646_s28 + $0x58c] sm:$0xf]  ;;  %v4477_v20 = vadd.f32 %v4476_v16, %v4475_v55 }
 0x256   : > { %4389 = vmatpush.bf16.msrb.mxu0 %v10385_v61  ;;  %4402 = vmatpush.bf16.msrb.mxu1 %v10513_v43  ;;  %v10465_v17 = vor.u32 %v13006_v8, %v10462_v6  ;;  %v10574_v61 = vld [vmem:[%s14646_s28 + $0x678] sm:$0xf0]  ;;  %v12958_v55 = vld [vmem:[%s14646_s28 + $0x40c] sm:$0xf] }
 0x257   : > { %4415 = vmatpush.bf16.msrb.mxu2 %v10641_v46  ;;  %4384 = vmatmul.bf16.vlgmr.msra.gmra.mxu3 %v15329_v12  ;;  %v10590_v12 = vld [vmem:[%s14646_s28 + $0x698] sm:$0xf0]  ;;  %v4502_v46 = vmul.f32 %v4498_v58, %v4477_v20  ;;  %v10577_v28 = vor.u32 %v13034_v24, %v10574_v61  ;;  %v12990_v6 = vld [vmem:[%s14646_s28 + $0x50c] sm:$0xf]  ;;  %v4139_v20 = vadd.f32 %v15803_v57, %v15289_v18 }
 0x258   : > { %4428 = vmatpush.bf16.msrb.mxu3 %v10769_v30  ;;  %4371 = vmatmul.bf16.vlgmr.msra.gmra.mxu2 %v15323_v7  ;;  %v12974_v7 = vld [vmem:[%s14646_s28 + $0x48c] sm:$0xf]  ;;  %v10593_v0 = vor.u32 %v13038_v9, %v10590_v12  ;;  %v10702_v43 = vld [vmem:[%s14646_s28 + $0x778] sm:$0xf0] }
 0x259   : > { %v10337_v59 = vor.u32 %v12974_v7, %v10334_v63  ;;  %v10302_v30 = vld [vmem:[%s14646_s28 + $0x458] sm:$0xf0]  ;;  %4508 = vst [vmem:[%s15825_s1] sm:$0xff] %v4502_v46  ;;  %v10705_v33 = vor.u32 %v13066_v25, %v10702_v43  ;;  %v10289_v7 = vor.u32 %v12962_v47, %v10286_v48  ;;  %v10417_v63 = vor.u32 %v12994_v49, %v10414_v51  ;;  %v13054_v58 = vld [vmem:[%s14646_s28 + $0x70c] sm:$0xf] }
 0x25a   : > { %4390 = vmatpush.bf16.msrb.mxu0 %v10369_v41  ;;  %4403 = vmatpush.bf16.msrb.mxu1 %v10497_v34  ;;  %v4177_v41 = vpop.f32.mrf.mxu3  ;;  %v13062_v34 = vld [vmem:[%s14646_s28 + $0x74c] sm:$0xf]  ;;  %v4140_v42 = vpop.f32.mrf.mxu0  ;;  %v10305_v44 = vor.u32 %v12966_v29, %v10302_v30  ;;  %v10398_v12 = vld [vmem:[%s14646_s28 + $0x518] sm:$0xf0] }
 0x25b   : > { %4416 = vmatpush.bf16.msrb.mxu2 %v10625_v31  ;;  %v4164_v35 = vpop.f32.mrf.mxu2  ;;  %v10686_v31 = vld [vmem:[%s14646_s28 + $0x758] sm:$0xf0]  ;;  %v4153_v45 = vpop.f32.mrf.mxu1  ;;  %v10401_v5 = vor.u32 %v12990_v6, %v10398_v12  ;;  %v4465_v29 = vld [vmem:[%s15772_s11 + $0x8] sm:$0xff]  ;;  %v4448_v6 = vperm.slane %v15735_v1, 2 }
 0x25c   : > { %4429 = vmatpush.bf16.msrb.mxu3 %v10753_v38  ;;  %v10561_v38 = vor.u32 %v13030_v50, %v10558_v39  ;;  %v10689_v40 = vor.u32 %v13062_v34, %v10686_v31  ;;  %v4499_v31 = vld [vmem:[%s15808_s6 + $0x8] sm:$0xff] }
 0x25e   : > { %4391 = vmatpush.bf16.msrb.mxu0 %v10353_v3  ;;  %4404 = vmatpush.bf16.msrb.mxu1 %v10481_v53  ;;  %v10542_v3 = vld [vmem:[%s14646_s28 + $0x638] sm:$0xf0]  ;;  %v13058_v53 = vld [vmem:[%s14646_s28 + $0x72c] sm:$0xf] }
 0x25f   : > { %4417 = vmatpush.bf16.msrb.mxu2 %v10609_v54  ;;  %v10670_v54 = vld [vmem:[%s14646_s28 + $0x738] sm:$0xf0]  ;;  %v10545_v8 = vor.u32 %v13026_v52, %v10542_v3 }
 0x260   : > { %4430 = vmatpush.bf16.msrb.mxu3 %v10737_v56  ;;  %v10270_v56 = vld [vmem:[%s14646_s28 + $0x418] sm:$0xf0]  ;;  %v10673_v9 = vor.u32 %v13058_v53, %v10670_v54 }
 0x262   : > { %4392 = vmatpush.bf16.msrb.mxu0 %v10337_v59  ;;  %4405 = vmatpush.bf16.msrb.mxu1 %v10465_v17  ;;  %v10654_v59 = vld [vmem:[%s14646_s28 + $0x718] sm:$0xf0]  ;;  %v4179_v17 = vpop.f32.mrf.mxu3 }
 0x263   : > { %4418 = vmatpush.bf16.msrb.mxu2 %v10593_v0  ;;  %v4166_v16 = vpop.f32.mrf.mxu2  ;;  %v10273_v0 = vor.u32 %v12958_v55, %v10270_v56  ;;  %v10657_v14 = vor.u32 %v13054_v58, %v10654_v59  ;;  %v4466_v58 = vld [vmem:[%s15772_s11 + $0x10] sm:$0xff] }
 0x264   : > { %4431 = vmatpush.bf16.msrb.mxu3 %v10721_v21  ;;  %v4152_v21 = vadd.f32 %v15811_v60, %v4139_v20  ;;  %v4447_v60 = vperm.slane %v15735_v1, 1 }
 0x266   : > { %4393 = vmatpush.bf16.msrb.mxu0 %v10321_v26  ;;  %4406 = vmatpush.bf16.msrb.mxu1 %v10449_v27  ;;  %v4165_v23 = vadd.f32 %v4164_v35, %v4152_v21 }
 0x267   : > { %4419 = vmatpush.bf16.msrb.mxu2 %v10577_v28 }
 0x268   : > { %4432 = vmatpush.bf16.msrb.mxu3 %v10705_v33  ;;  %v4178_v24 = vadd.f32 %v4177_v41, %v4165_v23 }
 0x26a   : > { %4394 = vmatpush.bf16.msrb.mxu0 %v10305_v44  ;;  %4407 = vmatpush.bf16.msrb.mxu1 %v10433_v37 }
 0x26b   : > { %4420 = vmatpush.bf16.msrb.mxu2 %v10561_v38 }
 0x26c   : > { %4433 = vmatpush.bf16.msrb.mxu3 %v10689_v40 }
 0x26e   : > { %4395 = vmatpush.bf16.msrb.mxu0 %v10289_v7  ;;  %4408 = vmatpush.bf16.msrb.mxu1 %v10417_v63 }
 0x26f   : > { %4421 = vmatpush.bf16.msrb.mxu2 %v10545_v8 }
 0x270   : > { %4434 = vmatpush.bf16.msrb.mxu3 %v10673_v9 }
 0x272   : > { %4396 = vmatpush.bf16.msrb.mxu0 %v10273_v0  ;;  %4409 = vmatpush.bf16.msrb.mxu1 %v10401_v5  ;;  %v4190_v61 = vpop.f32.mrf.mxu0  ;;  %v4203_v25 = vpop.f32.mrf.mxu1 }
 0x273   : > { %4422 = vmatpush.bf16.msrb.mxu2 %v10529_v10  ;;  %v4191_v18 = vadd.f32 %v4190_v61, %v4178_v24  ;;  %v4500_v24 = vld [vmem:[%s15808_s6 + $0x10] sm:$0xff] }
 0x274   : > { %4435 = vmatpush.bf16.msrb.mxu3 %v10657_v14 }
 0x275   : > { %4397 = vmatmul.bf16.vlgmr.msrb.gmra.mxu0 %v15396_v62  ;;  %4410 = vmatmul.bf16.vlgmr.msrb.gmra.mxu1 %v15403_v4  ;;  %v4204_v57 = vadd.f32 %v4203_v25, %v4191_v18 }
 0x276   : > { %4423 = vmatmul.bf16.vlgmr.msrb.gmra.mxu2 %v15401_v2 }
 0x277   : > { %4436 = vmatmul.bf16.vlgmr.msrb.gmra.mxu3 %v15407_v11 }
 0x27a   : > { %v4229_v26 = vpop.f32.mrf.mxu3  ;;  %v4192_v27 = vpop.f32.mrf.mxu0 }
 0x27b   : > { %v4216_v43 = vpop.f32.mrf.mxu2  ;;  %v4205_v62 = vpop.f32.mrf.mxu1 }
 0x27c   : > { %v4217_v46 = vadd.f32 %v4216_v43, %v4204_v57 }
 0x27e   : > { %v4230_v4 = vadd.f32 %v4229_v26, %v4217_v46 }
 0x280   : > { %v4455_v28 = vadd.f32 %v4447_v60, %v4230_v4 }
 0x282   : > { %14019 = vtanh.f32 %v4455_v28  ;;  %v4231_v11 = vpop.f32.mrf.mxu3 }
 0x283   : > { %v4218_v2 = vpop.f32.mrf.mxu2 }
 0x288   : > { %v14020_v30 = vpop.eup %14019 }
 0x289   : > { %v4469_v32 = vmul.f32 %v14020_v30, %v4465_v29 }
 0x28b   : > { %v4478_v33 = vrot.slane %v4469_v32, 4 }
 0x28d   : > { %v4479_v35 = vadd.f32 %v4478_v33, %v4469_v32 }
 0x28f   : > { %v4480_v36 = vrot.slane %v4479_v35, 2 }
 0x291   : > { %v4481_v50 = vadd.f32 %v4480_v36, %v4479_v35  ;;  %v4449_v36 = vperm.slane %v15735_v1, 3 }
 0x292   : > { %v4242_v39 = vpop.f32.mrf.mxu0  ;;  %v4255_v34 = vpop.f32.mrf.mxu1 }
 0x293   : > { %v4482_v41 = vrot.slane %v4481_v50, 1  ;;  %v4243_v40 = vadd.f32 %v4242_v39, %v15446_v15 }
 0x295   : > { %v4483_v42 = vadd.f32 %v4482_v41, %v4481_v50  ;;  %v4256_v51 = vadd.f32 %v4255_v34, %v4243_v40  ;;  %v4501_v40 = vld [vmem:[%s15808_s6 + $0x18] sm:$0xff] }
 0x297   : > { %v4503_v44 = vmul.f32 %v4499_v31, %v4483_v42  ;;  %v4467_v42 = vld [vmem:[%s15772_s11 + $0x18] sm:$0xff] }
 0x299   : > { %4509 = vst [vmem:[%s15825_s1 + $0x8] sm:$0xff] %v4503_v44 }
 0x29a   : > { %v4281_v37 = vpop.f32.mrf.mxu3  ;;  %v4244_v38 = vpop.f32.mrf.mxu0 }
 0x29b   : > { %v4268_v45 = vpop.f32.mrf.mxu2  ;;  %v4257_v47 = vpop.f32.mrf.mxu1 }
 0x29c   : > { %v4269_v52 = vadd.f32 %v4268_v45, %v4256_v51 }
 0x29e   : > { %v4282_v3 = vadd.f32 %v4281_v37, %v4269_v52 }
 0x2a2   : > { %v4283_v49 = vpop.f32.mrf.mxu3 }
 0x2a3   : > { %v4270_v48 = vpop.f32.mrf.mxu2 }
 0x2b2   : > { %v4294_v53 = vpop.f32.mrf.mxu0  ;;  %v4307_v54 = vpop.f32.mrf.mxu1 }
 0x2b3   : > { %v4295_v7 = vadd.f32 %v4294_v53, %v4282_v3 }
 0x2b5   : > { %v4308_v63 = vadd.f32 %v4307_v54, %v4295_v7 }
 0x2ba   : > { %v4333_v56 = vpop.f32.mrf.mxu3  ;;  %v4296_v9 = vpop.f32.mrf.mxu0 }
 0x2bb   : > { %v4320_v8 = vpop.f32.mrf.mxu2  ;;  %v4309_v12 = vpop.f32.mrf.mxu1 }
 0x2bc   : > { %v4321_v55 = vadd.f32 %v4320_v8, %v4308_v63 }
 0x2be   : > { %v4334_v13 = vadd.f32 %v4333_v56, %v4321_v55 }
 0x2c0   : > { %v4456_v19 = vadd.f32 %v4448_v6, %v4334_v13 }
 0x2c2   : > { %14021 = vtanh.f32 %v4456_v19  ;;  %v4335_v16 = vpop.f32.mrf.mxu3 }
 0x2c3   : > { %v4322_v15 = vpop.f32.mrf.mxu2 }
 0x2c8   : > { %v14022_v59 = vpop.eup %14021 }
 0x2c9   : > { %v4470_v17 = vmul.f32 %v14022_v59, %v4466_v58 }
 0x2cb   : > { %v4484_v0 = vrot.slane %v4470_v17, 4 }
 0x2cd   : > { %v4485_v5 = vadd.f32 %v4484_v0, %v4470_v17 }
 0x2cf   : > { %v4486_v10 = vrot.slane %v4485_v5, 2 }
 0x2d1   : > { %v4487_v14 = vadd.f32 %v4486_v10, %v4485_v5 }
 0x2d2   : > { %v4346_v20 = vpop.f32.mrf.mxu0  ;;  %v4359_v23 = vpop.f32.mrf.mxu1 }
 0x2d3   : > { %v4488_v21 = vrot.slane %v4487_v14, 1  ;;  %v4347_v27 = vadd.f32 %v4346_v20, %v15587_v22 }
 0x2d5   : > { %v4489_v61 = vadd.f32 %v4488_v21, %v4487_v14  ;;  %v4360_v62 = vadd.f32 %v4359_v23, %v4347_v27 }
 0x2d7   : > { %v4504_v25 = vmul.f32 %v4500_v24, %v4489_v61 }
 0x2d9   : > { %4510 = vst [vmem:[%s15825_s1 + $0x10] sm:$0xff] %v4504_v25 }
 0x2da   : > { %v4385_v57 = vpop.f32.mrf.mxu3  ;;  %v4348_v43 = vpop.f32.mrf.mxu0 }
 0x2db   : > { %v4372_v18 = vpop.f32.mrf.mxu2  ;;  %v4361_v46 = vpop.f32.mrf.mxu1 }
 0x2dc   : > { %v4373_v4 = vadd.f32 %v4372_v18, %v4360_v62 }
 0x2de   : > { %v4386_v28 = vadd.f32 %v4385_v57, %v4373_v4 }
 0x2e2   : > { %v4387_v60 = vpop.f32.mrf.mxu3 }
 0x2e3   : > { %v4374_v26 = vpop.f32.mrf.mxu2 }
 0x2f2   : > { %v4398_v2 = vpop.f32.mrf.mxu0  ;;  %v4411_v11 = vpop.f32.mrf.mxu1 }
 0x2f3   : > { %v4399_v29 = vadd.f32 %v4398_v2, %v4386_v28 }
 0x2f5   : > { %v4412_v30 = vadd.f32 %v4411_v11, %v4399_v29 }
 0x2f9   : > { %v4424_v32 = vpop.f32.mrf.mxu2 }
 0x2fa   : > { %v4425_v33 = vadd.f32 %v4424_v32, %v4412_v30  ;;  %v4437_v35 = vpop.f32.mrf.mxu3  ;;  %v4400_v50 = vpop.f32.mrf.mxu0 }
 0x2fb   : > { %v4413_v39 = vpop.f32.mrf.mxu1 }
 0x2fc   : > { %v4438_v41 = vadd.f32 %v4437_v35, %v4425_v33 }
 0x2fe   : > { %v4457_v34 = vadd.f32 %v4449_v36, %v4438_v41 }
 0x300   : > { %14023 = vtanh.f32 %v4457_v34 }
 0x301   : > { %v4426_v22 = vpop.f32.mrf.mxu2 }
 0x302   : > { %v4439_v31 = vpop.f32.mrf.mxu3 }
 0x306   : > { %v14024_v44 = vpop.eup %14023 }
 0x307   : > { %v4471_v45 = vmul.f32 %v14024_v44, %v4467_v42 }
 0x309   : > { %v4490_v37 = vrot.slane %v4471_v45, 4 }
 0x30b   : > { %v4491_v38 = vadd.f32 %v4490_v37, %v4471_v45 }
 0x30d   : > { %v4492_v47 = vrot.slane %v4491_v38, 2 }
 0x30f   : > { %v4493_v48 = vadd.f32 %v4492_v47, %v4491_v38 }
 0x311   : > { %v4494_v49 = vrot.slane %v4493_v48, 1 }
 0x313   : > { %v4495_v51 = vadd.f32 %v4494_v49, %v4493_v48 }
 0x315   : > { %v4505_v1 = vmul.f32 %v4501_v40, %v4495_v51 }
 0x317   : > { %4511 = vst [vmem:[%s15825_s1 + $0x18] sm:$0xff] %v4505_v1 }
 0x318 PF: > { %s17145_s17 = sld [smem:[#allocation25_spill]] }
 0x31e   : > { %p10773_p1 = scmp.ne.s32.totalorder %s17145_s17, 1 }
 0x31f   : > { %s17146_s3 = sld [smem:[#allocation24_spill]] (!%p10773_p1)  ;;  %s16992_s7 = sshra.s32 (!%p10773_p1), %s8720_s2, 7 }
 0x320   : > { %4515 = sbr.rel (%p10773_p1) target bundleno = 1615 (0x64f), region = 96  ;;  %s8454_s26 = scalar_lea.vmem (!%p10773_p1), [#allocation14], %s16992_s7 }
 0x321   : > { %s12822_s29 = sshll.u32 (!%p10773_p1), %s16992_s7, 3  ;;  %s8517_s8 = scalar_lea.vmem (!%p10773_p1), [#allocation15], %s16992_s7 }
 0x322   : > { %s17030_s28 = scalar_lea.vmem (!%p10773_p1), [#allocation8], %s12822_s29  ;;  %s17040_s0 = scalar_lea.vmem (!%p10773_p1), [#allocation2], %s12822_s29 }
 0x325   : > { %v10888_v52 = vld [vmem:[%s14657_s22 + $0x8e0] sm:$0xf]  ;;  %v13627_v3 = vld [vmem:[%s14657_s22 + $0x8ec] sm:$0xf0]  ;;  %p12824_p10 = scmp.ne.s32.totalorder %s17146_s3, 0 }
 0x326   : > { %v11016_v53 = vld [vmem:[%s14657_s22 + $0x9e0] sm:$0xf]  ;;  %v10889_v54 = vor.u32 %v13627_v3, %v10888_v52  ;;  %v13659_v7 = vld [vmem:[%s14657_s22 + $0x9ec] sm:$0xf0]  ;;  %s8541_s30 = sld [smem:[#allocation3]] (!%p12824_p10) }
 0x327   : > { %v11144_v63 = vld [vmem:[%s14657_s22 + $0xae0] sm:$0xf]  ;;  %v13691_v8 = vld [vmem:[%s14657_s22 + $0xaec] sm:$0xf0]  ;;  %v11017_v55 = vor.u32 %v13659_v7, %v11016_v53  ;;  %s17147_s2 = sld [smem:[#allocation34_spill]] (!%p12824_p10) }
 0x328   : > { %v11145_v56 = vor.u32 %v13691_v8, %v11144_v63  ;;  %v11272_v6 = vld [vmem:[%s14657_s22 + $0xbe0] sm:$0xf]  ;;  %v13723_v9 = vld [vmem:[%s14657_s22 + $0xbec] sm:$0xf0]  ;;  %6340 = vmatpush.bf16.msra.mxu0 %v10889_v54 }
 0x329   : > { %v10872_v12 = vld [vmem:[%s14657_s22 + $0x8c0] sm:$0xf]  ;;  %v11273_v13 = vor.u32 %v13723_v9, %v11272_v6  ;;  %v13623_v19 = vld [vmem:[%s14657_s22 + $0x8cc] sm:$0xf0]  ;;  %6353 = vmatpush.bf16.msra.mxu1 %v11017_v55 }
 0x32a   : > { %v11000_v15 = vld [vmem:[%s14657_s22 + $0x9c0] sm:$0xf]  ;;  %v13655_v16 = vld [vmem:[%s14657_s22 + $0x9cc] sm:$0xf0]  ;;  %6366 = vmatpush.bf16.msra.mxu2 %v11145_v56  ;;  %v10873_v58 = vor.u32 %v13623_v19, %v10872_v12 }
 0x32b   : > { %v11001_v59 = vor.u32 %v13655_v16, %v11000_v15  ;;  %v11128_v17 = vld [vmem:[%s14657_s22 + $0xac0] sm:$0xf]  ;;  %v13687_v0 = vld [vmem:[%s14657_s22 + $0xacc] sm:$0xf0]  ;;  %6379 = vmatpush.bf16.msra.mxu3 %v11273_v13 }
 0x32c   : > { %v11256_v5 = vld [vmem:[%s14657_s22 + $0xbc0] sm:$0xf]  ;;  %v11129_v10 = vor.u32 %v13687_v0, %v11128_v17  ;;  %v13719_v14 = vld [vmem:[%s14657_s22 + $0xbcc] sm:$0xf0]  ;;  %6341 = vmatpush.bf16.msra.mxu0 %v10873_v58 }
 0x32d   : > { %v10856_v20 = vld [vmem:[%s14657_s22 + $0x8a0] sm:$0xf]  ;;  %v13619_v21 = vld [vmem:[%s14657_s22 + $0x8ac] sm:$0xf0]  ;;  %v11257_v23 = vor.u32 %v13719_v14, %v11256_v5  ;;  %6354 = vmatpush.bf16.msra.mxu1 %v11001_v59 }
 0x32e   : > { %v10984_v24 = vld [vmem:[%s14657_s22 + $0x9a0] sm:$0xf]  ;;  %v13651_v61 = vld [vmem:[%s14657_s22 + $0x9ac] sm:$0xf0]  ;;  %v10857_v18 = vor.u32 %v13619_v21, %v10856_v20  ;;  %6367 = vmatpush.bf16.msra.mxu2 %v11129_v10 }
 0x32f   : > { %v11112_v25 = vld [vmem:[%s14657_s22 + $0xaa0] sm:$0xf]  ;;  %v13683_v57 = vld [vmem:[%s14657_s22 + $0xaac] sm:$0xf0]  ;;  %v10985_v26 = vor.u32 %v13651_v61, %v10984_v24  ;;  %6380 = vmatpush.bf16.msra.mxu3 %v11257_v23 }
 0x330   : > { %v11240_v43 = vld [vmem:[%s14657_s22 + $0xba0] sm:$0xf]  ;;  %v13715_v46 = vld [vmem:[%s14657_s22 + $0xbac] sm:$0xf0]  ;;  %v11113_v60 = vor.u32 %v13683_v57, %v11112_v25  ;;  %6342 = vmatpush.bf16.msra.mxu0 %v10857_v18 }
 0x331   : > { %v10840_v27 = vld [vmem:[%s14657_s22 + $0x880] sm:$0xf]  ;;  %v13615_v62 = vld [vmem:[%s14657_s22 + $0x88c] sm:$0xf0]  ;;  %v11241_v28 = vor.u32 %v13715_v46, %v11240_v43  ;;  %6355 = vmatpush.bf16.msra.mxu1 %v10985_v26 }
 0x332   : > { %v10968_v4 = vld [vmem:[%s14657_s22 + $0x980] sm:$0xf]  ;;  %v13647_v2 = vld [vmem:[%s14657_s22 + $0x98c] sm:$0xf0]  ;;  %v10841_v33 = vor.u32 %v13615_v62, %v10840_v27  ;;  %6368 = vmatpush.bf16.msra.mxu2 %v11113_v60 }
 0x333   : > { %v11096_v11 = vld [vmem:[%s14657_s22 + $0xa80] sm:$0xf]  ;;  %v13679_v29 = vld [vmem:[%s14657_s22 + $0xa8c] sm:$0xf0]  ;;  %v10969_v35 = vor.u32 %v13647_v2, %v10968_v4  ;;  %6381 = vmatpush.bf16.msra.mxu3 %v11241_v28 }
 0x334   : > { %v11224_v30 = vld [vmem:[%s14657_s22 + $0xb80] sm:$0xf]  ;;  %v13711_v32 = vld [vmem:[%s14657_s22 + $0xb8c] sm:$0xf0]  ;;  %v11097_v36 = vor.u32 %v13679_v29, %v11096_v11  ;;  %6343 = vmatpush.bf16.msra.mxu0 %v10841_v33 }
 0x335   : > { %v10824_v50 = vld [vmem:[%s14657_s22 + $0x860] sm:$0xf]  ;;  %v13611_v39 = vld [vmem:[%s14657_s22 + $0x86c] sm:$0xf0]  ;;  %v11225_v34 = vor.u32 %v13711_v32, %v11224_v30  ;;  %6356 = vmatpush.bf16.msra.mxu1 %v10969_v35 }
 0x336   : > { %v10952_v41 = vld [vmem:[%s14657_s22 + $0x960] sm:$0xf]  ;;  %v13643_v22 = vld [vmem:[%s14657_s22 + $0x96c] sm:$0xf0]  ;;  %v10825_v37 = vor.u32 %v13611_v39, %v10824_v50  ;;  %6369 = vmatpush.bf16.msra.mxu2 %v11097_v36 }
 0x337   : > { %v11080_v31 = vld [vmem:[%s14657_s22 + $0xa60] sm:$0xf]  ;;  %v13675_v42 = vld [vmem:[%s14657_s22 + $0xa6c] sm:$0xf0]  ;;  %v10953_v38 = vor.u32 %v13643_v22, %v10952_v41  ;;  %6382 = vmatpush.bf16.msra.mxu3 %v11225_v34 }
 0x338   : > { %v11208_v44 = vld [vmem:[%s14657_s22 + $0xb60] sm:$0xf]  ;;  %v13707_v45 = vld [vmem:[%s14657_s22 + $0xb6c] sm:$0xf0]  ;;  %v11081_v47 = vor.u32 %v13675_v42, %v11080_v31  ;;  %6344 = vmatpush.bf16.msra.mxu0 %v10825_v37 }
 0x339   : > { %v10808_v48 = vld [vmem:[%s14657_s22 + $0x840] sm:$0xf]  ;;  %v13607_v49 = vld [vmem:[%s14657_s22 + $0x84c] sm:$0xf0]  ;;  %v11209_v51 = vor.u32 %v13707_v45, %v11208_v44  ;;  %6357 = vmatpush.bf16.msra.mxu1 %v10953_v38 }
 0x33a   : > { %v10936_v40 = vld [vmem:[%s14657_s22 + $0x940] sm:$0xf]  ;;  %v13639_v1 = vld [vmem:[%s14657_s22 + $0x94c] sm:$0xf0]  ;;  %v10809_v7 = vor.u32 %v13607_v49, %v10808_v48  ;;  %6370 = vmatpush.bf16.msra.mxu2 %v11081_v47  ;;  %v5046_v47 = vld [vmem:[#allocation2 + $0x10] sm:$0xff] }
 0x33b   : > { %v11064_v52 = vld [vmem:[%s14657_s22 + $0xa40] sm:$0xf]  ;;  %v13671_v3 = vld [vmem:[%s14657_s22 + $0xa4c] sm:$0xf0]  ;;  %v10937_v63 = vor.u32 %v13639_v1, %v10936_v40  ;;  %6383 = vmatpush.bf16.msra.mxu3 %v11209_v51  ;;  %v15957_v1 = vpack.c.bf16 %v5046_v47, %v5046_v47 }
 0x33c   : > { %v11192_v53 = vld [vmem:[%s14657_s22 + $0xb40] sm:$0xf]  ;;  %v13703_v54 = vld [vmem:[%s14657_s22 + $0xb4c] sm:$0xf0]  ;;  %v11065_v8 = vor.u32 %v13671_v3, %v11064_v52  ;;  %6345 = vmatpush.bf16.msra.mxu0 %v10809_v7 }
 0x33d   : > { %v10792_v55 = vld [vmem:[%s14657_s22 + $0x820] sm:$0xf]  ;;  %v13603_v56 = vld [vmem:[%s14657_s22 + $0x82c] sm:$0xf0]  ;;  %v11193_v9 = vor.u32 %v13703_v54, %v11192_v53  ;;  %6358 = vmatpush.bf16.msra.mxu1 %v10937_v63  ;;  %v5044_v63 = vld [vmem:[#allocation2] sm:$0xff] }
 0x33e   : > { %v10920_v6 = vld [vmem:[%s14657_s22 + $0x920] sm:$0xf]  ;;  %v13635_v12 = vld [vmem:[%s14657_s22 + $0x92c] sm:$0xf0]  ;;  %v10793_v58 = vor.u32 %v13603_v56, %v10792_v55  ;;  %6371 = vmatpush.bf16.msra.mxu2 %v11065_v8 }
 0x33f   : > { %v11048_v13 = vld [vmem:[%s14657_s22 + $0xa20] sm:$0xf]  ;;  %v13667_v19 = vld [vmem:[%s14657_s22 + $0xa2c] sm:$0xf0]  ;;  %v10921_v0 = vor.u32 %v13635_v12, %v10920_v6  ;;  %6384 = vmatpush.bf16.msra.mxu3 %v11193_v9  ;;  %v15965_v6 = vpack.c.bf16 %v5044_v63, %v5044_v63  ;;  %v13625_v63 = vld [vmem:[%s14657_s22 + $0x8e4] sm:$0xf] }
 0x340   : > { %v11176_v15 = vld [vmem:[%s14657_s22 + $0xb20] sm:$0xf]  ;;  %v13699_v16 = vld [vmem:[%s14657_s22 + $0xb2c] sm:$0xf0]  ;;  %v11049_v5 = vor.u32 %v13667_v19, %v11048_v13  ;;  %6346 = vmatpush.bf16.msra.mxu0 %v10793_v58 }
 0x341   : > { %v10776_v59 = vld [vmem:[%s14657_s22 + $0x800] sm:$0xf]  ;;  %v13599_v17 = vld [vmem:[%s14657_s22 + $0x80c] sm:$0xf0]  ;;  %v11177_v21 = vor.u32 %v13699_v16, %v11176_v15  ;;  %6359 = vmatpush.bf16.msra.mxu1 %v10921_v0 }
 0x342   : > { %v10904_v10 = vld [vmem:[%s14657_s22 + $0x900] sm:$0xf]  ;;  %v13631_v14 = vld [vmem:[%s14657_s22 + $0x90c] sm:$0xf0]  ;;  %v10777_v43 = vor.u32 %v13599_v17, %v10776_v59  ;;  %6372 = vmatpush.bf16.msra.mxu2 %v11049_v5 }
 0x343   : > { %v11032_v20 = vld [vmem:[%s14657_s22 + $0xa00] sm:$0xf]  ;;  %v13663_v23 = vld [vmem:[%s14657_s22 + $0xa0c] sm:$0xf0]  ;;  %v10905_v27 = vor.u32 %v13631_v14, %v10904_v10  ;;  %6385 = vmatpush.bf16.msra.mxu3 %v11177_v21 }
 0x344   : > { %v11160_v24 = vld [vmem:[%s14657_s22 + $0xb00] sm:$0xf]  ;;  %v13695_v61 = vld [vmem:[%s14657_s22 + $0xb0c] sm:$0xf0]  ;;  %v11033_v62 = vor.u32 %v13663_v23, %v11032_v20  ;;  %6347 = vmatpush.bf16.msra.mxu0 %v10777_v43 }
 0x345   : > { %v11400_v25 = vld [vmem:[%s14657_s22 + $0xce0] sm:$0xf]  ;;  %v13755_v18 = vld [vmem:[%s14657_s22 + $0xcec] sm:$0xf0]  ;;  %v11161_v2 = vor.u32 %v13695_v61, %v11160_v24  ;;  %6360 = vmatpush.bf16.msra.mxu1 %v10905_v27 }
 0x346   : > { %v11528_v57 = vld [vmem:[%s14657_s22 + $0xde0] sm:$0xf]  ;;  %v13787_v46 = vld [vmem:[%s14657_s22 + $0xdec] sm:$0xf0]  ;;  %v11401_v11 = vor.u32 %v13755_v18, %v11400_v25  ;;  %6373 = vmatpush.bf16.msra.mxu2 %v11033_v62 }
 0x347   : > { %v11656_v26 = vld [vmem:[%s14657_s22 + $0xee0] sm:$0xf]  ;;  %v13819_v60 = vld [vmem:[%s14657_s22 + $0xeec] sm:$0xf0]  ;;  %v11529_v29 = vor.u32 %v13787_v46, %v11528_v57  ;;  %6386 = vmatpush.bf16.msra.mxu3 %v11161_v2  ;;  %6348 = vmatmul.bf16.vlgmr.msra.gmra.mxu0 %v15965_v6 }
 0x348   : > { %v11784_v4 = vld [vmem:[%s14657_s22 + $0xfe0] sm:$0xf]  ;;  %v13851_v28 = vld [vmem:[%s14657_s22 + $0xfec] sm:$0xf0]  ;;  %v11657_v30 = vor.u32 %v13819_v60, %v11656_v26  ;;  %6392 = vmatpush.bf16.msrb.mxu0 %v11401_v11 }
 0x349   : > { %v11384_v32 = vld [vmem:[%s14657_s22 + $0xcc0] sm:$0xf]  ;;  %v13751_v33 = vld [vmem:[%s14657_s22 + $0xccc] sm:$0xf0]  ;;  %v11785_v36 = vor.u32 %v13851_v28, %v11784_v4  ;;  %6405 = vmatpush.bf16.msrb.mxu1 %v11529_v29  ;;  %6374 = vmatmul.bf16.vlgmr.msra.gmra.mxu2 %v15957_v1 }
 0x34a   : > { %v11512_v35 = vld [vmem:[%s14657_s22 + $0xdc0] sm:$0xf]  ;;  %v13783_v50 = vld [vmem:[%s14657_s22 + $0xdcc] sm:$0xf0]  ;;  %v11385_v31 = vor.u32 %v13751_v33, %v11384_v32  ;;  %6418 = vmatpush.bf16.msrb.mxu2 %v11657_v30 }
 0x34b   : > { %v11640_v39 = vld [vmem:[%s14657_s22 + $0xec0] sm:$0xf]  ;;  %v13815_v41 = vld [vmem:[%s14657_s22 + $0xecc] sm:$0xf0]  ;;  %v11513_v44 = vor.u32 %v13783_v50, %v11512_v35  ;;  %6431 = vmatpush.bf16.msrb.mxu3 %v11785_v36 }
 0x34c   : > { %v11768_v34 = vld [vmem:[%s14657_s22 + $0xfc0] sm:$0xf]  ;;  %v13847_v22 = vld [vmem:[%s14657_s22 + $0xfcc] sm:$0xf0]  ;;  %v11641_v45 = vor.u32 %v13815_v41, %v11640_v39  ;;  %6393 = vmatpush.bf16.msrb.mxu0 %v11385_v31 }
 0x34d   : > { %v11368_v42 = vld [vmem:[%s14657_s22 + $0xca0] sm:$0xf]  ;;  %v13747_v37 = vld [vmem:[%s14657_s22 + $0xcac] sm:$0xf0]  ;;  %v11769_v48 = vor.u32 %v13847_v22, %v11768_v34  ;;  %6406 = vmatpush.bf16.msrb.mxu1 %v11513_v44 }
 0x34e   : > { %v11496_v38 = vld [vmem:[%s14657_s22 + $0xda0] sm:$0xf]  ;;  %v13779_v49 = vld [vmem:[%s14657_s22 + $0xdac] sm:$0xf0]  ;;  %v11369_v53 = vor.u32 %v13747_v37, %v11368_v42  ;;  %6419 = vmatpush.bf16.msrb.mxu2 %v11641_v45 }
 0x34f   : > { %v11624_v40 = vld [vmem:[%s14657_s22 + $0xea0] sm:$0xf]  ;;  %v13811_v51 = vld [vmem:[%s14657_s22 + $0xeac] sm:$0xf0]  ;;  %v11497_v8 = vor.u32 %v13779_v49, %v11496_v38  ;;  %6432 = vmatpush.bf16.msrb.mxu3 %v11769_v48 }
 0x350   : > { %v11752_v52 = vld [vmem:[%s14657_s22 + $0xfa0] sm:$0xf]  ;;  %v13843_v3 = vld [vmem:[%s14657_s22 + $0xfac] sm:$0xf0]  ;;  %v11625_v55 = vor.u32 %v13811_v51, %v11624_v40  ;;  %6394 = vmatpush.bf16.msrb.mxu0 %v11369_v53 }
 0x351   : > { %v11352_v54 = vld [vmem:[%s14657_s22 + $0xc80] sm:$0xf]  ;;  %v13743_v7 = vld [vmem:[%s14657_s22 + $0xc8c] sm:$0xf0]  ;;  %v11753_v13 = vor.u32 %v13843_v3, %v11752_v52  ;;  %6407 = vmatpush.bf16.msrb.mxu1 %v11497_v8  ;;  %v10890_v8 = vld [vmem:[%s14657_s22 + $0x8f0] sm:$0xf0] }
 0x352   : > { %v11480_v56 = vld [vmem:[%s14657_s22 + $0xd80] sm:$0xf]  ;;  %v5047_v9 = vld [vmem:[#allocation2 + $0x18] sm:$0xff]  ;;  %v11353_v5 = vor.u32 %v13743_v7, %v11352_v54  ;;  %6420 = vmatpush.bf16.msrb.mxu2 %v11625_v55  ;;  %v13657_v55 = vld [vmem:[%s14657_s22 + $0x9e4] sm:$0xf] }
 0x353   : > { %v5045_v12 = vld [vmem:[#allocation2 + $0x8] sm:$0xff]  ;;  %v13775_v19 = vld [vmem:[%s14657_s22 + $0xd8c] sm:$0xf0]  ;;  %v15970_v58 = vpack.c.bf16 %v5047_v9, %v5047_v9  ;;  %6433 = vmatpush.bf16.msrb.mxu3 %v11753_v13  ;;  %v11018_v9 = vld [vmem:[%s14657_s22 + $0x9f0] sm:$0xf0] }
 0x354   : > { %v11608_v15 = vld [vmem:[%s14657_s22 + $0xe80] sm:$0xf]  ;;  %v13807_v16 = vld [vmem:[%s14657_s22 + $0xe8c] sm:$0xf0]  ;;  %v15972_v59 = vpack.c.bf16 %v5045_v12, %v5045_v12  ;;  %v11481_v10 = vor.u32 %v13775_v19, %v11480_v56  ;;  %6395 = vmatpush.bf16.msrb.mxu0 %v11353_v5  ;;  %v13689_v12 = vld [vmem:[%s14657_s22 + $0xae4] sm:$0xf] }
 0x355   : > { %v11736_v17 = vld [vmem:[%s14657_s22 + $0xf80] sm:$0xf]  ;;  %v13839_v0 = vld [vmem:[%s14657_s22 + $0xf8c] sm:$0xf0]  ;;  %6387 = vmatmul.bf16.vlgmr.msra.gmra.mxu3 %v15970_v58  ;;  %v11609_v14 = vor.u32 %v13807_v16, %v11608_v15  ;;  %v11146_v13 = vld [vmem:[%s14657_s22 + $0xaf0] sm:$0xf0] }
 0x356   : > { %v11336_v20 = vld [vmem:[%s14657_s22 + $0xc60] sm:$0xf]  ;;  %v13739_v21 = vld [vmem:[%s14657_s22 + $0xc6c] sm:$0xf0]  ;;  %v11737_v24 = vor.u32 %v13839_v0, %v11736_v17  ;;  %6361 = vmatmul.bf16.vlgmr.msra.gmra.mxu1 %v15972_v59  ;;  %v13721_v16 = vld [vmem:[%s14657_s22 + $0xbe4] sm:$0xf] }
 0x357   : > { %v11464_v23 = vld [vmem:[%s14657_s22 + $0xd60] sm:$0xf]  ;;  %v13771_v61 = vld [vmem:[%s14657_s22 + $0xd6c] sm:$0xf0]  ;;  %v11337_v46 = vor.u32 %v13739_v21, %v11336_v20  ;;  %6408 = vmatpush.bf16.msrb.mxu1 %v11481_v10  ;;  %6421 = vmatpush.bf16.msrb.mxu2 %v11609_v14  ;;  %v11274_v17 = vld [vmem:[%s14657_s22 + $0xbf0] sm:$0xf0]  ;;  %v10893_v10 = vor.u32 %v13625_v63, %v10890_v8 }
 0x358   : > { %v11592_v25 = vld [vmem:[%s14657_s22 + $0xe60] sm:$0xf]  ;;  %v13803_v18 = vld [vmem:[%s14657_s22 + $0xe6c] sm:$0xf0]  ;;  %v11465_v26 = vor.u32 %v13771_v61, %v11464_v23  ;;  %6434 = vmatpush.bf16.msrb.mxu3 %v11737_v24  ;;  %v5050_v0 = vld [vmem:[#allocation2 + $0x30] sm:$0xff]  ;;  %v11021_v23 = vor.u32 %v13657_v55, %v11018_v9  ;;  %v11149_v24 = vor.u32 %v13689_v12, %v11146_v13 }
 0x359   : > { %v11720_v57 = vld [vmem:[%s14657_s22 + $0xf60] sm:$0xf]  ;;  %v13835_v43 = vld [vmem:[%s14657_s22 + $0xf6c] sm:$0xf0]  ;;  %v11593_v60 = vor.u32 %v13803_v18, %v11592_v25  ;;  %6396 = vmatpush.bf16.msrb.mxu0 %v11337_v46  ;;  %v13621_v14 = vld [vmem:[%s14657_s22 + $0x8c4] sm:$0xf] }
 0x35a   : > { %v11320_v27 = vld [vmem:[%s14657_s22 + $0xc40] sm:$0xf]  ;;  %v13735_v62 = vld [vmem:[%s14657_s22 + $0xc4c] sm:$0xf0]  ;;  %v11721_v28 = vor.u32 %v13835_v43, %v11720_v57  ;;  %v5048_v20 = vld [vmem:[#allocation2 + $0x20] sm:$0xff]  ;;  %v11277_v57 = vor.u32 %v13721_v16, %v11274_v17 }
 0x35b   : > { %v11448_v4 = vld [vmem:[%s14657_s22 + $0xd40] sm:$0xf]  ;;  %v13767_v2 = vld [vmem:[%s14657_s22 + $0xd4c] sm:$0xf0]  ;;  %v11321_v33 = vor.u32 %v13735_v62, %v11320_v27  ;;  %6409 = vmatpush.bf16.msrb.mxu1 %v11465_v26  ;;  %6422 = vmatpush.bf16.msrb.mxu2 %v11593_v60  ;;  %v10874_v61 = vld [vmem:[%s14657_s22 + $0x8d0] sm:$0xf0]  ;;  %v16025_v60 = vpack.c.bf16 %v5050_v0, %v5050_v0 }
 0x35c   : > { %v11576_v11 = vld [vmem:[%s14657_s22 + $0xe40] sm:$0xf]  ;;  %v13799_v29 = vld [vmem:[%s14657_s22 + $0xe4c] sm:$0xf0]  ;;  %v11449_v35 = vor.u32 %v13767_v2, %v11448_v4  ;;  %6435 = vmatpush.bf16.msrb.mxu3 %v11721_v28  ;;  %v13653_v25 = vld [vmem:[%s14657_s22 + $0x9c4] sm:$0xf]  ;;  %v16029_v4 = vpack.c.bf16 %v5048_v20, %v5048_v20  ;;  %v10877_v2 = vor.u32 %v13621_v14, %v10874_v61 }
 0x35d   : > { %v11704_v30 = vld [vmem:[%s14657_s22 + $0xf40] sm:$0xf]  ;;  %v13831_v32 = vld [vmem:[%s14657_s22 + $0xf4c] sm:$0xf0]  ;;  %v11577_v36 = vor.u32 %v13799_v29, %v11576_v11  ;;  %6397 = vmatpush.bf16.msrb.mxu0 %v11321_v33  ;;  %v11002_v43 = vld [vmem:[%s14657_s22 + $0x9d0] sm:$0xf0] }
 0x35e   : > { %v11304_v50 = vld [vmem:[%s14657_s22 + $0xc20] sm:$0xf]  ;;  %v13731_v39 = vld [vmem:[%s14657_s22 + $0xc2c] sm:$0xf0]  ;;  %v11705_v34 = vor.u32 %v13831_v32, %v11704_v30  ;;  %v13685_v46 = vld [vmem:[%s14657_s22 + $0xac4] sm:$0xf]  ;;  %v11005_v29 = vor.u32 %v13653_v25, %v11002_v43 }
 0x35f   : > { %v11432_v41 = vld [vmem:[%s14657_s22 + $0xd20] sm:$0xf]  ;;  %v13763_v22 = vld [vmem:[%s14657_s22 + $0xd2c] sm:$0xf0]  ;;  %v11305_v37 = vor.u32 %v13731_v39, %v11304_v50  ;;  %6410 = vmatpush.bf16.msrb.mxu1 %v11449_v35  ;;  %6423 = vmatpush.bf16.msrb.mxu2 %v11577_v36  ;;  %v11130_v26 = vld [vmem:[%s14657_s22 + $0xad0] sm:$0xf0] }
 0x360   : > { %v11560_v31 = vld [vmem:[%s14657_s22 + $0xe20] sm:$0xf]  ;;  %v13795_v42 = vld [vmem:[%s14657_s22 + $0xe2c] sm:$0xf0]  ;;  %v11433_v48 = vor.u32 %v13763_v22, %v11432_v41  ;;  %6436 = vmatpush.bf16.msrb.mxu3 %v11705_v34  ;;  %v13717_v27 = vld [vmem:[%s14657_s22 + $0xbc4] sm:$0xf]  ;;  %v11133_v30 = vor.u32 %v13685_v46, %v11130_v26 }
 0x361   : > { %v11688_v44 = vld [vmem:[%s14657_s22 + $0xf20] sm:$0xf]  ;;  %v13827_v45 = vld [vmem:[%s14657_s22 + $0xf2c] sm:$0xf0]  ;;  %v11561_v49 = vor.u32 %v13795_v42, %v11560_v31  ;;  %6398 = vmatpush.bf16.msrb.mxu0 %v11305_v37  ;;  %v11258_v62 = vld [vmem:[%s14657_s22 + $0xbd0] sm:$0xf0] }
 0x362   : > { %v11288_v38 = vld [vmem:[%s14657_s22 + $0xc00] sm:$0xf]  ;;  %v13727_v47 = vld [vmem:[%s14657_s22 + $0xc0c] sm:$0xf0]  ;;  %v11689_v3 = vor.u32 %v13827_v45, %v11688_v44  ;;  %v13617_v32 = vld [vmem:[%s14657_s22 + $0x8a4] sm:$0xf]  ;;  %v11261_v36 = vor.u32 %v13717_v27, %v11258_v62 }
 0x363   : > { %v11416_v40 = vld [vmem:[%s14657_s22 + $0xd00] sm:$0xf]  ;;  %v13759_v51 = vld [vmem:[%s14657_s22 + $0xd0c] sm:$0xf0]  ;;  %v11289_v56 = vor.u32 %v13727_v47, %v11288_v38  ;;  %6411 = vmatpush.bf16.msrb.mxu1 %v11433_v48  ;;  %6424 = vmatpush.bf16.msrb.mxu2 %v11561_v49  ;;  %v10858_v33 = vld [vmem:[%s14657_s22 + $0x8b0] sm:$0xf0] }
 0x364   : > { %v11544_v52 = vld [vmem:[%s14657_s22 + $0xe00] sm:$0xf]  ;;  %v13791_v53 = vld [vmem:[%s14657_s22 + $0xe0c] sm:$0xf0]  ;;  %v11417_v19 = vor.u32 %v13759_v51, %v11416_v40  ;;  %6437 = vmatpush.bf16.msrb.mxu3 %v11689_v3  ;;  %v13649_v35 = vld [vmem:[%s14657_s22 + $0x9a4] sm:$0xf]  ;;  %v10861_v31 = vor.u32 %v13617_v32, %v10858_v33 }
 0x365   : > { %v11672_v54 = vld [vmem:[%s14657_s22 + $0xf00] sm:$0xf]  ;;  %v13823_v7 = vld [vmem:[%s14657_s22 + $0xf0c] sm:$0xf0]  ;;  %v11545_v15 = vor.u32 %v13791_v53, %v11544_v52  ;;  %6399 = vmatpush.bf16.msrb.mxu0 %v11289_v56  ;;  %v10986_v50 = vld [vmem:[%s14657_s22 + $0x9b0] sm:$0xf0] }
 0x366   : > { %v11673_v5 = vor.u32 %v13823_v7, %v11672_v54  ;;  %v5051_v21 = vld [vmem:[#allocation2 + $0x38] sm:$0xff]  ;;  %v5049_v18 = vld [vmem:[#allocation2 + $0x28] sm:$0xff]  ;;  %v10989_v42 = vor.u32 %v13649_v35, %v10986_v50 }
 0x367   : > { %6412 = vmatpush.bf16.msrb.mxu1 %v11417_v19  ;;  %6425 = vmatpush.bf16.msrb.mxu2 %v11545_v15  ;;  %v16031_v28 = vpack.c.bf16 %v5051_v21, %v5051_v21  ;;  %v16033_v11 = vpack.c.bf16 %v5049_v18, %v5049_v18  ;;  %v13681_v39 = vld [vmem:[%s14657_s22 + $0xaa4] sm:$0xf]  ;;  %v11114_v41 = vld [vmem:[%s14657_s22 + $0xab0] sm:$0xf0] }
 0x368   : > { %6438 = vmatpush.bf16.msrb.mxu3 %v11673_v5  ;;  %6400 = vmatmul.bf16.vlgmr.msrb.gmra.mxu0 %v16029_v4  ;;  %v13713_v34 = vld [vmem:[%s14657_s22 + $0xba4] sm:$0xf]  ;;  %v11242_v22 = vld [vmem:[%s14657_s22 + $0xbb0] sm:$0xf0]  ;;  %v11117_v44 = vor.u32 %v13681_v39, %v11114_v41 }
 0x369   : > { %6444 = vmatpush.bf16.msra.mxu0 %v10893_v10  ;;  %v13613_v45 = vld [vmem:[%s14657_s22 + $0x884] sm:$0xf]  ;;  %v10842_v37 = vld [vmem:[%s14657_s22 + $0x890] sm:$0xf0]  ;;  %v11245_v47 = vor.u32 %v13713_v34, %v11242_v22 }
 0x36a   : > { %6426 = vmatmul.bf16.vlgmr.msrb.gmra.mxu2 %v16025_v60  ;;  %6413 = vmatmul.bf16.vlgmr.msrb.gmra.mxu1 %v16033_v11  ;;  %v13645_v38 = vld [vmem:[%s14657_s22 + $0x984] sm:$0xf]  ;;  %v10970_v48 = vld [vmem:[%s14657_s22 + $0x990] sm:$0xf0]  ;;  %v10845_v3 = vor.u32 %v13613_v45, %v10842_v37 }
 0x36b   : > { %6457 = vmatpush.bf16.msra.mxu1 %v11021_v23  ;;  %6470 = vmatpush.bf16.msra.mxu2 %v11149_v24  ;;  %v13677_v49 = vld [vmem:[%s14657_s22 + $0xa84] sm:$0xf]  ;;  %v11098_v40 = vld [vmem:[%s14657_s22 + $0xa90] sm:$0xf0]  ;;  %v10973_v53 = vor.u32 %v13645_v38, %v10970_v48 }
 0x36c   : > { %6483 = vmatpush.bf16.msra.mxu3 %v11277_v57  ;;  %v13709_v51 = vld [vmem:[%s14657_s22 + $0xb84] sm:$0xf]  ;;  %v11226_v52 = vld [vmem:[%s14657_s22 + $0xb90] sm:$0xf0]  ;;  %v11101_v54 = vor.u32 %v13677_v49, %v11098_v40 }
 0x36d   : > { %6439 = vmatmul.bf16.vlgmr.msrb.gmra.mxu3 %v16031_v28  ;;  %6445 = vmatpush.bf16.msra.mxu0 %v10877_v2  ;;  %v13609_v7 = vld [vmem:[%s14657_s22 + $0x864] sm:$0xf]  ;;  %v10826_v63 = vld [vmem:[%s14657_s22 + $0x870] sm:$0xf0]  ;;  %v11229_v55 = vor.u32 %v13709_v51, %v11226_v52 }
 0x36e   : > { %v13641_v8 = vld [vmem:[%s14657_s22 + $0x964] sm:$0xf]  ;;  %v10954_v56 = vld [vmem:[%s14657_s22 + $0x970] sm:$0xf0]  ;;  %v10829_v15 = vor.u32 %v13609_v7, %v10826_v63 }
 0x36f   : > { %6458 = vmatpush.bf16.msra.mxu1 %v11005_v29  ;;  %6471 = vmatpush.bf16.msra.mxu2 %v11133_v30  ;;  %v13673_v9 = vld [vmem:[%s14657_s22 + $0xa64] sm:$0xf]  ;;  %v11082_v12 = vld [vmem:[%s14657_s22 + $0xa70] sm:$0xf0]  ;;  %v10957_v16 = vor.u32 %v13641_v8, %v10954_v56 }
 0x370   : > { %6484 = vmatpush.bf16.msra.mxu3 %v11261_v36  ;;  %v13705_v13 = vld [vmem:[%s14657_s22 + $0xb64] sm:$0xf]  ;;  %v11210_v19 = vld [vmem:[%s14657_s22 + $0xb70] sm:$0xf0]  ;;  %v11085_v17 = vor.u32 %v13673_v9, %v11082_v12 }
 0x371   : > { %6446 = vmatpush.bf16.msra.mxu0 %v10861_v31  ;;  %v13605_v0 = vld [vmem:[%s14657_s22 + $0x844] sm:$0xf]  ;;  %v10810_v5 = vld [vmem:[%s14657_s22 + $0x850] sm:$0xf0]  ;;  %v11213_v14 = vor.u32 %v13705_v13, %v11210_v19 }
 0x372   : > { %v13637_v10 = vld [vmem:[%s14657_s22 + $0x944] sm:$0xf]  ;;  %v10938_v20 = vld [vmem:[%s14657_s22 + $0x950] sm:$0xf0]  ;;  %v10813_v25 = vor.u32 %v13605_v0, %v10810_v5 }
 0x373   : > { %6459 = vmatpush.bf16.msra.mxu1 %v10989_v42  ;;  %6472 = vmatpush.bf16.msra.mxu2 %v11117_v44  ;;  %v13669_v21 = vld [vmem:[%s14657_s22 + $0xa44] sm:$0xf]  ;;  %v11066_v23 = vld [vmem:[%s14657_s22 + $0xa50] sm:$0xf0]  ;;  %v10941_v18 = vor.u32 %v13637_v10, %v10938_v20 }
 0x374   : > { %6485 = vmatpush.bf16.msra.mxu3 %v11245_v47  ;;  %v13701_v24 = vld [vmem:[%s14657_s22 + $0xb44] sm:$0xf]  ;;  %v11194_v61 = vld [vmem:[%s14657_s22 + $0xb50] sm:$0xf0]  ;;  %v11069_v57 = vor.u32 %v13669_v21, %v11066_v23 }
 0x375   : > { %6447 = vmatpush.bf16.msra.mxu0 %v10845_v3  ;;  %v13601_v43 = vld [vmem:[%s14657_s22 + $0x824] sm:$0xf]  ;;  %v10794_v46 = vld [vmem:[%s14657_s22 + $0x830] sm:$0xf0]  ;;  %v11197_v27 = vor.u32 %v13701_v24, %v11194_v61 }
 0x376   : > { %v13633_v26 = vld [vmem:[%s14657_s22 + $0x924] sm:$0xf]  ;;  %v10922_v62 = vld [vmem:[%s14657_s22 + $0x930] sm:$0xf0]  ;;  %v10797_v33 = vor.u32 %v13601_v43, %v10794_v46 }
 0x377   : > { %6460 = vmatpush.bf16.msra.mxu1 %v10973_v53  ;;  %6473 = vmatpush.bf16.msra.mxu2 %v11101_v54  ;;  %v13665_v2 = vld [vmem:[%s14657_s22 + $0xa24] sm:$0xf]  ;;  %v11050_v29 = vld [vmem:[%s14657_s22 + $0xa30] sm:$0xf0]  ;;  %v10925_v50 = vor.u32 %v13633_v26, %v10922_v62 }
 0x378   : > { %6486 = vmatpush.bf16.msra.mxu3 %v11229_v55  ;;  %v13697_v30 = vld [vmem:[%s14657_s22 + $0xb24] sm:$0xf]  ;;  %v11178_v32 = vld [vmem:[%s14657_s22 + $0xb30] sm:$0xf0]  ;;  %v11053_v39 = vor.u32 %v13665_v2, %v11050_v29 }
 0x379   : > { %6448 = vmatpush.bf16.msra.mxu0 %v10829_v15  ;;  %v13597_v35 = vld [vmem:[%s14657_s22 + $0x804] sm:$0xf]  ;;  %v10778_v36 = vld [vmem:[%s14657_s22 + $0x810] sm:$0xf0]  ;;  %v11181_v31 = vor.u32 %v13697_v30, %v11178_v32 }
 0x37a   : > { %v13629_v41 = vld [vmem:[%s14657_s22 + $0x904] sm:$0xf]  ;;  %v10906_v34 = vld [vmem:[%s14657_s22 + $0x910] sm:$0xf0]  ;;  %v10781_v48 = vor.u32 %v13597_v35, %v10778_v36 }
 0x37b   : > { %6461 = vmatpush.bf16.msra.mxu1 %v10957_v16  ;;  %6474 = vmatpush.bf16.msra.mxu2 %v11085_v17  ;;  %v13661_v22 = vld [vmem:[%s14657_s22 + $0xa04] sm:$0xf]  ;;  %v11034_v42 = vld [vmem:[%s14657_s22 + $0xa10] sm:$0xf0]  ;;  %v10909_v52 = vor.u32 %v13629_v41, %v10906_v34 }
 0x37c   : > { %6487 = vmatpush.bf16.msra.mxu3 %v11213_v14  ;;  %v13693_v44 = vld [vmem:[%s14657_s22 + $0xb04] sm:$0xf]  ;;  %v11162_v45 = vld [vmem:[%s14657_s22 + $0xb10] sm:$0xf0]  ;;  %v11037_v3 = vor.u32 %v13661_v22, %v11034_v42 }
 0x37d   : > { %6449 = vmatpush.bf16.msra.mxu0 %v10813_v25  ;;  %v13753_v37 = vld [vmem:[%s14657_s22 + $0xce4] sm:$0xf]  ;;  %v11402_v38 = vld [vmem:[%s14657_s22 + $0xcf0] sm:$0xf0]  ;;  %v11165_v7 = vor.u32 %v13693_v44, %v11162_v45 }
 0x37e   : > { %v13785_v47 = vld [vmem:[%s14657_s22 + $0xde4] sm:$0xf]  ;;  %v11530_v49 = vld [vmem:[%s14657_s22 + $0xdf0] sm:$0xf0]  ;;  %v11405_v63 = vor.u32 %v13753_v37, %v11402_v38 }
 0x37f   : > { %6462 = vmatpush.bf16.msra.mxu1 %v10941_v18  ;;  %6475 = vmatpush.bf16.msra.mxu2 %v11069_v57  ;;  %v13817_v40 = vld [vmem:[%s14657_s22 + $0xee4] sm:$0xf]  ;;  %v11658_v51 = vld [vmem:[%s14657_s22 + $0xef0] sm:$0xf0]  ;;  %v11533_v8 = vor.u32 %v13785_v47, %v11530_v49 }
 0x380   : > { %6488 = vmatpush.bf16.msra.mxu3 %v11197_v27  ;;  %v13849_v53 = vld [vmem:[%s14657_s22 + $0xfe4] sm:$0xf]  ;;  %v11786_v54 = vld [vmem:[%s14657_s22 + $0xff0] sm:$0xf0]  ;;  %v11661_v55 = vor.u32 %v13817_v40, %v11658_v51 }
 0x381   : > { %6450 = vmatpush.bf16.msra.mxu0 %v10797_v33  ;;  %v13749_v56 = vld [vmem:[%s14657_s22 + $0xcc4] sm:$0xf]  ;;  %v11386_v9 = vld [vmem:[%s14657_s22 + $0xcd0] sm:$0xf0]  ;;  %v11789_v13 = vor.u32 %v13849_v53, %v11786_v54 }
 0x382   : > { %v13781_v12 = vld [vmem:[%s14657_s22 + $0xdc4] sm:$0xf]  ;;  %v11514_v19 = vld [vmem:[%s14657_s22 + $0xdd0] sm:$0xf0]  ;;  %v11389_v5 = vor.u32 %v13749_v56, %v11386_v9 }
 0x383   : > { %6463 = vmatpush.bf16.msra.mxu1 %v10925_v50  ;;  %6476 = vmatpush.bf16.msra.mxu2 %v11053_v39  ;;  %v13813_v15 = vld [vmem:[%s14657_s22 + $0xec4] sm:$0xf]  ;;  %v11642_v16 = vld [vmem:[%s14657_s22 + $0xed0] sm:$0xf0]  ;;  %v11517_v10 = vor.u32 %v13781_v12, %v11514_v19 }
 0x384   : > { %6489 = vmatpush.bf16.msra.mxu3 %v11181_v31  ;;  %v13845_v17 = vld [vmem:[%s14657_s22 + $0xfc4] sm:$0xf]  ;;  %v11770_v0 = vld [vmem:[%s14657_s22 + $0xfd0] sm:$0xf0]  ;;  %v11645_v14 = vor.u32 %v13813_v15, %v11642_v16 }
 0x385   : > { %6451 = vmatpush.bf16.msra.mxu0 %v10781_v48  ;;  %v13745_v20 = vld [vmem:[%s14657_s22 + $0xca4] sm:$0xf]  ;;  %v11370_v21 = vld [vmem:[%s14657_s22 + $0xcb0] sm:$0xf0]  ;;  %v11773_v24 = vor.u32 %v13845_v17, %v11770_v0 }
 0x386   : > { %v13777_v23 = vld [vmem:[%s14657_s22 + $0xda4] sm:$0xf]  ;;  %v11498_v61 = vld [vmem:[%s14657_s22 + $0xdb0] sm:$0xf0]  ;;  %v11373_v46 = vor.u32 %v13745_v20, %v11370_v21 }
 0x387   : > { %6464 = vmatpush.bf16.msra.mxu1 %v10909_v52  ;;  %6477 = vmatpush.bf16.msra.mxu2 %v11037_v3  ;;  %v13809_v25 = vld [vmem:[%s14657_s22 + $0xea4] sm:$0xf]  ;;  %v11626_v18 = vld [vmem:[%s14657_s22 + $0xeb0] sm:$0xf0]  ;;  %v11501_v26 = vor.u32 %v13777_v23, %v11498_v61 }
 0x388   : > { %6490 = vmatpush.bf16.msra.mxu3 %v11165_v7  ;;  %v13841_v57 = vld [vmem:[%s14657_s22 + $0xfa4] sm:$0xf]  ;;  %v11754_v43 = vld [vmem:[%s14657_s22 + $0xfb0] sm:$0xf0]  ;;  %6452 = vmatmul.bf16.vlgmr.msra.gmra.mxu0 %v15965_v6  ;;  %v11629_v27 = vor.u32 %v13809_v25, %v11626_v18 }
 0x389   : > { %6496 = vmatpush.bf16.msrb.mxu0 %v11405_v63  ;;  %v13741_v62 = vld [vmem:[%s14657_s22 + $0xc84] sm:$0xf]  ;;  %v11354_v2 = vld [vmem:[%s14657_s22 + $0xc90] sm:$0xf0]  ;;  %v11757_v30 = vor.u32 %v13841_v57, %v11754_v43 }
 0x38a   : > { %6478 = vmatmul.bf16.vlgmr.msra.gmra.mxu2 %v15957_v1  ;;  %6465 = vmatmul.bf16.vlgmr.msra.gmra.mxu1 %v15972_v59  ;;  %v13773_v29 = vld [vmem:[%s14657_s22 + $0xd84] sm:$0xf]  ;;  %v11482_v32 = vld [vmem:[%s14657_s22 + $0xd90] sm:$0xf0]  ;;  %v11357_v39 = vor.u32 %v13741_v62, %v11354_v2  ;;  %v10896_v2 = vld [vmem:[%s14657_s22 + $0x8e8] sm:$0xf] }
 0x38b   : > { %6509 = vmatpush.bf16.msrb.mxu1 %v11533_v8  ;;  %6522 = vmatpush.bf16.msrb.mxu2 %v11661_v55  ;;  %v13805_v33 = vld [vmem:[%s14657_s22 + $0xe84] sm:$0xf]  ;;  %v11610_v35 = vld [vmem:[%s14657_s22 + $0xe90] sm:$0xf0]  ;;  %v11485_v41 = vor.u32 %v13773_v29, %v11482_v32  ;;  %v13628_v29 = vld [vmem:[%s14657_s22 + $0x8f4] sm:$0xf0] }
 0x38c   : > { %6535 = vmatpush.bf16.msrb.mxu3 %v11789_v13  ;;  %v13837_v36 = vld [vmem:[%s14657_s22 + $0xf84] sm:$0xf]  ;;  %v11738_v50 = vld [vmem:[%s14657_s22 + $0xf90] sm:$0xf0]  ;;  %v11613_v34 = vor.u32 %v13805_v33, %v11610_v35  ;;  %v13660_v33 = vld [vmem:[%s14657_s22 + $0x9f4] sm:$0xf0] }
 0x38d   : > { %6491 = vmatmul.bf16.vlgmr.msra.gmra.mxu3 %v15970_v58  ;;  %6497 = vmatpush.bf16.msrb.mxu0 %v11389_v5  ;;  %v13737_v22 = vld [vmem:[%s14657_s22 + $0xc64] sm:$0xf]  ;;  %v11338_v31 = vld [vmem:[%s14657_s22 + $0xc70] sm:$0xf0]  ;;  %v11741_v44 = vor.u32 %v13837_v36, %v11738_v50  ;;  %v11152_v35 = vld [vmem:[%s14657_s22 + $0xae8] sm:$0xf] }
 0x38e   : > { %v13769_v42 = vld [vmem:[%s14657_s22 + $0xd64] sm:$0xf]  ;;  %v11466_v45 = vld [vmem:[%s14657_s22 + $0xd70] sm:$0xf0]  ;;  %v11341_v49 = vor.u32 %v13737_v22, %v11338_v31  ;;  %v13692_v36 = vld [vmem:[%s14657_s22 + $0xaf4] sm:$0xf0]  ;;  %v10897_v31 = vor.u32 %v13628_v29, %v10896_v2 }
 0x38f   : > { %6510 = vmatpush.bf16.msrb.mxu1 %v11517_v10  ;;  %6523 = vmatpush.bf16.msrb.mxu2 %v11645_v14  ;;  %v13801_v37 = vld [vmem:[%s14657_s22 + $0xe64] sm:$0xf]  ;;  %v11594_v38 = vld [vmem:[%s14657_s22 + $0xe70] sm:$0xf0]  ;;  %v11469_v40 = vor.u32 %v13769_v42, %v11466_v45  ;;  %v10880_v45 = vld [vmem:[%s14657_s22 + $0x8c8] sm:$0xf] }
 0x390   : > { %6536 = vmatpush.bf16.msrb.mxu3 %v11773_v24  ;;  %v13833_v47 = vld [vmem:[%s14657_s22 + $0xf64] sm:$0xf]  ;;  %v11722_v48 = vld [vmem:[%s14657_s22 + $0xf70] sm:$0xf0]  ;;  %v11597_v51 = vor.u32 %v13801_v37, %v11594_v38  ;;  %v13624_v37 = vld [vmem:[%s14657_s22 + $0x8d4] sm:$0xf0] }
 0x391   : > { %6498 = vmatpush.bf16.msrb.mxu0 %v11373_v46  ;;  %v13733_v52 = vld [vmem:[%s14657_s22 + $0xc44] sm:$0xf]  ;;  %v11322_v3 = vld [vmem:[%s14657_s22 + $0xc50] sm:$0xf0]  ;;  %v11725_v54 = vor.u32 %v13833_v47, %v11722_v48  ;;  %v11008_v38 = vld [vmem:[%s14657_s22 + $0x9c8] sm:$0xf] }
 0x392   : > { %v13765_v53 = vld [vmem:[%s14657_s22 + $0xd44] sm:$0xf]  ;;  %v11450_v7 = vld [vmem:[%s14657_s22 + $0xd50] sm:$0xf0]  ;;  %v11325_v9 = vor.u32 %v13733_v52, %v11322_v3  ;;  %v13656_v48 = vld [vmem:[%s14657_s22 + $0x9d4] sm:$0xf0]  ;;  %v10881_v3 = vor.u32 %v13624_v37, %v10880_v45 }
 0x393   : > { %6511 = vmatpush.bf16.msrb.mxu1 %v11501_v26  ;;  %6524 = vmatpush.bf16.msrb.mxu2 %v11629_v27  ;;  %v13797_v63 = vld [vmem:[%s14657_s22 + $0xe44] sm:$0xf]  ;;  %v11578_v8 = vld [vmem:[%s14657_s22 + $0xe50] sm:$0xf0]  ;;  %v11453_v12 = vor.u32 %v13765_v53, %v11450_v7  ;;  %v13720_v52 = vld [vmem:[%s14657_s22 + $0xbd4] sm:$0xf0]  ;;  %v11009_v53 = vor.u32 %v13656_v48, %v11008_v38 }
 0x394   : > { %6537 = vmatpush.bf16.msrb.mxu3 %v11757_v30  ;;  %v13829_v55 = vld [vmem:[%s14657_s22 + $0xf44] sm:$0xf]  ;;  %v11706_v56 = vld [vmem:[%s14657_s22 + $0xf50] sm:$0xf0]  ;;  %v11581_v13 = vor.u32 %v13797_v63, %v11578_v8  ;;  %v11024_v30 = vld [vmem:[%s14657_s22 + $0x9e8] sm:$0xf] }
 0x395   : > { %6499 = vmatpush.bf16.msrb.mxu0 %v11357_v39  ;;  %v13729_v19 = vld [vmem:[%s14657_s22 + $0xc24] sm:$0xf]  ;;  %v11306_v15 = vld [vmem:[%s14657_s22 + $0xc30] sm:$0xf0]  ;;  %v11709_v17 = vor.u32 %v13829_v55, %v11706_v56  ;;  %v11025_v42 = vor.u32 %v13660_v33, %v11024_v30  ;;  %v10864_v7 = vld [vmem:[%s14657_s22 + $0x8a8] sm:$0xf] }
 0x396   : > { %v13761_v16 = vld [vmem:[%s14657_s22 + $0xd24] sm:$0xf]  ;;  %v11434_v0 = vld [vmem:[%s14657_s22 + $0xd30] sm:$0xf0]  ;;  %v11309_v21 = vor.u32 %v13729_v19, %v11306_v15  ;;  %v13620_v63 = vld [vmem:[%s14657_s22 + $0x8b4] sm:$0xf0] }
 0x397   : > { %6512 = vmatpush.bf16.msrb.mxu1 %v11485_v41  ;;  %6525 = vmatpush.bf16.msrb.mxu2 %v11613_v34  ;;  %v13793_v5 = vld [vmem:[%s14657_s22 + $0xe24] sm:$0xf]  ;;  %v11562_v10 = vld [vmem:[%s14657_s22 + $0xe30] sm:$0xf0]  ;;  %v11437_v61 = vor.u32 %v13761_v16, %v11434_v0  ;;  %v11280_v41 = vld [vmem:[%s14657_s22 + $0xbe8] sm:$0xf]  ;;  %v10865_v15 = vor.u32 %v13620_v63, %v10864_v7 }
 0x398   : > { %6538 = vmatpush.bf16.msrb.mxu3 %v11741_v44  ;;  %v13825_v14 = vld [vmem:[%s14657_s22 + $0xf24] sm:$0xf]  ;;  %v11690_v20 = vld [vmem:[%s14657_s22 + $0xf30] sm:$0xf0]  ;;  %v11565_v25 = vor.u32 %v13793_v5, %v11562_v10  ;;  %v13724_v34 = vld [vmem:[%s14657_s22 + $0xbf4] sm:$0xf0]  ;;  %v11153_v44 = vor.u32 %v13692_v36, %v11152_v35 }
 0x399   : > { %6500 = vmatpush.bf16.msrb.mxu0 %v11341_v49  ;;  %v13725_v23 = vld [vmem:[%s14657_s22 + $0xc04] sm:$0xf]  ;;  %v11290_v24 = vld [vmem:[%s14657_s22 + $0xc10] sm:$0xf0]  ;;  %v11693_v46 = vor.u32 %v13825_v14, %v11690_v20  ;;  %v11281_v47 = vor.u32 %v13724_v34, %v11280_v41  ;;  %v11136_v49 = vld [vmem:[%s14657_s22 + $0xac8] sm:$0xf] }
 0x39a   : > { %v13757_v18 = vld [vmem:[%s14657_s22 + $0xd04] sm:$0xf]  ;;  %v11418_v57 = vld [vmem:[%s14657_s22 + $0xd10] sm:$0xf0]  ;;  %v11293_v32 = vor.u32 %v13725_v23, %v11290_v24  ;;  %v10992_v8 = vld [vmem:[%s14657_s22 + $0x9a8] sm:$0xf] }
 0x39b   : > { %6513 = vmatpush.bf16.msrb.mxu1 %v11469_v40  ;;  %6526 = vmatpush.bf16.msrb.mxu2 %v11597_v51  ;;  %v13789_v43 = vld [vmem:[%s14657_s22 + $0xe04] sm:$0xf]  ;;  %v11546_v26 = vld [vmem:[%s14657_s22 + $0xe10] sm:$0xf0]  ;;  %v11421_v50 = vor.u32 %v13757_v18, %v11418_v57  ;;  %v13688_v40 = vld [vmem:[%s14657_s22 + $0xad4] sm:$0xf0] }
 0x39c   : > { %6539 = vmatpush.bf16.msrb.mxu3 %v11725_v54  ;;  %v13821_v27 = vld [vmem:[%s14657_s22 + $0xf04] sm:$0xf]  ;;  %v11674_v62 = vld [vmem:[%s14657_s22 + $0xf10] sm:$0xf0]  ;;  %v11549_v39 = vor.u32 %v13789_v43, %v11546_v26  ;;  %v11264_v51 = vld [vmem:[%s14657_s22 + $0xbc8] sm:$0xf]  ;;  %v11137_v54 = vor.u32 %v13688_v40, %v11136_v49 }
 0x39d   : > { %6501 = vmatpush.bf16.msrb.mxu0 %v11325_v9  ;;  %v11677_v22 = vor.u32 %v13821_v27, %v11674_v62  ;;  %v11265_v55 = vor.u32 %v13720_v52, %v11264_v51  ;;  %v13652_v56 = vld [vmem:[%s14657_s22 + $0x9b4] sm:$0xf0]  ;;  %v11120_v9 = vld [vmem:[%s14657_s22 + $0xaa8] sm:$0xf] }
 0x39e   : > { %v13716_v19 = vld [vmem:[%s14657_s22 + $0xbb4] sm:$0xf0]  ;;  %v10993_v16 = vor.u32 %v13652_v56, %v10992_v8  ;;  %v10848_v0 = vld [vmem:[%s14657_s22 + $0x888] sm:$0xf] }
 0x39f   : > { %6514 = vmatpush.bf16.msrb.mxu1 %v11453_v12  ;;  %6527 = vmatpush.bf16.msrb.mxu2 %v11581_v13  ;;  %v13684_v12 = vld [vmem:[%s14657_s22 + $0xab4] sm:$0xf0]  ;;  %v11248_v13 = vld [vmem:[%s14657_s22 + $0xba8] sm:$0xf] }
 0x3a0   : > { %6540 = vmatpush.bf16.msrb.mxu3 %v11709_v17  ;;  %v11121_v17 = vor.u32 %v13684_v12, %v11120_v9  ;;  %v13616_v5 = vld [vmem:[%s14657_s22 + $0x894] sm:$0xf0]  ;;  %v10976_v10 = vld [vmem:[%s14657_s22 + $0x988] sm:$0xf]  ;;  %v11249_v14 = vor.u32 %v13716_v19, %v11248_v13 }
 0x3a1   : > { %6502 = vmatpush.bf16.msrb.mxu0 %v11309_v21  ;;  %v13648_v20 = vld [vmem:[%s14657_s22 + $0x994] sm:$0xf0]  ;;  %v11104_v21 = vld [vmem:[%s14657_s22 + $0xa88] sm:$0xf] }
 0x3a2   : > { %v13680_v23 = vld [vmem:[%s14657_s22 + $0xa94] sm:$0xf0]  ;;  %v11232_v24 = vld [vmem:[%s14657_s22 + $0xb88] sm:$0xf]  ;;  %v10977_v18 = vor.u32 %v13648_v20, %v10976_v10 }
 0x3a3   : > { %6515 = vmatpush.bf16.msrb.mxu1 %v11437_v61  ;;  %6528 = vmatpush.bf16.msrb.mxu2 %v11565_v25  ;;  %v13712_v61 = vld [vmem:[%s14657_s22 + $0xb94] sm:$0xf0]  ;;  %v10849_v25 = vor.u32 %v13616_v5, %v10848_v0  ;;  %v11105_v57 = vor.u32 %v13680_v23, %v11104_v21  ;;  %v10832_v43 = vld [vmem:[%s14657_s22 + $0x868] sm:$0xf] }
 0x3a4   : > { %6541 = vmatpush.bf16.msrb.mxu3 %v11693_v46  ;;  %v13612_v46 = vld [vmem:[%s14657_s22 + $0x874] sm:$0xf0]  ;;  %v10960_v26 = vld [vmem:[%s14657_s22 + $0x968] sm:$0xf]  ;;  %v11233_v27 = vor.u32 %v13712_v61, %v11232_v24 }
 0x3a5   : > { %6503 = vmatpush.bf16.msrb.mxu0 %v11293_v32  ;;  %v13644_v62 = vld [vmem:[%s14657_s22 + $0x974] sm:$0xf0]  ;;  %v11088_v2 = vld [vmem:[%s14657_s22 + $0xa68] sm:$0xf]  ;;  %v10833_v33 = vor.u32 %v13612_v46, %v10832_v43 }
 0x3a6   : > { %v13676_v29 = vld [vmem:[%s14657_s22 + $0xa74] sm:$0xf0]  ;;  %v11216_v30 = vld [vmem:[%s14657_s22 + $0xb68] sm:$0xf]  ;;  %v10961_v35 = vor.u32 %v13644_v62, %v10960_v26 }
 0x3a7   : > { %6516 = vmatpush.bf16.msrb.mxu1 %v11421_v50  ;;  %6529 = vmatpush.bf16.msrb.mxu2 %v11549_v39  ;;  %v13708_v32 = vld [vmem:[%s14657_s22 + $0xb74] sm:$0xf0]  ;;  %v11089_v36 = vor.u32 %v13676_v29, %v11088_v2  ;;  %v10816_v50 = vld [vmem:[%s14657_s22 + $0x848] sm:$0xf] }
 0x3a8   : > { %6542 = vmatpush.bf16.msrb.mxu3 %v11677_v22  ;;  %6504 = vmatmul.bf16.vlgmr.msrb.gmra.mxu0 %v16029_v4  ;;  %v13608_v39 = vld [vmem:[%s14657_s22 + $0x854] sm:$0xf0]  ;;  %v10944_v41 = vld [vmem:[%s14657_s22 + $0x948] sm:$0xf]  ;;  %v11217_v34 = vor.u32 %v13708_v32, %v11216_v30 }
 0x3a9   : > { %6548 = vmatpush.bf16.msra.mxu0 %v10897_v31  ;;  %v13640_v22 = vld [vmem:[%s14657_s22 + $0x954] sm:$0xf0]  ;;  %v11072_v31 = vld [vmem:[%s14657_s22 + $0xa48] sm:$0xf]  ;;  %v10817_v37 = vor.u32 %v13608_v39, %v10816_v50 }
 0x3aa   : > { %6530 = vmatmul.bf16.vlgmr.msrb.gmra.mxu2 %v16025_v60  ;;  %6517 = vmatmul.bf16.vlgmr.msrb.gmra.mxu1 %v16033_v11  ;;  %v13704_v45 = vld [vmem:[%s14657_s22 + $0xb54] sm:$0xf0]  ;;  %v10945_v38 = vor.u32 %v13640_v22, %v10944_v41  ;;  %v10800_v48 = vld [vmem:[%s14657_s22 + $0x828] sm:$0xf] }
 0x3ab   : > { %6561 = vmatpush.bf16.msra.mxu1 %v11025_v42  ;;  %6574 = vmatpush.bf16.msra.mxu2 %v11153_v44  ;;  %v13672_v42 = vld [vmem:[%s14657_s22 + $0xa54] sm:$0xf0]  ;;  %v11200_v44 = vld [vmem:[%s14657_s22 + $0xb48] sm:$0xf] }
 0x3ac   : > { %6587 = vmatpush.bf16.msra.mxu3 %v11281_v47  ;;  %v11073_v47 = vor.u32 %v13672_v42, %v11072_v31  ;;  %v13604_v49 = vld [vmem:[%s14657_s22 + $0x834] sm:$0xf0]  ;;  %v10928_v40 = vld [vmem:[%s14657_s22 + $0x928] sm:$0xf]  ;;  %v11201_v51 = vor.u32 %v13704_v45, %v11200_v44 }
 0x3ad   : > { %6543 = vmatmul.bf16.vlgmr.msrb.gmra.mxu3 %v16031_v28  ;;  %6549 = vmatpush.bf16.msra.mxu0 %v10881_v3  ;;  %v13636_v52 = vld [vmem:[%s14657_s22 + $0x934] sm:$0xf0]  ;;  %v11056_v3 = vld [vmem:[%s14657_s22 + $0xa28] sm:$0xf]  ;;  %v10801_v63 = vor.u32 %v13604_v49, %v10800_v48 }
 0x3ae   : > { %v13700_v7 = vld [vmem:[%s14657_s22 + $0xb34] sm:$0xf0]  ;;  %v10784_v8 = vld [vmem:[%s14657_s22 + $0x808] sm:$0xf]  ;;  %v10929_v56 = vor.u32 %v13636_v52, %v10928_v40 }
 0x3af   : > { %6562 = vmatpush.bf16.msra.mxu1 %v11009_v53  ;;  %6575 = vmatpush.bf16.msra.mxu2 %v11137_v54  ;;  %v13668_v53 = vld [vmem:[%s14657_s22 + $0xa34] sm:$0xf0]  ;;  %v11184_v54 = vld [vmem:[%s14657_s22 + $0xb28] sm:$0xf] }
 0x3b0   : > { %6588 = vmatpush.bf16.msra.mxu3 %v11265_v55  ;;  %v13600_v55 = vld [vmem:[%s14657_s22 + $0x814] sm:$0xf0]  ;;  %v11057_v9 = vor.u32 %v13668_v53, %v11056_v3  ;;  %v10912_v12 = vld [vmem:[%s14657_s22 + $0x908] sm:$0xf] }
 0x3b1   : > { %6550 = vmatpush.bf16.msra.mxu0 %v10865_v15  ;;  %v13632_v13 = vld [vmem:[%s14657_s22 + $0x914] sm:$0xf0]  ;;  %v11040_v19 = vld [vmem:[%s14657_s22 + $0xa08] sm:$0xf]  ;;  %v11185_v15 = vor.u32 %v13700_v7, %v11184_v54  ;;  %v10785_v20 = vor.u32 %v13600_v55, %v10784_v8 }
 0x3b2   : > { %v13696_v0 = vld [vmem:[%s14657_s22 + $0xb14] sm:$0xf0]  ;;  %v11408_v5 = vld [vmem:[%s14657_s22 + $0xce8] sm:$0xf]  ;;  %v10913_v61 = vor.u32 %v13632_v13, %v10912_v12 }
 0x3b3   : > { %6563 = vmatpush.bf16.msra.mxu1 %v10993_v16  ;;  %6576 = vmatpush.bf16.msra.mxu2 %v11121_v17  ;;  %v13664_v16 = vld [vmem:[%s14657_s22 + $0xa14] sm:$0xf0]  ;;  %v11168_v17 = vld [vmem:[%s14657_s22 + $0xb08] sm:$0xf] }
 0x3b4   : > { %6589 = vmatpush.bf16.msra.mxu3 %v11249_v14  ;;  %v13756_v10 = vld [vmem:[%s14657_s22 + $0xcf4] sm:$0xf0]  ;;  %v11536_v14 = vld [vmem:[%s14657_s22 + $0xde8] sm:$0xf]  ;;  %v11169_v43 = vor.u32 %v13696_v0, %v11168_v17 }
 0x3b5   : > { %6551 = vmatpush.bf16.msra.mxu0 %v10849_v25  ;;  %v13788_v21 = vld [vmem:[%s14657_s22 + $0xdf4] sm:$0xf0]  ;;  %v11664_v23 = vld [vmem:[%s14657_s22 + $0xee8] sm:$0xf]  ;;  %v11041_v25 = vor.u32 %v13664_v16, %v11040_v19  ;;  %v11409_v46 = vor.u32 %v13756_v10, %v11408_v5 }
 0x3b6   : > { %v13820_v24 = vld [vmem:[%s14657_s22 + $0xef4] sm:$0xf0]  ;;  %v11537_v26 = vor.u32 %v13788_v21, %v11536_v14  ;;  %v11392_v62 = vld [vmem:[%s14657_s22 + $0xcc8] sm:$0xf] }
 0x3b7   : > { %6564 = vmatpush.bf16.msra.mxu1 %v10977_v18  ;;  %6577 = vmatpush.bf16.msra.mxu2 %v11105_v57  ;;  %v11792_v18 = vld [vmem:[%s14657_s22 + $0xfe8] sm:$0xf]  ;;  %v13852_v57 = vld [vmem:[%s14657_s22 + $0xff4] sm:$0xf0] }
 0x3b8   : > { %6590 = vmatpush.bf16.msra.mxu3 %v11233_v27  ;;  %v11665_v27 = vor.u32 %v13820_v24, %v11664_v23  ;;  %v13752_v2 = vld [vmem:[%s14657_s22 + $0xcd4] sm:$0xf0]  ;;  %v11520_v29 = vld [vmem:[%s14657_s22 + $0xdc8] sm:$0xf]  ;;  %v11793_v30 = vor.u32 %v13852_v57, %v11792_v18 }
 0x3b9   : > { %6552 = vmatpush.bf16.msra.mxu0 %v10833_v33  ;;  %v13784_v32 = vld [vmem:[%s14657_s22 + $0xdd4] sm:$0xf0]  ;;  %v11648_v33 = vld [vmem:[%s14657_s22 + $0xec8] sm:$0xf]  ;;  %v11393_v39 = vor.u32 %v13752_v2, %v11392_v62 }
 0x3ba   : > { %v13848_v50 = vld [vmem:[%s14657_s22 + $0xfd4] sm:$0xf0]  ;;  %v11521_v41 = vor.u32 %v13784_v32, %v11520_v29  ;;  %v11376_v22 = vld [vmem:[%s14657_s22 + $0xca8] sm:$0xf] }
 0x3bb   : > { %6565 = vmatpush.bf16.msra.mxu1 %v10961_v35  ;;  %6578 = vmatpush.bf16.msra.mxu2 %v11089_v36  ;;  %v13816_v35 = vld [vmem:[%s14657_s22 + $0xed4] sm:$0xf0]  ;;  %v11776_v36 = vld [vmem:[%s14657_s22 + $0xfc8] sm:$0xf] }
 0x3bc   : > { %6591 = vmatpush.bf16.msra.mxu3 %v11217_v34  ;;  %v11649_v34 = vor.u32 %v13816_v35, %v11648_v33  ;;  %v13748_v31 = vld [vmem:[%s14657_s22 + $0xcb4] sm:$0xf0]  ;;  %v11504_v42 = vld [vmem:[%s14657_s22 + $0xda8] sm:$0xf]  ;;  %v11777_v44 = vor.u32 %v13848_v50, %v11776_v36 }
 0x3bd   : > { %6553 = vmatpush.bf16.msra.mxu0 %v10817_v37  ;;  %v13780_v45 = vld [vmem:[%s14657_s22 + $0xdb4] sm:$0xf0]  ;;  %v11632_v37 = vld [vmem:[%s14657_s22 + $0xea8] sm:$0xf]  ;;  %v11377_v49 = vor.u32 %v13748_v31, %v11376_v22 }
 0x3be   : > { %v13844_v48 = vld [vmem:[%s14657_s22 + $0xfb4] sm:$0xf0]  ;;  %v11505_v40 = vor.u32 %v13780_v45, %v11504_v42  ;;  %v11360_v52 = vld [vmem:[%s14657_s22 + $0xc88] sm:$0xf] }
 0x3bf   : > { %6566 = vmatpush.bf16.msra.mxu1 %v10945_v38  ;;  %6579 = vmatpush.bf16.msra.mxu2 %v11073_v47  ;;  %v13812_v38 = vld [vmem:[%s14657_s22 + $0xeb4] sm:$0xf0]  ;;  %v11760_v47 = vld [vmem:[%s14657_s22 + $0xfa8] sm:$0xf] }
 0x3c0   : > { %6592 = vmatpush.bf16.msra.mxu3 %v11201_v51  ;;  %v11633_v51 = vor.u32 %v13812_v38, %v11632_v37  ;;  %v13744_v3 = vld [vmem:[%s14657_s22 + $0xc94] sm:$0xf0]  ;;  %v11488_v53 = vld [vmem:[%s14657_s22 + $0xd88] sm:$0xf]  ;;  %v11761_v54 = vor.u32 %v13844_v48, %v11760_v47 }
 0x3c1   : > { %6554 = vmatpush.bf16.msra.mxu0 %v10801_v63  ;;  %v13776_v7 = vld [vmem:[%s14657_s22 + $0xd94] sm:$0xf0]  ;;  %v11616_v63 = vld [vmem:[%s14657_s22 + $0xe88] sm:$0xf] }
 0x3c2   : > { %v13808_v8 = vld [vmem:[%s14657_s22 + $0xe94] sm:$0xf0]  ;;  %v11744_v55 = vld [vmem:[%s14657_s22 + $0xf88] sm:$0xf]  ;;  %v11489_v12 = vor.u32 %v13776_v7, %v11488_v53 }
 0x3c3   : > { %6567 = vmatpush.bf16.msra.mxu1 %v10929_v56  ;;  %6580 = vmatpush.bf16.msra.mxu2 %v11057_v9  ;;  %v13840_v56 = vld [vmem:[%s14657_s22 + $0xf94] sm:$0xf0]  ;;  %v11361_v9 = vor.u32 %v13744_v3, %v11360_v52  ;;  %v11617_v13 = vor.u32 %v13808_v8, %v11616_v63  ;;  %v11344_v19 = vld [vmem:[%s14657_s22 + $0xc68] sm:$0xf] }
 0x3c4   : > { %6593 = vmatpush.bf16.msra.mxu3 %v11185_v15  ;;  %v13740_v15 = vld [vmem:[%s14657_s22 + $0xc74] sm:$0xf0]  ;;  %v11472_v16 = vld [vmem:[%s14657_s22 + $0xd68] sm:$0xf]  ;;  %v11745_v17 = vor.u32 %v13840_v56, %v11744_v55  ;;  %v6349_v23 = vpop.f32.mrf.mxu0 }
 0x3c5   : > { %6555 = vmatpush.bf16.msra.mxu0 %v10785_v20  ;;  %v13772_v0 = vld [vmem:[%s14657_s22 + $0xd74] sm:$0xf0]  ;;  %v11600_v5 = vld [vmem:[%s14657_s22 + $0xe68] sm:$0xf]  ;;  %v11345_v21 = vor.u32 %v13740_v15, %v11344_v19 }
 0x3c6   : > { %v13804_v10 = vld [vmem:[%s14657_s22 + $0xe74] sm:$0xf0]  ;;  %v11728_v14 = vld [vmem:[%s14657_s22 + $0xf68] sm:$0xf]  ;;  %v11473_v24 = vor.u32 %v13772_v0, %v11472_v16  ;;  %v13690_v0 = vld [vmem:[%s14657_s22 + $0xaec] sm:$0xf] }
 0x3c7   : > { %6568 = vmatpush.bf16.msra.mxu1 %v10913_v61  ;;  %6581 = vmatpush.bf16.msra.mxu2 %v11041_v25  ;;  %v13836_v20 = vld [vmem:[%s14657_s22 + $0xf74] sm:$0xf0]  ;;  %v11601_v61 = vor.u32 %v13804_v10, %v11600_v5  ;;  %v11328_v25 = vld [vmem:[%s14657_s22 + $0xc48] sm:$0xf]  ;;  %v11154_v5 = vld [vmem:[%s14657_s22 + $0xaf8] sm:$0xf0] }
 0x3c8   : > { %6594 = vmatpush.bf16.msra.mxu3 %v11169_v43  ;;  %6556 = vmatmul.bf16.vlgmr.msra.gmra.mxu0 %v15965_v6  ;;  %v13736_v18 = vld [vmem:[%s14657_s22 + $0xc54] sm:$0xf0]  ;;  %v11456_v57 = vld [vmem:[%s14657_s22 + $0xd48] sm:$0xf]  ;;  %v11729_v43 = vor.u32 %v13836_v20, %v11728_v14  ;;  %v13722_v20 = vld [vmem:[%s14657_s22 + $0xbec] sm:$0xf] }
 0x3c9   : > { %6600 = vmatpush.bf16.msrb.mxu0 %v11409_v46  ;;  %v13768_v46 = vld [vmem:[%s14657_s22 + $0xd54] sm:$0xf0]  ;;  %v11712_v62 = vld [vmem:[%s14657_s22 + $0xf48] sm:$0xf]  ;;  %v11329_v32 = vor.u32 %v13736_v18, %v11328_v25  ;;  %v11157_v25 = vor.u32 %v13690_v0, %v11154_v5  ;;  %v13622_v18 = vld [vmem:[%s14657_s22 + $0x8cc] sm:$0xf] }
 0x3ca   : > { %6582 = vmatmul.bf16.vlgmr.msra.gmra.mxu2 %v15957_v1  ;;  %6569 = vmatmul.bf16.vlgmr.msra.gmra.mxu1 %v15972_v59  ;;  %v13832_v2 = vld [vmem:[%s14657_s22 + $0xf54] sm:$0xf0]  ;;  %v11457_v35 = vor.u32 %v13768_v46, %v11456_v57  ;;  %v11312_v50 = vld [vmem:[%s14657_s22 + $0xc28] sm:$0xf]  ;;  %v10882_v57 = vld [vmem:[%s14657_s22 + $0x8d8] sm:$0xf0] }
 0x3cb   : > { %6613 = vmatpush.bf16.msrb.mxu1 %v11537_v26  ;;  %6626 = vmatpush.bf16.msrb.mxu2 %v11665_v27  ;;  %v11584_v26 = vld [vmem:[%s14657_s22 + $0xe48] sm:$0xf]  ;;  %v13800_v27 = vld [vmem:[%s14657_s22 + $0xe54] sm:$0xf0]  ;;  %v13674_v0 = vld [vmem:[%s14657_s22 + $0xa6c] sm:$0xf] }
 0x3cc   : > { %6639 = vmatpush.bf16.msrb.mxu3 %v11793_v30  ;;  %v6375_v30 = vpop.f32.mrf.mxu2  ;;  %v11585_v36 = vor.u32 %v13800_v27, %v11584_v26  ;;  %v13764_v22 = vld [vmem:[%s14657_s22 + $0xd34] sm:$0xf0]  ;;  %v11568_v31 = vld [vmem:[%s14657_s22 + $0xe28] sm:$0xf]  ;;  %v11010_v27 = vld [vmem:[%s14657_s22 + $0x9d8] sm:$0xf0] }
 0x3cd   : > { %6595 = vmatmul.bf16.vlgmr.msra.gmra.mxu3 %v15970_v58  ;;  %6601 = vmatpush.bf16.msrb.mxu0 %v11393_v39  ;;  %v13732_v39 = vld [vmem:[%s14657_s22 + $0xc34] sm:$0xf0]  ;;  %v11696_v45 = vld [vmem:[%s14657_s22 + $0xf28] sm:$0xf]  ;;  %v11090_v5 = vld [vmem:[%s14657_s22 + $0xa78] sm:$0xf0] }
 0x3ce   : > { %v13796_v42 = vld [vmem:[%s14657_s22 + $0xe34] sm:$0xf0]  ;;  %v11313_v47 = vor.u32 %v13732_v39, %v11312_v50  ;;  %v11296_v48 = vld [vmem:[%s14657_s22 + $0xc08] sm:$0xf]  ;;  %v10866_v50 = vld [vmem:[%s14657_s22 + $0x8b8] sm:$0xf0] }
 0x3cf   : > { %6614 = vmatpush.bf16.msrb.mxu1 %v11521_v41  ;;  %6627 = vmatpush.bf16.msrb.mxu2 %v11649_v34  ;;  %v11440_v41 = vld [vmem:[%s14657_s22 + $0xd28] sm:$0xf]  ;;  %v11713_v34 = vor.u32 %v13832_v2, %v11712_v62  ;;  %v13828_v37 = vld [vmem:[%s14657_s22 + $0xf34] sm:$0xf0]  ;;  %v11569_v3 = vor.u32 %v13796_v42, %v11568_v31  ;;  %v13686_v62 = vld [vmem:[%s14657_s22 + $0xacc] sm:$0xf] }
 0x3d0   : > { %6640 = vmatpush.bf16.msrb.mxu3 %v11777_v44  ;;  %v11441_v52 = vor.u32 %v13764_v22, %v11440_v41  ;;  %v11424_v53 = vld [vmem:[%s14657_s22 + $0xd08] sm:$0xf]  ;;  %v11697_v63 = vor.u32 %v13828_v37, %v11696_v45  ;;  %v13792_v8 = vld [vmem:[%s14657_s22 + $0xe14] sm:$0xf0]  ;;  %v11138_v2 = vld [vmem:[%s14657_s22 + $0xad8] sm:$0xf0] }
 0x3d1   : > { %6602 = vmatpush.bf16.msrb.mxu0 %v11377_v49  ;;  %v13728_v49 = vld [vmem:[%s14657_s22 + $0xc14] sm:$0xf0]  ;;  %v11552_v7 = vld [vmem:[%s14657_s22 + $0xe08] sm:$0xf]  ;;  %v13650_v39 = vld [vmem:[%s14657_s22 + $0x9ac] sm:$0xf] }
 0x3d2   : > { %v11680_v55 = vld [vmem:[%s14657_s22 + $0xf08] sm:$0xf]  ;;  %v13824_v56 = vld [vmem:[%s14657_s22 + $0xf14] sm:$0xf0]  ;;  %v11297_v16 = vor.u32 %v13728_v49, %v11296_v48  ;;  %v11553_v14 = vor.u32 %v13792_v8, %v11552_v7  ;;  %v13682_v22 = vld [vmem:[%s14657_s22 + $0xaac] sm:$0xf] }
 0x3d3   : > { %6615 = vmatpush.bf16.msrb.mxu1 %v11505_v40  ;;  %6628 = vmatpush.bf16.msrb.mxu2 %v11633_v51  ;;  %v6362_v29 = vpop.f32.mrf.mxu1  ;;  %v6351_v51 = vpop.f32.mrf.mxu0  ;;  %v11122_v31 = vld [vmem:[%s14657_s22 + $0xab8] sm:$0xf0]  ;;  %v13714_v42 = vld [vmem:[%s14657_s22 + $0xbac] sm:$0xf] }
 0x3d4   : > { %6641 = vmatpush.bf16.msrb.mxu3 %v11761_v54  ;;  %v6363_v33 = vadd.f32 %v6362_v29, %v6349_v23  ;;  %v13760_v54 = vld [vmem:[%s14657_s22 + $0xd14] sm:$0xf0]  ;;  %v6377_v15 = vpop.f32.mrf.mxu2  ;;  %v11681_v23 = vor.u32 %v13824_v56, %v11680_v55  ;;  %v13718_v29 = vld [vmem:[%s14657_s22 + $0xbcc] sm:$0xf]  ;;  %v10850_v48 = vld [vmem:[%s14657_s22 + $0x898] sm:$0xf0] }
 0x3d5   : > { %6603 = vmatpush.bf16.msrb.mxu0 %v11361_v9  ;;  %v13626_v9 = vld [vmem:[%s14657_s22 + $0x8ec] sm:$0xf]  ;;  %v11425_v10 = vor.u32 %v13760_v54, %v11424_v53  ;;  %v11106_v53 = vld [vmem:[%s14657_s22 + $0xa98] sm:$0xf0] }
 0x3d6   : > { %v6376_v44 = vadd.f32 %v6375_v30, %v6363_v33  ;;  %v11266_v30 = vld [vmem:[%s14657_s22 + $0xbd8] sm:$0xf0]  ;;  %v13646_v49 = vld [vmem:[%s14657_s22 + $0x98c] sm:$0xf] }
 0x3d7   : > { %6616 = vmatpush.bf16.msrb.mxu1 %v11489_v12  ;;  %6629 = vmatpush.bf16.msrb.mxu2 %v11617_v13  ;;  %v10898_v12 = vld [vmem:[%s14657_s22 + $0x8f8] sm:$0xf0]  ;;  %v13658_v13 = vld [vmem:[%s14657_s22 + $0x9ec] sm:$0xf]  ;;  %v11269_v41 = vor.u32 %v13718_v29, %v11266_v30 }
 0x3d8   : > { %6642 = vmatpush.bf16.msrb.mxu3 %v11745_v17  ;;  %v6388_v38 = vpop.f32.mrf.mxu3  ;;  %v11026_v17 = vld [vmem:[%s14657_s22 + $0x9f8] sm:$0xf0]  ;;  %v13710_v54 = vld [vmem:[%s14657_s22 + $0xb8c] sm:$0xf] }
 0x3d9   : > { %6604 = vmatpush.bf16.msrb.mxu0 %v11345_v21  ;;  %v16285_v40 = vadd.f32 %v6388_v38, %v6376_v44  ;;  %v11282_v21 = vld [vmem:[%s14657_s22 + $0xbf8] sm:$0xf0]  ;;  %v11125_v38 = vor.u32 %v13682_v22, %v11122_v31 }
 0x3da   : > { %v11285_v26 = vor.u32 %v13722_v20, %v11282_v21  ;;  %v11250_v44 = vld [vmem:[%s14657_s22 + $0xbb8] sm:$0xf0] }
 0x3db   : > { %6617 = vmatpush.bf16.msrb.mxu1 %v11473_v24  ;;  %6630 = vmatpush.bf16.msrb.mxu2 %v11601_v61  ;;  %v6364_v19 = vpop.f32.mrf.mxu1  ;;  %v10901_v24 = vor.u32 %v13626_v9, %v10898_v12  ;;  %v11029_v61 = vor.u32 %v13658_v13, %v11026_v17  ;;  %v11253_v51 = vor.u32 %v13714_v42, %v11250_v44  ;;  %v11234_v7 = vld [vmem:[%s14657_s22 + $0xb98] sm:$0xf0]  ;;  %v13610_v9 = vld [vmem:[%s14657_s22 + $0x86c] sm:$0xf] }
 0x3dc   : > { %6643 = vmatpush.bf16.msrb.mxu3 %v11729_v43  ;;  %v13654_v43 = vld [vmem:[%s14657_s22 + $0x9cc] sm:$0xf]  ;;  %v10834_v12 = vld [vmem:[%s14657_s22 + $0x878] sm:$0xf0] }
 0x3dd   : > { %6605 = vmatpush.bf16.msrb.mxu0 %v11329_v32  ;;  %v10885_v32 = vor.u32 %v13622_v18, %v10882_v57  ;;  %v11013_v33 = vor.u32 %v13654_v43, %v11010_v27  ;;  %v13642_v13 = vld [vmem:[%s14657_s22 + $0x96c] sm:$0xf]  ;;  %v10962_v17 = vld [vmem:[%s14657_s22 + $0x978] sm:$0xf0]  ;;  %v10837_v21 = vor.u32 %v13610_v9, %v10834_v12 }
 0x3de   : > { %v10946_v43 = vld [vmem:[%s14657_s22 + $0x958] sm:$0xf0]  ;;  %v13666_v42 = vld [vmem:[%s14657_s22 + $0xa2c] sm:$0xf] }
 0x3df   : > { %6618 = vmatpush.bf16.msrb.mxu1 %v11457_v35  ;;  %6631 = vmatpush.bf16.msrb.mxu2 %v11585_v36  ;;  %v11141_v35 = vor.u32 %v13686_v62, %v11138_v2  ;;  %v13618_v36 = vld [vmem:[%s14657_s22 + $0x8ac] sm:$0xf]  ;;  %v11202_v29 = vld [vmem:[%s14657_s22 + $0xb58] sm:$0xf0] }
 0x3e0   : > { %6644 = vmatpush.bf16.msrb.mxu3 %v11713_v34  ;;  %v6390_v46 = vpop.f32.mrf.mxu3  ;;  %v10994_v34 = vld [vmem:[%s14657_s22 + $0x9b8] sm:$0xf0]  ;;  %v10869_v45 = vor.u32 %v13618_v36, %v10866_v50  ;;  %v13702_v2 = vld [vmem:[%s14657_s22 + $0xb4c] sm:$0xf] }
 0x3e1   : > { %6606 = vmatpush.bf16.msrb.mxu0 %v11313_v47  ;;  %v10997_v37 = vor.u32 %v13650_v39, %v10994_v34  ;;  %v13614_v47 = vld [vmem:[%s14657_s22 + $0x88c] sm:$0xf]  ;;  %v10802_v39 = vld [vmem:[%s14657_s22 + $0x838] sm:$0xf0]  ;;  %v11205_v22 = vor.u32 %v13702_v2, %v11202_v29 }
 0x3e2   : > { %v13670_v46 = vld [vmem:[%s14657_s22 + $0xa4c] sm:$0xf]  ;;  %v10930_v31 = vld [vmem:[%s14657_s22 + $0x938] sm:$0xf0] }
 0x3e3   : > { %6619 = vmatpush.bf16.msrb.mxu1 %v11441_v52  ;;  %6632 = vmatpush.bf16.msrb.mxu2 %v11569_v3  ;;  %v10978_v52 = vld [vmem:[%s14657_s22 + $0x998] sm:$0xf0]  ;;  %v13678_v3 = vld [vmem:[%s14657_s22 + $0xa8c] sm:$0xf] }
 0x3e4   : > { %6645 = vmatpush.bf16.msrb.mxu3 %v11697_v63  ;;  %v10853_v63 = vor.u32 %v13614_v47, %v10850_v48  ;;  %v10981_v55 = vor.u32 %v13646_v49, %v10978_v52  ;;  %v11109_v56 = vor.u32 %v13678_v3, %v11106_v53  ;;  %v13602_v50 = vld [vmem:[%s14657_s22 + $0x82c] sm:$0xf]  ;;  %v11058_v44 = vld [vmem:[%s14657_s22 + $0xa38] sm:$0xf0] }
 0x3e5   : > { %6607 = vmatpush.bf16.msrb.mxu0 %v11297_v16  ;;  %v6401_v8 = vpop.f32.mrf.mxu0  ;;  %v11237_v16 = vor.u32 %v13710_v54, %v11234_v7  ;;  %v13598_v47 = vld [vmem:[%s14657_s22 + $0x80c] sm:$0xf]  ;;  %v10786_v48 = vld [vmem:[%s14657_s22 + $0x818] sm:$0xf0] }
 0x3e6   : > { %v6402_v19 = vadd.f32 %v6401_v8, %v16285_v40  ;;  %v10965_v40 = vor.u32 %v13642_v13, %v10962_v17  ;;  %v13630_v52 = vld [vmem:[%s14657_s22 + $0x90c] sm:$0xf]  ;;  %v10914_v3 = vld [vmem:[%s14657_s22 + $0x918] sm:$0xf0] }
 0x3e7   : > { %6620 = vmatpush.bf16.msrb.mxu1 %v11425_v10  ;;  %6633 = vmatpush.bf16.msrb.mxu2 %v11553_v14  ;;  %v6414_v15 = vpop.f32.mrf.mxu1  ;;  %v13706_v10 = vld [vmem:[%s14657_s22 + $0xb6c] sm:$0xf]  ;;  %v11218_v14 = vld [vmem:[%s14657_s22 + $0xb78] sm:$0xf0] }
 0x3e8   : > { %6646 = vmatpush.bf16.msrb.mxu3 %v11681_v23  ;;  %6608 = vmatmul.bf16.vlgmr.msrb.gmra.mxu0 %v16029_v4  ;;  %v6415_v20 = vadd.f32 %v6414_v15, %v6402_v19  ;;  %v11093_v23 = vor.u32 %v13674_v0, %v11090_v5  ;;  %v11221_v57 = vor.u32 %v13706_v10, %v11218_v14  ;;  %v13662_v53 = vld [vmem:[%s14657_s22 + $0xa0c] sm:$0xf]  ;;  %v11410_v12 = vld [vmem:[%s14657_s22 + $0xcf8] sm:$0xf0] }
 0x3e9   : > { %6652 = vmatpush.bf16.msra.mxu0 %v10901_v24  ;;  %v13606_v24 = vld [vmem:[%s14657_s22 + $0x84c] sm:$0xf]  ;;  %v10789_v19 = vor.u32 %v13598_v47, %v10786_v48  ;;  %v11538_v15 = vld [vmem:[%s14657_s22 + $0xdf8] sm:$0xf0]  ;;  %v10917_v0 = vor.u32 %v13630_v52, %v10914_v3 }
 0x3ea   : > { %6634 = vmatmul.bf16.vlgmr.msrb.gmra.mxu2 %v16025_v60  ;;  %6621 = vmatmul.bf16.vlgmr.msrb.gmra.mxu1 %v16033_v11  ;;  %v13694_v8 = vld [vmem:[%s14657_s22 + $0xb0c] sm:$0xf]  ;;  %v11666_v17 = vld [vmem:[%s14657_s22 + $0xef8] sm:$0xf0] }
 0x3eb   : > { %6665 = vmatpush.bf16.msra.mxu1 %v11029_v61  ;;  %6678 = vmatpush.bf16.msra.mxu2 %v11157_v25  ;;  %v10818_v61 = vld [vmem:[%s14657_s22 + $0x858] sm:$0xf0]  ;;  %v13638_v25 = vld [vmem:[%s14657_s22 + $0x94c] sm:$0xf] }
 0x3ec   : > { %6691 = vmatpush.bf16.msra.mxu3 %v11285_v26  ;;  %v11074_v26 = vld [vmem:[%s14657_s22 + $0xa58] sm:$0xf0]  ;;  %v10821_v30 = vor.u32 %v13606_v24, %v10818_v61  ;;  %v13754_v9 = vld [vmem:[%s14657_s22 + $0xcec] sm:$0xf] }
 0x3ed   : > { %6647 = vmatmul.bf16.vlgmr.msrb.gmra.mxu3 %v16031_v28  ;;  %6653 = vmatpush.bf16.msra.mxu0 %v10885_v32  ;;  %v6427_v18 = vpop.f32.mrf.mxu2  ;;  %v11077_v36 = vor.u32 %v13670_v46, %v11074_v26  ;;  %v13786_v13 = vld [vmem:[%s14657_s22 + $0xdec] sm:$0xf]  ;;  %v11794_v14 = vld [vmem:[%s14657_s22 + $0xff8] sm:$0xf0] }
 0x3ee   : > { %v6428_v27 = vadd.f32 %v6427_v18, %v6415_v20  ;;  %v13850_v10 = vld [vmem:[%s14657_s22 + $0xfec] sm:$0xf]  ;;  %v11394_v61 = vld [vmem:[%s14657_s22 + $0xcd8] sm:$0xf0] }
 0x3ef   : > { %6666 = vmatpush.bf16.msra.mxu1 %v11013_v33  ;;  %6679 = vmatpush.bf16.msra.mxu2 %v11141_v35  ;;  %v6403_v33 = vpop.f32.mrf.mxu0  ;;  %v10949_v35 = vor.u32 %v13638_v25, %v10946_v43  ;;  %v6416_v34 = vpop.f32.mrf.mxu1  ;;  %v13750_v24 = vld [vmem:[%s14657_s22 + $0xccc] sm:$0xf]  ;;  %v11797_v18 = vor.u32 %v13850_v10, %v11794_v14  ;;  %v11650_v46 = vld [vmem:[%s14657_s22 + $0xed8] sm:$0xf0] }
 0x3f0   : > { %6692 = vmatpush.bf16.msra.mxu3 %v11269_v41  ;;  %v6440_v62 = vpop.f32.mrf.mxu3  ;;  %v13634_v41 = vld [vmem:[%s14657_s22 + $0x92c] sm:$0xf]  ;;  %v11378_v33 = vld [vmem:[%s14657_s22 + $0xcb8] sm:$0xf0] }
 0x3f1   : > { %6654 = vmatpush.bf16.msra.mxu0 %v10869_v45  ;;  %v16346_v32 = vadd.f32 %v6440_v62, %v6428_v27  ;;  %v13698_v45 = vld [vmem:[%s14657_s22 + $0xb2c] sm:$0xf]  ;;  %v10933_v49 = vor.u32 %v13634_v41, %v10930_v31  ;;  %v11778_v27 = vld [vmem:[%s14657_s22 + $0xfd8] sm:$0xf0]  ;;  %v11397_v62 = vor.u32 %v13750_v24, %v11394_v61 }
 0x3f2   : > { %v13782_v25 = vld [vmem:[%s14657_s22 + $0xdcc] sm:$0xf]  ;;  %v11634_v41 = vld [vmem:[%s14657_s22 + $0xeb8] sm:$0xf0] }
 0x3f3   : > { %6667 = vmatpush.bf16.msra.mxu1 %v10997_v37  ;;  %6680 = vmatpush.bf16.msra.mxu2 %v11125_v38  ;;  %v11186_v37 = vld [vmem:[%s14657_s22 + $0xb38] sm:$0xf0]  ;;  %v10805_v38 = vor.u32 %v13602_v50, %v10802_v39  ;;  %v13814_v43 = vld [vmem:[%s14657_s22 + $0xecc] sm:$0xf] }
 0x3f4   : > { %6693 = vmatpush.bf16.msra.mxu3 %v11253_v51  ;;  %v11061_v51 = vor.u32 %v13666_v42, %v11058_v44  ;;  %v11189_v7 = vor.u32 %v13698_v45, %v11186_v37  ;;  %v13846_v26 = vld [vmem:[%s14657_s22 + $0xfcc] sm:$0xf]  ;;  %v11653_v29 = vor.u32 %v13814_v43, %v11650_v46  ;;  %v11506_v50 = vld [vmem:[%s14657_s22 + $0xdb8] sm:$0xf0] }
 0x3f5   : > { %6655 = vmatpush.bf16.msra.mxu0 %v10853_v63  ;;  %v6429_v54 = vpop.f32.mrf.mxu2  ;;  %v11042_v63 = vld [vmem:[%s14657_s22 + $0xa18] sm:$0xf0]  ;;  %v13810_v39 = vld [vmem:[%s14657_s22 + $0xeac] sm:$0xf] }
 0x3f6   : > { %v11045_v5 = vor.u32 %v13662_v53, %v11042_v63  ;;  %v13842_v34 = vld [vmem:[%s14657_s22 + $0xfac] sm:$0xf]  ;;  %v11637_v44 = vor.u32 %v13810_v39, %v11634_v41  ;;  %v11362_v45 = vld [vmem:[%s14657_s22 + $0xc98] sm:$0xf0] }
 0x3f7   : > { %6668 = vmatpush.bf16.msra.mxu1 %v10981_v55  ;;  %6681 = vmatpush.bf16.msra.mxu2 %v11109_v56  ;;  %v11170_v55 = vld [vmem:[%s14657_s22 + $0xb18] sm:$0xf0]  ;;  %v13774_v37 = vld [vmem:[%s14657_s22 + $0xd8c] sm:$0xf] }
 0x3f8   : > { %6694 = vmatpush.bf16.msra.mxu3 %v11237_v16  ;;  %v6442_v56 = vpop.f32.mrf.mxu3  ;;  %v13818_v16 = vld [vmem:[%s14657_s22 + $0xeec] sm:$0xf]  ;;  %v11173_v20 = vor.u32 %v13694_v8, %v11170_v55  ;;  %v11618_v47 = vld [vmem:[%s14657_s22 + $0xe98] sm:$0xf0] }
 0x3f9   : > { %6656 = vmatpush.bf16.msra.mxu0 %v10837_v21  ;;  %v11413_v21 = vor.u32 %v13754_v9, %v11410_v12  ;;  %v13838_v48 = vld [vmem:[%s14657_s22 + $0xf8c] sm:$0xf]  ;;  %v11346_v54 = vld [vmem:[%s14657_s22 + $0xc78] sm:$0xf0] }
 0x3fa   : > { %v13738_v53 = vld [vmem:[%s14657_s22 + $0xc6c] sm:$0xf]  ;;  %v11474_v55 = vld [vmem:[%s14657_s22 + $0xd78] sm:$0xf0] }
 0x3fb   : > { %6669 = vmatpush.bf16.msra.mxu1 %v10965_v40  ;;  %6682 = vmatpush.bf16.msra.mxu2 %v11093_v23  ;;  %v11541_v40 = vor.u32 %v13786_v13, %v11538_v15  ;;  %v11669_v23 = vor.u32 %v13818_v16, %v11666_v17  ;;  %v13802_v56 = vld [vmem:[%s14657_s22 + $0xe6c] sm:$0xf]  ;;  %v11602_v9 = vld [vmem:[%s14657_s22 + $0xe78] sm:$0xf0]  ;;  %v11349_v15 = vor.u32 %v13738_v53, %v11346_v54  ;;  %v13403_v53 = vld [vmem:[%s14657_s22 + $0x1ec] sm:$0xf0] }
 0x3fc   : > { %6695 = vmatpush.bf16.msra.mxu3 %v11221_v57  ;;  %v11522_v57 = vld [vmem:[%s14657_s22 + $0xdd8] sm:$0xf0]  ;;  %v13834_v13 = vld [vmem:[%s14657_s22 + $0xf6c] sm:$0xf]  ;;  %v11605_v17 = vor.u32 %v13802_v56, %v11602_v9  ;;  %v12168_v54 = vld [vmem:[%s14657_s22 + $0x2e0] sm:$0xf] }
 0x3fd   : > { %6657 = vmatpush.bf16.msra.mxu0 %v10821_v30  ;;  %v11525_v2 = vor.u32 %v13782_v25, %v11522_v57  ;;  %v13746_v30 = vld [vmem:[%s14657_s22 + $0xcac] sm:$0xf]  ;;  %v11698_v41 = vld [vmem:[%s14657_s22 + $0xf38] sm:$0xf0]  ;;  %v13467_v56 = vld [vmem:[%s14657_s22 + $0x3ec] sm:$0xf0] }
 0x3fe   : > { %v11381_v31 = vor.u32 %v13746_v30, %v11378_v33  ;;  %v13766_v10 = vld [vmem:[%s14657_s22 + $0xd4c] sm:$0xf] }
 0x3ff   : > { %6670 = vmatpush.bf16.msra.mxu1 %v10949_v35  ;;  %6683 = vmatpush.bf16.msra.mxu2 %v11077_v36  ;;  %v13778_v35 = vld [vmem:[%s14657_s22 + $0xdac] sm:$0xf]  ;;  %v11781_v36 = vor.u32 %v13846_v26, %v11778_v27 }
 0x400   : > { %6696 = vmatpush.bf16.msra.mxu3 %v11205_v22  ;;  %v11762_v22 = vld [vmem:[%s14657_s22 + $0xfb8] sm:$0xf0]  ;;  %v11509_v42 = vor.u32 %v13778_v35, %v11506_v50  ;;  %v13830_v25 = vld [vmem:[%s14657_s22 + $0xf4c] sm:$0xf] }
 0x401   : > { %6658 = vmatpush.bf16.msra.mxu0 %v10805_v38  ;;  %v11490_v38 = vld [vmem:[%s14657_s22 + $0xd98] sm:$0xf0]  ;;  %v13826_v39 = vld [vmem:[%s14657_s22 + $0xf2c] sm:$0xf] }
 0x402   : > { %v11493_v52 = vor.u32 %v13774_v37, %v11490_v38  ;;  %v11442_v35 = vld [vmem:[%s14657_s22 + $0xd38] sm:$0xf0]  ;;  %v13790_v37 = vld [vmem:[%s14657_s22 + $0xe0c] sm:$0xf]  ;;  %v11701_v38 = vor.u32 %v13826_v39, %v11698_v41  ;;  %v13423_v39 = vld [vmem:[%s14657_s22 + $0x28c] sm:$0xf0] }
 0x403   : > { %6671 = vmatpush.bf16.msra.mxu1 %v10933_v49  ;;  %6684 = vmatpush.bf16.msra.mxu2 %v11061_v51  ;;  %v11746_v49 = vld [vmem:[%s14657_s22 + $0xf98] sm:$0xf0]  ;;  %v12248_v41 = vld [vmem:[%s14657_s22 + $0x380] sm:$0xf] }
 0x404   : > { %6697 = vmatpush.bf16.msra.mxu3 %v11189_v7  ;;  %v13770_v7 = vld [vmem:[%s14657_s22 + $0xd6c] sm:$0xf]  ;;  %v11749_v8 = vor.u32 %v13838_v48, %v11746_v49  ;;  %v11570_v50 = vld [vmem:[%s14657_s22 + $0xe38] sm:$0xf0] }
 0x405   : > { %6659 = vmatpush.bf16.msra.mxu0 %v10789_v19  ;;  %v6453_v51 = vpop.f32.mrf.mxu0  ;;  %v11730_v19 = vld [vmem:[%s14657_s22 + $0xf78] sm:$0xf0]  ;;  %v11477_v16 = vor.u32 %v13770_v7, %v11474_v55  ;;  %v13435_v7 = vld [vmem:[%s14657_s22 + $0x2ec] sm:$0xf0]  ;;  %v12296_v55 = vld [vmem:[%s14657_s22 + $0x3e0] sm:$0xf] }
 0x406   : > { %v11682_v48 = vld [vmem:[%s14657_s22 + $0xf18] sm:$0xf0] }
 0x407   : > { %6672 = vmatpush.bf16.msra.mxu1 %v10917_v0  ;;  %6685 = vmatpush.bf16.msra.mxu2 %v11045_v5  ;;  %v6466_v63 = vpop.f32.mrf.mxu1  ;;  %v13734_v0 = vld [vmem:[%s14657_s22 + $0xc4c] sm:$0xf]  ;;  %v11330_v5 = vld [vmem:[%s14657_s22 + $0xc58] sm:$0xf0] }
 0x408   : > { %6698 = vmatpush.bf16.msra.mxu3 %v11173_v20  ;;  %6660 = vmatmul.bf16.vlgmr.msra.gmra.mxu0 %v15965_v6  ;;  %v11765_v6 = vor.u32 %v13842_v34, %v11762_v22  ;;  %v6467_v12 = vadd.f32 %v6466_v63, %v6453_v51  ;;  %v11733_v20 = vor.u32 %v13834_v13, %v11730_v19  ;;  %v13726_v22 = vld [vmem:[%s14657_s22 + $0xc0c] sm:$0xf]  ;;  %v13371_v51 = vld [vmem:[%s14657_s22 + $0xec] sm:$0xf0] }
 0x409   : > { %6704 = vmatpush.bf16.msrb.mxu0 %v11413_v21  ;;  %v11458_v21 = vld [vmem:[%s14657_s22 + $0xd58] sm:$0xf0]  ;;  %v11333_v57 = vor.u32 %v13734_v0, %v11330_v5  ;;  %v12169_v19 = vor.u32 %v13435_v7, %v12168_v54  ;;  %v12297_v0 = vor.u32 %v13467_v56, %v12296_v55  ;;  %v13399_v5 = vld [vmem:[%s14657_s22 + $0x1cc] sm:$0xf0]  ;;  %v11960_v7 = vld [vmem:[%s14657_s22 + $0x140] sm:$0xf] }
 0x40a   : > { %6686 = vmatmul.bf16.vlgmr.msra.gmra.mxu2 %v15957_v1  ;;  %6673 = vmatmul.bf16.vlgmr.msra.gmra.mxu1 %v15972_v59  ;;  %v13742_v1 = vld [vmem:[%s14657_s22 + $0xc8c] sm:$0xf]  ;;  %v11461_v26 = vor.u32 %v13766_v10, %v11458_v21  ;;  %v12152_v10 = vld [vmem:[%s14657_s22 + $0x2c0] sm:$0xf]  ;;  %v13463_v21 = vld [vmem:[%s14657_s22 + $0x3cc] sm:$0xf0] }
 0x40b   : > { %6717 = vmatpush.bf16.msrb.mxu1 %v11541_v40  ;;  %6730 = vmatpush.bf16.msrb.mxu2 %v11669_v23  ;;  %v11365_v59 = vor.u32 %v13742_v1, %v11362_v45  ;;  %v13798_v40 = vld [vmem:[%s14657_s22 + $0xe4c] sm:$0xf]  ;;  %v11586_v23 = vld [vmem:[%s14657_s22 + $0xe58] sm:$0xf0]  ;;  %v13351_v54 = vld [vmem:[%s14657_s22 + $0x4c] sm:$0xf0] }
 0x40c   : > { %6743 = vmatpush.bf16.msrb.mxu3 %v11797_v18  ;;  %v11714_v18 = vld [vmem:[%s14657_s22 + $0xf58] sm:$0xf0]  ;;  %v11589_v27 = vor.u32 %v13798_v40, %v11586_v23  ;;  %v13758_v1 = vld [vmem:[%s14657_s22 + $0xd0c] sm:$0xf]  ;;  %v13383_v55 = vld [vmem:[%s14657_s22 + $0x14c] sm:$0xf0] }
 0x40d   : > { %6699 = vmatmul.bf16.vlgmr.msra.gmra.mxu3 %v15970_v58  ;;  %6705 = vmatpush.bf16.msrb.mxu0 %v11397_v62  ;;  %v13806_v58 = vld [vmem:[%s14657_s22 + $0xe8c] sm:$0xf]  ;;  %v6479_v14 = vpop.f32.mrf.mxu2  ;;  %v6455_v46 = vpop.f32.mrf.mxu0  ;;  %v11717_v33 = vor.u32 %v13830_v25, %v11714_v18  ;;  %v11426_v45 = vld [vmem:[%s14657_s22 + $0xd18] sm:$0xf0]  ;;  %v13363_v25 = vld [vmem:[%s14657_s22 + $0xac] sm:$0xf0] }
 0x40e   : > { %v11621_v3 = vor.u32 %v13806_v58, %v11618_v47  ;;  %v6480_v24 = vadd.f32 %v6479_v14, %v6467_v12  ;;  %v13730_v62 = vld [vmem:[%s14657_s22 + $0xc2c] sm:$0xf]  ;;  %v11554_v58 = vld [vmem:[%s14657_s22 + $0xe18] sm:$0xf0]  ;;  %v11429_v63 = vor.u32 %v13758_v1, %v11426_v45  ;;  %v13431_v14 = vld [vmem:[%s14657_s22 + $0x2cc] sm:$0xf0] }
 0x40f   : > { %6718 = vmatpush.bf16.msrb.mxu1 %v11525_v2  ;;  %6731 = vmatpush.bf16.msrb.mxu2 %v11653_v29  ;;  %v11314_v2 = vld [vmem:[%s14657_s22 + $0xc38] sm:$0xf0]  ;;  %v13762_v29 = vld [vmem:[%s14657_s22 + $0xd2c] sm:$0xf]  ;;  %v6468_v30 = vpop.f32.mrf.mxu1  ;;  %v12008_v18 = vld [vmem:[%s14657_s22 + $0x1a0] sm:$0xf] }
 0x410   : > { %6744 = vmatpush.bf16.msrb.mxu3 %v11781_v36  ;;  %v6492_v61 = vpop.f32.mrf.mxu3  ;;  %v13794_v36 = vld [vmem:[%s14657_s22 + $0xe2c] sm:$0xf]  ;;  %v11317_v34 = vor.u32 %v13730_v62, %v11314_v2  ;;  %v13395_v46 = vld [vmem:[%s14657_s22 + $0x1ac] sm:$0xf0]  ;;  %v12264_v62 = vld [vmem:[%s14657_s22 + $0x3a0] sm:$0xf] }
 0x411   : > { %6706 = vmatpush.bf16.msrb.mxu0 %v11381_v31  ;;  %v16416_v43 = vadd.f32 %v6492_v61, %v6480_v24  ;;  %v11298_v31 = vld [vmem:[%s14657_s22 + $0xc18] sm:$0xf0]  ;;  %v13822_v47 = vld [vmem:[%s14657_s22 + $0xf0c] sm:$0xf]  ;;  %v12153_v24 = vor.u32 %v13431_v14, %v12152_v10  ;;  %v11880_v61 = vld [vmem:[%s14657_s22 + $0xa0] sm:$0xf] }
 0x412   : > { %v11685_v9 = vor.u32 %v13822_v47, %v11682_v48  ;;  %v13459_v2 = vld [vmem:[%s14657_s22 + $0x3ac] sm:$0xf0]  ;;  %v11976_v45 = vld [vmem:[%s14657_s22 + $0x160] sm:$0xf] }
 0x413   : > { %6719 = vmatpush.bf16.msrb.mxu1 %v11509_v42  ;;  %6732 = vmatpush.bf16.msrb.mxu2 %v11637_v44  ;;  %v11445_v42 = vor.u32 %v13762_v29, %v11442_v35  ;;  %v11573_v44 = vor.u32 %v13794_v36, %v11570_v50  ;;  %v11881_v29 = vor.u32 %v13363_v25, %v11880_v61  ;;  %v13359_v35 = vld [vmem:[%s14657_s22 + $0x8c] sm:$0xf0]  ;;  %v12120_v50 = vld [vmem:[%s14657_s22 + $0x280] sm:$0xf] }
 0x414   : > { %6745 = vmatpush.bf16.msrb.mxu3 %v11765_v6  ;;  %v13391_v36 = vld [vmem:[%s14657_s22 + $0x18c] sm:$0xf0]  ;;  %v12104_v47 = vld [vmem:[%s14657_s22 + $0x260] sm:$0xf] }
 0x415   : > { %6707 = vmatpush.bf16.msrb.mxu0 %v11365_v59  ;;  %v6481_v6 = vpop.f32.mrf.mxu2  ;;  %v11912_v59 = vld [vmem:[%s14657_s22 + $0xe0] sm:$0xf]  ;;  %v13355_v1 = vld [vmem:[%s14657_s22 + $0x6c] sm:$0xf0] }
 0x416   : > { %v11913_v12 = vor.u32 %v13371_v51, %v11912_v59  ;;  %v13419_v48 = vld [vmem:[%s14657_s22 + $0x26c] sm:$0xf0]  ;;  %v12088_v56 = vld [vmem:[%s14657_s22 + $0x240] sm:$0xf] }
 0x417   : > { %6720 = vmatpush.bf16.msrb.mxu1 %v11493_v52  ;;  %6733 = vmatpush.bf16.msrb.mxu2 %v11621_v3  ;;  %v12040_v52 = vld [vmem:[%s14657_s22 + $0x1e0] sm:$0xf]  ;;  %v11301_v3 = vor.u32 %v13726_v22, %v11298_v31  ;;  %v13451_v59 = vld [vmem:[%s14657_s22 + $0x36c] sm:$0xf0] }
 0x418   : > { %6746 = vmatpush.bf16.msrb.mxu3 %v11749_v8  ;;  %v6494_v49 = vpop.f32.mrf.mxu3  ;;  %v11557_v8 = vor.u32 %v13790_v37, %v11554_v58  ;;  %v12041_v13 = vor.u32 %v13403_v53, %v12040_v52  ;;  %v13387_v58 = vld [vmem:[%s14657_s22 + $0x16c] sm:$0xf0]  ;;  %v11832_v53 = vld [vmem:[%s14657_s22 + $0x40] sm:$0xf] }
 0x419   : > { %6708 = vmatpush.bf16.msrb.mxu0 %v11349_v15  ;;  %v11896_v15 = vld [vmem:[%s14657_s22 + $0xc0] sm:$0xf]  ;;  %v13411_v25 = vld [vmem:[%s14657_s22 + $0x22c] sm:$0xf0] }
 0x41a   : > { %v12232_v49 = vld [vmem:[%s14657_s22 + $0x360] sm:$0xf] }
 0x41b   : > { %6721 = vmatpush.bf16.msrb.mxu1 %v11477_v16  ;;  %6734 = vmatpush.bf16.msrb.mxu2 %v11605_v17  ;;  %v13367_v16 = vld [vmem:[%s14657_s22 + $0xcc] sm:$0xf0]  ;;  %v12024_v17 = vld [vmem:[%s14657_s22 + $0x1c0] sm:$0xf] }
 0x41c   : > { %6747 = vmatpush.bf16.msrb.mxu3 %v11733_v20  ;;  %v12280_v20 = vld [vmem:[%s14657_s22 + $0x3c0] sm:$0xf]  ;;  %v11897_v40 = vor.u32 %v13367_v16, %v11896_v15  ;;  %v12025_v23 = vor.u32 %v13399_v5, %v12024_v17  ;;  %v13447_v15 = vld [vmem:[%s14657_s22 + $0x34c] sm:$0xf0]  ;;  %v11833_v16 = vor.u32 %v13351_v54, %v11832_v53  ;;  %v11961_v5 = vor.u32 %v13383_v55, %v11960_v7 }
 0x41d   : > { %6709 = vmatpush.bf16.msrb.mxu0 %v11333_v57  ;;  %v12281_v57 = vor.u32 %v13463_v21, %v12280_v20  ;;  %v11816_v14 = vld [vmem:[%s14657_s22 + $0x20] sm:$0xf]  ;;  %v13347_v20 = vld [vmem:[%s14657_s22 + $0x2c] sm:$0xf0] }
 0x41e   : > { %v11944_v21 = vld [vmem:[%s14657_s22 + $0x120] sm:$0xf]  ;;  %v13527_v7 = vld [vmem:[%s14657_s22 + $0x5cc] sm:$0xf0] }
 0x41f   : > { %6722 = vmatpush.bf16.msrb.mxu1 %v11461_v26  ;;  %6735 = vmatpush.bf16.msrb.mxu2 %v11589_v27  ;;  %v12136_v26 = vld [vmem:[%s14657_s22 + $0x2a0] sm:$0xf]  ;;  %v13427_v27 = vld [vmem:[%s14657_s22 + $0x2ac] sm:$0xf0] }
 0x420   : > { %6748 = vmatpush.bf16.msrb.mxu3 %v11717_v33  ;;  %v12137_v30 = vor.u32 %v13427_v27, %v12136_v26  ;;  %v11864_v33 = vld [vmem:[%s14657_s22 + $0x80] sm:$0xf]  ;;  %v13343_v27 = vld [vmem:[%s14657_s22 + $0xc] sm:$0xf0] }
 0x421   : > { %6710 = vmatpush.bf16.msrb.mxu0 %v11317_v34  ;;  %v13455_v34 = vld [vmem:[%s14657_s22 + $0x38c] sm:$0xf0]  ;;  %v12072_v61 = vld [vmem:[%s14657_s22 + $0x220] sm:$0xf] }
 0x422   : > { %v11800_v26 = vld [vmem:[%s14657_s22] sm:$0xf] }
 0x423   : > { %6723 = vmatpush.bf16.msrb.mxu1 %v11445_v42  ;;  %6736 = vmatpush.bf16.msrb.mxu2 %v11573_v44  ;;  %v12121_v42 = vor.u32 %v13423_v39, %v12120_v50  ;;  %v11848_v44 = vld [vmem:[%s14657_s22 + $0x60] sm:$0xf] }
 0x424   : > { %6749 = vmatpush.bf16.msrb.mxu3 %v11701_v38  ;;  %v12249_v38 = vor.u32 %v13455_v34, %v12248_v41  ;;  %v11849_v52 = vor.u32 %v13355_v1, %v11848_v44  ;;  %v12424_v39 = vld [vmem:[%s14657_s22 + $0x4e0] sm:$0xf]  ;;  %v13499_v41 = vld [vmem:[%s14657_s22 + $0x4ec] sm:$0xf0] }
 0x425   : > { %6711 = vmatpush.bf16.msrb.mxu0 %v11301_v3  ;;  %v6505_v22 = vpop.f32.mrf.mxu0  ;;  %v12105_v3 = vor.u32 %v13419_v48, %v12104_v47  ;;  %v12552_v34 = vld [vmem:[%s14657_s22 + $0x5e0] sm:$0xf]  ;;  %v5030_v47 = vld [vmem:[#allocation8 + $0x10] sm:$0xff] }
 0x426   : > { %v6506_v37 = vadd.f32 %v6505_v22, %v16416_v43  ;;  %v11977_v43 = vor.u32 %v13387_v58, %v11976_v45  ;;  %v13531_v22 = vld [vmem:[%s14657_s22 + $0x5ec] sm:$0xf0]  ;;  %v12808_v45 = vld [vmem:[%s14657_s22 + $0x7e0] sm:$0xf]  ;;  %v12425_v58 = vor.u32 %v13499_v41, %v12424_v39  ;;  %v16521_v55 = vpack.c.bf16 %v5030_v47, %v5030_v47 }
 0x427   : > { %6724 = vmatpush.bf16.msrb.mxu1 %v11429_v63  ;;  %6737 = vmatpush.bf16.msrb.mxu2 %v11557_v8  ;;  %v6518_v6 = vpop.f32.mrf.mxu1  ;;  %v12233_v8 = vor.u32 %v13451_v59, %v12232_v49  ;;  %v5029_v48 = vld [vmem:[#allocation8 + $0x8] sm:$0xff]  ;;  %v5031_v49 = vld [vmem:[#allocation8 + $0x18] sm:$0xff]  ;;  %v12553_v59 = vor.u32 %v13531_v22, %v12552_v34 }
 0x428   : > { %6750 = vmatpush.bf16.msrb.mxu3 %v11685_v9  ;;  %6712 = vmatmul.bf16.vlgmr.msrb.gmra.mxu0 %v16029_v4  ;;  %v11992_v4 = vld [vmem:[%s14657_s22 + $0x180] sm:$0xf]  ;;  %v6519_v51 = vadd.f32 %v6518_v6, %v6506_v37  ;;  %v13415_v9 = vld [vmem:[%s14657_s22 + $0x24c] sm:$0xf0]  ;;  %v5028_v6 = vld [vmem:[#allocation8] sm:$0xff] }
 0x429   : > { %8036 = vmatpush.bf16.msra.mxu0 %v11913_v12  ;;  %v11993_v31 = vor.u32 %v13391_v36, %v11992_v4  ;;  %v12089_v10 = vor.u32 %v13415_v9, %v12088_v56  ;;  %v13407_v4 = vld [vmem:[%s14657_s22 + $0x20c] sm:$0xf0]  ;;  %v16516_v54 = vpack.c.bf16 %v5028_v6, %v5028_v6  ;;  %v16523_v56 = vpack.c.bf16 %v5029_v48, %v5029_v48  ;;  %v12792_v9 = vld [vmem:[%s14657_s22 + $0x7c0] sm:$0xf] }
 0x42a   : > { %6738 = vmatmul.bf16.vlgmr.msrb.gmra.mxu2 %v16025_v60  ;;  %6725 = vmatmul.bf16.vlgmr.msrb.gmra.mxu1 %v16033_v11  ;;  %v12009_v60 = vor.u32 %v13395_v46, %v12008_v18  ;;  %v11865_v11 = vor.u32 %v13359_v35, %v11864_v33  ;;  %v12200_v18 = vld [vmem:[%s14657_s22 + $0x320] sm:$0xf]  ;;  %v11817_v46 = vor.u32 %v13347_v20, %v11816_v14  ;;  %v13439_v36 = vld [vmem:[%s14657_s22 + $0x30c] sm:$0xf0] }
 0x42b   : > { %8049 = vmatpush.bf16.msra.mxu1 %v12041_v13  ;;  %8062 = vmatpush.bf16.msra.mxu2 %v12169_v19  ;;  %v12216_v19 = vld [vmem:[%s14657_s22 + $0x340] sm:$0xf]  ;;  %v13595_v37 = vld [vmem:[%s14657_s22 + $0x7ec] sm:$0xf0] }
 0x42c   : > { %8075 = vmatpush.bf16.msra.mxu3 %v12297_v0  ;;  %v12809_v53 = vor.u32 %v13595_v37, %v12808_v45  ;;  %v13523_v20 = vld [vmem:[%s14657_s22 + $0x5ac] sm:$0xf0]  ;;  %v12488_v39 = vld [vmem:[%s14657_s22 + $0x560] sm:$0xf] }
 0x42d   : > { %6751 = vmatmul.bf16.vlgmr.msrb.gmra.mxu3 %v16031_v28  ;;  %8037 = vmatpush.bf16.msra.mxu0 %v11897_v40  ;;  %v12265_v28 = vor.u32 %v13459_v2, %v12264_v62  ;;  %v6531_v63 = vpop.f32.mrf.mxu2  ;;  %v6507_v0 = vpop.f32.mrf.mxu0  ;;  %v12073_v2 = vor.u32 %v13411_v25, %v12072_v61  ;;  %v12616_v22 = vld [vmem:[%s14657_s22 + $0x660] sm:$0xf] }
 0x42e   : > { %v6532_v12 = vadd.f32 %v6531_v63, %v6519_v51  ;;  %v12664_v63 = vld [vmem:[%s14657_s22 + $0x6c0] sm:$0xf] }
 0x42f   : > { %8050 = vmatpush.bf16.msra.mxu1 %v12025_v23  ;;  %8063 = vmatpush.bf16.msra.mxu2 %v12153_v24  ;;  %v6520_v40 = vpop.f32.mrf.mxu1  ;;  %v12217_v23 = vor.u32 %v13447_v15, %v12216_v19  ;;  %v13379_v24 = vld [vmem:[%s14657_s22 + $0x12c] sm:$0xf0]  ;;  %v12392_v0 = vld [vmem:[%s14657_s22 + $0x4a0] sm:$0xf] }
 0x430   : > { %8076 = vmatpush.bf16.msra.mxu3 %v12281_v57  ;;  %v6544_v13 = vpop.f32.mrf.mxu3  ;;  %v13443_v57 = vld [vmem:[%s14657_s22 + $0x32c] sm:$0xf0]  ;;  %v11945_v62 = vor.u32 %v13379_v24, %v11944_v21  ;;  %v12648_v21 = vld [vmem:[%s14657_s22 + $0x6a0] sm:$0xf] }
 0x431   : > { %8038 = vmatpush.bf16.msra.mxu0 %v11881_v29  ;;  %v16487_v17 = vadd.f32 %v6544_v13, %v6532_v12  ;;  %v11928_v29 = vld [vmem:[%s14657_s22 + $0x100] sm:$0xf]  ;;  %v12201_v35 = vor.u32 %v13443_v57, %v12200_v18  ;;  %v13591_v12 = vld [vmem:[%s14657_s22 + $0x7cc] sm:$0xf0]  ;;  %v16527_v13 = vpack.c.bf16 %v5031_v49, %v5031_v49 }
 0x432   : > { %v12793_v14 = vor.u32 %v13591_v12, %v12792_v9  ;;  %v13555_v40 = vld [vmem:[%s14657_s22 + $0x6ac] sm:$0xf0]  ;;  %v12376_v57 = vld [vmem:[%s14657_s22 + $0x480] sm:$0xf] }
 0x433   : > { %8051 = vmatpush.bf16.msra.mxu1 %v12009_v60  ;;  %8064 = vmatpush.bf16.msra.mxu2 %v12137_v30  ;;  %v13375_v60 = vld [vmem:[%s14657_s22 + $0x10c] sm:$0xf0]  ;;  %v12056_v30 = vld [vmem:[%s14657_s22 + $0x200] sm:$0xf]  ;;  %v12649_v18 = vor.u32 %v13555_v40, %v12648_v21 }
 0x434   : > { %8077 = vmatpush.bf16.msra.mxu3 %v12265_v28  ;;  %v12184_v28 = vld [vmem:[%s14657_s22 + $0x300] sm:$0xf]  ;;  %v11929_v44 = vor.u32 %v13375_v60, %v11928_v29  ;;  %v12057_v1 = vor.u32 %v13407_v4, %v12056_v30  ;;  %v13587_v24 = vld [vmem:[%s14657_s22 + $0x7ac] sm:$0xf0] }
 0x435   : > { %8039 = vmatpush.bf16.msra.mxu0 %v11865_v11  ;;  %v6533_v33 = vpop.f32.mrf.mxu2  ;;  %v11801_v11 = vor.u32 %v13343_v27, %v11800_v26  ;;  %v12504_v26 = vld [vmem:[%s14657_s22 + $0x580] sm:$0xf]  ;;  %v13551_v29 = vld [vmem:[%s14657_s22 + $0x68c] sm:$0xf0] }
 0x436   : > { %v12760_v60 = vld [vmem:[%s14657_s22 + $0x780] sm:$0xf]  ;;  %v13583_v30 = vld [vmem:[%s14657_s22 + $0x78c] sm:$0xf0] }
 0x437   : > { %8052 = vmatpush.bf16.msra.mxu1 %v11993_v31  ;;  %8065 = vmatpush.bf16.msra.mxu2 %v12121_v42  ;;  %v12680_v31 = vld [vmem:[%s14657_s22 + $0x6e0] sm:$0xf]  ;;  %v13563_v42 = vld [vmem:[%s14657_s22 + $0x6ec] sm:$0xf0]  ;;  %v12761_v34 = vor.u32 %v13583_v30, %v12760_v60 }
 0x438   : > { %8078 = vmatpush.bf16.msra.mxu3 %v12249_v38  ;;  %v6546_v50 = vpop.f32.mrf.mxu3  ;;  %v12185_v38 = vor.u32 %v13439_v36, %v12184_v28  ;;  %v12681_v51 = vor.u32 %v13563_v42, %v12680_v31  ;;  %v12360_v36 = vld [vmem:[%s14657_s22 + $0x460] sm:$0xf]  ;;  %v13547_v31 = vld [vmem:[%s14657_s22 + $0x66c] sm:$0xf0] }
 0x439   : > { %8040 = vmatpush.bf16.msra.mxu0 %v11849_v52  ;;  %v12408_v52 = vld [vmem:[%s14657_s22 + $0x4c0] sm:$0xf]  ;;  %v13483_v50 = vld [vmem:[%s14657_s22 + $0x46c] sm:$0xf0]  ;;  %v12617_v6 = vor.u32 %v13547_v31, %v12616_v22  ;;  %v13465_v22 = vld [vmem:[%s14657_s22 + $0x3e4] sm:$0xf] }
 0x43a   : > { %v12361_v45 = vor.u32 %v13483_v50, %v12360_v36  ;;  %v12472_v47 = vld [vmem:[%s14657_s22 + $0x540] sm:$0xf]  ;;  %v13539_v21 = vld [vmem:[%s14657_s22 + $0x62c] sm:$0xf0]  ;;  %v12042_v50 = vld [vmem:[%s14657_s22 + $0x1f0] sm:$0xf0] }
 0x43b   : > { %8053 = vmatpush.bf16.msra.mxu1 %v11977_v43  ;;  %8066 = vmatpush.bf16.msra.mxu2 %v12105_v3  ;;  %v13495_v43 = vld [vmem:[%s14657_s22 + $0x4cc] sm:$0xf0]  ;;  %v12536_v3 = vld [vmem:[%s14657_s22 + $0x5c0] sm:$0xf]  ;;  %v12298_v31 = vld [vmem:[%s14657_s22 + $0x3f0] sm:$0xf0] }
 0x43c   : > { %8079 = vmatpush.bf16.msra.mxu3 %v12233_v8  ;;  %v13559_v8 = vld [vmem:[%s14657_s22 + $0x6cc] sm:$0xf0]  ;;  %v12409_v19 = vor.u32 %v13495_v43, %v12408_v52  ;;  %v12537_v15 = vor.u32 %v13527_v7, %v12536_v3  ;;  %v12712_v40 = vld [vmem:[%s14657_s22 + $0x720] sm:$0xf] }
 0x43d   : > { %8041 = vmatpush.bf16.msra.mxu0 %v11833_v16  ;;  %v12665_v16 = vor.u32 %v13559_v8, %v12664_v63  ;;  %v13543_v52 = vld [vmem:[%s14657_s22 + $0x64c] sm:$0xf0]  ;;  %v12696_v60 = vld [vmem:[%s14657_s22 + $0x700] sm:$0xf] }
 0x43e   : > { %v13575_v7 = vld [vmem:[%s14657_s22 + $0x74c] sm:$0xf0] }
 0x43f   : > { %8054 = vmatpush.bf16.msra.mxu1 %v11961_v5  ;;  %8067 = vmatpush.bf16.msra.mxu2 %v12089_v10  ;;  %v13491_v5 = vld [vmem:[%s14657_s22 + $0x4ac] sm:$0xf0]  ;;  %v12520_v10 = vld [vmem:[%s14657_s22 + $0x5a0] sm:$0xf] }
 0x440   : > { %8080 = vmatpush.bf16.msra.mxu3 %v12217_v23  ;;  %v12776_v23 = vld [vmem:[%s14657_s22 + $0x7a0] sm:$0xf]  ;;  %v12393_v61 = vor.u32 %v13491_v5, %v12392_v0  ;;  %v12521_v25 = vor.u32 %v13523_v20, %v12520_v10  ;;  %v13567_v30 = vld [vmem:[%s14657_s22 + $0x70c] sm:$0xf0] }
 0x441   : > { %8042 = vmatpush.bf16.msra.mxu0 %v11817_v46  ;;  %v13487_v46 = vld [vmem:[%s14657_s22 + $0x48c] sm:$0xf0]  ;;  %v12777_v27 = vor.u32 %v13587_v24, %v12776_v23  ;;  %v12456_v0 = vld [vmem:[%s14657_s22 + $0x520] sm:$0xf] }
 0x442   : > { %v12377_v33 = vor.u32 %v13487_v46, %v12376_v57  ;;  %v12584_v20 = vld [vmem:[%s14657_s22 + $0x620] sm:$0xf]  ;;  %v13571_v23 = vld [vmem:[%s14657_s22 + $0x72c] sm:$0xf0] }
 0x443   : > { %8055 = vmatpush.bf16.msra.mxu1 %v11945_v62  ;;  %8068 = vmatpush.bf16.msra.mxu2 %v12073_v2  ;;  %v13519_v62 = vld [vmem:[%s14657_s22 + $0x58c] sm:$0xf0]  ;;  %v12632_v2 = vld [vmem:[%s14657_s22 + $0x680] sm:$0xf]  ;;  %v12585_v57 = vor.u32 %v13539_v21, %v12584_v20  ;;  %v12010_v20 = vld [vmem:[%s14657_s22 + $0x1b0] sm:$0xf0] }
 0x444   : > { %8081 = vmatpush.bf16.msra.mxu3 %v12201_v35  ;;  %v12505_v4 = vor.u32 %v13519_v62, %v12504_v26  ;;  %v12633_v28 = vor.u32 %v13551_v29, %v12632_v2  ;;  %v12440_v46 = vld [vmem:[%s14657_s22 + $0x500] sm:$0xf]  ;;  %v13503_v26 = vld [vmem:[%s14657_s22 + $0x50c] sm:$0xf0]  ;;  %v12713_v2 = vor.u32 %v13571_v23, %v12712_v40  ;;  %v13425_v21 = vld [vmem:[%s14657_s22 + $0x2a4] sm:$0xf] }
 0x445   : > { %8043 = vmatpush.bf16.msra.mxu0 %v11801_v11  ;;  %v6557_v35 = vpop.f32.mrf.mxu0  ;;  %v13515_v11 = vld [vmem:[%s14657_s22 + $0x56c] sm:$0xf0]  ;;  %v12138_v40 = vld [vmem:[%s14657_s22 + $0x2b0] sm:$0xf0]  ;;  %v13457_v23 = vld [vmem:[%s14657_s22 + $0x3a4] sm:$0xf] }
 0x446   : > { %v12489_v37 = vor.u32 %v13515_v11, %v12488_v39  ;;  %v13535_v29 = vld [vmem:[%s14657_s22 + $0x60c] sm:$0xf0]  ;;  %v13433_v39 = vld [vmem:[%s14657_s22 + $0x2e4] sm:$0xf] }
 0x447   : > { %8056 = vmatpush.bf16.msra.mxu1 %v11929_v44  ;;  %8069 = vmatpush.bf16.msra.mxu2 %v12057_v1  ;;  %v6570_v41 = vpop.f32.mrf.mxu1  ;;  %v12744_v44 = vld [vmem:[%s14657_s22 + $0x760] sm:$0xf]  ;;  %v13579_v1 = vld [vmem:[%s14657_s22 + $0x76c] sm:$0xf0] }
 0x448   : > { %8082 = vmatpush.bf16.msra.mxu3 %v12185_v38  ;;  %8044 = vmatmul.bf16.vlgmr.msra.gmra.mxu0 %v16516_v54  ;;  %v6571_v42 = vadd.f32 %v6570_v41, %v6557_v35  ;;  %v12344_v38 = vld [vmem:[%s14657_s22 + $0x440] sm:$0xf]  ;;  %v12745_v49 = vor.u32 %v13579_v1, %v12744_v44  ;;  %v13369_v35 = vld [vmem:[%s14657_s22 + $0xe4] sm:$0xf]  ;;  %v12170_v41 = vld [vmem:[%s14657_s22 + $0x2f0] sm:$0xf0]  ;;  %v12697_v44 = vor.u32 %v13567_v30, %v12696_v60 }
 0x449   : > { %8088 = vmatpush.bf16.msrb.mxu0 %v12425_v58  ;;  %v13479_v58 = vld [vmem:[%s14657_s22 + $0x44c] sm:$0xf0]  ;;  %v13453_v60 = vld [vmem:[%s14657_s22 + $0x384] sm:$0xf]  ;;  %v12250_v30 = vld [vmem:[%s14657_s22 + $0x390] sm:$0xf0] }
 0x44a   : > { %8070 = vmatmul.bf16.vlgmr.msra.gmra.mxu2 %v16521_v55  ;;  %8057 = vmatmul.bf16.vlgmr.msra.gmra.mxu1 %v16523_v56  ;;  %v12345_v63 = vor.u32 %v13479_v58, %v12344_v38  ;;  %v12173_v58 = vor.u32 %v13433_v39, %v12170_v41  ;;  %v13385_v39 = vld [vmem:[%s14657_s22 + $0x164] sm:$0xf] }
 0x44b   : > { %8101 = vmatpush.bf16.msrb.mxu1 %v12553_v59  ;;  %8114 = vmatpush.bf16.msrb.mxu2 %v12681_v51  ;;  %v13511_v59 = vld [vmem:[%s14657_s22 + $0x54c] sm:$0xf0]  ;;  %v12600_v51 = vld [vmem:[%s14657_s22 + $0x640] sm:$0xf] }
 0x44c   : > { %8127 = vmatpush.bf16.msrb.mxu3 %v12809_v53  ;;  %v12728_v53 = vld [vmem:[%s14657_s22 + $0x740] sm:$0xf]  ;;  %v12473_v12 = vor.u32 %v13511_v59, %v12472_v47  ;;  %v13365_v47 = vld [vmem:[%s14657_s22 + $0xc4] sm:$0xf]  ;;  %v12301_v59 = vor.u32 %v13465_v22, %v12298_v31  ;;  %v11978_v22 = vld [vmem:[%s14657_s22 + $0x170] sm:$0xf0] }
 0x44d   : > { %8083 = vmatmul.bf16.vlgmr.msra.gmra.mxu3 %v16527_v13  ;;  %8089 = vmatpush.bf16.msrb.mxu0 %v12409_v19  ;;  %v6583_v48 = vpop.f32.mrf.mxu2  ;;  %v6559_v9 = vpop.f32.mrf.mxu0  ;;  %v12601_v19 = vor.u32 %v13543_v52, %v12600_v51  ;;  %v12729_v10 = vor.u32 %v13575_v7, %v12728_v53  ;;  %v12026_v52 = vld [vmem:[%s14657_s22 + $0x1d0] sm:$0xf0]  ;;  %v13417_v31 = vld [vmem:[%s14657_s22 + $0x264] sm:$0xf] }
 0x44e   : > { %v6584_v43 = vadd.f32 %v6583_v48, %v6571_v42  ;;  %v5032_v42 = vld [vmem:[#allocation8 + $0x20] sm:$0xff]  ;;  %v11898_v48 = vld [vmem:[%s14657_s22 + $0xd0] sm:$0xf0] }
 0x44f   : > { %8102 = vmatpush.bf16.msrb.mxu1 %v12537_v15  ;;  %8115 = vmatpush.bf16.msrb.mxu2 %v12665_v16  ;;  %v12328_v15 = vld [vmem:[%s14657_s22 + $0x420] sm:$0xf]  ;;  %v13475_v16 = vld [vmem:[%s14657_s22 + $0x42c] sm:$0xf0]  ;;  %v6572_v5 = vpop.f32.mrf.mxu1  ;;  %v16594_v51 = vpack.c.bf16 %v5032_v42, %v5032_v42  ;;  %v12282_v9 = vld [vmem:[%s14657_s22 + $0x3d0] sm:$0xf0] }
 0x450   : > { %8128 = vmatpush.bf16.msrb.mxu3 %v12793_v14  ;;  %v6596_v3 = vpop.f32.mrf.mxu3  ;;  %v13507_v14 = vld [vmem:[%s14657_s22 + $0x52c] sm:$0xf0]  ;;  %v12329_v24 = vor.u32 %v13475_v16, %v12328_v15  ;;  %v11882_v5 = vld [vmem:[%s14657_s22 + $0xb0] sm:$0xf0] }
 0x451   : > { %8090 = vmatpush.bf16.msrb.mxu0 %v12393_v61  ;;  %v16565_v8 = vadd.f32 %v6596_v3, %v6584_v43  ;;  %v12312_v61 = vld [vmem:[%s14657_s22 + $0x400] sm:$0xf]  ;;  %v13429_v43 = vld [vmem:[%s14657_s22 + $0x2c4] sm:$0xf]  ;;  %v12154_v3 = vld [vmem:[%s14657_s22 + $0x2d0] sm:$0xf0] }
 0x452   : > { %v12157_v16 = vor.u32 %v13429_v43, %v12154_v3  ;;  %v12106_v42 = vld [vmem:[%s14657_s22 + $0x270] sm:$0xf0] }
 0x453   : > { %8103 = vmatpush.bf16.msrb.mxu1 %v12521_v25  ;;  %8116 = vmatpush.bf16.msrb.mxu2 %v12649_v18  ;;  %v13471_v25 = vld [vmem:[%s14657_s22 + $0x40c] sm:$0xf0]  ;;  %v12457_v18 = vor.u32 %v13507_v14, %v12456_v0  ;;  %v13361_v0 = vld [vmem:[%s14657_s22 + $0xa4] sm:$0xf]  ;;  %v12090_v43 = vld [vmem:[%s14657_s22 + $0x250] sm:$0xf0] }
 0x454   : > { %8129 = vmatpush.bf16.msrb.mxu3 %v12777_v27  ;;  %v12568_v27 = vld [vmem:[%s14657_s22 + $0x600] sm:$0xf]  ;;  %v12313_v36 = vor.u32 %v13471_v25, %v12312_v61  ;;  %v11885_v61 = vor.u32 %v13361_v0, %v11882_v5 }
 0x455   : > { %8091 = vmatpush.bf16.msrb.mxu0 %v12377_v33  ;;  %v6585_v62 = vpop.f32.mrf.mxu2  ;;  %v12569_v11 = vor.u32 %v13535_v29, %v12568_v27  ;;  %v12122_v29 = vld [vmem:[%s14657_s22 + $0x290] sm:$0xf0] }
 0x456   : > { %v11994_v62 = vld [vmem:[%s14657_s22 + $0x190] sm:$0xf0] }
 0x457   : > { %8104 = vmatpush.bf16.msrb.mxu1 %v12505_v4  ;;  %8117 = vmatpush.bf16.msrb.mxu2 %v12633_v28  ;;  %v11914_v4 = vld [vmem:[%s14657_s22 + $0xf0] sm:$0xf0]  ;;  %v13401_v28 = vld [vmem:[%s14657_s22 + $0x1e4] sm:$0xf] }
 0x458   : > { %8130 = vmatpush.bf16.msrb.mxu3 %v12761_v34  ;;  %v6598_v33 = vpop.f32.mrf.mxu3  ;;  %v12441_v34 = vor.u32 %v13503_v26, %v12440_v46  ;;  %v11917_v1 = vor.u32 %v13369_v35, %v11914_v4  ;;  %v12045_v38 = vor.u32 %v13401_v28, %v12042_v50  ;;  %v11866_v46 = vld [vmem:[%s14657_s22 + $0x90] sm:$0xf0]  ;;  %v13389_v26 = vld [vmem:[%s14657_s22 + $0x184] sm:$0xf] }
 0x459   : > { %8092 = vmatpush.bf16.msrb.mxu0 %v12361_v45  ;;  %v5034_v45 = vld [vmem:[#allocation8 + $0x30] sm:$0xff]  ;;  %v11997_v4 = vor.u32 %v13389_v26, %v11994_v62  ;;  %v11850_v50 = vld [vmem:[%s14657_s22 + $0x70] sm:$0xf0]  ;;  %v13341_v26 = vld [vmem:[%s14657_s22 + $0x4] sm:$0xf] }
 0x45a   : > { %v16599_v53 = vpack.c.bf16 %v5034_v45, %v5034_v45 }
 0x45b   : > { %8105 = vmatpush.bf16.msrb.mxu1 %v12489_v37  ;;  %8118 = vmatpush.bf16.msrb.mxu2 %v12617_v6  ;;  %v5033_v37 = vld [vmem:[#allocation8 + $0x28] sm:$0xff]  ;;  %v5035_v6 = vld [vmem:[#allocation8 + $0x38] sm:$0xff] }
 0x45c   : > { %8131 = vmatpush.bf16.msrb.mxu3 %v12745_v49  ;;  %v13397_v49 = vld [vmem:[%s14657_s22 + $0x1c4] sm:$0xf]  ;;  %v16601_v7 = vpack.c.bf16 %v5033_v37, %v5033_v37 }
 0x45d   : > { %8093 = vmatpush.bf16.msrb.mxu0 %v12345_v63  ;;  %v13461_v63 = vld [vmem:[%s14657_s22 + $0x3c4] sm:$0xf]  ;;  %v12029_v15 = vor.u32 %v13397_v49, %v12026_v52 }
 0x45e   : > { %v12285_v14 = vor.u32 %v13461_v63, %v12282_v9  ;;  %v13413_v52 = vld [vmem:[%s14657_s22 + $0x244] sm:$0xf] }
 0x45f   : > { %8106 = vmatpush.bf16.msrb.mxu1 %v12473_v12  ;;  %8119 = vmatpush.bf16.msrb.mxu2 %v12601_v19  ;;  %v16605_v12 = vpack.c.bf16 %v5035_v6, %v5035_v6  ;;  %v11901_v19 = vor.u32 %v13365_v47, %v11898_v48  ;;  %v12109_v6 = vor.u32 %v13417_v31, %v12106_v42  ;;  %v13381_v47 = vld [vmem:[%s14657_s22 + $0x144] sm:$0xf]  ;;  %v12682_v42 = vld [vmem:[%s14657_s22 + $0x6f0] sm:$0xf0] }
 0x460   : > { %8132 = vmatpush.bf16.msrb.mxu3 %v12729_v10  ;;  %v13393_v10 = vld [vmem:[%s14657_s22 + $0x1a4] sm:$0xf] }
 0x461   : > { %8094 = vmatpush.bf16.msrb.mxu0 %v12329_v24  ;;  %v12266_v24 = vld [vmem:[%s14657_s22 + $0x3b0] sm:$0xf0]  ;;  %v12013_v25 = vor.u32 %v13393_v10, %v12010_v20  ;;  %v13445_v9 = vld [vmem:[%s14657_s22 + $0x344] sm:$0xf]  ;;  %v12093_v10 = vor.u32 %v13413_v52, %v12090_v43 }
 0x462   : > { %v12269_v27 = vor.u32 %v13457_v23, %v12266_v24  ;;  %v11818_v20 = vld [vmem:[%s14657_s22 + $0x30] sm:$0xf0]  ;;  %v13561_v31 = vld [vmem:[%s14657_s22 + $0x6e4] sm:$0xf] }
 0x463   : > { %8107 = vmatpush.bf16.msrb.mxu1 %v12457_v18  ;;  %8120 = vmatpush.bf16.msrb.mxu2 %v12585_v57  ;;  %v12141_v18 = vor.u32 %v13425_v21, %v12138_v40  ;;  %v13357_v57 = vld [vmem:[%s14657_s22 + $0x84] sm:$0xf]  ;;  %v11946_v24 = vld [vmem:[%s14657_s22 + $0x130] sm:$0xf0] }
 0x464   : > { %8133 = vmatpush.bf16.msrb.mxu3 %v12713_v2  ;;  %v13421_v2 = vld [vmem:[%s14657_s22 + $0x284] sm:$0xf]  ;;  %v11869_v33 = vor.u32 %v13357_v57, %v11866_v46  ;;  %v12202_v57 = vld [vmem:[%s14657_s22 + $0x330] sm:$0xf0] }
 0x465   : > { %8095 = vmatpush.bf16.msrb.mxu0 %v12313_v36  ;;  %v6609_v35 = vpop.f32.mrf.mxu0  ;;  %v12125_v28 = vor.u32 %v13421_v2, %v12122_v29  ;;  %v13353_v36 = vld [vmem:[%s14657_s22 + $0x64] sm:$0xf]  ;;  %v12538_v52 = vld [vmem:[%s14657_s22 + $0x5d0] sm:$0xf0] }
 0x466   : > { %v6610_v41 = vadd.f32 %v6609_v35, %v16565_v8  ;;  %v11853_v37 = vor.u32 %v13353_v36, %v11850_v50  ;;  %v11981_v8 = vor.u32 %v13385_v39, %v11978_v22  ;;  %v13377_v21 = vld [vmem:[%s14657_s22 + $0x124] sm:$0xf]  ;;  %v12186_v36 = vld [vmem:[%s14657_s22 + $0x310] sm:$0xf0] }
 0x467   : > { %8108 = vmatpush.bf16.msrb.mxu1 %v12441_v34  ;;  %8121 = vmatpush.bf16.msrb.mxu2 %v12569_v11  ;;  %v6622_v34 = vpop.f32.mrf.mxu1  ;;  %v12253_v11 = vor.u32 %v13453_v60, %v12250_v30  ;;  %v11949_v62 = vor.u32 %v13377_v21, %v11946_v24  ;;  %v13373_v29 = vld [vmem:[%s14657_s22 + $0x104] sm:$0xf]  ;;  %v11930_v60 = vld [vmem:[%s14657_s22 + $0x110] sm:$0xf0] }
 0x468   : > { %8134 = vmatpush.bf16.msrb.mxu3 %v12697_v44  ;;  %8096 = vmatmul.bf16.vlgmr.msrb.gmra.mxu0 %v16594_v51  ;;  %v13449_v44 = vld [vmem:[%s14657_s22 + $0x364] sm:$0xf]  ;;  %v6623_v45 = vadd.f32 %v6622_v34, %v6610_v41  ;;  %v12426_v41 = vld [vmem:[%s14657_s22 + $0x4f0] sm:$0xf0] }
 0x469   : > { %8140 = vmatpush.bf16.msra.mxu0 %v11917_v1  ;;  %v12234_v1 = vld [vmem:[%s14657_s22 + $0x370] sm:$0xf0]  ;;  %v13405_v30 = vld [vmem:[%s14657_s22 + $0x204] sm:$0xf] }
 0x46a   : > { %8122 = vmatmul.bf16.vlgmr.msrb.gmra.mxu2 %v16599_v53  ;;  %8109 = vmatmul.bf16.vlgmr.msrb.gmra.mxu1 %v16601_v7  ;;  %v12237_v49 = vor.u32 %v13449_v44, %v12234_v1  ;;  %v13497_v39 = vld [vmem:[%s14657_s22 + $0x4e4] sm:$0xf]  ;;  %v12554_v22 = vld [vmem:[%s14657_s22 + $0x5f0] sm:$0xf0]  ;;  %v11933_v44 = vor.u32 %v13373_v29, %v11930_v60 }
 0x46b   : > { %8153 = vmatpush.bf16.msra.mxu1 %v12045_v38  ;;  %8166 = vmatpush.bf16.msra.mxu2 %v12173_v58  ;;  %v13349_v38 = vld [vmem:[%s14657_s22 + $0x44] sm:$0xf]  ;;  %v11834_v58 = vld [vmem:[%s14657_s22 + $0x50] sm:$0xf0] }
 0x46c   : > { %8179 = vmatpush.bf16.msra.mxu3 %v12301_v59  ;;  %v11962_v59 = vld [vmem:[%s14657_s22 + $0x150] sm:$0xf0]  ;;  %v13529_v34 = vld [vmem:[%s14657_s22 + $0x5e4] sm:$0xf] }
 0x46d   : > { %8135 = vmatmul.bf16.vlgmr.msrb.gmra.mxu3 %v16605_v12  ;;  %8141 = vmatpush.bf16.msra.mxu0 %v11901_v19  ;;  %v6635_v48 = vpop.f32.mrf.mxu2  ;;  %v12218_v19 = vld [vmem:[%s14657_s22 + $0x350] sm:$0xf0]  ;;  %v6611_v0 = vpop.f32.mrf.mxu0  ;;  %v11965_v5 = vor.u32 %v13381_v47, %v11962_v59  ;;  %v13493_v47 = vld [vmem:[%s14657_s22 + $0x4c4] sm:$0xf] }
 0x46e   : > { %v6636_v3 = vadd.f32 %v6635_v48, %v6623_v45  ;;  %v12221_v23 = vor.u32 %v13445_v9, %v12218_v19  ;;  %v13593_v45 = vld [vmem:[%s14657_s22 + $0x7e4] sm:$0xf]  ;;  %v12410_v48 = vld [vmem:[%s14657_s22 + $0x4d0] sm:$0xf0] }
 0x46f   : > { %8154 = vmatpush.bf16.msra.mxu1 %v12029_v15  ;;  %8167 = vmatpush.bf16.msra.mxu2 %v12157_v16  ;;  %v11837_v15 = vor.u32 %v13349_v38, %v11834_v58  ;;  %v6624_v40 = vpop.f32.mrf.mxu1  ;;  %v12557_v38 = vor.u32 %v13529_v34, %v12554_v22  ;;  %v12685_v58 = vor.u32 %v13561_v31, %v12682_v42  ;;  %v13557_v43 = vld [vmem:[%s14657_s22 + $0x6c4] sm:$0xf]  ;;  %v12794_v9 = vld [vmem:[%s14657_s22 + $0x7d0] sm:$0xf0] }
 0x470   : > { %8180 = vmatpush.bf16.msra.mxu3 %v12285_v14  ;;  %v6648_v63 = vpop.f32.mrf.mxu3  ;;  %v13345_v14 = vld [vmem:[%s14657_s22 + $0x24] sm:$0xf]  ;;  %v12413_v19 = vor.u32 %v13493_v47, %v12410_v48  ;;  %v12522_v21 = vld [vmem:[%s14657_s22 + $0x5b0] sm:$0xf0] }
 0x471   : > { %8142 = vmatpush.bf16.msra.mxu0 %v11885_v61  ;;  %v16644_v16 = vadd.f32 %v6648_v63, %v6636_v3  ;;  %v13409_v61 = vld [vmem:[%s14657_s22 + $0x224] sm:$0xf]  ;;  %v11821_v46 = vor.u32 %v13345_v14, %v11818_v20  ;;  %v12666_v3 = vld [vmem:[%s14657_s22 + $0x6d0] sm:$0xf0] }
 0x472   : > { %v13589_v63 = vld [vmem:[%s14657_s22 + $0x7c4] sm:$0xf]  ;;  %v12669_v0 = vor.u32 %v13557_v43, %v12666_v3  ;;  %v12634_v60 = vld [vmem:[%s14657_s22 + $0x690] sm:$0xf0] }
 0x473   : > { %8155 = vmatpush.bf16.msra.mxu1 %v12013_v25  ;;  %8168 = vmatpush.bf16.msra.mxu2 %v12141_v18  ;;  %v12074_v25 = vld [vmem:[%s14657_s22 + $0x230] sm:$0xf0]  ;;  %v13441_v18 = vld [vmem:[%s14657_s22 + $0x324] sm:$0xf]  ;;  %v12797_v20 = vor.u32 %v13589_v63, %v12794_v9 }
 0x474   : > { %8181 = vmatpush.bf16.msra.mxu3 %v12269_v27  ;;  %v11802_v27 = vld [vmem:[%s14657_s22 + $0x10] sm:$0xf0]  ;;  %v12077_v2 = vor.u32 %v13409_v61, %v12074_v25  ;;  %v12205_v35 = vor.u32 %v13441_v18, %v12202_v57  ;;  %v13521_v14 = vld [vmem:[%s14657_s22 + $0x5a4] sm:$0xf] }
 0x475   : > { %8143 = vmatpush.bf16.msra.mxu0 %v11869_v33  ;;  %v6637_v33 = vpop.f32.mrf.mxu2  ;;  %v13553_v40 = vld [vmem:[%s14657_s22 + $0x6a4] sm:$0xf]  ;;  %v12778_v61 = vld [vmem:[%s14657_s22 + $0x7b0] sm:$0xf0]  ;;  %v12525_v18 = vor.u32 %v13521_v14, %v12522_v21 }
 0x476   : > { %v13585_v24 = vld [vmem:[%s14657_s22 + $0x7a4] sm:$0xf]  ;;  %v12762_v33 = vld [vmem:[%s14657_s22 + $0x790] sm:$0xf0] }
 0x477   : > { %8156 = vmatpush.bf16.msra.mxu1 %v11997_v4  ;;  %8169 = vmatpush.bf16.msra.mxu2 %v12125_v28  ;;  %v12058_v4 = vld [vmem:[%s14657_s22 + $0x210] sm:$0xf0]  ;;  %v13437_v28 = vld [vmem:[%s14657_s22 + $0x304] sm:$0xf] }
 0x478   : > { %8182 = vmatpush.bf16.msra.mxu3 %v12253_v11  ;;  %v6650_v50 = vpop.f32.mrf.mxu3  ;;  %v11805_v11 = vor.u32 %v13341_v26, %v11802_v27  ;;  %v12061_v1 = vor.u32 %v13405_v30, %v12058_v4  ;;  %v12378_v26 = vld [vmem:[%s14657_s22 + $0x490] sm:$0xf0]  ;;  %v13517_v27 = vld [vmem:[%s14657_s22 + $0x584] sm:$0xf] }
 0x479   : > { %8144 = vmatpush.bf16.msra.mxu0 %v11853_v37  ;;  %v12810_v37 = vld [vmem:[%s14657_s22 + $0x7f0] sm:$0xf0]  ;;  %v13549_v29 = vld [vmem:[%s14657_s22 + $0x684] sm:$0xf] }
 0x47a   : > { %v12813_v59 = vor.u32 %v13593_v45, %v12810_v37  ;;  %v13581_v30 = vld [vmem:[%s14657_s22 + $0x784] sm:$0xf]  ;;  %v12490_v22 = vld [vmem:[%s14657_s22 + $0x570] sm:$0xf0] }
 0x47b   : > { %8157 = vmatpush.bf16.msra.mxu1 %v11981_v8  ;;  %8170 = vmatpush.bf16.msra.mxu2 %v12109_v6  ;;  %v12189_v8 = vor.u32 %v13437_v28, %v12186_v36  ;;  %v12429_v6 = vor.u32 %v13497_v39, %v12426_v41  ;;  %v12637_v36 = vor.u32 %v13549_v29, %v12634_v60  ;;  %v13481_v50 = vld [vmem:[%s14657_s22 + $0x464] sm:$0xf]  ;;  %v12362_v39 = vld [vmem:[%s14657_s22 + $0x470] sm:$0xf0] }
 0x47c   : > { %8183 = vmatpush.bf16.msra.mxu3 %v12237_v49  ;;  %v13525_v49 = vld [vmem:[%s14657_s22 + $0x5c4] sm:$0xf]  ;;  %v12618_v42 = vld [vmem:[%s14657_s22 + $0x670] sm:$0xf0]  ;;  %v12365_v37 = vor.u32 %v13481_v50, %v12362_v39 }
 0x47d   : > { %8145 = vmatpush.bf16.msra.mxu0 %v11837_v15  ;;  %v12541_v15 = vor.u32 %v13525_v49, %v12538_v52  ;;  %v13513_v41 = vld [vmem:[%s14657_s22 + $0x564] sm:$0xf]  ;;  %v12746_v45 = vld [vmem:[%s14657_s22 + $0x770] sm:$0xf0] }
 0x47e   : > { %v13545_v31 = vld [vmem:[%s14657_s22 + $0x664] sm:$0xf]  ;;  %v12602_v43 = vld [vmem:[%s14657_s22 + $0x650] sm:$0xf0] }
 0x47f   : > { %8158 = vmatpush.bf16.msra.mxu1 %v11965_v5  ;;  %8171 = vmatpush.bf16.msra.mxu2 %v12093_v10  ;;  %v13489_v5 = vld [vmem:[%s14657_s22 + $0x4a4] sm:$0xf]  ;;  %v12394_v10 = vld [vmem:[%s14657_s22 + $0x4b0] sm:$0xf0] }
 0x480   : > { %8184 = vmatpush.bf16.msra.mxu3 %v12221_v23  ;;  %v12650_v23 = vld [vmem:[%s14657_s22 + $0x6b0] sm:$0xf0]  ;;  %v12397_v25 = vor.u32 %v13489_v5, %v12394_v10  ;;  %v13509_v47 = vld [vmem:[%s14657_s22 + $0x544] sm:$0xf] }
 0x481   : > { %8146 = vmatpush.bf16.msra.mxu0 %v11821_v46  ;;  %v12653_v57 = vor.u32 %v13553_v40, %v12650_v23  ;;  %v13485_v46 = vld [vmem:[%s14657_s22 + $0x484] sm:$0xf]  ;;  %v12330_v21 = vld [vmem:[%s14657_s22 + $0x430] sm:$0xf0] }
 0x482   : > { %v13541_v52 = vld [vmem:[%s14657_s22 + $0x644] sm:$0xf]  ;;  %v12698_v50 = vld [vmem:[%s14657_s22 + $0x710] sm:$0xf0] }
 0x483   : > { %8159 = vmatpush.bf16.msra.mxu1 %v11949_v62  ;;  %8172 = vmatpush.bf16.msra.mxu2 %v12077_v2  ;;  %v12781_v62 = vor.u32 %v13585_v24, %v12778_v61  ;;  %v12506_v2 = vld [vmem:[%s14657_s22 + $0x590] sm:$0xf0]  ;;  %v13573_v9 = vld [vmem:[%s14657_s22 + $0x744] sm:$0xf]  ;;  %v12605_v14 = vor.u32 %v13541_v52, %v12602_v43  ;;  %v13400_v43 = vld [vmem:[%s14657_s22 + $0x1d4] sm:$0xf0] }
 0x484   : > { %8185 = vmatpush.bf16.msra.mxu3 %v12205_v35  ;;  %v12381_v35 = vor.u32 %v13485_v46, %v12378_v26  ;;  %v12509_v28 = vor.u32 %v13517_v27, %v12506_v2  ;;  %v13505_v40 = vld [vmem:[%s14657_s22 + $0x524] sm:$0xf]  ;;  %v12458_v61 = vld [vmem:[%s14657_s22 + $0x530] sm:$0xf0] }
 0x485   : > { %8147 = vmatpush.bf16.msra.mxu0 %v11805_v11  ;;  %v6661_v4 = vpop.f32.mrf.mxu0  ;;  %v12765_v11 = vor.u32 %v13581_v30, %v12762_v33  ;;  %v12714_v46 = vld [vmem:[%s14657_s22 + $0x730] sm:$0xf0]  ;;  %v13469_v27 = vld [vmem:[%s14657_s22 + $0x404] sm:$0xf]  ;;  %v12461_v2 = vor.u32 %v13505_v40, %v12458_v61  ;;  %v13428_v61 = vld [vmem:[%s14657_s22 + $0x2b4] sm:$0xf0] }
 0x486   : > { %v13501_v60 = vld [vmem:[%s14657_s22 + $0x504] sm:$0xf]  ;;  %v12442_v30 = vld [vmem:[%s14657_s22 + $0x510] sm:$0xf0] }
 0x487   : > { %8160 = vmatpush.bf16.msra.mxu1 %v11933_v44  ;;  %8173 = vmatpush.bf16.msra.mxu2 %v12061_v1  ;;  %v6674_v34 = vpop.f32.mrf.mxu1  ;;  %v13577_v1 = vld [vmem:[%s14657_s22 + $0x764] sm:$0xf] }
 0x488   : > { %8186 = vmatpush.bf16.msra.mxu3 %v12189_v8  ;;  %8148 = vmatmul.bf16.vlgmr.msra.gmra.mxu0 %v16516_v54  ;;  %v6675_v44 = vadd.f32 %v6674_v34, %v6661_v4  ;;  %v12493_v8 = vor.u32 %v13513_v41, %v12490_v22  ;;  %v12749_v49 = vor.u32 %v13577_v1, %v12746_v45  ;;  %v13533_v33 = vld [vmem:[%s14657_s22 + $0x604] sm:$0xf]  ;;  %v11920_v41 = vld [vmem:[%s14657_s22 + $0xe8] sm:$0xf]  ;;  %v13372_v34 = vld [vmem:[%s14657_s22 + $0xf4] sm:$0xf0] }
 0x489   : > { %8192 = vmatpush.bf16.msrb.mxu0 %v12429_v6  ;;  %v12621_v6 = vor.u32 %v13545_v31, %v12618_v42  ;;  %v13404_v31 = vld [vmem:[%s14657_s22 + $0x1f4] sm:$0xf0]  ;;  %v12176_v42 = vld [vmem:[%s14657_s22 + $0x2e8] sm:$0xf]  ;;  %v12445_v1 = vor.u32 %v13501_v60, %v12442_v30 }
 0x48a   : > { %8174 = vmatmul.bf16.vlgmr.msra.gmra.mxu2 %v16521_v55  ;;  %8161 = vmatmul.bf16.vlgmr.msra.gmra.mxu1 %v16523_v56  ;;  %v13392_v60 = vld [vmem:[%s14657_s22 + $0x194] sm:$0xf0]  ;;  %v12128_v30 = vld [vmem:[%s14657_s22 + $0x288] sm:$0xf] }
 0x48b   : > { %8205 = vmatpush.bf16.msrb.mxu1 %v12557_v38  ;;  %8218 = vmatpush.bf16.msrb.mxu2 %v12685_v58  ;;  %v13477_v38 = vld [vmem:[%s14657_s22 + $0x444] sm:$0xf]  ;;  %v12346_v58 = vld [vmem:[%s14657_s22 + $0x450] sm:$0xf0] }
 0x48c   : > { %8231 = vmatpush.bf16.msrb.mxu3 %v12813_v59  ;;  %v12474_v59 = vld [vmem:[%s14657_s22 + $0x550] sm:$0xf0] }
 0x48d   : > { %8187 = vmatmul.bf16.vlgmr.msra.gmra.mxu3 %v16527_v13  ;;  %8193 = vmatpush.bf16.msrb.mxu0 %v12413_v19  ;;  %v6687_v48 = vpop.f32.mrf.mxu2  ;;  %v12730_v19 = vld [vmem:[%s14657_s22 + $0x750] sm:$0xf0]  ;;  %v6663_v5 = vpop.f32.mrf.mxu0  ;;  %v12477_v10 = vor.u32 %v13509_v47, %v12474_v59  ;;  %v12032_v59 = vld [vmem:[%s14657_s22 + $0x1c8] sm:$0xf] }
 0x48e   : > { %v6688_v3 = vadd.f32 %v6687_v48, %v6675_v44  ;;  %v12733_v24 = vor.u32 %v13573_v9, %v12730_v19  ;;  %v13436_v44 = vld [vmem:[%s14657_s22 + $0x2f4] sm:$0xf0]  ;;  %v11904_v48 = vld [vmem:[%s14657_s22 + $0xc8] sm:$0xf]  ;;  %v12033_v5 = vor.u32 %v13400_v43, %v12032_v59 }
 0x48f   : > { %8206 = vmatpush.bf16.msrb.mxu1 %v12541_v15  ;;  %8219 = vmatpush.bf16.msrb.mxu2 %v12669_v0  ;;  %v12349_v15 = vor.u32 %v13477_v38, %v12346_v58  ;;  %v6676_v23 = vpop.f32.mrf.mxu1  ;;  %v11921_v38 = vor.u32 %v13372_v34, %v11920_v41  ;;  %v12177_v47 = vor.u32 %v13436_v44, %v12176_v42  ;;  %v12288_v9 = vld [vmem:[%s14657_s22 + $0x3c8] sm:$0xf]  ;;  %v13464_v19 = vld [vmem:[%s14657_s22 + $0x3d4] sm:$0xf0] }
 0x490   : > { %8232 = vmatpush.bf16.msrb.mxu3 %v12797_v20  ;;  %v6700_v63 = vpop.f32.mrf.mxu3  ;;  %v13473_v20 = vld [vmem:[%s14657_s22 + $0x424] sm:$0xf]  ;;  %v12289_v40 = vor.u32 %v13464_v19, %v12288_v9  ;;  %v13396_v23 = vld [vmem:[%s14657_s22 + $0x1b4] sm:$0xf0]  ;;  %v11856_v41 = vld [vmem:[%s14657_s22 + $0x68] sm:$0xf] }
 0x491   : > { %8194 = vmatpush.bf16.msrb.mxu0 %v12397_v25  ;;  %v16714_v0 = vadd.f32 %v6700_v63, %v6688_v3  ;;  %v13537_v25 = vld [vmem:[%s14657_s22 + $0x624] sm:$0xf]  ;;  %v12333_v26 = vor.u32 %v13473_v20, %v12330_v21  ;;  %v12160_v3 = vld [vmem:[%s14657_s22 + $0x2c8] sm:$0xf]  ;;  %v13432_v63 = vld [vmem:[%s14657_s22 + $0x2d4] sm:$0xf0] }
 0x492   : > { %v13364_v20 = vld [vmem:[%s14657_s22 + $0xb4] sm:$0xf0]  ;;  %v12016_v21 = vld [vmem:[%s14657_s22 + $0x1a8] sm:$0xf] }
 0x493   : > { %8207 = vmatpush.bf16.msrb.mxu1 %v12525_v18  ;;  %8220 = vmatpush.bf16.msrb.mxu2 %v12653_v57  ;;  %v12586_v18 = vld [vmem:[%s14657_s22 + $0x630] sm:$0xf0]  ;;  %v13569_v57 = vld [vmem:[%s14657_s22 + $0x724] sm:$0xf]  ;;  %v13356_v34 = vld [vmem:[%s14657_s22 + $0x74] sm:$0xf0] }
 0x494   : > { %8233 = vmatpush.bf16.msrb.mxu3 %v12781_v62  ;;  %v12314_v62 = vld [vmem:[%s14657_s22 + $0x410] sm:$0xf0]  ;;  %v12589_v29 = vor.u32 %v13537_v25, %v12586_v18  ;;  %v12717_v4 = vor.u32 %v13569_v57, %v12714_v46  ;;  %v12272_v25 = vld [vmem:[%s14657_s22 + $0x3a8] sm:$0xf]  ;;  %v13460_v18 = vld [vmem:[%s14657_s22 + $0x3b4] sm:$0xf0]  ;;  %v12017_v46 = vor.u32 %v13396_v23, %v12016_v21 }
 0x495   : > { %8195 = vmatpush.bf16.msrb.mxu0 %v12381_v35  ;;  %v6689_v35 = vpop.f32.mrf.mxu2  ;;  %v12317_v22 = vor.u32 %v13469_v27, %v12314_v62  ;;  %v11872_v27 = vld [vmem:[%s14657_s22 + $0x88] sm:$0xf]  ;;  %v13360_v62 = vld [vmem:[%s14657_s22 + $0x94] sm:$0xf0] }
 0x496   : > { %v12256_v35 = vld [vmem:[%s14657_s22 + $0x388] sm:$0xf]  ;;  %v13388_v44 = vld [vmem:[%s14657_s22 + $0x174] sm:$0xf0] }
 0x497   : > { %8208 = vmatpush.bf16.msrb.mxu1 %v12509_v28  ;;  %8221 = vmatpush.bf16.msrb.mxu2 %v12637_v36  ;;  %v12570_v28 = vld [vmem:[%s14657_s22 + $0x610] sm:$0xf0]  ;;  %v13565_v36 = vld [vmem:[%s14657_s22 + $0x704] sm:$0xf]  ;;  %v13384_v43 = vld [vmem:[%s14657_s22 + $0x154] sm:$0xf0] }
 0x498   : > { %8234 = vmatpush.bf16.msrb.mxu3 %v12765_v11  ;;  %v6702_v39 = vpop.f32.mrf.mxu3  ;;  %v12048_v11 = vld [vmem:[%s14657_s22 + $0x1e8] sm:$0xf]  ;;  %v12573_v45 = vor.u32 %v13533_v33, %v12570_v28  ;;  %v13424_v33 = vld [vmem:[%s14657_s22 + $0x294] sm:$0xf0]  ;;  %v11873_v28 = vor.u32 %v13360_v62, %v11872_v27 }
 0x499   : > { %8196 = vmatpush.bf16.msrb.mxu0 %v12365_v37  ;;  %v12304_v37 = vld [vmem:[%s14657_s22 + $0x3e8] sm:$0xf]  ;;  %v12049_v58 = vor.u32 %v13404_v31, %v12048_v11  ;;  %v12129_v39 = vor.u32 %v13424_v33, %v12128_v30  ;;  %v13444_v62 = vld [vmem:[%s14657_s22 + $0x334] sm:$0xf0] }
 0x49a   : > { %v11984_v11 = vld [vmem:[%s14657_s22 + $0x168] sm:$0xf] }
 0x49b   : > { %8209 = vmatpush.bf16.msrb.mxu1 %v12493_v8  ;;  %8222 = vmatpush.bf16.msrb.mxu2 %v12621_v6  ;;  %v13468_v8 = vld [vmem:[%s14657_s22 + $0x3f4] sm:$0xf0]  ;;  %v12701_v6 = vor.u32 %v13565_v36, %v12698_v50  ;;  %v11824_v23 = vld [vmem:[%s14657_s22 + $0x28] sm:$0xf] }
 0x49c   : > { %8235 = vmatpush.bf16.msrb.mxu3 %v12749_v49  ;;  %v13368_v49 = vld [vmem:[%s14657_s22 + $0xd4] sm:$0xf0]  ;;  %v12305_v52 = vor.u32 %v13468_v8, %v12304_v37  ;;  %v12240_v37 = vld [vmem:[%s14657_s22 + $0x368] sm:$0xf] }
 0x49d   : > { %8197 = vmatpush.bf16.msrb.mxu0 %v12349_v15  ;;  %v11905_v15 = vor.u32 %v13368_v49, %v11904_v48  ;;  %v13452_v8 = vld [vmem:[%s14657_s22 + $0x374] sm:$0xf0]  ;;  %v11968_v49 = vld [vmem:[%s14657_s22 + $0x148] sm:$0xf] }
 0x49e   : > { %v13352_v48 = vld [vmem:[%s14657_s22 + $0x54] sm:$0xf0]  ;;  %v11969_v21 = vor.u32 %v13384_v43, %v11968_v49  ;;  %v12208_v27 = vld [vmem:[%s14657_s22 + $0x328] sm:$0xf] }
 0x49f   : > { %8210 = vmatpush.bf16.msrb.mxu1 %v12477_v10  ;;  %8223 = vmatpush.bf16.msrb.mxu2 %v12605_v14  ;;  %v12161_v10 = vor.u32 %v13432_v63, %v12160_v3  ;;  %v11888_v14 = vld [vmem:[%s14657_s22 + $0xa8] sm:$0xf]  ;;  %v13416_v63 = vld [vmem:[%s14657_s22 + $0x254] sm:$0xf0] }
 0x4a0   : > { %8236 = vmatpush.bf16.msrb.mxu3 %v12733_v24  ;;  %v12144_v24 = vld [vmem:[%s14657_s22 + $0x2a8] sm:$0xf]  ;;  %v11889_v57 = vor.u32 %v13364_v20, %v11888_v14 }
 0x4a1   : > { %8198 = vmatpush.bf16.msrb.mxu0 %v12333_v26  ;;  %v12145_v26 = vor.u32 %v13428_v61, %v12144_v24  ;;  %v12096_v3 = vld [vmem:[%s14657_s22 + $0x248] sm:$0xf]  ;;  %v13348_v24 = vld [vmem:[%s14657_s22 + $0x34] sm:$0xf0] }
 0x4a2   : > { %v11952_v61 = vld [vmem:[%s14657_s22 + $0x128] sm:$0xf] }
 0x4a3   : > { %8211 = vmatpush.bf16.msrb.mxu1 %v12461_v2  ;;  %8224 = vmatpush.bf16.msrb.mxu2 %v12589_v29  ;;  %v12000_v2 = vld [vmem:[%s14657_s22 + $0x188] sm:$0xf]  ;;  %v12273_v29 = vor.u32 %v13460_v18, %v12272_v25 }
 0x4a4   : > { %8237 = vmatpush.bf16.msrb.mxu3 %v12717_v4  ;;  %v13456_v4 = vld [vmem:[%s14657_s22 + $0x394] sm:$0xf0]  ;;  %v12001_v50 = vor.u32 %v13392_v60, %v12000_v2  ;;  %v11825_v2 = vor.u32 %v13348_v24, %v11824_v23  ;;  %v12544_v43 = vld [vmem:[%s14657_s22 + $0x5c8] sm:$0xf] }
 0x4a5   : > { %8199 = vmatpush.bf16.msrb.mxu0 %v12317_v22  ;;  %v6713_v36 = vpop.f32.mrf.mxu0  ;;  %v12257_v42 = vor.u32 %v13456_v4, %v12256_v35  ;;  %v13344_v60 = vld [vmem:[%s14657_s22 + $0x14] sm:$0xf0]  ;;  %v11936_v35 = vld [vmem:[%s14657_s22 + $0x108] sm:$0xf] }
 0x4a6   : > { %v6714_v22 = vadd.f32 %v6713_v36, %v16714_v0  ;;  %v11985_v0 = vor.u32 %v13388_v44, %v11984_v11  ;;  %v13376_v4 = vld [vmem:[%s14657_s22 + $0x114] sm:$0xf0]  ;;  %v12528_v24 = vld [vmem:[%s14657_s22 + $0x5a8] sm:$0xf] }
 0x4a7   : > { %8212 = vmatpush.bf16.msrb.mxu1 %v12445_v1  ;;  %8225 = vmatpush.bf16.msrb.mxu2 %v12573_v45  ;;  %v6726_v31 = vpop.f32.mrf.mxu1  ;;  %v12112_v1 = vld [vmem:[%s14657_s22 + $0x268] sm:$0xf]  ;;  %v13420_v45 = vld [vmem:[%s14657_s22 + $0x274] sm:$0xf0] }
 0x4a8   : > { %8238 = vmatpush.bf16.msrb.mxu3 %v12701_v6  ;;  %8200 = vmatmul.bf16.vlgmr.msrb.gmra.mxu0 %v16594_v51  ;;  %v6727_v6 = vadd.f32 %v6726_v31, %v6714_v22  ;;  %v12432_v22 = vld [vmem:[%s14657_s22 + $0x4e8] sm:$0xf]  ;;  %v13500_v31 = vld [vmem:[%s14657_s22 + $0x4f4] sm:$0xf0] }
 0x4a9   : > { %8244 = vmatpush.bf16.msra.mxu0 %v11921_v38  ;;  %v11857_v38 = vor.u32 %v13356_v34, %v11856_v41  ;;  %v12192_v41 = vld [vmem:[%s14657_s22 + $0x308] sm:$0xf]  ;;  %v13440_v34 = vld [vmem:[%s14657_s22 + $0x314] sm:$0xf0] }
 0x4aa   : > { %8226 = vmatmul.bf16.vlgmr.msrb.gmra.mxu2 %v16599_v53  ;;  %8213 = vmatmul.bf16.vlgmr.msrb.gmra.mxu1 %v16601_v7  ;;  %v13492_v23 = vld [vmem:[%s14657_s22 + $0x4b4] sm:$0xf0] }
 0x4ab   : > { %8257 = vmatpush.bf16.msra.mxu1 %v12049_v58  ;;  %8270 = vmatpush.bf16.msra.mxu2 %v12177_v47  ;;  %v12113_v58 = vor.u32 %v13420_v45, %v12112_v1  ;;  %v11840_v47 = vld [vmem:[%s14657_s22 + $0x48] sm:$0xf]  ;;  %v13532_v1 = vld [vmem:[%s14657_s22 + $0x5f4] sm:$0xf0] }
 0x4ac   : > { %8283 = vmatpush.bf16.msra.mxu3 %v12305_v52  ;;  %v12241_v52 = vor.u32 %v13452_v8, %v12240_v37  ;;  %v12688_v45 = vld [vmem:[%s14657_s22 + $0x6e8] sm:$0xf]  ;;  %v13564_v37 = vld [vmem:[%s14657_s22 + $0x6f4] sm:$0xf0]  ;;  %v11937_v8 = vor.u32 %v13376_v4, %v11936_v35 }
 0x4ad   : > { %8239 = vmatmul.bf16.vlgmr.msrb.gmra.mxu3 %v16605_v12  ;;  %8245 = vmatpush.bf16.msra.mxu0 %v11905_v15  ;;  %v6739_v59 = vpop.f32.mrf.mxu2  ;;  %v12224_v15 = vld [vmem:[%s14657_s22 + $0x348] sm:$0xf]  ;;  %v6715_v20 = vpop.f32.mrf.mxu0  ;;  %v12689_v49 = vor.u32 %v13564_v37, %v12688_v45  ;;  %v13520_v35 = vld [vmem:[%s14657_s22 + $0x594] sm:$0xf0] }
 0x4ae   : > { %v6740_v9 = vadd.f32 %v6739_v59, %v6727_v6  ;;  %v12416_v59 = vld [vmem:[%s14657_s22 + $0x4c8] sm:$0xf] }
 0x4af   : > { %8258 = vmatpush.bf16.msra.mxu1 %v12033_v5  ;;  %8271 = vmatpush.bf16.msra.mxu2 %v12161_v10  ;;  %v13448_v5 = vld [vmem:[%s14657_s22 + $0x354] sm:$0xf0]  ;;  %v11841_v10 = vor.u32 %v13352_v48, %v11840_v47  ;;  %v6728_v25 = vpop.f32.mrf.mxu1  ;;  %v12433_v47 = vor.u32 %v13500_v31, %v12432_v22  ;;  %v12640_v4 = vld [vmem:[%s14657_s22 + $0x688] sm:$0xf] }
 0x4b0   : > { %8284 = vmatpush.bf16.msra.mxu3 %v12289_v40  ;;  %v6752_v19 = vpop.f32.mrf.mxu3  ;;  %v12097_v40 = vor.u32 %v13416_v63, %v12096_v3  ;;  %v12225_v18 = vor.u32 %v13448_v5, %v12224_v15  ;;  %v13528_v63 = vld [vmem:[%s14657_s22 + $0x5d4] sm:$0xf0]  ;;  %v12800_v15 = vld [vmem:[%s14657_s22 + $0x7c8] sm:$0xf] }
 0x4b1   : > { %8246 = vmatpush.bf16.msra.mxu0 %v11889_v57  ;;  %v16785_v14 = vadd.f32 %v6752_v19, %v6740_v9  ;;  %v13380_v57 = vld [vmem:[%s14657_s22 + $0x134] sm:$0xf0]  ;;  %v12672_v9 = vld [vmem:[%s14657_s22 + $0x6c8] sm:$0xf]  ;;  %v12545_v20 = vor.u32 %v13528_v63, %v12544_v43 }
 0x4b2   : > { %v11953_v30 = vor.u32 %v13380_v57, %v11952_v61  ;;  %v13560_v19 = vld [vmem:[%s14657_s22 + $0x6d4] sm:$0xf0] }
 0x4b3   : > { %8259 = vmatpush.bf16.msra.mxu1 %v12017_v46  ;;  %8272 = vmatpush.bf16.msra.mxu2 %v12145_v26  ;;  %v12080_v46 = vld [vmem:[%s14657_s22 + $0x228] sm:$0xf]  ;;  %v13412_v26 = vld [vmem:[%s14657_s22 + $0x234] sm:$0xf0] }
 0x4b4   : > { %8285 = vmatpush.bf16.msra.mxu3 %v12273_v29  ;;  %v11808_v29 = vld [vmem:[%s14657_s22 + $0x8] sm:$0xf]  ;;  %v12081_v33 = vor.u32 %v13412_v26, %v12080_v46  ;;  %v13592_v5 = vld [vmem:[%s14657_s22 + $0x7d4] sm:$0xf0] }
 0x4b5   : > { %8247 = vmatpush.bf16.msra.mxu0 %v11873_v28  ;;  %v12064_v28 = vld [vmem:[%s14657_s22 + $0x208] sm:$0xf]  ;;  %v6741_v36 = vpop.f32.mrf.mxu2  ;;  %v11809_v44 = vor.u32 %v13344_v60, %v11808_v29  ;;  %v12801_v61 = vor.u32 %v13592_v5, %v12800_v15  ;;  %v13524_v25 = vld [vmem:[%s14657_s22 + $0x5b4] sm:$0xf0] }
 0x4b6   : > { %v13556_v57 = vld [vmem:[%s14657_s22 + $0x6b4] sm:$0xf0]  ;;  %v12784_v46 = vld [vmem:[%s14657_s22 + $0x7a8] sm:$0xf] }
 0x4b7   : > { %8260 = vmatpush.bf16.msra.mxu1 %v12001_v50  ;;  %8273 = vmatpush.bf16.msra.mxu2 %v12129_v39  ;;  %v12209_v50 = vor.u32 %v13444_v62, %v12208_v27  ;;  %v13408_v39 = vld [vmem:[%s14657_s22 + $0x214] sm:$0xf0]  ;;  %v12529_v62 = vor.u32 %v13524_v25, %v12528_v24  ;;  %v12384_v29 = vld [vmem:[%s14657_s22 + $0x488] sm:$0xf] }
 0x4b8   : > { %8286 = vmatpush.bf16.msra.mxu3 %v12257_v42  ;;  %v6754_v11 = vpop.f32.mrf.mxu3  ;;  %v12560_v42 = vld [vmem:[%s14657_s22 + $0x5e8] sm:$0xf]  ;;  %v12065_v6 = vor.u32 %v13408_v39, %v12064_v28  ;;  %v13588_v26 = vld [vmem:[%s14657_s22 + $0x7b4] sm:$0xf0] }
 0x4b9   : > { %8248 = vmatpush.bf16.msra.mxu0 %v11857_v38  ;;  %v12816_v38 = vld [vmem:[%s14657_s22 + $0x7e8] sm:$0xf]  ;;  %v12561_v48 = vor.u32 %v13532_v1, %v12560_v42  ;;  %v13488_v60 = vld [vmem:[%s14657_s22 + $0x494] sm:$0xf0] }
 0x4ba   : > { %v13552_v28 = vld [vmem:[%s14657_s22 + $0x694] sm:$0xf0]  ;;  %v12368_v42 = vld [vmem:[%s14657_s22 + $0x468] sm:$0xf] }
 0x4bb   : > { %8261 = vmatpush.bf16.msra.mxu1 %v11985_v0  ;;  %8274 = vmatpush.bf16.msra.mxu2 %v12113_v58  ;;  %v13596_v0 = vld [vmem:[%s14657_s22 + $0x7f4] sm:$0xf0]  ;;  %v12193_v58 = vor.u32 %v13440_v34, %v12192_v41  ;;  %v12385_v34 = vor.u32 %v13488_v60, %v12384_v29  ;;  %v12641_v31 = vor.u32 %v13552_v28, %v12640_v4  ;;  %v12496_v1 = vld [vmem:[%s14657_s22 + $0x568] sm:$0xf] }
 0x4bc   : > { %8287 = vmatpush.bf16.msra.mxu3 %v12241_v52  ;;  %v13496_v52 = vld [vmem:[%s14657_s22 + $0x4d4] sm:$0xf0]  ;;  %v12817_v3 = vor.u32 %v13596_v0, %v12816_v38  ;;  %v12752_v38 = vld [vmem:[%s14657_s22 + $0x768] sm:$0xf] }
 0x4bd   : > { %8249 = vmatpush.bf16.msra.mxu0 %v11841_v10  ;;  %v12417_v10 = vor.u32 %v13496_v52, %v12416_v59  ;;  %v13584_v39 = vld [vmem:[%s14657_s22 + $0x794] sm:$0xf0]  ;;  %v12480_v52 = vld [vmem:[%s14657_s22 + $0x548] sm:$0xf] }
 0x4be   : > { %v13580_v0 = vld [vmem:[%s14657_s22 + $0x774] sm:$0xf0]  ;;  %v12720_v29 = vld [vmem:[%s14657_s22 + $0x728] sm:$0xf] }
 0x4bf   : > { %8262 = vmatpush.bf16.msra.mxu1 %v11969_v21  ;;  %8275 = vmatpush.bf16.msra.mxu2 %v12097_v40  ;;  %v12673_v21 = vor.u32 %v13560_v19, %v12672_v9  ;;  %v12400_v40 = vld [vmem:[%s14657_s22 + $0x4a8] sm:$0xf]  ;;  %v13480_v59 = vld [vmem:[%s14657_s22 + $0x454] sm:$0xf0]  ;;  %v12753_v43 = vor.u32 %v13580_v0, %v12752_v38 }
 0x4c0   : > { %8288 = vmatpush.bf16.msra.mxu3 %v12225_v18  ;;  %v12656_v18 = vld [vmem:[%s14657_s22 + $0x6a8] sm:$0xf]  ;;  %v12401_v27 = vor.u32 %v13492_v23, %v12400_v40  ;;  %v13512_v63 = vld [vmem:[%s14657_s22 + $0x554] sm:$0xf0] }
 0x4c1   : > { %8250 = vmatpush.bf16.msra.mxu0 %v11825_v2  ;;  %v12657_v2 = vor.u32 %v13556_v57, %v12656_v18  ;;  %v12608_v9 = vld [vmem:[%s14657_s22 + $0x648] sm:$0xf]  ;;  %v13544_v19 = vld [vmem:[%s14657_s22 + $0x654] sm:$0xf0] }
 0x4c2   : > { %v12609_v25 = vor.u32 %v13544_v19, %v12608_v9  ;;  %v12336_v18 = vld [vmem:[%s14657_s22 + $0x428] sm:$0xf]  ;;  %v13476_v57 = vld [vmem:[%s14657_s22 + $0x434] sm:$0xf0]  ;;  %v12034_v19 = vld [vmem:[%s14657_s22 + $0x1d8] sm:$0xf0] }
 0x4c3   : > { %8263 = vmatpush.bf16.msra.mxu1 %v11953_v30  ;;  %8276 = vmatpush.bf16.msra.mxu2 %v12081_v33  ;;  %v12512_v30 = vld [vmem:[%s14657_s22 + $0x588] sm:$0xf]  ;;  %v12785_v33 = vor.u32 %v13588_v26, %v12784_v46  ;;  %v13572_v60 = vld [vmem:[%s14657_s22 + $0x734] sm:$0xf0] }
 0x4c4   : > { %8289 = vmatpush.bf16.msra.mxu3 %v12209_v50  ;;  %v12768_v50 = vld [vmem:[%s14657_s22 + $0x788] sm:$0xf]  ;;  %v12513_v22 = vor.u32 %v13520_v35, %v12512_v30  ;;  %v12337_v30 = vor.u32 %v13476_v57, %v12336_v18  ;;  %v13472_v35 = vld [vmem:[%s14657_s22 + $0x414] sm:$0xf0]  ;;  %v13394_v18 = vld [vmem:[%s14657_s22 + $0x1ac] sm:$0xf] }
 0x4c5   : > { %8251 = vmatpush.bf16.msra.mxu0 %v11809_v44  ;;  %v8045_v36 = vpop.f32.mrf.mxu0  ;;  %v13484_v44 = vld [vmem:[%s14657_s22 + $0x474] sm:$0xf0]  ;;  %v12769_v45 = vor.u32 %v13584_v39, %v12768_v50  ;;  %v12464_v46 = vld [vmem:[%s14657_s22 + $0x528] sm:$0xf] }
 0x4c6   : > { %v8046_v41 = vadd.f32 %v8045_v36, %v16346_v32  ;;  %v13548_v32 = vld [vmem:[%s14657_s22 + $0x674] sm:$0xf0]  ;;  %v12448_v36 = vld [vmem:[%s14657_s22 + $0x508] sm:$0xf] }
 0x4c7   : > { %8264 = vmatpush.bf16.msra.mxu1 %v11937_v8  ;;  %8277 = vmatpush.bf16.msra.mxu2 %v12065_v6  ;;  %v8058_v11 = vpop.f32.mrf.mxu1  ;;  %v13516_v8 = vld [vmem:[%s14657_s22 + $0x574] sm:$0xf0]  ;;  %v12624_v6 = vld [vmem:[%s14657_s22 + $0x668] sm:$0xf] }
 0x4c8   : > { %8290 = vmatpush.bf16.msra.mxu3 %v12193_v58  ;;  %8252 = vmatmul.bf16.vlgmr.msra.gmra.mxu0 %v16516_v54  ;;  %v8059_v37 = vadd.f32 %v8058_v11, %v8046_v41  ;;  %v12369_v58 = vor.u32 %v13484_v44, %v12368_v42  ;;  %v13504_v50 = vld [vmem:[%s14657_s22 + $0x514] sm:$0xf0]  ;;  %v12576_v39 = vld [vmem:[%s14657_s22 + $0x608] sm:$0xf]  ;;  %v12721_v41 = vor.u32 %v13572_v60, %v12720_v29  ;;  %v13370_v42 = vld [vmem:[%s14657_s22 + $0xec] sm:$0xf] }
 0x4c9   : > { %8296 = vmatpush.bf16.msrb.mxu0 %v12433_v47  ;;  %v12497_v47 = vor.u32 %v13516_v8, %v12496_v1  ;;  %v12704_v11 = vld [vmem:[%s14657_s22 + $0x708] sm:$0xf]  ;;  %v11922_v44 = vld [vmem:[%s14657_s22 + $0xf8] sm:$0xf0]  ;;  %v13402_v1 = vld [vmem:[%s14657_s22 + $0x1ec] sm:$0xf]  ;;  %v12449_v38 = vor.u32 %v13504_v50, %v12448_v36 }
 0x4ca   : > { %8278 = vmatmul.bf16.vlgmr.msra.gmra.mxu2 %v16521_v55  ;;  %8265 = vmatmul.bf16.vlgmr.msra.gmra.mxu1 %v16523_v56  ;;  %v12050_v8 = vld [vmem:[%s14657_s22 + $0x1f8] sm:$0xf0]  ;;  %v13422_v50 = vld [vmem:[%s14657_s22 + $0x28c] sm:$0xf] }
 0x4cb   : > { %8309 = vmatpush.bf16.msrb.mxu1 %v12561_v48  ;;  %8322 = vmatpush.bf16.msrb.mxu2 %v12689_v49  ;;  %v12625_v48 = vor.u32 %v13548_v32, %v12624_v6  ;;  %v12352_v49 = vld [vmem:[%s14657_s22 + $0x448] sm:$0xf]  ;;  %v13434_v6 = vld [vmem:[%s14657_s22 + $0x2ec] sm:$0xf]  ;;  %v12178_v32 = vld [vmem:[%s14657_s22 + $0x2f8] sm:$0xf0] }
 0x4cc   : > { %8335 = vmatpush.bf16.msrb.mxu3 %v12817_v3  ;;  %v12353_v40 = vor.u32 %v13480_v59, %v12352_v49  ;;  %v11925_v49 = vor.u32 %v13370_v42, %v11922_v44  ;;  %v12053_v59 = vor.u32 %v13402_v1, %v12050_v8  ;;  %v12002_v36 = vld [vmem:[%s14657_s22 + $0x198] sm:$0xf0]  ;;  %v13386_v8 = vld [vmem:[%s14657_s22 + $0x16c] sm:$0xf] }
 0x4cd   : > { %8291 = vmatmul.bf16.vlgmr.msra.gmra.mxu3 %v16527_v13  ;;  %8297 = vmatpush.bf16.msrb.mxu0 %v12417_v10  ;;  %v8071_v3 = vpop.f32.mrf.mxu2  ;;  %v12736_v10 = vld [vmem:[%s14657_s22 + $0x748] sm:$0xf] }
 0x4ce   : > { %v8072_v15 = vadd.f32 %v8071_v3, %v8059_v37  ;;  %v11906_v3 = vld [vmem:[%s14657_s22 + $0xd8] sm:$0xf0] }
 0x4cf   : > { %8310 = vmatpush.bf16.msrb.mxu1 %v12545_v20  ;;  %8323 = vmatpush.bf16.msrb.mxu2 %v12673_v21  ;;  %v13576_v20 = vld [vmem:[%s14657_s22 + $0x754] sm:$0xf0]  ;;  %v8047_v21 = vpop.f32.mrf.mxu0  ;;  %v8060_v23 = vpop.f32.mrf.mxu1 }
 0x4d0   : > { %8336 = vmatpush.bf16.msrb.mxu3 %v12801_v61  ;;  %v8084_v5 = vpop.f32.mrf.mxu3  ;;  %v12481_v61 = vor.u32 %v13512_v63, %v12480_v52  ;;  %v12737_v26 = vor.u32 %v13576_v20, %v12736_v10  ;;  %v12181_v52 = vor.u32 %v13434_v6, %v12178_v32  ;;  %v13398_v63 = vld [vmem:[%s14657_s22 + $0x1cc] sm:$0xf]  ;;  %v12290_v20 = vld [vmem:[%s14657_s22 + $0x3d8] sm:$0xf0] }
 0x4d1   : > { %8298 = vmatpush.bf16.msrb.mxu0 %v12401_v27  ;;  %v16856_v24 = vadd.f32 %v8084_v5, %v8072_v15  ;;  %v13508_v27 = vld [vmem:[%s14657_s22 + $0x534] sm:$0xf0]  ;;  %v13430_v15 = vld [vmem:[%s14657_s22 + $0x2cc] sm:$0xf]  ;;  %v12162_v5 = vld [vmem:[%s14657_s22 + $0x2d8] sm:$0xf0] }
 0x4d2   : > { %v12465_v4 = vor.u32 %v13508_v27, %v12464_v46  ;;  %v13462_v10 = vld [vmem:[%s14657_s22 + $0x3cc] sm:$0xf]  ;;  %v12165_v23 = vor.u32 %v13430_v15, %v12162_v5  ;;  %v12018_v46 = vld [vmem:[%s14657_s22 + $0x1b8] sm:$0xf0] }
 0x4d3   : > { %8311 = vmatpush.bf16.msrb.mxu1 %v12529_v62  ;;  %8324 = vmatpush.bf16.msrb.mxu2 %v12657_v2  ;;  %v12592_v62 = vld [vmem:[%s14657_s22 + $0x628] sm:$0xf]  ;;  %v13540_v2 = vld [vmem:[%s14657_s22 + $0x634] sm:$0xf0]  ;;  %v12293_v57 = vor.u32 %v13462_v10, %v12290_v20  ;;  %v12146_v27 = vld [vmem:[%s14657_s22 + $0x2b8] sm:$0xf0]  ;;  %v12021_v60 = vor.u32 %v13394_v18, %v12018_v46 }
 0x4d4   : > { %8337 = vmatpush.bf16.msrb.mxu3 %v12785_v33  ;;  %v12320_v33 = vld [vmem:[%s14657_s22 + $0x408] sm:$0xf]  ;;  %v12593_v28 = vor.u32 %v13540_v2, %v12592_v62  ;;  %v13458_v62 = vld [vmem:[%s14657_s22 + $0x3ac] sm:$0xf]  ;;  %v12274_v2 = vld [vmem:[%s14657_s22 + $0x3b8] sm:$0xf0] }
 0x4d5   : > { %8299 = vmatpush.bf16.msrb.mxu0 %v12385_v34  ;;  %v13536_v34 = vld [vmem:[%s14657_s22 + $0x614] sm:$0xf0]  ;;  %v12321_v37 = vor.u32 %v13472_v35, %v12320_v33  ;;  %v13358_v33 = vld [vmem:[%s14657_s22 + $0x8c] sm:$0xf]  ;;  %v11874_v35 = vld [vmem:[%s14657_s22 + $0x98] sm:$0xf0] }
 0x4d6   : > { %v12577_v0 = vor.u32 %v13536_v34, %v12576_v39  ;;  %v12130_v39 = vld [vmem:[%s14657_s22 + $0x298] sm:$0xf0]  ;;  %v13454_v34 = vld [vmem:[%s14657_s22 + $0x38c] sm:$0xf] }
 0x4d7   : > { %8312 = vmatpush.bf16.msrb.mxu1 %v12513_v22  ;;  %8325 = vmatpush.bf16.msrb.mxu2 %v12641_v31  ;;  %v13568_v22 = vld [vmem:[%s14657_s22 + $0x714] sm:$0xf0]  ;;  %v8073_v31 = vpop.f32.mrf.mxu2  ;;  %v12133_v1 = vor.u32 %v13422_v50, %v12130_v39  ;;  %v13414_v15 = vld [vmem:[%s14657_s22 + $0x24c] sm:$0xf]  ;;  %v12098_v5 = vld [vmem:[%s14657_s22 + $0x258] sm:$0xf0] }
 0x4d8   : > { %8338 = vmatpush.bf16.msrb.mxu3 %v12769_v45  ;;  %v8086_v45 = vpop.f32.mrf.mxu3  ;;  %v11877_v31 = vor.u32 %v13358_v33, %v11874_v35  ;;  %v12101_v46 = vor.u32 %v13414_v15, %v12098_v5  ;;  %v13442_v33 = vld [vmem:[%s14657_s22 + $0x32c] sm:$0xf]  ;;  %v12210_v35 = vld [vmem:[%s14657_s22 + $0x338] sm:$0xf0] }
 0x4d9   : > { %8300 = vmatpush.bf16.msrb.mxu0 %v12369_v58  ;;  %v13466_v58 = vld [vmem:[%s14657_s22 + $0x3ec] sm:$0xf]  ;;  %v12546_v5 = vld [vmem:[%s14657_s22 + $0x5d8] sm:$0xf0] }
 0x4da   : > { %v13354_v45 = vld [vmem:[%s14657_s22 + $0x6c] sm:$0xf] }
 0x4db   : > { %8313 = vmatpush.bf16.msrb.mxu1 %v12497_v47  ;;  %8326 = vmatpush.bf16.msrb.mxu2 %v12625_v48  ;;  %v12306_v47 = vld [vmem:[%s14657_s22 + $0x3f8] sm:$0xf0]  ;;  %v12705_v48 = vor.u32 %v13568_v22, %v12704_v11 }
 0x4dc   : > { %8339 = vmatpush.bf16.msrb.mxu3 %v12753_v43  ;;  %v13366_v43 = vld [vmem:[%s14657_s22 + $0xcc] sm:$0xf]  ;;  %v12309_v9 = vor.u32 %v13466_v58, %v12306_v47  ;;  %v12258_v11 = vld [vmem:[%s14657_s22 + $0x398] sm:$0xf0] }
 0x4dd   : > { %8301 = vmatpush.bf16.msrb.mxu0 %v12353_v40  ;;  %v11909_v21 = vor.u32 %v13366_v43, %v11906_v3  ;;  %v12037_v40 = vor.u32 %v13398_v63, %v12034_v19  ;;  %v12261_v6 = vor.u32 %v13454_v34, %v12258_v11  ;;  %v13450_v58 = vld [vmem:[%s14657_s22 + $0x36c] sm:$0xf]  ;;  %v12242_v47 = vld [vmem:[%s14657_s22 + $0x378] sm:$0xf0] }
 0x4de   : > { %v11842_v43 = vld [vmem:[%s14657_s22 + $0x58] sm:$0xf0]  ;;  %v13382_v3 = vld [vmem:[%s14657_s22 + $0x14c] sm:$0xf]  ;;  %v12245_v63 = vor.u32 %v13450_v58, %v12242_v47 }
 0x4df   : > { %8314 = vmatpush.bf16.msrb.mxu1 %v12481_v61  ;;  %8327 = vmatpush.bf16.msrb.mxu2 %v12609_v25  ;;  %v13362_v61 = vld [vmem:[%s14657_s22 + $0xac] sm:$0xf]  ;;  %v11890_v25 = vld [vmem:[%s14657_s22 + $0xb8] sm:$0xf0] }
 0x4e0   : > { %8340 = vmatpush.bf16.msrb.mxu3 %v12737_v26  ;;  %v13426_v26 = vld [vmem:[%s14657_s22 + $0x2ac] sm:$0xf]  ;;  %v11893_v29 = vor.u32 %v13362_v61, %v11890_v25  ;;  %v11970_v19 = vld [vmem:[%s14657_s22 + $0x158] sm:$0xf0] }
 0x4e1   : > { %8302 = vmatpush.bf16.msrb.mxu0 %v12337_v30  ;;  %v12149_v30 = vor.u32 %v13426_v26, %v12146_v27  ;;  %v13346_v26 = vld [vmem:[%s14657_s22 + $0x2c] sm:$0xf]  ;;  %v11826_v27 = vld [vmem:[%s14657_s22 + $0x38] sm:$0xf0] }
 0x4e2   : > { %v11938_v34 = vld [vmem:[%s14657_s22 + $0x118] sm:$0xf0]  ;;  %v13406_v11 = vld [vmem:[%s14657_s22 + $0x20c] sm:$0xf] }
 0x4e3   : > { %8315 = vmatpush.bf16.msrb.mxu1 %v12465_v4  ;;  %8328 = vmatpush.bf16.msrb.mxu2 %v12593_v28  ;;  %v13390_v4 = vld [vmem:[%s14657_s22 + $0x18c] sm:$0xf]  ;;  %v12277_v28 = vor.u32 %v13458_v62, %v12274_v2 }
 0x4e4   : > { %8341 = vmatpush.bf16.msrb.mxu3 %v12721_v41  ;;  %v12005_v44 = vor.u32 %v13390_v4, %v12002_v36  ;;  %v13378_v62 = vld [vmem:[%s14657_s22 + $0x12c] sm:$0xf]  ;;  %v11829_v4 = vor.u32 %v13346_v26, %v11826_v27  ;;  %v11810_v36 = vld [vmem:[%s14657_s22 + $0x18] sm:$0xf0] }
 0x4e5   : > { %8303 = vmatpush.bf16.msrb.mxu0 %v12321_v37  ;;  %v8097_v41 = vpop.f32.mrf.mxu0  ;;  %v11858_v37 = vld [vmem:[%s14657_s22 + $0x78] sm:$0xf0]  ;;  %v13522_v26 = vld [vmem:[%s14657_s22 + $0x5ac] sm:$0xf] }
 0x4e6   : > { %v8098_v22 = vadd.f32 %v8097_v41, %v16856_v24  ;;  %v12114_v24 = vld [vmem:[%s14657_s22 + $0x278] sm:$0xf0]  ;;  %v13374_v41 = vld [vmem:[%s14657_s22 + $0x10c] sm:$0xf] }
 0x4e7   : > { %8316 = vmatpush.bf16.msrb.mxu1 %v12449_v38  ;;  %8329 = vmatpush.bf16.msrb.mxu2 %v12577_v0  ;;  %v8110_v42 = vpop.f32.mrf.mxu1  ;;  %v11986_v38 = vld [vmem:[%s14657_s22 + $0x178] sm:$0xf0]  ;;  %v13418_v0 = vld [vmem:[%s14657_s22 + $0x26c] sm:$0xf]  ;;  %v11941_v58 = vor.u32 %v13374_v41, %v11938_v34 }
 0x4e8   : > { %8342 = vmatpush.bf16.msrb.mxu3 %v12705_v48  ;;  %8304 = vmatmul.bf16.vlgmr.msrb.gmra.mxu0 %v16594_v51  ;;  %v8111_v32 = vadd.f32 %v8110_v42, %v8098_v22  ;;  %v11861_v48 = vor.u32 %v13354_v45, %v11858_v37  ;;  %v12213_v22 = vor.u32 %v13442_v33, %v12210_v35  ;;  %v13438_v42 = vld [vmem:[%s14657_s22 + $0x30c] sm:$0xf]  ;;  %v12434_v37 = vld [vmem:[%s14657_s22 + $0x4f8] sm:$0xf0] }
 0x4e9   : > { %8348 = vmatpush.bf16.msra.mxu0 %v11925_v49  ;;  %v11989_v49 = vor.u32 %v13386_v8, %v11986_v38  ;;  %v13498_v45 = vld [vmem:[%s14657_s22 + $0x4ec] sm:$0xf]  ;;  %v12562_v38 = vld [vmem:[%s14657_s22 + $0x5f8] sm:$0xf0] }
 0x4ea   : > { %8330 = vmatmul.bf16.vlgmr.msrb.gmra.mxu2 %v16599_v53  ;;  %8317 = vmatmul.bf16.vlgmr.msrb.gmra.mxu1 %v16601_v7  ;;  %v13530_v8 = vld [vmem:[%s14657_s22 + $0x5ec] sm:$0xf]  ;;  %v12770_v34 = vld [vmem:[%s14657_s22 + $0x798] sm:$0xf0] }
 0x4eb   : > { %8361 = vmatpush.bf16.msra.mxu1 %v12053_v59  ;;  %8374 = vmatpush.bf16.msra.mxu2 %v12181_v52  ;;  %v12117_v59 = vor.u32 %v13418_v0, %v12114_v24  ;;  %v13350_v52 = vld [vmem:[%s14657_s22 + $0x4c] sm:$0xf]  ;;  %v12690_v24 = vld [vmem:[%s14657_s22 + $0x6f8] sm:$0xf0] }
 0x4ec   : > { %8387 = vmatpush.bf16.msra.mxu3 %v12309_v9  ;;  %v11845_v61 = vor.u32 %v13350_v52, %v11842_v43  ;;  %v13562_v0 = vld [vmem:[%s14657_s22 + $0x6ec] sm:$0xf]  ;;  %v12437_v52 = vor.u32 %v13498_v45, %v12434_v37  ;;  %v12565_v43 = vor.u32 %v13530_v8, %v12562_v38  ;;  %v12370_v45 = vld [vmem:[%s14657_s22 + $0x478] sm:$0xf0] }
 0x4ed   : > { %8343 = vmatmul.bf16.vlgmr.msrb.gmra.mxu3 %v16605_v12  ;;  %8349 = vmatpush.bf16.msra.mxu0 %v11909_v21  ;;  %v8123_v9 = vpop.f32.mrf.mxu2  ;;  %v13446_v21 = vld [vmem:[%s14657_s22 + $0x34c] sm:$0xf]  ;;  %v12626_v38 = vld [vmem:[%s14657_s22 + $0x678] sm:$0xf0] }
 0x4ee   : > { %v8124_v10 = vadd.f32 %v8123_v9, %v8111_v32  ;;  %v12418_v9 = vld [vmem:[%s14657_s22 + $0x4d8] sm:$0xf0]  ;;  %v13582_v41 = vld [vmem:[%s14657_s22 + $0x78c] sm:$0xf] }
 0x4ef   : > { %8362 = vmatpush.bf16.msra.mxu1 %v12037_v40  ;;  %8375 = vmatpush.bf16.msra.mxu2 %v12165_v23  ;;  %v12226_v40 = vld [vmem:[%s14657_s22 + $0x358] sm:$0xf0]  ;;  %v8099_v23 = vpop.f32.mrf.mxu0  ;;  %v8112_v25 = vpop.f32.mrf.mxu1  ;;  %v13514_v37 = vld [vmem:[%s14657_s22 + $0x56c] sm:$0xf]  ;;  %v12773_v8 = vor.u32 %v13582_v41, %v12770_v34 }
 0x4f0   : > { %8388 = vmatpush.bf16.msra.mxu3 %v12293_v57  ;;  %v8136_v20 = vpop.f32.mrf.mxu3  ;;  %v11973_v57 = vor.u32 %v13382_v3, %v11970_v19  ;;  %v12229_v2 = vor.u32 %v13446_v21, %v12226_v40  ;;  %v12693_v3 = vor.u32 %v13562_v0, %v12690_v24  ;;  %v13526_v19 = vld [vmem:[%s14657_s22 + $0x5cc] sm:$0xf]  ;;  %v12802_v40 = vld [vmem:[%s14657_s22 + $0x7d8] sm:$0xf0] }
 0x4f1   : > { %8350 = vmatpush.bf16.msra.mxu0 %v11893_v29  ;;  %v16927_v18 = vadd.f32 %v8136_v20, %v8124_v10  ;;  %v11954_v29 = vld [vmem:[%s14657_s22 + $0x138] sm:$0xf0]  ;;  %v13558_v10 = vld [vmem:[%s14657_s22 + $0x6cc] sm:$0xf] }
 0x4f2   : > { %v11957_v50 = vor.u32 %v13378_v62, %v11954_v29  ;;  %v12674_v20 = vld [vmem:[%s14657_s22 + $0x6d8] sm:$0xf0]  ;;  %v13590_v21 = vld [vmem:[%s14657_s22 + $0x7cc] sm:$0xf] }
 0x4f3   : > { %8363 = vmatpush.bf16.msra.mxu1 %v12021_v60  ;;  %8376 = vmatpush.bf16.msra.mxu2 %v12149_v30  ;;  %v13410_v60 = vld [vmem:[%s14657_s22 + $0x22c] sm:$0xf]  ;;  %v12082_v30 = vld [vmem:[%s14657_s22 + $0x238] sm:$0xf0]  ;;  %v12677_v25 = vor.u32 %v13558_v10, %v12674_v20  ;;  %v12805_v27 = vor.u32 %v13590_v21, %v12802_v40 }
 0x4f4   : > { %8389 = vmatpush.bf16.msra.mxu3 %v12277_v28  ;;  %v13342_v28 = vld [vmem:[%s14657_s22 + $0xc] sm:$0xf]  ;;  %v12085_v39 = vor.u32 %v13410_v60, %v12082_v30  ;;  %v12530_v62 = vld [vmem:[%s14657_s22 + $0x5b8] sm:$0xf0] }
 0x4f5   : > { %8351 = vmatpush.bf16.msra.mxu0 %v11877_v31  ;;  %v12066_v31 = vld [vmem:[%s14657_s22 + $0x218] sm:$0xf0]  ;;  %v11813_v32 = vor.u32 %v13342_v28, %v11810_v36  ;;  %v13586_v60 = vld [vmem:[%s14657_s22 + $0x7ac] sm:$0xf]  ;;  %v12533_v33 = vor.u32 %v13522_v26, %v12530_v62 }
 0x4f6   : > { %v12069_v47 = vor.u32 %v13406_v11, %v12066_v31  ;;  %v12658_v29 = vld [vmem:[%s14657_s22 + $0x6b8] sm:$0xf0]  ;;  %v13578_v0 = vld [vmem:[%s14657_s22 + $0x76c] sm:$0xf] }
 0x4f7   : > { %8364 = vmatpush.bf16.msra.mxu1 %v12005_v44  ;;  %8377 = vmatpush.bf16.msra.mxu2 %v12133_v1  ;;  %v12194_v44 = vld [vmem:[%s14657_s22 + $0x318] sm:$0xf0]  ;;  %v8125_v1 = vpop.f32.mrf.mxu2  ;;  %v13574_v10 = vld [vmem:[%s14657_s22 + $0x74c] sm:$0xf] }
 0x4f8   : > { %8390 = vmatpush.bf16.msra.mxu3 %v12261_v6  ;;  %v8138_v6 = vpop.f32.mrf.mxu3  ;;  %v12786_v30 = vld [vmem:[%s14657_s22 + $0x7b8] sm:$0xf0]  ;;  %v13482_v1 = vld [vmem:[%s14657_s22 + $0x46c] sm:$0xf] }
 0x4f9   : > { %8352 = vmatpush.bf16.msra.mxu0 %v11861_v48  ;;  %v13594_v48 = vld [vmem:[%s14657_s22 + $0x7ec] sm:$0xf]  ;;  %v12386_v28 = vld [vmem:[%s14657_s22 + $0x498] sm:$0xf0] }
 0x4fa   : > { %v12514_v36 = vld [vmem:[%s14657_s22 + $0x598] sm:$0xf0] }
 0x4fb   : > { %8365 = vmatpush.bf16.msra.mxu1 %v11989_v49  ;;  %8378 = vmatpush.bf16.msra.mxu2 %v12117_v59  ;;  %v12818_v49 = vld [vmem:[%s14657_s22 + $0x7f8] sm:$0xf0]  ;;  %v12197_v59 = vor.u32 %v13438_v42, %v12194_v44 }
 0x4fc   : > { %8391 = vmatpush.bf16.msra.mxu3 %v12245_v63  ;;  %v13494_v63 = vld [vmem:[%s14657_s22 + $0x4cc] sm:$0xf]  ;;  %v12821_v15 = vor.u32 %v13594_v48, %v12818_v49  ;;  %v12754_v24 = vld [vmem:[%s14657_s22 + $0x778] sm:$0xf0] }
 0x4fd   : > { %8353 = vmatpush.bf16.msra.mxu0 %v11845_v61  ;;  %v12421_v23 = vor.u32 %v13494_v63, %v12418_v9  ;;  %v12549_v61 = vor.u32 %v13526_v19, %v12546_v5  ;;  %v13478_v49 = vld [vmem:[%s14657_s22 + $0x44c] sm:$0xf]  ;;  %v12482_v63 = vld [vmem:[%s14657_s22 + $0x558] sm:$0xf0] }
 0x4fe   : > { %v13542_v9 = vld [vmem:[%s14657_s22 + $0x64c] sm:$0xf]  ;;  %v12610_v19 = vld [vmem:[%s14657_s22 + $0x658] sm:$0xf0] }
 0x4ff   : > { %8366 = vmatpush.bf16.msra.mxu1 %v11973_v57  ;;  %8379 = vmatpush.bf16.msra.mxu2 %v12101_v46  ;;  %v13490_v57 = vld [vmem:[%s14657_s22 + $0x4ac] sm:$0xf]  ;;  %v12402_v46 = vld [vmem:[%s14657_s22 + $0x4b8] sm:$0xf0] }
 0x500   : > { %8392 = vmatpush.bf16.msra.mxu3 %v12229_v2  ;;  %v13554_v2 = vld [vmem:[%s14657_s22 + $0x6ac] sm:$0xf]  ;;  %v12738_v20 = vld [vmem:[%s14657_s22 + $0x758] sm:$0xf0] }
 0x501   : > { %8354 = vmatpush.bf16.msra.mxu0 %v11829_v4  ;;  %v12661_v35 = vor.u32 %v13554_v2, %v12658_v29  ;;  %v13486_v4 = vld [vmem:[%s14657_s22 + $0x48c] sm:$0xf]  ;;  %v12338_v26 = vld [vmem:[%s14657_s22 + $0x438] sm:$0xf0]  ;;  %v12741_v62 = vor.u32 %v13574_v10, %v12738_v20 }
 0x502   : > { %v12466_v2 = vld [vmem:[%s14657_s22 + $0x538] sm:$0xf0]  ;;  %v13538_v29 = vld [vmem:[%s14657_s22 + $0x62c] sm:$0xf] }
 0x503   : > { %8367 = vmatpush.bf16.msra.mxu1 %v11957_v50  ;;  %8380 = vmatpush.bf16.msra.mxu2 %v12085_v39  ;;  %v13550_v50 = vld [vmem:[%s14657_s22 + $0x68c] sm:$0xf]  ;;  %v12642_v39 = vld [vmem:[%s14657_s22 + $0x698] sm:$0xf0] }
 0x504   : > { %8393 = vmatpush.bf16.msra.mxu3 %v12213_v22  ;;  %v12389_v22 = vor.u32 %v13486_v4, %v12386_v28  ;;  %v12645_v44 = vor.u32 %v13550_v50, %v12642_v39  ;;  %v12450_v39 = vld [vmem:[%s14657_s22 + $0x518] sm:$0xf0] }
 0x505   : > { %8355 = vmatpush.bf16.msra.mxu0 %v11813_v32  ;;  %v12498_v32 = vld [vmem:[%s14657_s22 + $0x578] sm:$0xf0] }
 0x506   : > { %v12578_v41 = vld [vmem:[%s14657_s22 + $0x618] sm:$0xf0] }
 0x507   : > { %8368 = vmatpush.bf16.msra.mxu1 %v11941_v58  ;;  %8381 = vmatpush.bf16.msra.mxu2 %v12069_v47  ;;  %v8162_v31 = vpop.f32.mrf.mxu1  ;;  %v12373_v58 = vor.u32 %v13482_v1, %v12370_v45  ;;  %v12501_v47 = vor.u32 %v13514_v37, %v12498_v32 }
 0x508   : > { %8394 = vmatpush.bf16.msra.mxu3 %v12197_v59  ;;  %8356 = vmatmul.bf16.vlgmr.msra.gmra.mxu0 %v16516_v54  ;;  %v12405_v54 = vor.u32 %v13490_v57, %v12402_v46  ;;  %v12354_v59 = vld [vmem:[%s14657_s22 + $0x458] sm:$0xf0]  ;;  %v12613_v57 = vor.u32 %v13542_v9, %v12610_v19  ;;  %v13474_v46 = vld [vmem:[%s14657_s22 + $0x42c] sm:$0xf]  ;;  %v8476_v9 = vld [vmem:[%s17030_s28 + $0x8] sm:$0xff] }
 0x509   : > { %8400 = vmatpush.bf16.msrb.mxu0 %v12437_v52  ;;  %v13510_v52 = vld [vmem:[%s14657_s22 + $0x54c] sm:$0xf]  ;;  %v12357_v40 = vor.u32 %v13478_v49, %v12354_v59 }
 0x50a   : > { %8382 = vmatmul.bf16.vlgmr.msra.gmra.mxu2 %v16521_v55  ;;  %8369 = vmatmul.bf16.vlgmr.msra.gmra.mxu1 %v16523_v56  ;;  %v13518_v55 = vld [vmem:[%s14657_s22 + $0x58c] sm:$0xf]  ;;  %v12789_v56 = vor.u32 %v13586_v60, %v12786_v30  ;;  %v12594_v60 = vld [vmem:[%s14657_s22 + $0x638] sm:$0xf0] }
 0x50b   : > { %8413 = vmatpush.bf16.msrb.mxu1 %v12565_v43  ;;  %8426 = vmatpush.bf16.msrb.mxu2 %v12693_v3  ;;  %v12517_v42 = vor.u32 %v13518_v55, %v12514_v36  ;;  %v12757_v43 = vor.u32 %v13578_v0, %v12754_v24  ;;  %v13570_v30 = vld [vmem:[%s14657_s22 + $0x72c] sm:$0xf]  ;;  %v12597_v28 = vor.u32 %v13538_v29, %v12594_v60 }
 0x50c   : > { %8439 = vmatpush.bf16.msrb.mxu3 %v12821_v15  ;;  %v13470_v55 = vld [vmem:[%s14657_s22 + $0x40c] sm:$0xf] }
 0x50d   : > { %8395 = vmatmul.bf16.vlgmr.msra.gmra.mxu3 %v16527_v13  ;;  %8401 = vmatpush.bf16.msrb.mxu0 %v12421_v23  ;;  %v8149_v13 = vpop.f32.mrf.mxu0  ;;  %v8175_v3 = vpop.f32.mrf.mxu2  ;;  %v13502_v36 = vld [vmem:[%s14657_s22 + $0x50c] sm:$0xf] }
 0x50e   : > { %v8150_v11 = vadd.f32 %v8149_v13, %v16487_v17  ;;  %v13546_v17 = vld [vmem:[%s14657_s22 + $0x66c] sm:$0xf]  ;;  %v12453_v1 = vor.u32 %v13502_v36, %v12450_v39 }
 0x50f   : > { %8414 = vmatpush.bf16.msrb.mxu1 %v12549_v61  ;;  %8427 = vmatpush.bf16.msrb.mxu2 %v12677_v25  ;;  %v12629_v48 = vor.u32 %v13546_v17, %v12626_v38  ;;  %v8164_v23 = vpop.f32.mrf.mxu1  ;;  %v12485_v25 = vor.u32 %v13510_v52, %v12482_v63  ;;  %v13534_v13 = vld [vmem:[%s14657_s22 + $0x60c] sm:$0xf] }
 0x510   : > { %8440 = vmatpush.bf16.msrb.mxu3 %v12805_v27  ;;  %v8163_v6 = vadd.f32 %v8162_v31, %v8150_v11  ;;  %v8188_v5 = vpop.f32.mrf.mxu3  ;;  %v13506_v27 = vld [vmem:[%s14657_s22 + $0x52c] sm:$0xf]  ;;  %v12581_v45 = vor.u32 %v13534_v13, %v12578_v41 }
 0x511   : > { %8402 = vmatpush.bf16.msrb.mxu0 %v12405_v54  ;;  %v12722_v54 = vld [vmem:[%s14657_s22 + $0x738] sm:$0xf0]  ;;  %v12469_v4 = vor.u32 %v13506_v27, %v12466_v2  ;;  %v13566_v11 = vld [vmem:[%s14657_s22 + $0x70c] sm:$0xf]  ;;  %v8510_v2 = vld [vmem:[%s17040_s0 + $0x8] sm:$0xff] }
 0x512   : > { %v8176_v15 = vadd.f32 %v8175_v3, %v8163_v6  ;;  %v12725_v50 = vor.u32 %v13570_v30, %v12722_v54 }
 0x513   : > { %8415 = vmatpush.bf16.msrb.mxu1 %v12533_v33  ;;  %8428 = vmatpush.bf16.msrb.mxu2 %v12661_v35  ;;  %v17011_v33 = vld [vmem:[%s8454_s26] sm:$0xf]  ;;  %v12341_v35 = vor.u32 %v13474_v46, %v12338_v26 }
 0x514   : > { %8441 = vmatpush.bf16.msrb.mxu3 %v12789_v56  ;;  %v8189_v61 = vadd.f32 %v8188_v5, %v8176_v15  ;;  %v12322_v56 = vld [vmem:[%s14657_s22 + $0x418] sm:$0xf0] }
 0x515   : > { %8403 = vmatpush.bf16.msrb.mxu0 %v12389_v22  ;;  %v8151_v21 = vpop.f32.mrf.mxu0  ;;  %v8177_v34 = vpop.f32.mrf.mxu2  ;;  %v12706_v22 = vld [vmem:[%s14657_s22 + $0x718] sm:$0xf0] }
 0x516   : > { %v12709_v37 = vor.u32 %v13566_v11, %v12706_v22  ;;  %v8509_v46 = vld [vmem:[%s17040_s0] sm:$0xff] }
 0x517   : > { %8416 = vmatpush.bf16.msrb.mxu1 %v12517_v42  ;;  %8429 = vmatpush.bf16.msrb.mxu2 %v12645_v44  ;;  %v12325_v42 = vor.u32 %v13470_v55, %v12322_v56  ;;  %v8457_v44 = vperm.slane %v17011_v33, 0 }
 0x518   : > { %8442 = vmatpush.bf16.msrb.mxu3 %v12773_v8  ;;  %v8190_v31 = vpop.f32.mrf.mxu3 }
 0x519   : > { %8404 = vmatpush.bf16.msrb.mxu0 %v12373_v58  ;;  %v8465_v8 = vadd.f32 %v8457_v44, %v16927_v18  ;;  %v8475_v18 = vld [vmem:[%s17030_s28] sm:$0xff] }
 0x51b   : > { %8417 = vmatpush.bf16.msrb.mxu1 %v12501_v47  ;;  %8430 = vmatpush.bf16.msrb.mxu2 %v12629_v48  ;;  %14025 = vtanh.f32 %v8465_v8  ;;  %v8459_v8 = vperm.slane %v17011_v33, 2 }
 0x51c   : > { %8443 = vmatpush.bf16.msrb.mxu3 %v12757_v43 }
 0x51d   : > { %8405 = vmatpush.bf16.msrb.mxu0 %v12357_v40 }
 0x51f   : > { %8418 = vmatpush.bf16.msrb.mxu1 %v12485_v25  ;;  %8431 = vmatpush.bf16.msrb.mxu2 %v12613_v57  ;;  %v17036_v25 = vld [vmem:[%s8517_s8] sm:$0xf] }
 0x520   : > { %8444 = vmatpush.bf16.msrb.mxu3 %v12741_v62  ;;  %v8520_v29 = vperm.slane %v17036_v25, 0 }
 0x521   : > { %8406 = vmatpush.bf16.msrb.mxu0 %v12341_v35  ;;  %v14026_v38 = vpop.eup %14025  ;;  %v8521_v35 = vperm.slane %v17036_v25, 1 }
 0x523   : > { %8419 = vmatpush.bf16.msrb.mxu1 %v12469_v4  ;;  %8432 = vmatpush.bf16.msrb.mxu2 %v12597_v28 }
 0x524   : > { %8445 = vmatpush.bf16.msrb.mxu3 %v12725_v50 }
 0x525   : > { %8407 = vmatpush.bf16.msrb.mxu0 %v12325_v42  ;;  %v8201_v6 = vpop.f32.mrf.mxu0 }
 0x526   : > { %v8202_v32 = vadd.f32 %v8201_v6, %v8189_v61 }
 0x527   : > { %8420 = vmatpush.bf16.msrb.mxu1 %v12453_v1  ;;  %8433 = vmatpush.bf16.msrb.mxu2 %v12581_v45  ;;  %v8214_v17 = vpop.f32.mrf.mxu1 }
 0x528   : > { %8446 = vmatpush.bf16.msrb.mxu3 %v12709_v37  ;;  %8408 = vmatmul.bf16.vlgmr.msrb.gmra.mxu0 %v16594_v51  ;;  %v8215_v0 = vadd.f32 %v8214_v17, %v8202_v32  ;;  %v8479_v51 = vmul.f32 %v14026_v38, %v8475_v18 }
 0x52a   : > { %8421 = vmatmul.bf16.vlgmr.msrb.gmra.mxu1 %v16601_v7  ;;  %8434 = vmatmul.bf16.vlgmr.msrb.gmra.mxu2 %v16599_v53  ;;  %v8458_v53 = vperm.slane %v17011_v33, 1  ;;  %v8483_v48 = vrot.slane %v8479_v51, 4 }
 0x52b   : > { %8447 = vmatmul.bf16.vlgmr.msrb.gmra.mxu3 %v16605_v12 }
 0x52c   : > { %v8484_v52 = vadd.f32 %v8483_v48, %v8479_v51  ;;  %v8477_v51 = vld [vmem:[%s17030_s28 + $0x10] sm:$0xff] }
 0x52d   : > { %v8227_v24 = vpop.f32.mrf.mxu2  ;;  %v8203_v47 = vpop.f32.mrf.mxu0 }
 0x52e   : > { %v8228_v7 = vadd.f32 %v8227_v24, %v8215_v0  ;;  %v8485_v63 = vrot.slane %v8484_v52, 2 }
 0x52f   : > { %v8216_v12 = vpop.f32.mrf.mxu1 }
 0x530   : > { %v8240_v58 = vpop.f32.mrf.mxu3  ;;  %v8486_v5 = vadd.f32 %v8485_v63, %v8484_v52  ;;  %v8511_v52 = vld [vmem:[%s17040_s0 + $0x10] sm:$0xff] }
 0x531   : > { %v8241_v49 = vadd.f32 %v8240_v58, %v8228_v7 }
 0x532   : > { %v8487_v21 = vrot.slane %v8486_v5, 1 }
 0x533   : > { %v8466_v59 = vadd.f32 %v8458_v53, %v8241_v49 }
 0x534   : > { %v8488_v23 = vadd.f32 %v8487_v21, %v8486_v5 }
 0x535   : > { %14027 = vtanh.f32 %v8466_v59  ;;  %v8229_v43 = vpop.f32.mrf.mxu2 }
 0x536   : > { %v8513_v54 = vmul.f32 %v8509_v46, %v8488_v23 }
 0x538   : > { %v8242_v3 = vpop.f32.mrf.mxu3  ;;  %v8528_v55 = vmul.f32 %v8520_v29, %v8513_v54  ;;  %v8460_v54 = vperm.slane %v17011_v33, 3  ;;  %v8523_v33 = vperm.slane %v17036_v25, 3 }
 0x539   : > { %v8522_v3 = vperm.slane %v17036_v25, 2 }
 0x53b   : > { %v14028_v19 = vpop.eup %14027 }
 0x53c   : > { %v8480_v15 = vmul.f32 %v14028_v19, %v8476_v9 }
 0x53e   : > { %v8489_v10 = vrot.slane %v8480_v15, 4 }
 0x540   : > { %v8490_v20 = vadd.f32 %v8489_v10, %v8480_v15 }
 0x542   : > { %v8491_v40 = vrot.slane %v8490_v20, 2 }
 0x544   : > { %v8492_v61 = vadd.f32 %v8491_v40, %v8490_v20 }
 0x545   : > { %v8253_v57 = vpop.f32.mrf.mxu0 }
 0x546   : > { %v8254_v26 = vadd.f32 %v8253_v57, %v16644_v16  ;;  %v8493_v62 = vrot.slane %v8492_v61, 1 }
 0x547   : > { %v8266_v27 = vpop.f32.mrf.mxu1 }
 0x548   : > { %v8267_v60 = vadd.f32 %v8266_v27, %v8254_v26  ;;  %v8494_v30 = vadd.f32 %v8493_v62, %v8492_v61 }
 0x54a   : > { %v8514_v4 = vmul.f32 %v8510_v2, %v8494_v30 }
 0x54c   : > { %v8529_v56 = vmul.f32 %v8521_v35, %v8514_v4 }
 0x54d   : > { %v8279_v28 = vpop.f32.mrf.mxu2  ;;  %v8255_v39 = vpop.f32.mrf.mxu0 }
 0x54e   : > { %v8280_v36 = vadd.f32 %v8279_v28, %v8267_v60  ;;  %v8532_v41 = vadd.f32 %v8529_v56, %v8528_v55 }
 0x54f   : > { %v8268_v13 = vpop.f32.mrf.mxu1 }
 0x550   : > { %v8292_v50 = vpop.f32.mrf.mxu3 }
 0x551   : > { %v8293_v16 = vadd.f32 %v8292_v50, %v8280_v36  ;;  %v8478_v36 = vld [vmem:[%s17030_s28 + $0x18] sm:$0xff] }
 0x555   : > { %v8281_v34 = vpop.f32.mrf.mxu2 }
 0x558   : > { %v8294_v11 = vpop.f32.mrf.mxu3 }
 0x565   : > { %v8305_v22 = vpop.f32.mrf.mxu0 }
 0x566   : > { %v8306_v42 = vadd.f32 %v8305_v22, %v8293_v16  ;;  %v8512_v22 = vld [vmem:[%s17040_s0 + $0x18] sm:$0xff] }
 0x567   : > { %v8318_v31 = vpop.f32.mrf.mxu1 }
 0x568   : > { %v8319_v44 = vadd.f32 %v8318_v31, %v8306_v42 }
 0x56d   : > { %v8331_v1 = vpop.f32.mrf.mxu2  ;;  %v8307_v6 = vpop.f32.mrf.mxu0 }
 0x56e   : > { %v8332_v45 = vadd.f32 %v8331_v1, %v8319_v44 }
 0x56f   : > { %v8320_v32 = vpop.f32.mrf.mxu1 }
 0x570   : > { %v8344_v37 = vpop.f32.mrf.mxu3 }
 0x571   : > { %v8345_v17 = vadd.f32 %v8344_v37, %v8332_v45 }
 0x573   : > { %v8467_v38 = vadd.f32 %v8459_v8, %v8345_v17 }
 0x575   : > { %14029 = vtanh.f32 %v8467_v38  ;;  %v8333_v18 = vpop.f32.mrf.mxu2 }
 0x578   : > { %v8346_v0 = vpop.f32.mrf.mxu3 }
 0x57b   : > { %v14030_v24 = vpop.eup %14029 }
 0x57c   : > { %v8481_v7 = vmul.f32 %v14030_v24, %v8477_v51 }
 0x57e   : > { %v8495_v58 = vrot.slane %v8481_v7, 4 }
 0x580   : > { %v8496_v53 = vadd.f32 %v8495_v58, %v8481_v7 }
 0x582   : > { %v8497_v47 = vrot.slane %v8496_v53, 2 }
 0x584   : > { %v8498_v48 = vadd.f32 %v8497_v47, %v8496_v53 }
 0x585   : > { %v8357_v12 = vpop.f32.mrf.mxu0 }
 0x586   : > { %v8499_v59 = vrot.slane %v8498_v48, 1  ;;  %v8358_v23 = vadd.f32 %v8357_v12, %v16785_v14 }
 0x587   : > { %v8370_v49 = vpop.f32.mrf.mxu1 }
 0x588   : > { %v8500_v43 = vadd.f32 %v8499_v59, %v8498_v48  ;;  %v8371_v61 = vadd.f32 %v8370_v49, %v8358_v23 }
 0x58a   : > { %v8515_v63 = vmul.f32 %v8511_v52, %v8500_v43 }
 0x58c   : > { %v8530_v19 = vmul.f32 %v8522_v3, %v8515_v63 }
 0x58d   : > { %v8383_v9 = vpop.f32.mrf.mxu2  ;;  %v8359_v5 = vpop.f32.mrf.mxu0 }
 0x58e   : > { %v8533_v20 = vadd.f32 %v8532_v41, %v8530_v19  ;;  %v8384_v57 = vadd.f32 %v8383_v9, %v8371_v61 }
 0x58f   : > { %v8372_v10 = vpop.f32.mrf.mxu1 }
 0x590   : > { %v8396_v15 = vpop.f32.mrf.mxu3 }
 0x591   : > { %v8397_v46 = vadd.f32 %v8396_v15, %v8384_v57 }
 0x595   : > { %v8385_v21 = vpop.f32.mrf.mxu2 }
 0x598   : > { %v8398_v40 = vpop.f32.mrf.mxu3 }
 0x5a5   : > { %v8409_v26 = vpop.f32.mrf.mxu0 }
 0x5a6   : > { %v8410_v62 = vadd.f32 %v8409_v26, %v8397_v46 }
 0x5a7   : > { %v8422_v27 = vpop.f32.mrf.mxu1 }
 0x5a8   : > { %v8423_v2 = vadd.f32 %v8422_v27, %v8410_v62 }
 0x5ad   : > { %v8435_v29 = vpop.f32.mrf.mxu2  ;;  %v8411_v35 = vpop.f32.mrf.mxu0 }
 0x5ae   : > { %v8436_v60 = vadd.f32 %v8435_v29, %v8423_v2  ;;  %v8448_v30 = vpop.f32.mrf.mxu3 }
 0x5af   : > { %v8424_v4 = vpop.f32.mrf.mxu1 }
 0x5b0   : > { %v8449_v28 = vadd.f32 %v8448_v30, %v8436_v60 }
 0x5b2   : > { %v8468_v55 = vadd.f32 %v8460_v54, %v8449_v28 }
 0x5b4   : > { %14031 = vtanh.f32 %v8468_v55 }
 0x5b5   : > { %v8437_v14 = vpop.f32.mrf.mxu2 }
 0x5b6   : > { %v8450_v56 = vpop.f32.mrf.mxu3 }
 0x5ba   : > { %v14032_v50 = vpop.eup %14031 }
 0x5bb   : > { %v8482_v39 = vmul.f32 %v14032_v50, %v8478_v36 }
 0x5bd   : > { %v8501_v13 = vrot.slane %v8482_v39, 4 }
 0x5bf   : > { %v8502_v41 = vadd.f32 %v8501_v13, %v8482_v39 }
 0x5c1   : > { %v8503_v16 = vrot.slane %v8502_v41, 2 }
 0x5c3   : > { %v8504_v34 = vadd.f32 %v8503_v16, %v8502_v41 }
 0x5c5   : > { %v8505_v11 = vrot.slane %v8504_v34, 1 }
 0x5c7   : > { %v8506_v31 = vadd.f32 %v8505_v11, %v8504_v34 }
 0x5c9   : > { %v8516_v42 = vmul.f32 %v8512_v22, %v8506_v31 }
 0x5cb   : > { %v8531_v44 = vmul.f32 %v8523_v33, %v8516_v42 }
 0x5cd   : > { %v8534_v1 = vadd.f32 %v8533_v20, %v8531_v44 }
 0x5cf   : > { %8535 = vadd.xlane.f32.xlu0 %v8534_v1 }
 0x63e   : > { %8540 = sbr.rel (%p12824_p10) target bundleno = 1605 (0x645), region = 100 }
 0x642   : > { %v8536_v45 = vpop.xlane.xlu0 %8535 }
 0x643   : > { %vm8543_vm0 = vcmask 7168   ;;  %v8542_v37 = vstv %s8541_s30 }
 0x644   : > { %8544 = vst.msk [vmem:[%s17147_s2] sm:$0xff] %vm8543_vm0, %v8542_v37 }
 0x645 PF: > { %s17148_s21 = sld [smem:[#allocation34_spill]]  ;;  %vm8547_vm1 = vcmask 7168  }
 0x64b   : > { %v8545_v25 = vld [vmem:[%s17148_s21] sm:$0xff] }
 0x64c   : > { %v8546_v8 = vadd.f32 %v8545_v25, %v8536_v45 }
 0x64e   : > { %8548 = vst.msk [vmem:[%s17148_s21] sm:$0xff] %vm8547_vm1, %v8546_v8 }
 0x64f PF: > { %s29_s20 = sadd.s32 1, %s14387_s20   ;;  %s17149_s6 = sld [smem:[#allocation26_spill]] }
 0x650   : > { %p26_p11 = scmp.ge.s32.totalorder %s29_s20, 6   ;;  %s17150_s11 = smov %s14351_s12 }
 0x651   : > { %s17151_s12 = smov %s14355_s13  ;;  %s17152_s13 = smov %s14623_s9 }
 0x652   : > { %s17153_s14 = smov %s14363_s15  ;;  %s17154_s15 = smov %s14367_s16 }
 0x653   : > { %s17155_s16 = smov %s14595_s24  ;;  %s17156_s8 = smov %s14379_s18 }
 0x654   : > { %s17157_s17 = smov %s14383_s19  ;;  %s17158_s18 = smov %s17161_s10 }
 0x655   : > { %s17159_s19 = smov %s17149_s6  ;;  %28 = sbr.rel (!%p26_p11) target bundleno = 22 (0x16), region = 150 }
 0x65a   :  { %8560 = vsyncpa [#allocation5], 1 }
 0x65b   :  { %8562 = vsyncpa [#allocation5 + $0x1], 1 }
 0x65c   :  { %8563 = vsyncpa [#allocation7], 1 }
 0x65d   :  { %8564 = vsyncpa [#allocation10], 1 }
 0x65e   :  { %8566 = vsyncpa [#allocation10 + $0x1], 1 }
 0x65f   :  { %8567 = vsyncpa [#allocation13], 1 }
 0x660   :  { %8569 = vsyncpa [#allocation13 + $0x1], 1 }
 0x661   :  { %8570 = vsyncpa [#allocation16], 1 }

</bundles_post_ra>
